<compile_context>
chip_gen: v7x
topology: tpu7x:2x2x1
jax: 0.10.0
libtpu: 0.0.40
codegen_flags: <defaults>
</compile_context>

<pallas_src>
import functools

import jax
import jax.numpy as jnp
from jax import lax
from jax.experimental import pallas as pl
from jax.experimental.pallas import tpu as pltpu

F32 = jnp.float32
BF16 = jnp.bfloat16

FEAT_PAD = 128        # 35-d voxel features zero-padded to a lane-aligned K
HIDDEN = 256          # Fold / rebuild_map hidden dim
FOLD_STEP = 8
FACTOR = FOLD_STEP * FOLD_STEP  # 64
MISC_W = 128          # lane-dense packed head output width


# ----------------------------- fused Pallas kernel -----------------------------

def _fused_kernel(vf_ref, mask_ref, expq_ref, mm3_ref,
                  vtw_ref, vtb_ref, qe_ref, pdw_ref, pdb_ref,
                  ppw1_ref, ppb1_ref, ppw2_ref, ppb2_ref, ppw2t_ref, ppb2t_ref,
                  idw1_ref, idb1_ref, idw2_ref, idb2_ref,
                  rmwg_ref, rmwq_ref, rmwp_ref, rmb_ref,
                  rbw1_ref, rbb1_ref, rbw2_ref, rbb2_ref, clsw_ref, clsb_ref,
                  seed1_ref, f1wf_ref, f1w2_ref, f1b2_ref,
                  wbr_ref, f2wf_ref, f2b1_ref, f2w2_ref, f2b2_ref, f2w3t_ref, f2b3t_ref,
                  misc_ref, pts_ref, *, B, V, M, E):
    BM = B * M
    hd = HIDDEN

    # ---- voxel-transformer stand-in + masked max over voxels + proxy-decoder stand-in ----
    vf = vf_ref[...].reshape(B * V, FEAT_PAD)                                   # bf16
    ge = jnp.dot(vf, vtw_ref[...], preferred_element_type=F32) + vtb_ref[...]
    ge = jnp.maximum(ge, 0.0)
    ge = ge * mask_ref[...].reshape(B * V, 1)                                   # reference: feats*mask, then max
    ctx = jnp.max(ge.reshape(B, V, E), axis=1)                                  # (B, E)
    q_in = (ctx[:, None, :] + qe_ref[...]).reshape(BM, E).astype(BF16)
    qf = jnp.maximum(jnp.dot(q_in, pdw_ref[...], preferred_element_type=F32) + pdb_ref[...], 0.0)
    qfb = qf.astype(BF16)                                                       # (BM, E)

    # ---- plane_pred: both row-major ps and channel-major ps_t from one hidden layer ----
    hp = jnp.maximum(jnp.dot(qfb, ppw1_ref[...], preferred_element_type=F32) + ppb1_ref[...], 0.0)
    hpb = hp.astype(BF16)                                                       # (BM, 64)
    ps = jnp.dot(hpb, ppw2_ref[...], preferred_element_type=F32) + ppb2_ref[...]          # (BM, 3)
    ps_t = lax.dot_general(ppw2t_ref[...], hpb, (((1,), (1,)), ((), ())),
                           preferred_element_type=F32) + ppb2t_ref[...]                   # (3, BM)

    th = ps[:, 0:1]
    ph = ps[:, 1:2]
    rr = ps[:, 2:3]
    pcart = jnp.concatenate([jnp.sin(th) * jnp.cos(ph), jnp.sin(th) * jnp.sin(ph),
                             jnp.cos(th), -rr], axis=1)                         # (BM, 4)

    # ---- increase_dim (BN folded) + max over queries + reduce_map as split matmuls ----
    g = jnp.dot(qfb, idw1_ref[...], preferred_element_type=F32) + idb1_ref[...]
    g = jnp.where(g > 0, g, 0.2 * g)                                            # LeakyReLU(0.2)
    g = jnp.dot(g.astype(BF16), idw2_ref[...], preferred_element_type=F32) + idb2_ref[...]  # (BM, 1024)
    gmax = jnp.max(g.reshape(B, M, 1024), axis=1)                               # (B, 1024)
    gpart = jnp.dot(gmax.astype(BF16), rmwg_ref[...], preferred_element_type=F32)           # (B, E)
    gfull = jnp.broadcast_to(gpart[:, None, :], (B, M, E)).reshape(BM, E)
    rf = (gfull
          + jnp.dot(qfb, rmwq_ref[...], preferred_element_type=F32)
          + jnp.dot(ps.astype(BF16), rmwp_ref[...], preferred_element_type=F32)
          + rmb_ref[...])                                                       # (BM, E)
    rfb = rf.astype(BF16)

    # ---- rebuild_map (BN folded) + classifier ----
    r1 = jnp.maximum(jnp.dot(rfb, rbw1_ref[...], preferred_element_type=F32) + rbb1_ref[...], 0.0)
    r2 = jnp.maximum(jnp.dot(r1.astype(BF16), rbw2_ref[...], preferred_element_type=F32) + rbb2_ref[...], 0.0)
    cls = jnp.dot(r2.astype(BF16), clsw_ref[...], preferred_element_type=F32) + clsb_ref[...]  # (BM, 2)

    # ---- pack qf | plane_cartesian | class logits into one lane-dense buffer ----
    pad = jnp.zeros((BM, MISC_W - E - 6), F32)
    misc_ref[...] = jnp.concatenate([qf, pcart, cls, pad], axis=1)              # (BM, 128)

    # ---- Fold decoder, batched over all B*M*64 rows (seed + bridge pre-folded) ----
    rf_exp = jnp.broadcast_to(rfb[:, None, :], (BM, FACTOR, E)).reshape(BM * FACTOR, E)
    seed_t = jnp.broadcast_to(seed1_ref[...][None, :, :], (BM, FACTOR, hd)).reshape(BM * FACTOR, hd)
    h1 = jnp.maximum(seed_t + jnp.dot(rf_exp, f1wf_ref[...], preferred_element_type=F32), 0.0)
    h1b = jnp.maximum(jnp.dot(h1.astype(BF16), f1w2_ref[...], preferred_element_type=F32)
                      + f1b2_ref[...], 0.0)                                     # (BM*64, hd/2)
    h2 = jnp.maximum(jnp.dot(h1b.astype(BF16), wbr_ref[...], preferred_element_type=F32)
                     + jnp.dot(rf_exp, f2wf_ref[...], preferred_element_type=F32)
                     + f2b1_ref[...], 0.0)                                      # (BM*64, hd)
    h2b = jnp.maximum(jnp.dot(h2.astype(BF16), f2w2_ref[...], preferred_element_type=F32)
                      + f2b2_ref[...], 0.0)                                     # (BM*64, hd/2)
    # last fold layer produced directly in the (channel, lane=(b,q,k)) orientation
    fd2_t = lax.dot_general(f2w3t_ref[...], h2b.astype(BF16), (((1,), (1,)), ((), ())),
                            preferred_element_type=F32) + f2b3t_ref[...]        # (2, BM*64)
    thp = fd2_t[0:1, :]
    php = fd2_t[1:2, :]

    # ---- spherical reconstruction (rows = m, lanes = (b, q, k)) ----
    # Reference broadcasting quirk: the plane used for output (b, q, m, k) is
    # plane_spherical[q, m] (requires B == num_queries). Reproduced with a constant
    # one-hot gather matmul (exact in f32).
    s_sel = jnp.broadcast_to(ps_t[:, None, :], (3, M, BM)).reshape(3 * M, BM) * mm3_ref[...]
    plane_all = jnp.dot(s_sel, expq_ref[...], preferred_element_type=F32)       # (3M, BM*64)
    theta = plane_all[0:M]
    phi = plane_all[M:2 * M]
    rpl = plane_all[2 * M:3 * M]

    sth = jnp.sin(thp)
    cth = jnp.cos(thp)
    nn = jnp.cos(php - phi) * sth * jnp.sin(theta) + cth * jnp.cos(theta)       # (M, BM*64)
    r2d = rpl / jnp.maximum(nn, 1e-6)
    pts_ref[0] = jnp.clip(r2d * sth * jnp.cos(php), -1.0, 1.0)
    pts_ref[1] = jnp.clip(r2d * sth * jnp.sin(php), -1.0, 1.0)
    pts_ref[2] = jnp.clip(r2d * cth, -1.0, 1.0)


# ----------------------------- pallas_call wrapper -----------------------------

def _full_spec(shape):
    nd = len(shape)
    return pl.BlockSpec(shape, lambda i, _nd=nd: (0,) * _nd)


def fused_forward(pp, vox_feat_padded, vox_mask, B, V, M, E):
    BM = B * M
    L = BM * FACTOR
    assert E + 6 <= MISC_W

    # constant gather operands for the fold-branch broadcasting quirk (jit constants)
    lane_q = (jnp.arange(L) // FACTOR) % M
    jidx = jnp.arange(BM)
    expq = (jidx[:, None] // M == lane_q[None, :]).astype(F32)                  # (BM, L)
    maskmod3 = jnp.tile((jidx[None, :] % M == jnp.arange(M)[:, None]).astype(F32), (3, 1))  # (3M, BM)

    args = (vox_feat_padded, vox_mask, expq, maskmod3,
            pp['vt_w'], pp['vt_b'], pp['query_embed'], pp['pd_w'], pp['pd_b'],
            pp['pp_w1'], pp['pp_b1'], pp['pp_w2'], pp['pp_b2'], pp['pp_w2t'], pp['pp_b2t'],
            pp['id_w1'], pp['id_b1'], pp['id_w2'], pp['id_b2'],
            pp['rm_w_g'], pp['rm_w_q'], pp['rm_w_p'], pp['rm_b'],
            pp['rb_w1'], pp['rb_b1'], pp['rb_w2'], pp['rb_b2'], pp['cls_w'], pp['cls_b'],
            pp['seed_bias1'], pp['f1_w1_feat'], pp['f1_w2'], pp['f1_b2'],
            pp['w_bridge'], pp['f2_w1_feat'], pp['f2_b1p'], pp['f2_w2'], pp['f2_b2'],
            pp['f2_w3t'], pp['f2_b3t'])

    out_shapes = (jax.ShapeDtypeStruct((BM, MISC_W), F32),     # qf | pcart | cls (packed)
                  jax.ShapeDtypeStruct((3, M, L), F32))        # fold/spherical points

    return pl.pallas_call(
        functools.partial(_fused_kernel, B=B, V=V, M=M, E=E),
        out_shape=out_shapes,
        grid=(1,),
        in_specs=[_full_spec(a.shape) for a in args],
        out_specs=tuple(_full_spec(s.shape) for s in out_shapes),
        compiler_params=pltpu.CompilerParams(dimension_semantics=("arbitrary",)),
    )(*args)


# ----------------------------- parameters -----------------------------

def bn_default(dim):
    # (gamma, beta, running_mean, running_var) at PyTorch eval-mode defaults
    return (jnp.ones((dim,), F32), jnp.zeros((dim,), F32),
            jnp.zeros((dim,), F32), jnp.ones((dim,), F32))


def fold_bn(w, b, bn, eps=1e-5):
    gamma, beta, mean, var = bn
    scale = gamma / jnp.sqrt(var + eps)
    return w * scale[None, :], b * scale + (beta - mean * scale)


def init_params(key, E, M):
    ks = iter(jax.random.split(key, 24))

    def tn(shape):
        # nn.init.trunc_normal_(std=0.02); Conv1d layers also use this stand-in init.
        return 0.02 * jax.random.truncated_normal(next(ks), -2.0, 2.0, shape, dtype=F32)

    hd = HIDDEN
    p = {}
    # --- stand-ins for submodules not defined in the reference source ---
    p['vt_w'] = tn((35, E)); p['vt_b'] = jnp.zeros((E,), F32)
    p['query_embed'] = tn((M, E))
    p['pd_w'] = tn((E, E)); p['pd_b'] = jnp.zeros((E,), F32)
    # --- faithful head parameters (shapes from PaCoVoxelPipeline.__init__) ---
    p['pp_w1'] = tn((E, 64)); p['pp_b1'] = jnp.zeros((64,), F32)
    p['pp_w2'] = tn((64, 3)); p['pp_b2'] = jnp.zeros((3,), F32)
    p['id_w1'] = tn((E, 1024)); p['id_b1'] = jnp.zeros((1024,), F32); p['id_bn1'] = bn_default(1024)
    p['id_w2'] = tn((1024, 1024)); p['id_b2'] = jnp.zeros((1024,), F32)
    p['rm_w'] = tn((E + 1027, E)); p['rm_b'] = jnp.zeros((E,), F32)
    for name in ('f1', 'f2'):  # Fold.folding1 / folding2 (hidden_dim=256, freedom=2)
        p[f'{name}_w1'] = tn((E + 2, hd)); p[f'{name}_b1'] = jnp.zeros((hd,), F32); p[f'{name}_bn1'] = bn_default(hd)
        p[f'{name}_w2'] = tn((hd, hd // 2)); p[f'{name}_b2'] = jnp.zeros((hd // 2,), F32); p[f'{name}_bn2'] = bn_default(hd // 2)
        p[f'{name}_w3'] = tn((hd // 2, 2)); p[f'{name}_b3'] = jnp.zeros((2,), F32)
    p['rb_w1'] = tn((E, hd)); p['rb_b1'] = jnp.zeros((hd,), F32); p['rb_bn1'] = bn_default(hd)
    p['rb_w2'] = tn((hd, hd // 2)); p['rb_b2'] = jnp.zeros((hd // 2,), F32); p['rb_bn2'] = bn_default(hd // 2)
    p['cls_w'] = tn((hd // 2, 2)); p['cls_b'] = jnp.zeros((2,), F32)
    return p


def prepare_params(p, E):
    """One-time: fold BN, split weights, pre-apply the constant folding seed,
    pre-multiply the folding1->folding2 rank-2 bridge, pad narrow K dims, and
    pre-cast MXU operands to bf16 (biases stay f32)."""
    def w(x):
        return x.astype(BF16)

    def bias(x):
        return x.reshape(1, -1).astype(F32)

    q = {}
    # encoder / proxy stand-ins; zero-pad 35-d feature K to 128 (lane-aligned).
    vt_w = jnp.zeros((FEAT_PAD, E), F32).at[:p['vt_w'].shape[0]].set(p['vt_w'])
    q['vt_w'] = w(vt_w); q['vt_b'] = bias(p['vt_b'])
    q['query_embed'] = p['query_embed'].astype(F32)
    q['pd_w'] = w(p['pd_w']); q['pd_b'] = bias(p['pd_b'])

    # plane_pred (normal + pre-transposed for the channel-major ps used by the fold quirk)
    q['pp_w1'] = w(p['pp_w1']); q['pp_b1'] = bias(p['pp_b1'])
    q['pp_w2'] = w(p['pp_w2']); q['pp_b2'] = bias(p['pp_b2'])
    q['pp_w2t'] = w(p['pp_w2'].T); q['pp_b2t'] = p['pp_b2'].reshape(-1, 1).astype(F32)

    # increase_dim (Conv1d+BN+LeakyReLU+Conv1d), BN folded
    w1, b1 = fold_bn(p['id_w1'], p['id_b1'], p['id_bn1'])
    q['id_w1'] = w(w1); q['id_b1'] = bias(b1)
    q['id_w2'] = w(p['id_w2']); q['id_b2'] = bias(p['id_b2'])

    # reduce_map split: rows [global(1024) | query(E) | plane(3)]
    q['rm_w_g'] = w(p['rm_w'][:1024])
    q['rm_w_q'] = w(p['rm_w'][1024:1024 + E])
    q['rm_w_p'] = w(p['rm_w'][1024 + E:])
    q['rm_b'] = bias(p['rm_b'])

    # Fold: split layer-1 weights into (seed|fd) and feature parts; fold the constant
    # folding_seed into a (64, hd) additive term; pre-multiply folding1's last linear
    # into folding2's first (fd1 is never emitted by the reference forward).
    lin = jnp.linspace(-1.0, 1.0, FOLD_STEP, dtype=F32)
    seed_pts = jnp.stack([jnp.tile(lin, FOLD_STEP), jnp.repeat(lin, FOLD_STEP)], axis=-1)  # (64, 2)

    f1w1, f1b1 = fold_bn(p['f1_w1'], p['f1_b1'], p['f1_bn1'])
    q['seed_bias1'] = (seed_pts @ f1w1[:2] + f1b1[None, :]).astype(F32)
    q['f1_w1_feat'] = w(f1w1[2:])
    f1w2, f1b2 = fold_bn(p['f1_w2'], p['f1_b2'], p['f1_bn2'])
    q['f1_w2'] = w(f1w2); q['f1_b2'] = bias(f1b2)

    f2w1, f2b1 = fold_bn(p['f2_w1'], p['f2_b1'], p['f2_bn1'])
    f2w1_fd, f2w1_feat = f2w1[:2], f2w1[2:]
    q['w_bridge'] = w(p['f1_w3'] @ f2w1_fd)                    # (hd//2, hd)
    q['f2_w1_feat'] = w(f2w1_feat)
    q['f2_b1p'] = bias(f2b1 + p['f1_b3'] @ f2w1_fd)
    f2w2, f2b2 = fold_bn(p['f2_w2'], p['f2_b2'], p['f2_bn2'])
    q['f2_w2'] = w(f2w2); q['f2_b2'] = bias(f2b2)
    q['f2_w3t'] = w(p['f2_w3'].T)                              # (2, hd//2)
    q['f2_b3t'] = p['f2_b3'].reshape(-1, 1).astype(F32)

    # rebuild_map + classifier
    w1, b1 = fold_bn(p['rb_w1'], p['rb_b1'], p['rb_bn1'])
    q['rb_w1'] = w(w1); q['rb_b1'] = bias(b1)
    w2, b2 = fold_bn(p['rb_w2'], p['rb_b2'], p['rb_bn2'])
    q['rb_w2'] = w(w2); q['rb_b2'] = bias(b2)
    q['cls_w'] = w(p['cls_w']); q['cls_b'] = bias(p['cls_b'])
    return q


# ----------------------------- forward pass -----------------------------

def normalize_pointcloud(points):
    centroid = jnp.mean(points, axis=1, keepdims=True)
    centered = points - centroid
    scale = jnp.max(jnp.abs(centered).reshape(points.shape[0], -1), axis=1)[:, None, None]
    return centered / (scale + 1e-8), centroid, scale


def voxelize_batch(points, voxel_resolution):
    # TODO(synk): `process_point_cloud` (sparse voxelization) is not defined in the
    # reference source; stand-in treats each point as a voxel with a 35-d feature.
    b, n, _ = points.shape
    coords = jnp.clip(jnp.floor((points + 0.5) * voxel_resolution), 0, voxel_resolution - 1)
    feats = jnp.concatenate([points, jnp.zeros((b, n, 32), F32)], axis=-1)   # (B, N, 35)
    masks = jnp.ones((b, n), F32)  # equal voxel counts -> no padding needed
    return feats, coords, masks


def paco_voxel_pipeline_forward(params, xyz, cfg):
    B = xyz.shape[0]
    E = cfg['embed_dim']
    M = cfg['num_queries']

    # TODO(synk): self.feature_expansion (FeatureExpansionMLP) is constructed but
    # never used in the reference forward; omitted.
    xyz_n, _centroid, _scale = normalize_pointcloud(xyz)
    vox_feat, _vox_coords, vox_mask = voxelize_batch(xyz_n, cfg['voxel_resolution'])
    V = vox_feat.shape[1]

    # Pad feature K to 128 once (weight rows 35..127 are zero -> identical result).
    vf = jnp.pad(vox_feat, ((0, 0), (0, 0), (0, FEAT_PAD - vox_feat.shape[-1]))).astype(BF16)
    mask = vox_mask[..., None].astype(F32)

    # TODO(synk): SparseVoxelTransformer / ProxyDecoder are not defined in the
    # reference source; the fused kernel uses Linear+ReLU stand-ins (coords unused).
    misc, pts = fused_forward(params, vf, mask, B, V, M, E)

    qf = misc[:, :E].reshape(B, M, E)
    plane_cartesian = misc[:, E:E + 4].reshape(B, M, 4)
    class_prob = misc[:, E + 4:E + 6].reshape(B, M, 2)

    # pts[c, m, (b*M+q)*64 + k] -> rebuild_points[b, q*M*64 + m*64 + k, c]
    rebuild_points = jnp.transpose(
        pts.reshape(3, M, B, M, FACTOR), (2, 3, 1, 4, 0)).reshape(B, M * M * FACTOR, 3)

    return {
        'ret': (plane_cartesian, rebuild_points),
        'class_prob': class_prob,
        'proxy_outputs': {'query_features': qf},
        'q': qf,
    }


# ----------------------------- demo -----------------------------

if __name__ == "__main__":
    # B must equal num_queries to satisfy the reference module's 'fold'-branch broadcasting.
    B, N_pts = 2, 64
    E, M = 32, 2
    cfg = dict(embed_dim=E, num_queries=M, voxel_resolution=16)

    key = jax.random.PRNGKey(0)
    kp, kx = jax.random.split(key)
    raw_params = init_params(kp, E, M)
    params = prepare_params(raw_params, E)
    xyz = jax.random.normal(kx, (B, N_pts, 3), dtype=jnp.float32)

    fwd = jax.jit(functools.partial(paco_voxel_pipeline_forward, cfg=cfg))
    out = fwd(params, xyz)
    jax.block_until_ready(out)

    plane_cart, rebuild_pts = out['ret']
    assert plane_cart.shape == (B, M, 4)
    assert rebuild_pts.shape == (B, M * M * FACTOR, 3)
    assert out['class_prob'].shape == (B, M, 2)
    assert out['q'].shape == (B, M, E)
    assert bool(jnp.all(jnp.isfinite(rebuild_pts)))
    print("KERNEL_OK")
</pallas_src>

<mosaic_0001>
module attributes {stable_mosaic.version = 11 : i64} {
  func.func @_fused_kernel(%arg0: i32, %arg1: memref<2x64x128xbf16, #tpu.memory_space<vmem>>, %arg2: memref<2x64x1xf32, #tpu.memory_space<vmem>>, %arg3: memref<4x256xf32, #tpu.memory_space<vmem>>, %arg4: memref<6x4xf32, #tpu.memory_space<vmem>>, %arg5: memref<128x32xbf16, #tpu.memory_space<vmem>>, %arg6: memref<1x32xf32, #tpu.memory_space<vmem>>, %arg7: memref<2x32xf32, #tpu.memory_space<vmem>>, %arg8: memref<32x32xbf16, #tpu.memory_space<vmem>>, %arg9: memref<1x32xf32, #tpu.memory_space<vmem>>, %arg10: memref<32x64xbf16, #tpu.memory_space<vmem>>, %arg11: memref<1x64xf32, #tpu.memory_space<vmem>>, %arg12: memref<64x3xbf16, #tpu.memory_space<vmem>>, %arg13: memref<1x3xf32, #tpu.memory_space<vmem>>, %arg14: memref<3x64xbf16, #tpu.memory_space<vmem>>, %arg15: memref<3x1xf32, #tpu.memory_space<vmem>>, %arg16: memref<32x1024xbf16, #tpu.memory_space<vmem>>, %arg17: memref<1x1024xf32, #tpu.memory_space<vmem>>, %arg18: memref<1024x1024xbf16, #tpu.memory_space<vmem>>, %arg19: memref<1x1024xf32, #tpu.memory_space<vmem>>, %arg20: memref<1024x32xbf16, #tpu.memory_space<vmem>>, %arg21: memref<32x32xbf16, #tpu.memory_space<vmem>>, %arg22: memref<3x32xbf16, #tpu.memory_space<vmem>>, %arg23: memref<1x32xf32, #tpu.memory_space<vmem>>, %arg24: memref<32x256xbf16, #tpu.memory_space<vmem>>, %arg25: memref<1x256xf32, #tpu.memory_space<vmem>>, %arg26: memref<256x128xbf16, #tpu.memory_space<vmem>>, %arg27: memref<1x128xf32, #tpu.memory_space<vmem>>, %arg28: memref<128x2xbf16, #tpu.memory_space<vmem>>, %arg29: memref<1x2xf32, #tpu.memory_space<vmem>>, %arg30: memref<64x256xf32, #tpu.memory_space<vmem>>, %arg31: memref<32x256xbf16, #tpu.memory_space<vmem>>, %arg32: memref<256x128xbf16, #tpu.memory_space<vmem>>, %arg33: memref<1x128xf32, #tpu.memory_space<vmem>>, %arg34: memref<128x256xbf16, #tpu.memory_space<vmem>>, %arg35: memref<32x256xbf16, #tpu.memory_space<vmem>>, %arg36: memref<1x256xf32, #tpu.memory_space<vmem>>, %arg37: memref<256x128xbf16, #tpu.memory_space<vmem>>, %arg38: memref<1x128xf32, #tpu.memory_space<vmem>>, %arg39: memref<2x128xbf16, #tpu.memory_space<vmem>>, %arg40: memref<2x1xf32, #tpu.memory_space<vmem>>, %arg41: memref<4x128xf32, #tpu.memory_space<vmem>>, %arg42: memref<3x2x256xf32, #tpu.memory_space<vmem>>) attributes {dimension_semantics = [#tpu.dimension_semantics<arbitrary>], iteration_bounds = array<i64: 1>, scalar_prefetch = 0 : i64, scratch_operands = 0 : i64, tpu.core_type = #tpu.core_type<tc>, window_params = [{pipeline_mode = #tpu.pipeline_mode<synchronous>, transform_indices = @transform_0, window_bounds = array<i64: 2, 64, 128>}, {pipeline_mode = #tpu.pipeline_mode<synchronous>, transform_indices = @transform_1, window_bounds = array<i64: 2, 64, 1>}, {pipeline_mode = #tpu.pipeline_mode<synchronous>, transform_indices = @transform_2, window_bounds = array<i64: 4, 256>}, {pipeline_mode = #tpu.pipeline_mode<synchronous>, transform_indices = @transform_3, window_bounds = array<i64: 6, 4>}, {pipeline_mode = #tpu.pipeline_mode<synchronous>, transform_indices = @transform_4, window_bounds = array<i64: 128, 32>}, {pipeline_mode = #tpu.pipeline_mode<synchronous>, transform_indices = @transform_5, window_bounds = array<i64: 1, 32>}, {pipeline_mode = #tpu.pipeline_mode<synchronous>, transform_indices = @transform_6, window_bounds = array<i64: 2, 32>}, {pipeline_mode = #tpu.pipeline_mode<synchronous>, transform_indices = @transform_7, window_bounds = array<i64: 32, 32>}, {pipeline_mode = #tpu.pipeline_mode<synchronous>, transform_indices = @transform_8, window_bounds = array<i64: 1, 32>}, {pipeline_mode = #tpu.pipeline_mode<synchronous>, transform_indices = @transform_9, window_bounds = array<i64: 32, 64>}, {pipeline_mode = #tpu.pipeline_mode<synchronous>, transform_indices = @transform_10, window_bounds = array<i64: 1, 64>}, {pipeline_mode = #tpu.pipeline_mode<synchronous>, transform_indices = @transform_11, window_bounds = array<i64: 64, 3>}, {pipeline_mode = #tpu.pipeline_mode<synchronous>, transform_indices = @transform_12, window_bounds = array<i64: 1, 3>}, {pipeline_mode = #tpu.pipeline_mode<synchronous>, transform_indices = @transform_13, window_bounds = array<i64: 3, 64>}, {pipeline_mode = #tpu.pipeline_mode<synchronous>, transform_indices = @transform_14, window_bounds = array<i64: 3, 1>}, {pipeline_mode = #tpu.pipeline_mode<synchronous>, transform_indices = @transform_15, window_bounds = array<i64: 32, 1024>}, {pipeline_mode = #tpu.pipeline_mode<synchronous>, transform_indices = @transform_16, window_bounds = array<i64: 1, 1024>}, {pipeline_mode = #tpu.pipeline_mode<synchronous>, transform_indices = @transform_17, window_bounds = array<i64: 1024, 1024>}, {pipeline_mode = #tpu.pipeline_mode<synchronous>, transform_indices = @transform_18, window_bounds = array<i64: 1, 1024>}, {pipeline_mode = #tpu.pipeline_mode<synchronous>, transform_indices = @transform_19, window_bounds = array<i64: 1024, 32>}, {pipeline_mode = #tpu.pipeline_mode<synchronous>, transform_indices = @transform_20, window_bounds = array<i64: 32, 32>}, {pipeline_mode = #tpu.pipeline_mode<synchronous>, transform_indices = @transform_21, window_bounds = array<i64: 3, 32>}, {pipeline_mode = #tpu.pipeline_mode<synchronous>, transform_indices = @transform_22, window_bounds = array<i64: 1, 32>}, {pipeline_mode = #tpu.pipeline_mode<synchronous>, transform_indices = @transform_23, window_bounds = array<i64: 32, 256>}, {pipeline_mode = #tpu.pipeline_mode<synchronous>, transform_indices = @transform_24, window_bounds = array<i64: 1, 256>}, {pipeline_mode = #tpu.pipeline_mode<synchronous>, transform_indices = @transform_25, window_bounds = array<i64: 256, 128>}, {pipeline_mode = #tpu.pipeline_mode<synchronous>, transform_indices = @transform_26, window_bounds = array<i64: 1, 128>}, {pipeline_mode = #tpu.pipeline_mode<synchronous>, transform_indices = @transform_27, window_bounds = array<i64: 128, 2>}, {pipeline_mode = #tpu.pipeline_mode<synchronous>, transform_indices = @transform_28, window_bounds = array<i64: 1, 2>}, {pipeline_mode = #tpu.pipeline_mode<synchronous>, transform_indices = @transform_29, window_bounds = array<i64: 64, 256>}, {pipeline_mode = #tpu.pipeline_mode<synchronous>, transform_indices = @transform_30, window_bounds = array<i64: 32, 256>}, {pipeline_mode = #tpu.pipeline_mode<synchronous>, transform_indices = @transform_31, window_bounds = array<i64: 256, 128>}, {pipeline_mode = #tpu.pipeline_mode<synchronous>, transform_indices = @transform_32, window_bounds = array<i64: 1, 128>}, {pipeline_mode = #tpu.pipeline_mode<synchronous>, transform_indices = @transform_33, window_bounds = array<i64: 128, 256>}, {pipeline_mode = #tpu.pipeline_mode<synchronous>, transform_indices = @transform_34, window_bounds = array<i64: 32, 256>}, {pipeline_mode = #tpu.pipeline_mode<synchronous>, transform_indices = @transform_35, window_bounds = array<i64: 1, 256>}, {pipeline_mode = #tpu.pipeline_mode<synchronous>, transform_indices = @transform_36, window_bounds = array<i64: 256, 128>}, {pipeline_mode = #tpu.pipeline_mode<synchronous>, transform_indices = @transform_37, window_bounds = array<i64: 1, 128>}, {pipeline_mode = #tpu.pipeline_mode<synchronous>, transform_indices = @transform_38, window_bounds = array<i64: 2, 128>}, {pipeline_mode = #tpu.pipeline_mode<synchronous>, transform_indices = @transform_39, window_bounds = array<i64: 2, 1>}, {pipeline_mode = #tpu.pipeline_mode<synchronous>, transform_indices = @transform_40, window_bounds = array<i64: 4, 128>}, {pipeline_mode = #tpu.pipeline_mode<synchronous>, transform_indices = @transform_41, window_bounds = array<i64: 3, 2, 256>}]} {
    %c0 = arith.constant 0 : index
    %c0_0 = arith.constant 0 : index
    %c0_1 = arith.constant 0 : index
    %0 = vector.load %arg1[%c0, %c0_0, %c0_1] : memref<2x64x128xbf16, #tpu.memory_space<vmem>>, vector<2x64x128xbf16>
    %1 = vector.shape_cast %0 : vector<2x64x128xbf16> to vector<128x128xbf16>
    %c0_2 = arith.constant 0 : index
    %c0_3 = arith.constant 0 : index
    %2 = vector.load %arg5[%c0_2, %c0_3] : memref<128x32xbf16, #tpu.memory_space<vmem>>, vector<128x32xbf16>
    %cst = arith.constant dense<0.000000e+00> : vector<128x32xf32>
    %3 = tpu.matmul %1, %2, %cst {dimension_numbers = #tpu.dot_dimension_numbers<[1], [0], [0], [1], [0, 0, 1, 1], [], []>} : vector<128x128xbf16>, vector<128x32xbf16>, vector<128x32xf32> -> vector<128x32xf32>
    %c0_4 = arith.constant 0 : index
    %c0_5 = arith.constant 0 : index
    %4 = vector.load %arg6[%c0_4, %c0_5] : memref<1x32xf32, #tpu.memory_space<vmem>>, vector<1x32xf32>
    %5 = vector.broadcast %4 : vector<1x32xf32> to vector<128x32xf32>
    %6 = arith.addf %3, %5 : vector<128x32xf32>
    %cst_6 = arith.constant 0.000000e+00 : f32
    %7 = vector.broadcast %cst_6 : f32 to vector<128x32xf32>
    %8 = arith.maximumf %6, %7 : vector<128x32xf32>
    %c0_7 = arith.constant 0 : index
    %c0_8 = arith.constant 0 : index
    %c0_9 = arith.constant 0 : index
    %9 = vector.load %arg2[%c0_7, %c0_8, %c0_9] : memref<2x64x1xf32, #tpu.memory_space<vmem>>, vector<2x64x1xf32>
    %10 = vector.shape_cast %9 : vector<2x64x1xf32> to vector<128x1xf32>
    %11 = vector.broadcast %10 : vector<128x1xf32> to vector<128x32xf32>
    %12 = arith.mulf %8, %11 : vector<128x32xf32>
    %13 = vector.shape_cast %12 : vector<128x32xf32> to vector<2x64x32xf32>
    %cst_10 = arith.constant dense<0xFF800000> : vector<2x32xf32>
    %14 = vector.multi_reduction <maximumf>, %13, %cst_10 [1] : vector<2x64x32xf32> to vector<2x32xf32>
    %15 = vector.shape_cast %14 : vector<2x32xf32> to vector<2x1x32xf32>
    %c0_11 = arith.constant 0 : index
    %c0_12 = arith.constant 0 : index
    %16 = vector.load %arg7[%c0_11, %c0_12] : memref<2x32xf32, #tpu.memory_space<vmem>>, vector<2x32xf32>
    %17 = vector.shape_cast %16 : vector<2x32xf32> to vector<1x2x32xf32>
    %18 = vector.broadcast %15 : vector<2x1x32xf32> to vector<2x2x32xf32>
    %19 = vector.broadcast %17 : vector<1x2x32xf32> to vector<2x2x32xf32>
    %20 = arith.addf %18, %19 : vector<2x2x32xf32>
    %21 = vector.shape_cast %20 : vector<2x2x32xf32> to vector<4x32xf32>
    %22 = arith.truncf %21 : vector<4x32xf32> to vector<4x32xbf16>
    %c0_13 = arith.constant 0 : index
    %c0_14 = arith.constant 0 : index
    %23 = vector.load %arg8[%c0_13, %c0_14] : memref<32x32xbf16, #tpu.memory_space<vmem>>, vector<32x32xbf16>
    %cst_15 = arith.constant dense<0.000000e+00> : vector<4x32xf32>
    %24 = tpu.matmul %22, %23, %cst_15 {dimension_numbers = #tpu.dot_dimension_numbers<[1], [0], [0], [1], [0, 0, 1, 1], [], []>} : vector<4x32xbf16>, vector<32x32xbf16>, vector<4x32xf32> -> vector<4x32xf32>
    %c0_16 = arith.constant 0 : index
    %c0_17 = arith.constant 0 : index
    %25 = vector.load %arg9[%c0_16, %c0_17] : memref<1x32xf32, #tpu.memory_space<vmem>>, vector<1x32xf32>
    %26 = vector.broadcast %25 : vector<1x32xf32> to vector<4x32xf32>
    %27 = arith.addf %24, %26 : vector<4x32xf32>
    %cst_18 = arith.constant 0.000000e+00 : f32
    %28 = vector.broadcast %cst_18 : f32 to vector<4x32xf32>
    %29 = arith.maximumf %27, %28 : vector<4x32xf32>
    %30 = arith.truncf %29 : vector<4x32xf32> to vector<4x32xbf16>
    %c0_19 = arith.constant 0 : index
    %c0_20 = arith.constant 0 : index
    %31 = vector.load %arg10[%c0_19, %c0_20] : memref<32x64xbf16, #tpu.memory_space<vmem>>, vector<32x64xbf16>
    %cst_21 = arith.constant dense<0.000000e+00> : vector<4x64xf32>
    %32 = tpu.matmul %30, %31, %cst_21 {dimension_numbers = #tpu.dot_dimension_numbers<[1], [0], [0], [1], [0, 0, 1, 1], [], []>} : vector<4x32xbf16>, vector<32x64xbf16>, vector<4x64xf32> -> vector<4x64xf32>
    %c0_22 = arith.constant 0 : index
    %c0_23 = arith.constant 0 : index
    %33 = vector.load %arg11[%c0_22, %c0_23] : memref<1x64xf32, #tpu.memory_space<vmem>>, vector<1x64xf32>
    %34 = vector.broadcast %33 : vector<1x64xf32> to vector<4x64xf32>
    %35 = arith.addf %32, %34 : vector<4x64xf32>
    %cst_24 = arith.constant 0.000000e+00 : f32
    %36 = vector.broadcast %cst_24 : f32 to vector<4x64xf32>
    %37 = arith.maximumf %35, %36 : vector<4x64xf32>
    %38 = arith.truncf %37 : vector<4x64xf32> to vector<4x64xbf16>
    %c0_25 = arith.constant 0 : index
    %c0_26 = arith.constant 0 : index
    %39 = vector.load %arg12[%c0_25, %c0_26] : memref<64x3xbf16, #tpu.memory_space<vmem>>, vector<64x3xbf16>
    %cst_27 = arith.constant dense<0.000000e+00> : vector<4x3xf32>
    %40 = tpu.matmul %38, %39, %cst_27 {dimension_numbers = #tpu.dot_dimension_numbers<[1], [0], [0], [1], [0, 0, 1, 1], [], []>} : vector<4x64xbf16>, vector<64x3xbf16>, vector<4x3xf32> -> vector<4x3xf32>
    %c0_28 = arith.constant 0 : index
    %c0_29 = arith.constant 0 : index
    %41 = vector.load %arg13[%c0_28, %c0_29] : memref<1x3xf32, #tpu.memory_space<vmem>>, vector<1x3xf32>
    %42 = vector.broadcast %41 : vector<1x3xf32> to vector<4x3xf32>
    %43 = arith.addf %40, %42 : vector<4x3xf32>
    %c0_30 = arith.constant 0 : index
    %c0_31 = arith.constant 0 : index
    %44 = vector.load %arg14[%c0_30, %c0_31] : memref<3x64xbf16, #tpu.memory_space<vmem>>, vector<3x64xbf16>
    %cst_32 = arith.constant dense<0.000000e+00> : vector<3x4xf32>
    %45 = tpu.matmul %44, %38, %cst_32 {dimension_numbers = #tpu.dot_dimension_numbers<[1], [1], [0], [0], [0, 0, 1, 0], [], []>} : vector<3x64xbf16>, vector<4x64xbf16>, vector<3x4xf32> -> vector<3x4xf32>
    %c0_33 = arith.constant 0 : index
    %c0_34 = arith.constant 0 : index
    %46 = vector.load %arg15[%c0_33, %c0_34] : memref<3x1xf32, #tpu.memory_space<vmem>>, vector<3x1xf32>
    %47 = vector.broadcast %46 : vector<3x1xf32> to vector<3x4xf32>
    %48 = arith.addf %45, %47 : vector<3x4xf32>
    %49 = vector.extract_strided_slice %43 {offsets = [0, 0], sizes = [4, 1], strides = [1, 1]} : vector<4x3xf32> to vector<4x1xf32>
    %50 = vector.extract_strided_slice %43 {offsets = [0, 1], sizes = [4, 1], strides = [1, 1]} : vector<4x3xf32> to vector<4x1xf32>
    %51 = vector.extract_strided_slice %43 {offsets = [0, 2], sizes = [4, 1], strides = [1, 1]} : vector<4x3xf32> to vector<4x1xf32>
    %52 = math.sin %49 : vector<4x1xf32>
    %53 = math.cos %50 : vector<4x1xf32>
    %54 = arith.mulf %52, %53 : vector<4x1xf32>
    %55 = math.sin %49 : vector<4x1xf32>
    %56 = math.sin %50 : vector<4x1xf32>
    %57 = arith.mulf %55, %56 : vector<4x1xf32>
    %58 = math.cos %49 : vector<4x1xf32>
    %cst_35 = arith.constant 0.000000e+00 : f32
    %59 = vector.broadcast %cst_35 : f32 to vector<4x1xf32>
    %60 = arith.subf %59, %51 : vector<4x1xf32>
    %61 = tpu.concatenate %54, %57, %58, %60 in 1 : vector<4x1xf32>, vector<4x1xf32>, vector<4x1xf32>, vector<4x1xf32> -> vector<4x4xf32>
    %c0_36 = arith.constant 0 : index
    %c0_37 = arith.constant 0 : index
    %62 = vector.load %arg16[%c0_36, %c0_37] : memref<32x1024xbf16, #tpu.memory_space<vmem>>, vector<32x1024xbf16>
    %cst_38 = arith.constant dense<0.000000e+00> : vector<4x1024xf32>
    %63 = tpu.matmul %30, %62, %cst_38 {dimension_numbers = #tpu.dot_dimension_numbers<[1], [0], [0], [1], [0, 0, 1, 1], [], []>} : vector<4x32xbf16>, vector<32x1024xbf16>, vector<4x1024xf32> -> vector<4x1024xf32>
    %c0_39 = arith.constant 0 : index
    %c0_40 = arith.constant 0 : index
    %64 = vector.load %arg17[%c0_39, %c0_40] : memref<1x1024xf32, #tpu.memory_space<vmem>>, vector<1x1024xf32>
    %65 = vector.broadcast %64 : vector<1x1024xf32> to vector<4x1024xf32>
    %66 = arith.addf %63, %65 : vector<4x1024xf32>
    %cst_41 = arith.constant 0.000000e+00 : f32
    %67 = vector.broadcast %cst_41 : f32 to vector<4x1024xf32>
    %68 = arith.cmpf ogt, %66, %67 : vector<4x1024xf32>
    %cst_42 = arith.constant 2.000000e-01 : f32
    %69 = vector.broadcast %cst_42 : f32 to vector<4x1024xf32>
    %70 = arith.mulf %69, %66 : vector<4x1024xf32>
    %71 = arith.select %68, %66, %70 : vector<4x1024xi1>, vector<4x1024xf32>
    %72 = arith.truncf %71 : vector<4x1024xf32> to vector<4x1024xbf16>
    %c0_43 = arith.constant 0 : index
    %c0_44 = arith.constant 0 : index
    %73 = vector.load %arg18[%c0_43, %c0_44] : memref<1024x1024xbf16, #tpu.memory_space<vmem>>, vector<1024x1024xbf16>
    %cst_45 = arith.constant dense<0.000000e+00> : vector<4x1024xf32>
    %74 = tpu.matmul %72, %73, %cst_45 {dimension_numbers = #tpu.dot_dimension_numbers<[1], [0], [0], [1], [0, 0, 1, 1], [], []>} : vector<4x1024xbf16>, vector<1024x1024xbf16>, vector<4x1024xf32> -> vector<4x1024xf32>
    %c0_46 = arith.constant 0 : index
    %c0_47 = arith.constant 0 : index
    %75 = vector.load %arg19[%c0_46, %c0_47] : memref<1x1024xf32, #tpu.memory_space<vmem>>, vector<1x1024xf32>
    %76 = vector.broadcast %75 : vector<1x1024xf32> to vector<4x1024xf32>
    %77 = arith.addf %74, %76 : vector<4x1024xf32>
    %78 = vector.shape_cast %77 : vector<4x1024xf32> to vector<2x2x1024xf32>
    %cst_48 = arith.constant dense<0xFF800000> : vector<2x1024xf32>
    %79 = vector.multi_reduction <maximumf>, %78, %cst_48 [1] : vector<2x2x1024xf32> to vector<2x1024xf32>
    %80 = arith.truncf %79 : vector<2x1024xf32> to vector<2x1024xbf16>
    %c0_49 = arith.constant 0 : index
    %c0_50 = arith.constant 0 : index
    %81 = vector.load %arg20[%c0_49, %c0_50] : memref<1024x32xbf16, #tpu.memory_space<vmem>>, vector<1024x32xbf16>
    %cst_51 = arith.constant dense<0.000000e+00> : vector<2x32xf32>
    %82 = tpu.matmul %80, %81, %cst_51 {dimension_numbers = #tpu.dot_dimension_numbers<[1], [0], [0], [1], [0, 0, 1, 1], [], []>} : vector<2x1024xbf16>, vector<1024x32xbf16>, vector<2x32xf32> -> vector<2x32xf32>
    %83 = vector.shape_cast %82 : vector<2x32xf32> to vector<2x1x32xf32>
    %84 = vector.shape_cast %83 : vector<2x1x32xf32> to vector<2x1x32xf32>
    %85 = vector.broadcast %84 : vector<2x1x32xf32> to vector<2x2x32xf32>
    %86 = vector.shape_cast %85 : vector<2x2x32xf32> to vector<4x32xf32>
    %c0_52 = arith.constant 0 : index
    %c0_53 = arith.constant 0 : index
    %87 = vector.load %arg21[%c0_52, %c0_53] : memref<32x32xbf16, #tpu.memory_space<vmem>>, vector<32x32xbf16>
    %cst_54 = arith.constant dense<0.000000e+00> : vector<4x32xf32>
    %88 = tpu.matmul %30, %87, %cst_54 {dimension_numbers = #tpu.dot_dimension_numbers<[1], [0], [0], [1], [0, 0, 1, 1], [], []>} : vector<4x32xbf16>, vector<32x32xbf16>, vector<4x32xf32> -> vector<4x32xf32>
    %89 = arith.addf %86, %88 : vector<4x32xf32>
    %90 = arith.truncf %43 : vector<4x3xf32> to vector<4x3xbf16>
    %c0_55 = arith.constant 0 : index
    %c0_56 = arith.constant 0 : index
    %91 = vector.load %arg22[%c0_55, %c0_56] : memref<3x32xbf16, #tpu.memory_space<vmem>>, vector<3x32xbf16>
    %cst_57 = arith.constant dense<0.000000e+00> : vector<4x32xf32>
    %92 = tpu.matmul %90, %91, %cst_57 {dimension_numbers = #tpu.dot_dimension_numbers<[1], [0], [0], [1], [0, 0, 1, 1], [], []>} : vector<4x3xbf16>, vector<3x32xbf16>, vector<4x32xf32> -> vector<4x32xf32>
    %93 = arith.addf %89, %92 : vector<4x32xf32>
    %c0_58 = arith.constant 0 : index
    %c0_59 = arith.constant 0 : index
    %94 = vector.load %arg23[%c0_58, %c0_59] : memref<1x32xf32, #tpu.memory_space<vmem>>, vector<1x32xf32>
    %95 = vector.broadcast %94 : vector<1x32xf32> to vector<4x32xf32>
    %96 = arith.addf %93, %95 : vector<4x32xf32>
    %97 = arith.truncf %96 : vector<4x32xf32> to vector<4x32xbf16>
    %c0_60 = arith.constant 0 : index
    %c0_61 = arith.constant 0 : index
    %98 = vector.load %arg24[%c0_60, %c0_61] : memref<32x256xbf16, #tpu.memory_space<vmem>>, vector<32x256xbf16>
    %cst_62 = arith.constant dense<0.000000e+00> : vector<4x256xf32>
    %99 = tpu.matmul %97, %98, %cst_62 {dimension_numbers = #tpu.dot_dimension_numbers<[1], [0], [0], [1], [0, 0, 1, 1], [], []>} : vector<4x32xbf16>, vector<32x256xbf16>, vector<4x256xf32> -> vector<4x256xf32>
    %c0_63 = arith.constant 0 : index
    %c0_64 = arith.constant 0 : index
    %100 = vector.load %arg25[%c0_63, %c0_64] : memref<1x256xf32, #tpu.memory_space<vmem>>, vector<1x256xf32>
    %101 = vector.broadcast %100 : vector<1x256xf32> to vector<4x256xf32>
    %102 = arith.addf %99, %101 : vector<4x256xf32>
    %cst_65 = arith.constant 0.000000e+00 : f32
    %103 = vector.broadcast %cst_65 : f32 to vector<4x256xf32>
    %104 = arith.maximumf %102, %103 : vector<4x256xf32>
    %105 = arith.truncf %104 : vector<4x256xf32> to vector<4x256xbf16>
    %c0_66 = arith.constant 0 : index
    %c0_67 = arith.constant 0 : index
    %106 = vector.load %arg26[%c0_66, %c0_67] : memref<256x128xbf16, #tpu.memory_space<vmem>>, vector<256x128xbf16>
    %cst_68 = arith.constant dense<0.000000e+00> : vector<4x128xf32>
    %107 = tpu.matmul %105, %106, %cst_68 {dimension_numbers = #tpu.dot_dimension_numbers<[1], [0], [0], [1], [0, 0, 1, 1], [], []>} : vector<4x256xbf16>, vector<256x128xbf16>, vector<4x128xf32> -> vector<4x128xf32>
    %c0_69 = arith.constant 0 : index
    %c0_70 = arith.constant 0 : index
    %108 = vector.load %arg27[%c0_69, %c0_70] : memref<1x128xf32, #tpu.memory_space<vmem>>, vector<1x128xf32>
    %109 = vector.broadcast %108 : vector<1x128xf32> to vector<4x128xf32>
    %110 = arith.addf %107, %109 : vector<4x128xf32>
    %cst_71 = arith.constant 0.000000e+00 : f32
    %111 = vector.broadcast %cst_71 : f32 to vector<4x128xf32>
    %112 = arith.maximumf %110, %111 : vector<4x128xf32>
    %113 = arith.truncf %112 : vector<4x128xf32> to vector<4x128xbf16>
    %c0_72 = arith.constant 0 : index
    %c0_73 = arith.constant 0 : index
    %114 = vector.load %arg28[%c0_72, %c0_73] : memref<128x2xbf16, #tpu.memory_space<vmem>>, vector<128x2xbf16>
    %cst_74 = arith.constant dense<0.000000e+00> : vector<4x2xf32>
    %115 = tpu.matmul %113, %114, %cst_74 {dimension_numbers = #tpu.dot_dimension_numbers<[1], [0], [0], [1], [0, 0, 1, 1], [], []>} : vector<4x128xbf16>, vector<128x2xbf16>, vector<4x2xf32> -> vector<4x2xf32>
    %c0_75 = arith.constant 0 : index
    %c0_76 = arith.constant 0 : index
    %116 = vector.load %arg29[%c0_75, %c0_76] : memref<1x2xf32, #tpu.memory_space<vmem>>, vector<1x2xf32>
    %117 = vector.broadcast %116 : vector<1x2xf32> to vector<4x2xf32>
    %118 = arith.addf %115, %117 : vector<4x2xf32>
    %cst_77 = arith.constant 0.000000e+00 : f32
    %119 = vector.broadcast %cst_77 : f32 to vector<4x90xf32>
    %120 = tpu.concatenate %29, %61, %118, %119 in 1 : vector<4x32xf32>, vector<4x4xf32>, vector<4x2xf32>, vector<4x90xf32> -> vector<4x128xf32>
    %c0_78 = arith.constant 0 : index
    %c0_79 = arith.constant 0 : index
    %121 = vector.load %arg41[%c0_78, %c0_79] : memref<4x128xf32, #tpu.memory_space<vmem>>, vector<4x128xf32>
    tpu.vector_store %arg41[%c0_78, %c0_79], %120 {strides = array<i32>} : memref<4x128xf32, #tpu.memory_space<vmem>>, vector<4x128xf32>,
    %122 = vector.shape_cast %97 : vector<4x32xbf16> to vector<4x1x32xbf16>
    %123 = vector.shape_cast %122 : vector<4x1x32xbf16> to vector<4x1x32xbf16>
    %124 = vector.broadcast %123 : vector<4x1x32xbf16> to vector<4x64x32xbf16>
    %125 = vector.shape_cast %124 : vector<4x64x32xbf16> to vector<256x32xbf16>
    %c0_80 = arith.constant 0 : index
    %c0_81 = arith.constant 0 : index
    %126 = vector.load %arg30[%c0_80, %c0_81] : memref<64x256xf32, #tpu.memory_space<vmem>>, vector<64x256xf32>
    %127 = vector.shape_cast %126 : vector<64x256xf32> to vector<1x64x256xf32>
    %128 = vector.shape_cast %127 : vector<1x64x256xf32> to vector<1x64x256xf32>
    %129 = vector.broadcast %128 : vector<1x64x256xf32> to vector<4x64x256xf32>
    %130 = vector.shape_cast %129 : vector<4x64x256xf32> to vector<256x256xf32>
    %c0_82 = arith.constant 0 : index
    %c0_83 = arith.constant 0 : index
    %131 = vector.load %arg31[%c0_82, %c0_83] : memref<32x256xbf16, #tpu.memory_space<vmem>>, vector<32x256xbf16>
    %cst_84 = arith.constant dense<0.000000e+00> : vector<256x256xf32>
    %132 = tpu.matmul %125, %131, %cst_84 {dimension_numbers = #tpu.dot_dimension_numbers<[1], [0], [0], [1], [0, 0, 1, 1], [], []>} : vector<256x32xbf16>, vector<32x256xbf16>, vector<256x256xf32> -> vector<256x256xf32>
    %133 = arith.addf %130, %132 : vector<256x256xf32>
    %cst_85 = arith.constant 0.000000e+00 : f32
    %134 = vector.broadcast %cst_85 : f32 to vector<256x256xf32>
    %135 = arith.maximumf %133, %134 : vector<256x256xf32>
    %136 = arith.truncf %135 : vector<256x256xf32> to vector<256x256xbf16>
    %c0_86 = arith.constant 0 : index
    %c0_87 = arith.constant 0 : index
    %137 = vector.load %arg32[%c0_86, %c0_87] : memref<256x128xbf16, #tpu.memory_space<vmem>>, vector<256x128xbf16>
    %cst_88 = arith.constant dense<0.000000e+00> : vector<256x128xf32>
    %138 = tpu.matmul %136, %137, %cst_88 {dimension_numbers = #tpu.dot_dimension_numbers<[1], [0], [0], [1], [0, 0, 1, 1], [], []>} : vector<256x256xbf16>, vector<256x128xbf16>, vector<256x128xf32> -> vector<256x128xf32>
    %c0_89 = arith.constant 0 : index
    %c0_90 = arith.constant 0 : index
    %139 = vector.load %arg33[%c0_89, %c0_90] : memref<1x128xf32, #tpu.memory_space<vmem>>, vector<1x128xf32>
    %140 = vector.broadcast %139 : vector<1x128xf32> to vector<256x128xf32>
    %141 = arith.addf %138, %140 : vector<256x128xf32>
    %cst_91 = arith.constant 0.000000e+00 : f32
    %142 = vector.broadcast %cst_91 : f32 to vector<256x128xf32>
    %143 = arith.maximumf %141, %142 : vector<256x128xf32>
    %144 = arith.truncf %143 : vector<256x128xf32> to vector<256x128xbf16>
    %c0_92 = arith.constant 0 : index
    %c0_93 = arith.constant 0 : index
    %145 = vector.load %arg34[%c0_92, %c0_93] : memref<128x256xbf16, #tpu.memory_space<vmem>>, vector<128x256xbf16>
    %cst_94 = arith.constant dense<0.000000e+00> : vector<256x256xf32>
    %146 = tpu.matmul %144, %145, %cst_94 {dimension_numbers = #tpu.dot_dimension_numbers<[1], [0], [0], [1], [0, 0, 1, 1], [], []>} : vector<256x128xbf16>, vector<128x256xbf16>, vector<256x256xf32> -> vector<256x256xf32>
    %c0_95 = arith.constant 0 : index
    %c0_96 = arith.constant 0 : index
    %147 = vector.load %arg35[%c0_95, %c0_96] : memref<32x256xbf16, #tpu.memory_space<vmem>>, vector<32x256xbf16>
    %cst_97 = arith.constant dense<0.000000e+00> : vector<256x256xf32>
    %148 = tpu.matmul %125, %147, %cst_97 {dimension_numbers = #tpu.dot_dimension_numbers<[1], [0], [0], [1], [0, 0, 1, 1], [], []>} : vector<256x32xbf16>, vector<32x256xbf16>, vector<256x256xf32> -> vector<256x256xf32>
    %149 = arith.addf %146, %148 : vector<256x256xf32>
    %c0_98 = arith.constant 0 : index
    %c0_99 = arith.constant 0 : index
    %150 = vector.load %arg36[%c0_98, %c0_99] : memref<1x256xf32, #tpu.memory_space<vmem>>, vector<1x256xf32>
    %151 = vector.broadcast %150 : vector<1x256xf32> to vector<256x256xf32>
    %152 = arith.addf %149, %151 : vector<256x256xf32>
    %cst_100 = arith.constant 0.000000e+00 : f32
    %153 = vector.broadcast %cst_100 : f32 to vector<256x256xf32>
    %154 = arith.maximumf %152, %153 : vector<256x256xf32>
    %155 = arith.truncf %154 : vector<256x256xf32> to vector<256x256xbf16>
    %c0_101 = arith.constant 0 : index
    %c0_102 = arith.constant 0 : index
    %156 = vector.load %arg37[%c0_101, %c0_102] : memref<256x128xbf16, #tpu.memory_space<vmem>>, vector<256x128xbf16>
    %cst_103 = arith.constant dense<0.000000e+00> : vector<256x128xf32>
    %157 = tpu.matmul %155, %156, %cst_103 {dimension_numbers = #tpu.dot_dimension_numbers<[1], [0], [0], [1], [0, 0, 1, 1], [], []>} : vector<256x256xbf16>, vector<256x128xbf16>, vector<256x128xf32> -> vector<256x128xf32>
    %c0_104 = arith.constant 0 : index
    %c0_105 = arith.constant 0 : index
    %158 = vector.load %arg38[%c0_104, %c0_105] : memref<1x128xf32, #tpu.memory_space<vmem>>, vector<1x128xf32>
    %159 = vector.broadcast %158 : vector<1x128xf32> to vector<256x128xf32>
    %160 = arith.addf %157, %159 : vector<256x128xf32>
    %cst_106 = arith.constant 0.000000e+00 : f32
    %161 = vector.broadcast %cst_106 : f32 to vector<256x128xf32>
    %162 = arith.maximumf %160, %161 : vector<256x128xf32>
    %c0_107 = arith.constant 0 : index
    %c0_108 = arith.constant 0 : index
    %163 = vector.load %arg39[%c0_107, %c0_108] : memref<2x128xbf16, #tpu.memory_space<vmem>>, vector<2x128xbf16>
    %164 = arith.truncf %162 : vector<256x128xf32> to vector<256x128xbf16>
    %cst_109 = arith.constant dense<0.000000e+00> : vector<2x256xf32>
    %165 = tpu.matmul %163, %164, %cst_109 {dimension_numbers = #tpu.dot_dimension_numbers<[1], [1], [0], [0], [0, 0, 1, 0], [], []>} : vector<2x128xbf16>, vector<256x128xbf16>, vector<2x256xf32> -> vector<2x256xf32>
    %c0_110 = arith.constant 0 : index
    %c0_111 = arith.constant 0 : index
    %166 = vector.load %arg40[%c0_110, %c0_111] : memref<2x1xf32, #tpu.memory_space<vmem>>, vector<2x1xf32>
    %167 = vector.broadcast %166 : vector<2x1xf32> to vector<2x256xf32>
    %168 = arith.addf %165, %167 : vector<2x256xf32>
    %169 = vector.extract_strided_slice %168 {offsets = [0, 0], sizes = [1, 256], strides = [1, 1]} : vector<2x256xf32> to vector<1x256xf32>
    %170 = vector.extract_strided_slice %168 {offsets = [1, 0], sizes = [1, 256], strides = [1, 1]} : vector<2x256xf32> to vector<1x256xf32>
    %171 = vector.shape_cast %48 : vector<3x4xf32> to vector<3x1x4xf32>
    %172 = vector.shape_cast %171 : vector<3x1x4xf32> to vector<3x1x4xf32>
    %173 = vector.broadcast %172 : vector<3x1x4xf32> to vector<3x2x4xf32>
    %174 = vector.shape_cast %173 : vector<3x2x4xf32> to vector<6x4xf32>
    %c0_112 = arith.constant 0 : index
    %c0_113 = arith.constant 0 : index
    %175 = vector.load %arg4[%c0_112, %c0_113] : memref<6x4xf32, #tpu.memory_space<vmem>>, vector<6x4xf32>
    %176 = arith.mulf %174, %175 : vector<6x4xf32>
    %c0_114 = arith.constant 0 : index
    %c0_115 = arith.constant 0 : index
    %177 = vector.load %arg3[%c0_114, %c0_115] : memref<4x256xf32, #tpu.memory_space<vmem>>, vector<4x256xf32>
    %cst_116 = arith.constant dense<0.000000e+00> : vector<6x256xf32>
    %178 = tpu.matmul %176, %177, %cst_116 {dimension_numbers = #tpu.dot_dimension_numbers<[1], [0], [0], [1], [0, 0, 1, 1], [], []>} : vector<6x4xf32>, vector<4x256xf32>, vector<6x256xf32> -> vector<6x256xf32>
    %179 = vector.extract_strided_slice %178 {offsets = [0, 0], sizes = [2, 256], strides = [1, 1]} : vector<6x256xf32> to vector<2x256xf32>
    %180 = vector.extract_strided_slice %178 {offsets = [2, 0], sizes = [2, 256], strides = [1, 1]} : vector<6x256xf32> to vector<2x256xf32>
    %181 = vector.extract_strided_slice %178 {offsets = [4, 0], sizes = [2, 256], strides = [1, 1]} : vector<6x256xf32> to vector<2x256xf32>
    %182 = math.sin %169 : vector<1x256xf32>
    %183 = math.cos %169 : vector<1x256xf32>
    %184 = vector.broadcast %170 : vector<1x256xf32> to vector<2x256xf32>
    %185 = arith.subf %184, %180 : vector<2x256xf32>
    %186 = math.cos %185 : vector<2x256xf32>
    %187 = vector.broadcast %182 : vector<1x256xf32> to vector<2x256xf32>
    %188 = arith.mulf %186, %187 : vector<2x256xf32>
    %189 = math.sin %179 : vector<2x256xf32>
    %190 = arith.mulf %188, %189 : vector<2x256xf32>
    %191 = math.cos %179 : vector<2x256xf32>
    %192 = vector.broadcast %183 : vector<1x256xf32> to vector<2x256xf32>
    %193 = arith.mulf %192, %191 : vector<2x256xf32>
    %194 = arith.addf %190, %193 : vector<2x256xf32>
    %cst_117 = arith.constant 9.99999997E-7 : f32
    %195 = vector.broadcast %cst_117 : f32 to vector<2x256xf32>
    %196 = arith.maximumf %194, %195 : vector<2x256xf32>
    %197 = arith.divf %181, %196 : vector<2x256xf32>
    %198 = vector.broadcast %182 : vector<1x256xf32> to vector<2x256xf32>
    %199 = arith.mulf %197, %198 : vector<2x256xf32>
    %200 = math.cos %170 : vector<1x256xf32>
    %201 = vector.broadcast %200 : vector<1x256xf32> to vector<2x256xf32>
    %202 = arith.mulf %199, %201 : vector<2x256xf32>
    %cst_118 = arith.constant -1.000000e+00 : f32
    %cst_119 = arith.constant 1.000000e+00 : f32
    %203 = vector.broadcast %cst_118 : f32 to vector<2x256xf32>
    %204 = arith.maximumf %203, %202 : vector<2x256xf32>
    %205 = vector.broadcast %cst_119 : f32 to vector<2x256xf32>
    %206 = arith.minimumf %205, %204 : vector<2x256xf32>
    %c0_120 = arith.constant 0 : index
    %c0_121 = arith.constant 0 : index
    %c0_122 = arith.constant 0 : index
    %207 = vector.load %arg42[%c0_120, %c0_121, %c0_122] : memref<3x2x256xf32, #tpu.memory_space<vmem>>, vector<1x2x256xf32>
    %208 = vector.shape_cast %207 : vector<1x2x256xf32> to vector<2x256xf32>
    %209 = vector.shape_cast %206 : vector<2x256xf32> to vector<1x2x256xf32>
    tpu.vector_store %arg42[%c0_120, %c0_121, %c0_122], %209 {strides = array<i32>} : memref<3x2x256xf32, #tpu.memory_space<vmem>>, vector<1x2x256xf32>,
    %210 = vector.broadcast %182 : vector<1x256xf32> to vector<2x256xf32>
    %211 = arith.mulf %197, %210 : vector<2x256xf32>
    %212 = math.sin %170 : vector<1x256xf32>
    %213 = vector.broadcast %212 : vector<1x256xf32> to vector<2x256xf32>
    %214 = arith.mulf %211, %213 : vector<2x256xf32>
    %cst_123 = arith.constant -1.000000e+00 : f32
    %cst_124 = arith.constant 1.000000e+00 : f32
    %215 = vector.broadcast %cst_123 : f32 to vector<2x256xf32>
    %216 = arith.maximumf %215, %214 : vector<2x256xf32>
    %217 = vector.broadcast %cst_124 : f32 to vector<2x256xf32>
    %218 = arith.minimumf %217, %216 : vector<2x256xf32>
    %c1 = arith.constant 1 : index
    %c0_125 = arith.constant 0 : index
    %c0_126 = arith.constant 0 : index
    %219 = vector.load %arg42[%c1, %c0_125, %c0_126] : memref<3x2x256xf32, #tpu.memory_space<vmem>>, vector<1x2x256xf32>
    %220 = vector.shape_cast %219 : vector<1x2x256xf32> to vector<2x256xf32>
    %221 = vector.shape_cast %218 : vector<2x256xf32> to vector<1x2x256xf32>
    tpu.vector_store %arg42[%c1, %c0_125, %c0_126], %221 {strides = array<i32>} : memref<3x2x256xf32, #tpu.memory_space<vmem>>, vector<1x2x256xf32>,
    %222 = vector.broadcast %183 : vector<1x256xf32> to vector<2x256xf32>
    %223 = arith.mulf %197, %222 : vector<2x256xf32>
    %cst_127 = arith.constant -1.000000e+00 : f32
    %cst_128 = arith.constant 1.000000e+00 : f32
    %224 = vector.broadcast %cst_127 : f32 to vector<2x256xf32>
    %225 = arith.maximumf %224, %223 : vector<2x256xf32>
    %226 = vector.broadcast %cst_128 : f32 to vector<2x256xf32>
    %227 = arith.minimumf %226, %225 : vector<2x256xf32>
    %c2 = arith.constant 2 : index
    %c0_129 = arith.constant 0 : index
    %c0_130 = arith.constant 0 : index
    %228 = vector.load %arg42[%c2, %c0_129, %c0_130] : memref<3x2x256xf32, #tpu.memory_space<vmem>>, vector<1x2x256xf32>
    %229 = vector.shape_cast %228 : vector<1x2x256xf32> to vector<2x256xf32>
    %230 = vector.shape_cast %227 : vector<2x256xf32> to vector<1x2x256xf32>
    tpu.vector_store %arg42[%c2, %c0_129, %c0_130], %230 {strides = array<i32>} : memref<3x2x256xf32, #tpu.memory_space<vmem>>, vector<1x2x256xf32>,
    return
  }
  func.func @transform_0(%arg0: i32) -> (i32, i32, i32) {
    %c0_i32 = arith.constant 0 : i32
    %c0_i32_0 = arith.constant 0 : i32
    %c0_i32_1 = arith.constant 0 : i32
    %c0_i32_2 = arith.constant 0 : i32
    return %c0_i32, %c0_i32_0, %c0_i32_1 : i32, i32, i32
  }
  func.func @transform_1(%arg0: i32) -> (i32, i32, i32) {
    %c0_i32 = arith.constant 0 : i32
    %c0_i32_0 = arith.constant 0 : i32
    %c0_i32_1 = arith.constant 0 : i32
    %c0_i32_2 = arith.constant 0 : i32
    return %c0_i32, %c0_i32_0, %c0_i32_1 : i32, i32, i32
  }
  func.func @transform_2(%arg0: i32) -> (i32, i32) {
    %c0_i32 = arith.constant 0 : i32
    %c0_i32_0 = arith.constant 0 : i32
    %c0_i32_1 = arith.constant 0 : i32
    return %c0_i32, %c0_i32_0 : i32, i32
  }
  func.func @transform_3(%arg0: i32) -> (i32, i32) {
    %c0_i32 = arith.constant 0 : i32
    %c0_i32_0 = arith.constant 0 : i32
    %c0_i32_1 = arith.constant 0 : i32
    return %c0_i32, %c0_i32_0 : i32, i32
  }
  func.func @transform_4(%arg0: i32) -> (i32, i32) {
    %c0_i32 = arith.constant 0 : i32
    %c0_i32_0 = arith.constant 0 : i32
    %c0_i32_1 = arith.constant 0 : i32
    return %c0_i32, %c0_i32_0 : i32, i32
  }
  func.func @transform_5(%arg0: i32) -> (i32, i32) {
    %c0_i32 = arith.constant 0 : i32
    %c0_i32_0 = arith.constant 0 : i32
    %c0_i32_1 = arith.constant 0 : i32
    return %c0_i32, %c0_i32_0 : i32, i32
  }
  func.func @transform_6(%arg0: i32) -> (i32, i32) {
    %c0_i32 = arith.constant 0 : i32
    %c0_i32_0 = arith.constant 0 : i32
    %c0_i32_1 = arith.constant 0 : i32
    return %c0_i32, %c0_i32_0 : i32, i32
  }
  func.func @transform_7(%arg0: i32) -> (i32, i32) {
    %c0_i32 = arith.constant 0 : i32
    %c0_i32_0 = arith.constant 0 : i32
    %c0_i32_1 = arith.constant 0 : i32
    return %c0_i32, %c0_i32_0 : i32, i32
  }
  func.func @transform_8(%arg0: i32) -> (i32, i32) {
    %c0_i32 = arith.constant 0 : i32
    %c0_i32_0 = arith.constant 0 : i32
    %c0_i32_1 = arith.constant 0 : i32
    return %c0_i32, %c0_i32_0 : i32, i32
  }
  func.func @transform_9(%arg0: i32) -> (i32, i32) {
    %c0_i32 = arith.constant 0 : i32
    %c0_i32_0 = arith.constant 0 : i32
    %c0_i32_1 = arith.constant 0 : i32
    return %c0_i32, %c0_i32_0 : i32, i32
  }
  func.func @transform_10(%arg0: i32) -> (i32, i32) {
    %c0_i32 = arith.constant 0 : i32
    %c0_i32_0 = arith.constant 0 : i32
    %c0_i32_1 = arith.constant 0 : i32
    return %c0_i32, %c0_i32_0 : i32, i32
  }
  func.func @transform_11(%arg0: i32) -> (i32, i32) {
    %c0_i32 = arith.constant 0 : i32
    %c0_i32_0 = arith.constant 0 : i32
    %c0_i32_1 = arith.constant 0 : i32
    return %c0_i32, %c0_i32_0 : i32, i32
  }
  func.func @transform_12(%arg0: i32) -> (i32, i32) {
    %c0_i32 = arith.constant 0 : i32
    %c0_i32_0 = arith.constant 0 : i32
    %c0_i32_1 = arith.constant 0 : i32
    return %c0_i32, %c0_i32_0 : i32, i32
  }
  func.func @transform_13(%arg0: i32) -> (i32, i32) {
    %c0_i32 = arith.constant 0 : i32
    %c0_i32_0 = arith.constant 0 : i32
    %c0_i32_1 = arith.constant 0 : i32
    return %c0_i32, %c0_i32_0 : i32, i32
  }
  func.func @transform_14(%arg0: i32) -> (i32, i32) {
    %c0_i32 = arith.constant 0 : i32
    %c0_i32_0 = arith.constant 0 : i32
    %c0_i32_1 = arith.constant 0 : i32
    return %c0_i32, %c0_i32_0 : i32, i32
  }
  func.func @transform_15(%arg0: i32) -> (i32, i32) {
    %c0_i32 = arith.constant 0 : i32
    %c0_i32_0 = arith.constant 0 : i32
    %c0_i32_1 = arith.constant 0 : i32
    return %c0_i32, %c0_i32_0 : i32, i32
  }
  func.func @transform_16(%arg0: i32) -> (i32, i32) {
    %c0_i32 = arith.constant 0 : i32
    %c0_i32_0 = arith.constant 0 : i32
    %c0_i32_1 = arith.constant 0 : i32
    return %c0_i32, %c0_i32_0 : i32, i32
  }
  func.func @transform_17(%arg0: i32) -> (i32, i32) {
    %c0_i32 = arith.constant 0 : i32
    %c0_i32_0 = arith.constant 0 : i32
    %c0_i32_1 = arith.constant 0 : i32
    return %c0_i32, %c0_i32_0 : i32, i32
  }
  func.func @transform_18(%arg0: i32) -> (i32, i32) {
    %c0_i32 = arith.constant 0 : i32
    %c0_i32_0 = arith.constant 0 : i32
    %c0_i32_1 = arith.constant 0 : i32
    return %c0_i32, %c0_i32_0 : i32, i32
  }
  func.func @transform_19(%arg0: i32) -> (i32, i32) {
    %c0_i32 = arith.constant 0 : i32
    %c0_i32_0 = arith.constant 0 : i32
    %c0_i32_1 = arith.constant 0 : i32
    return %c0_i32, %c0_i32_0 : i32, i32
  }
  func.func @transform_20(%arg0: i32) -> (i32, i32) {
    %c0_i32 = arith.constant 0 : i32
    %c0_i32_0 = arith.constant 0 : i32
    %c0_i32_1 = arith.constant 0 : i32
    return %c0_i32, %c0_i32_0 : i32, i32
  }
  func.func @transform_21(%arg0: i32) -> (i32, i32) {
    %c0_i32 = arith.constant 0 : i32
    %c0_i32_0 = arith.constant 0 : i32
    %c0_i32_1 = arith.constant 0 : i32
    return %c0_i32, %c0_i32_0 : i32, i32
  }
  func.func @transform_22(%arg0: i32) -> (i32, i32) {
    %c0_i32 = arith.constant 0 : i32
    %c0_i32_0 = arith.constant 0 : i32
    %c0_i32_1 = arith.constant 0 : i32
    return %c0_i32, %c0_i32_0 : i32, i32
  }
  func.func @transform_23(%arg0: i32) -> (i32, i32) {
    %c0_i32 = arith.constant 0 : i32
    %c0_i32_0 = arith.constant 0 : i32
    %c0_i32_1 = arith.constant 0 : i32
    return %c0_i32, %c0_i32_0 : i32, i32
  }
  func.func @transform_24(%arg0: i32) -> (i32, i32) {
    %c0_i32 = arith.constant 0 : i32
    %c0_i32_0 = arith.constant 0 : i32
    %c0_i32_1 = arith.constant 0 : i32
    return %c0_i32, %c0_i32_0 : i32, i32
  }
  func.func @transform_25(%arg0: i32) -> (i32, i32) {
    %c0_i32 = arith.constant 0 : i32
    %c0_i32_0 = arith.constant 0 : i32
    %c0_i32_1 = arith.constant 0 : i32
    return %c0_i32, %c0_i32_0 : i32, i32
  }
  func.func @transform_26(%arg0: i32) -> (i32, i32) {
    %c0_i32 = arith.constant 0 : i32
    %c0_i32_0 = arith.constant 0 : i32
    %c0_i32_1 = arith.constant 0 : i32
    return %c0_i32, %c0_i32_0 : i32, i32
  }
  func.func @transform_27(%arg0: i32) -> (i32, i32) {
    %c0_i32 = arith.constant 0 : i32
    %c0_i32_0 = arith.constant 0 : i32
    %c0_i32_1 = arith.constant 0 : i32
    return %c0_i32, %c0_i32_0 : i32, i32
  }
  func.func @transform_28(%arg0: i32) -> (i32, i32) {
    %c0_i32 = arith.constant 0 : i32
    %c0_i32_0 = arith.constant 0 : i32
    %c0_i32_1 = arith.constant 0 : i32
    return %c0_i32, %c0_i32_0 : i32, i32
  }
  func.func @transform_29(%arg0: i32) -> (i32, i32) {
    %c0_i32 = arith.constant 0 : i32
    %c0_i32_0 = arith.constant 0 : i32
    %c0_i32_1 = arith.constant 0 : i32
    return %c0_i32, %c0_i32_0 : i32, i32
  }
  func.func @transform_30(%arg0: i32) -> (i32, i32) {
    %c0_i32 = arith.constant 0 : i32
    %c0_i32_0 = arith.constant 0 : i32
    %c0_i32_1 = arith.constant 0 : i32
    return %c0_i32, %c0_i32_0 : i32, i32
  }
  func.func @transform_31(%arg0: i32) -> (i32, i32) {
    %c0_i32 = arith.constant 0 : i32
    %c0_i32_0 = arith.constant 0 : i32
    %c0_i32_1 = arith.constant 0 : i32
    return %c0_i32, %c0_i32_0 : i32, i32
  }
  func.func @transform_32(%arg0: i32) -> (i32, i32) {
    %c0_i32 = arith.constant 0 : i32
    %c0_i32_0 = arith.constant 0 : i32
    %c0_i32_1 = arith.constant 0 : i32
    return %c0_i32, %c0_i32_0 : i32, i32
  }
  func.func @transform_33(%arg0: i32) -> (i32, i32) {
    %c0_i32 = arith.constant 0 : i32
    %c0_i32_0 = arith.constant 0 : i32
    %c0_i32_1 = arith.constant 0 : i32
    return %c0_i32, %c0_i32_0 : i32, i32
  }
  func.func @transform_34(%arg0: i32) -> (i32, i32) {
    %c0_i32 = arith.constant 0 : i32
    %c0_i32_0 = arith.constant 0 : i32
    %c0_i32_1 = arith.constant 0 : i32
    return %c0_i32, %c0_i32_0 : i32, i32
  }
  func.func @transform_35(%arg0: i32) -> (i32, i32) {
    %c0_i32 = arith.constant 0 : i32
    %c0_i32_0 = arith.constant 0 : i32
    %c0_i32_1 = arith.constant 0 : i32
    return %c0_i32, %c0_i32_0 : i32, i32
  }
  func.func @transform_36(%arg0: i32) -> (i32, i32) {
    %c0_i32 = arith.constant 0 : i32
    %c0_i32_0 = arith.constant 0 : i32
    %c0_i32_1 = arith.constant 0 : i32
    return %c0_i32, %c0_i32_0 : i32, i32
  }
  func.func @transform_37(%arg0: i32) -> (i32, i32) {
    %c0_i32 = arith.constant 0 : i32
    %c0_i32_0 = arith.constant 0 : i32
    %c0_i32_1 = arith.constant 0 : i32
    return %c0_i32, %c0_i32_0 : i32, i32
  }
  func.func @transform_38(%arg0: i32) -> (i32, i32) {
    %c0_i32 = arith.constant 0 : i32
    %c0_i32_0 = arith.constant 0 : i32
    %c0_i32_1 = arith.constant 0 : i32
    return %c0_i32, %c0_i32_0 : i32, i32
  }
  func.func @transform_39(%arg0: i32) -> (i32, i32) {
    %c0_i32 = arith.constant 0 : i32
    %c0_i32_0 = arith.constant 0 : i32
    %c0_i32_1 = arith.constant 0 : i32
    return %c0_i32, %c0_i32_0 : i32, i32
  }
  func.func @transform_40(%arg0: i32) -> (i32, i32) {
    %c0_i32 = arith.constant 0 : i32
    %c0_i32_0 = arith.constant 0 : i32
    %c0_i32_1 = arith.constant 0 : i32
    return %c0_i32, %c0_i32_0 : i32, i32
  }
  func.func @transform_41(%arg0: i32) -> (i32, i32, i32) {
    %c0_i32 = arith.constant 0 : i32
    %c0_i32_0 = arith.constant 0 : i32
    %c0_i32_1 = arith.constant 0 : i32
    %c0_i32_2 = arith.constant 0 : i32
    return %c0_i32, %c0_i32_0, %c0_i32_1 : i32, i32, i32
  }
}

</mosaic_0001>

<bundles_post_ra>
// kernel: tile.9
= control target key start
LH: loop header
LB: loop body
LE: loop exit
PB: predicated region body
PF: predicated region fallthrough
CT: control target
= control target key end

     0   :  { %vm16_vm0 = vcmask 31744   ;;  %s61_s0 = inlined_call_operand.vmem [shape: f32[3,2,4], index: 0, kind: input, shape index: {}]   ;;  %s62_s1 = inlined_call_operand.vmem [shape: f32[6,4], index: 1, kind: output, shape index: {}]  }
   0x1   :  { %v29_v0 = vld [vmem:[%s61_s0 + $0x4] sm:$0x3]  ;;  %v30_v1 = vld [vmem:[%s61_s0 + $0x2] sm:$0x3]  ;;  %v13_v2 = vld [vmem:[%s61_s0] sm:$0x3] }
   0x2   :  { %8 = vst [vmem:[#allocation0 + $0x10] sm:$0x3] %v29_v0  ;;  %12 = vst [vmem:[#allocation0 + $0x8] sm:$0x3] %v30_v1 }
   0x3   :  { %14 = vst [vmem:[#allocation0] sm:$0x3] %v13_v2 }
   0x9   :  { %v19_v4 = vld [vmem:[#allocation0 + $0x8] sm:$0x3]   ;;  %v24_v5 = vld [vmem:[#allocation0 + $0x10] sm:$0x3]  }
   0xa   :  { %v15_v3 = vld [vmem:[#allocation0] sm:$0x3]   ;;  %31 = vst.msk [vmem:[%s62_s1 + $0x2] sm:$0x3] %vm16_vm0, %v19_v4   ;;  %32 = vst.msk [vmem:[%s62_s1 + $0x4] sm:$0x3] %vm16_vm0, %v24_v5  }
   0xb   :  { %17 = vst.msk [vmem:[%s62_s1] sm:$0x3] %vm16_vm0, %v15_v3  }

// kernel: paco_voxel_pipeline_forward.1
= control target key start
LH: loop header
LB: loop body
LE: loop exit
PB: predicated region body
PF: predicated region fallthrough
CT: control target
= control target key end

     0   :  { %s12906_s6 = smov 1   ;;  %s12907_s10 = smov 2   ;;  %s15065_s0 = inlined_call_operand.smem [shape: u32[42], index: -1, kind: input, shape index: {}] }
   0x1   :  { %s13009_s5 = sld [smem:[%s15065_s0]]   ;;  %s12908_s14 = smov 3  }
   0x2   :  { %s13014_s9 = sld [smem:[%s15065_s0 + %s12906_s6]]   ;;  %s12909_s18 = smov 4  }
   0x3   :  { %s13019_s13 = sld [smem:[%s15065_s0 + %s12907_s10]]   ;;  %s12910_s22 = smov 5  }
   0x4   :  { %s13024_s17 = sld [smem:[%s15065_s0 + %s12908_s14]]   ;;  %s12911_s26 = smov 6  }
   0x5   :  { %s13029_s21 = sld [smem:[%s15065_s0 + %s12909_s18]]   ;;  %s12912_s30 = smov 7  }
   0x6   :  { %s13034_s25 = sld [smem:[%s15065_s0 + %s12910_s22]]   ;;  %s12913_s4 = smov 8  }
   0x7   :  { %15103 = sst [smem:[#allocation64_spill]] %s13009_s5  ;;  %s12914_s10 = smov 9  }
   0x8   :  { %15104 = sst [smem:[#allocation65_spill]] %s13014_s9  ;;  %s12915_s15 = smov 10  }
   0x9   :  { %15105 = sst [smem:[#allocation66_spill]] %s13019_s13  ;;  %s12916_s20 = smov 11  }
   0xa   :  { %15106 = sst [smem:[#allocation67_spill]] %s13024_s17  ;;  %s12918_s1 = smov 13  }
   0xb   :  { %15107 = sst [smem:[#allocation68_spill]] %s13029_s21  ;;  %s12919_s7 = smov 14  }
   0xc   :  { %15108 = sst [smem:[#allocation69_spill]] %s13034_s25  ;;  %s12921_s22 = smov 16  }
   0xd   :  { %s13039_s29 = sld [smem:[%s15065_s0 + %s12911_s26]]   ;;  %s12917_s26 = smov 12  }
   0xe   :  { %s13044_s3 = sld [smem:[%s15065_s0 + %s12912_s30]]   ;;  %s12922_s28 = smov 17  }
   0xf   :  { %s13049_s8 = sld [smem:[%s15065_s0 + %s12913_s4]]  }
  0x10   :  { %s13054_s14 = sld [smem:[%s15065_s0 + %s12914_s10]]  }
  0x11   :  { %s13059_s19 = sld [smem:[%s15065_s0 + %s12915_s15]]   ;;  %s12920_s15 = smov 15  }
  0x12   :  { %s13064_s24 = sld [smem:[%s15065_s0 + %s12916_s20]]  }
  0x13   :  { %s13069_s30 = sld [smem:[%s15065_s0 + %s12917_s26]]  }
  0x14   :  { %15109 = sst [smem:[#allocation70_spill]] %s13044_s3 }
  0x15   :  { %s13074_s6 = sld [smem:[%s15065_s0 + %s12918_s1]]  }
  0x16   :  { %15110 = sst [smem:[#allocation71_spill]] %s13054_s14 }
  0x17   :  { %s13079_s12 = sld [smem:[%s15065_s0 + %s12919_s7]]   ;;  %s12923_s7 = smov 18  }
  0x18   :  { %15111 = sst [smem:[#allocation72_spill]] %s13064_s24 }
  0x19   :  { %15112 = sst [smem:[#allocation73_spill]] %s13069_s30 }
  0x1a   :  { %s13084_s20 = sld [smem:[%s15065_s0 + %s12920_s15]]   ;;  %s12924_s15 = smov 19  }
  0x1b   :  { %s13089_s27 = sld [smem:[%s15065_s0 + %s12921_s22]]   ;;  %s12925_s22 = smov 20  }
  0x1c   :  { %s13094_s4 = sld [smem:[%s15065_s0 + %s12922_s28]]   ;;  %s12926_s28 = smov 21  }
  0x1d   :  { %15113 = sst [smem:[#allocation74_spill]] %s13079_s12 }
  0x1e   :  { %s13099_s13 = sld [smem:[%s15065_s0 + %s12923_s7]]   ;;  %s12927_s7 = smov 22  }
  0x1f   :  { %s13104_s17 = sld [smem:[%s15065_s0 + %s12924_s15]]   ;;  %s12928_s15 = smov 23  }
  0x20   :  { %15114 = sst [smem:[#allocation75_spill]] %s13084_s20 }
  0x21   :  { %s13109_s24 = sld [smem:[%s15065_s0 + %s12925_s22]]   ;;  %s12929_s22 = smov 24  }
  0x22   :  { %15115 = sst [smem:[#allocation76_spill]] %s13094_s4 }
  0x23   :  { %s13114_s12 = sld [smem:[%s15065_s0 + %s12926_s28]]   ;;  %s12930_s28 = smov 25  }
  0x24   :  { %s13119_s9 = sld [smem:[%s15065_s0 + %s12927_s7]]   ;;  %s12931_s7 = smov 26  }
  0x25   :  { %15116 = sst [smem:[#allocation77_spill]] %s13104_s17 }
  0x26   :  { %s13124_s17 = sld [smem:[%s15065_s0 + %s12928_s15]]   ;;  %s12932_s15 = smov 27  }
  0x27   :  { %15117 = sst [smem:[#allocation78_spill]] %s13109_s24 }
  0x28   :  { %s13129_s5 = sld [smem:[%s15065_s0 + %s12929_s22]]   ;;  %s12933_s22 = smov 28  }
  0x29   :  { %s13134_s21 = sld [smem:[%s15065_s0 + %s12930_s28]]   ;;  %s12934_s28 = smov 29  }
  0x2a   :  { %15118 = sst [smem:[#allocation79_spill]] %s13119_s9 }
  0x2b   :  { %s13139_s9 = sld [smem:[%s15065_s0 + %s12931_s7]]   ;;  %s12935_s7 = smov 30  }
  0x2c   :  { %s13144_s24 = sld [smem:[%s15065_s0 + %s12932_s15]]   ;;  %s12936_s15 = smov 31  }
  0x2d   :  { %s13154_s4 = sld [smem:[%s15065_s0 + %s12934_s28]]   ;;  %s12938_s28 = smov 33  }
  0x2e   :  { %15119 = sst [smem:[#allocation80_spill]] %s13129_s5 }
  0x2f   :  { %s13149_s5 = sld [smem:[%s15065_s0 + %s12933_s22]]   ;;  %s12937_s22 = smov 32  }
  0x30   :  { %s13169_s20 = sld [smem:[%s15065_s0 + %s12937_s22]]   ;;  %s12941_s22 = smov 36  }
  0x31   :  { %15120 = sst [smem:[#allocation81_spill]] %s13139_s9 }
  0x32   :  { %15121 = sst [smem:[#allocation82_spill]] %s13144_s24 }
  0x33   :  { %15122 = sst [smem:[#allocation83_spill]] %s13154_s4 }
  0x34   :  { %s13159_s9 = sld [smem:[%s15065_s0 + %s12935_s7]]   ;;  %s12939_s7 = smov 34  }
  0x35   :  { %s13164_s24 = sld [smem:[%s15065_s0 + %s12936_s15]]   ;;  %s12940_s15 = smov 35  }
  0x36   :  { %s13174_s4 = sld [smem:[%s15065_s0 + %s12938_s28]]   ;;  %s12942_s28 = smov 37  }
  0x37   :  { %s13179_s30 = sld [smem:[%s15065_s0 + %s12939_s7]]   ;;  %s12943_s7 = smov 38  }
  0x38   :  { %s13189_s14 = sld [smem:[%s15065_s0 + %s12941_s22]]   ;;  %s12945_s22 = smov 40  }
  0x39   :  { %s13199_s3 = sld [smem:[%s15065_s0 + %s12943_s7]]  }
  0x3a   :  { %s13209_s25 = sld [smem:[%s15065_s0 + %s12945_s22]]  }
  0x3b   :  { %15123 = sst [smem:[#allocation84_spill]] %s13164_s24 }
  0x3c   :  { %15124 = sst [smem:[#allocation85_spill]] %s13174_s4 }
  0x3d   :  { %s13184_s24 = sld [smem:[%s15065_s0 + %s12940_s15]]   ;;  %s12944_s15 = smov 39  }
  0x3e   :  { %s13194_s4 = sld [smem:[%s15065_s0 + %s12942_s28]]   ;;  %s12946_s28 = smov 41  }
  0x43   :  { %15125 = sst [smem:[#allocation86_spill]] %s13184_s24 }
  0x44   :  { %15126 = sst [smem:[#allocation87_spill]] %s13194_s4 }
  0x45   :  { %s13204_s24 = sld [smem:[%s15065_s0 + %s12944_s15]]  }
  0x46   :  { %s13214_s4 = sld [smem:[%s15065_s0 + %s12946_s28]]  }
  0x47   :  { %89 = vsyncpa [#allocation3], 0 }
  0x48   :  { %90 = vsyncpa [#allocation5], 0 }
  0x49   :  { %91 = vsyncpa [#allocation8], 0 }
  0x4a   :  { %92 = vsyncpa [#allocation11], 0 }
  0x4b   :  { %93 = vsyncpa [#allocation14], 0 }
  0x4c   :  { %94 = vsyncpa [#allocation17], 0 }
  0x4d   :  { %95 = vsyncpa [#allocation20], 0 }
  0x4e   :  { %96 = vsyncpa [#allocation23], 0 }
  0x4f   :  { %97 = vsyncpa [#allocation26], 0 }
  0x50   :  { %98 = vsyncpa [#allocation29], 0 }
  0x51   :  { %99 = vsyncpa [#allocation32], 0 }
  0x52   :  { %100 = vsyncpa [#allocation35], 0 }
  0x53   :  { %101 = vsyncpa [#allocation38], 0 }
  0x54   :  { %102 = vsyncpa [#allocation41], 0 }
  0x55   :  { %103 = vsyncpa [#allocation44], 0 }
  0x56   :  { %104 = vsyncpa [#allocation47], 0  ;;  %s12947_s0 = smov [#allocation4]   ;;  %s12948_s10 = smov [#allocation7]  }
  0x57   :  { %s131_s7 = sshll.u32 %s12947_s0, 4  ;;  %s153_s11 = sshll.u32 %s12948_s10, 4  ;;  %s132_s7 = int_to_ptr.vmem [resolvable:$true] %s131_s7  ;;  %s154_s11 = int_to_ptr.vmem [resolvable:$true] %s153_s11 }
  0x58   :  { %s12214_s15 = scalar_lea.hbm %s13039_s29, 32 }
  0x59   :  { %p12215_p0 = scmp.ne.s32.totalorder %s13039_s29, %s12214_s15  ;;  %p12218_p1 = scmp.lt.u32.totalorder %s12214_s15, %s13039_s29 }
  0x5b   :  { %p12220_p2 = pnand %p12218_p1, %p12215_p0 }
  0x5d   :  { %12223 = shalt.err (!%p12220_p2)
}
  0x5e   :  { %s12224_s16 = scalar_lea.vmem %s132_s7, 32  ;;  %p12229_p4 = scmp.lt.s32.totalorder %s132_s7, %s132_s7 }
  0x5f   :  { %p12225_p3 = scmp.ne.s32.totalorder %s132_s7, %s12224_s16  ;;  %p12230_p5 = scmp.lt.s32.totalorder %s12224_s16, %s12224_s16 }
  0x61   :  { %p12231_p6 = por %p12230_p5, %p12229_p4 }
  0x63   :  { %p12232_p7 = pnand %p12231_p6, %p12225_p3 }
  0x65   :  { %12235 = shalt.err (!%p12232_p7)
}
  0x66   :  { %134 = dma.hbm_to_vmem [thread:$0]  %s13039_s29, 32, %s132_s7, [#allocation5]  }
  0x67   :  { %s12236_s18 = scalar_lea.hbm %s13049_s8, 16 }
  0x68   :  { %p12237_p8 = scmp.ne.s32.totalorder %s13049_s8, %s12236_s18  ;;  %p12240_p9 = scmp.lt.u32.totalorder %s12236_s18, %s13049_s8 }
  0x6a   :  { %p12242_p10 = pnand %p12240_p9, %p12237_p8 }
  0x6c   :  { %12245 = shalt.err (!%p12242_p10)
}
  0x6d   :  { %s12246_s22 = scalar_lea.vmem %s154_s11, 16  ;;  %s12250_s23 = scalar_lea.vmem %s154_s11, 32 }
  0x6e   :  { %p12247_p11 = scmp.ne.s32.totalorder %s154_s11, %s12246_s22  ;;  %p12251_p12 = scmp.lt.s32.totalorder %s154_s11, %s154_s11 }
  0x6f   :  { %p12252_p13 = scmp.lt.s32.totalorder %s12250_s23, %s12246_s22 }
  0x71   :  { %p12253_p0 = por %p12252_p13, %p12251_p12 }
  0x73   :  { %p12254_p1 = pnand %p12253_p0, %p12247_p11 }
  0x75   :  { %12257 = shalt.err (!%p12254_p1)
}
  0x76   :  { %156 = dma.hbm_to_vmem [thread:$0]  %s13049_s8, 16, %s154_s11, [#allocation8]  }
  0x77   :  { %s12949_s26 = smov [#allocation10]   ;;  %s12950_s28 = smov [#allocation13]  }
  0x78   :  { %s175_s29 = sshll.u32 %s12949_s26, 4  ;;  %s197_s1 = sshll.u32 %s12950_s28, 4  ;;  %s176_s29 = int_to_ptr.vmem [resolvable:$true] %s175_s29  ;;  %s198_s1 = int_to_ptr.vmem [resolvable:$true] %s197_s1 }
  0x79   :  { %s12258_s2 = scalar_lea.hbm %s13059_s19, 16 }
  0x7a   :  { %p12259_p2 = scmp.ne.s32.totalorder %s13059_s19, %s12258_s2  ;;  %p12262_p3 = scmp.lt.u32.totalorder %s12258_s2, %s13059_s19 }
  0x7c   :  { %p12264_p4 = pnand %p12262_p3, %p12259_p2 }
  0x7e   :  { %12267 = shalt.err (!%p12264_p4)
}
  0x7f   :  { %s12268_s0 = scalar_lea.vmem %s176_s29, 16  ;;  %s12272_s7 = scalar_lea.vmem %s176_s29, 32 }
  0x80   :  { %p12269_p5 = scmp.ne.s32.totalorder %s176_s29, %s12268_s0  ;;  %p12273_p6 = scmp.lt.s32.totalorder %s176_s29, %s176_s29 }
  0x81   :  { %p12274_p7 = scmp.lt.s32.totalorder %s12272_s7, %s12268_s0 }
  0x83   :  { %p12275_p8 = por %p12274_p7, %p12273_p6 }
  0x85   :  { %p12276_p9 = pnand %p12275_p8, %p12269_p5 }
  0x87   :  { %12279 = shalt.err (!%p12276_p9)
}
  0x88   :  { %178 = dma.hbm_to_vmem [thread:$0]  %s13059_s19, 16, %s176_s29, [#allocation11]  }
  0x89   :  { %s12280_s8 = scalar_lea.hbm %s13074_s6, 32 }
  0x8a   :  { %p12281_p10 = scmp.ne.s32.totalorder %s13074_s6, %s12280_s8  ;;  %p12284_p11 = scmp.lt.u32.totalorder %s12280_s8, %s13074_s6 }
  0x8c   :  { %p12286_p12 = pnand %p12284_p11, %p12281_p10 }
  0x8e   :  { %12289 = shalt.err (!%p12286_p12)
}
  0x8f   :  { %s12290_s10 = scalar_lea.vmem %s198_s1, 32  ;;  %p12295_p0 = scmp.lt.s32.totalorder %s198_s1, %s198_s1 }
  0x90   :  { %p12291_p13 = scmp.ne.s32.totalorder %s198_s1, %s12290_s10  ;;  %p12296_p1 = scmp.lt.s32.totalorder %s12290_s10, %s12290_s10 }
  0x92   :  { %p12297_p2 = por %p12296_p1, %p12295_p0 }
  0x94   :  { %p12298_p3 = pnand %p12297_p2, %p12291_p13 }
  0x96   :  { %12301 = shalt.err (!%p12298_p3)
}
  0x97   :  { %200 = dma.hbm_to_vmem [thread:$0]  %s13074_s6, 32, %s198_s1, [#allocation14]  }
  0x98   :  { %s12951_s11 = smov [#allocation16]   ;;  %s12952_s19 = smov [#allocation19]  }
  0x99   :  { %s221_s15 = sshll.u32 %s12951_s11, 4  ;;  %s243_s16 = sshll.u32 %s12952_s19, 4  ;;  %s222_s15 = int_to_ptr.vmem [resolvable:$true] %s221_s15  ;;  %s244_s16 = int_to_ptr.vmem [resolvable:$true] %s243_s16 }
  0x9a   :  { %s12302_s18 = scalar_lea.hbm %s13089_s27, 128 }
  0x9b   :  { %p12303_p4 = scmp.ne.s32.totalorder %s13089_s27, %s12302_s18  ;;  %p12306_p5 = scmp.lt.u32.totalorder %s12302_s18, %s13089_s27 }
  0x9d   :  { %p12308_p6 = pnand %p12306_p5, %p12303_p4 }
  0x9f   :  { %12311 = shalt.err (!%p12308_p6)
}
  0xa0   :  { %s12312_s22 = scalar_lea.vmem %s222_s15, 128  ;;  %p12317_p8 = scmp.lt.s32.totalorder %s222_s15, %s222_s15 }
  0xa1   :  { %p12313_p7 = scmp.ne.s32.totalorder %s222_s15, %s12312_s22  ;;  %p12318_p9 = scmp.lt.s32.totalorder %s12312_s22, %s12312_s22 }
  0xa3   :  { %p12319_p10 = por %p12318_p9, %p12317_p8 }
  0xa5   :  { %p12320_p11 = pnand %p12319_p10, %p12313_p7 }
  0xa7   :  { %12323 = shalt.err (!%p12320_p11)
}
  0xa8   :  { %224 = dma.hbm_to_vmem [thread:$0]  %s13089_s27, 128, %s222_s15, [#allocation17]  }
  0xa9   :  { %s12324_s6 = scalar_lea.hbm %s13099_s13, 128 }
  0xaa   :  { %p12325_p12 = scmp.ne.s32.totalorder %s13099_s13, %s12324_s6  ;;  %p12328_p13 = scmp.lt.u32.totalorder %s12324_s6, %s13099_s13 }
  0xac   :  { %p12330_p0 = pnand %p12328_p13, %p12325_p12 }
  0xae   :  { %12333 = shalt.err (!%p12330_p0)
}
  0xaf   :  { %s12334_s23 = scalar_lea.vmem %s244_s16, 128  ;;  %p12339_p2 = scmp.lt.s32.totalorder %s244_s16, %s244_s16 }
  0xb0   :  { %p12335_p1 = scmp.ne.s32.totalorder %s244_s16, %s12334_s23  ;;  %p12340_p3 = scmp.lt.s32.totalorder %s12334_s23, %s12334_s23 }
  0xb2   :  { %p12341_p4 = por %p12340_p3, %p12339_p2 }
  0xb4   :  { %p12342_p5 = pnand %p12341_p4, %p12335_p1 }
  0xb6   :  { %12345 = shalt.err (!%p12342_p5)
}
  0xb7   :  { %246 = dma.hbm_to_vmem [thread:$0]  %s13099_s13, 128, %s244_s16, [#allocation20]  }
  0xb8   :  { %s12953_s26 = smov [#allocation22]   ;;  %s12954_s27 = smov [#allocation25]  }
  0xb9   :  { %s267_s29 = sshll.u32 %s12953_s26, 4  ;;  %s286_s28 = sshll.u32 %s12954_s27, 4  ;;  %s268_s29 = int_to_ptr.vmem [resolvable:$true] %s267_s29  ;;  %s13240_s28 = int_to_ptr.vmem [resolvable:$true] %s286_s28 }
  0xba   :  { %s12346_s1 = scalar_lea.hbm %s13114_s12, 32 }
  0xbb   :  { %p12347_p6 = scmp.ne.s32.totalorder %s13114_s12, %s12346_s1  ;;  %p12350_p7 = scmp.lt.u32.totalorder %s12346_s1, %s13114_s12 }
  0xbd   :  { %p12352_p8 = pnand %p12350_p7, %p12347_p6 }
  0xbf   :  { %12355 = shalt.err (!%p12352_p8)
}
  0xc0   :  { %s12356_s2 = scalar_lea.vmem %s268_s29, 32  ;;  %p12361_p10 = scmp.lt.s32.totalorder %s268_s29, %s268_s29 }
  0xc1   :  { %p12357_p9 = scmp.ne.s32.totalorder %s268_s29, %s12356_s2  ;;  %p12362_p11 = scmp.lt.s32.totalorder %s12356_s2, %s12356_s2 }
  0xc3   :  { %p12363_p12 = por %p12362_p11, %p12361_p10 }
  0xc5   :  { %p12364_p13 = pnand %p12363_p12, %p12357_p9 }
  0xc7   :  { %12367 = shalt.err (!%p12364_p13)
}
  0xc8   :  { %270 = dma.hbm_to_vmem [thread:$0]  %s13114_s12, 32, %s268_s29, [#allocation23]  }
  0xc9   :  { %s12368_s13 = scalar_lea.hbm %s13124_s17, 512 }
  0xca   :  { %p12369_p0 = scmp.ne.s32.totalorder %s13124_s17, %s12368_s13  ;;  %p12372_p1 = scmp.lt.u32.totalorder %s12368_s13, %s13124_s17 }
  0xcc   :  { %p12374_p2 = pnand %p12372_p1, %p12369_p0 }
  0xce   :  { %12377 = shalt.err (!%p12374_p2)
}
  0xcf   :  { %s12378_s0 = scalar_lea.vmem %s13240_s28, 512  ;;  %p12383_p4 = scmp.lt.s32.totalorder %s13240_s28, %s13240_s28 }
  0xd0   :  { %p12379_p3 = scmp.ne.s32.totalorder %s13240_s28, %s12378_s0  ;;  %p12384_p5 = scmp.lt.s32.totalorder %s12378_s0, %s12378_s0 }
  0xd2   :  { %p12385_p6 = por %p12384_p5, %p12383_p4 }
  0xd4   :  { %p12386_p7 = pnand %p12385_p6, %p12379_p3 }
  0xd6   :  { %12389 = shalt.err (!%p12386_p7)
}
  0xd7   :  { %s12955_s7 = smov 128   ;;  %s12956_s12 = smov 8  }
  0xd8   :  { %292 = dma.hbm_to_vmem [thread:$0]  %s13124_s17, 512, %s13240_s28, [#allocation26], %s12955_s7, %s12955_s7, %s12956_s12  }
  0xd9   :  { %s12957_s8 = smov [#allocation28]   ;;  %s12958_s11 = smov [#allocation31]  }
  0xda   :  { %s308_s10 = sshll.u32 %s12957_s8, 4  ;;  %s333_s15 = sshll.u32 %s12958_s11, 4  ;;  %s309_s10 = int_to_ptr.vmem [resolvable:$true] %s308_s10  ;;  %s13258_s15 = int_to_ptr.vmem [resolvable:$true] %s333_s15 }
  0xdb   :  { %s12390_s19 = scalar_lea.hbm %s13134_s21, 2048 }
  0xdc   :  { %p12391_p8 = scmp.ne.s32.totalorder %s13134_s21, %s12390_s19  ;;  %p12394_p9 = scmp.lt.u32.totalorder %s12390_s19, %s13134_s21 }
  0xde   :  { %p12396_p10 = pnand %p12394_p9, %p12391_p8 }
  0xe0   :  { %12399 = shalt.err (!%p12396_p10)
}
  0xe1   :  { %s12400_s16 = scalar_lea.vmem %s309_s10, 2048  ;;  %p12405_p12 = scmp.lt.s32.totalorder %s309_s10, %s309_s10 }
  0xe2   :  { %p12401_p11 = scmp.ne.s32.totalorder %s309_s10, %s12400_s16  ;;  %p12406_p13 = scmp.lt.s32.totalorder %s12400_s16, %s12400_s16 }
  0xe4   :  { %p12407_p0 = por %p12406_p13, %p12405_p12 }
  0xe6   :  { %p12408_p1 = pnand %p12407_p0, %p12401_p11 }
  0xe8   :  { %12411 = shalt.err (!%p12408_p1)
}
  0xe9   :  { %s12959_s17 = smov 64   ;;  %s12960_s18 = smov 4  }
  0xea   :  { %314 = dma.hbm_to_vmem [thread:$0]  %s13134_s21, 2048, %s309_s10, [#allocation29], %s12959_s17, %s12959_s17, %s12960_s18  }
  0xeb   :  { %s12412_s22 = scalar_lea.hbm %s13149_s5, 16 }
  0xec   :  { %p12413_p2 = scmp.ne.s32.totalorder %s13149_s5, %s12412_s22  ;;  %p12416_p3 = scmp.lt.u32.totalorder %s12412_s22, %s13149_s5 }
  0xee   :  { %p12418_p4 = pnand %p12416_p3, %p12413_p2 }
  0xf0   :  { %12421 = shalt.err (!%p12418_p4)
}
  0xf1   :  { %s12422_s6 = scalar_lea.vmem %s13258_s15, 16  ;;  %s12426_s23 = scalar_lea.vmem %s13258_s15, 32 }
  0xf2   :  { %p12423_p5 = scmp.ne.s32.totalorder %s13258_s15, %s12422_s6  ;;  %p12427_p6 = scmp.lt.s32.totalorder %s13258_s15, %s13258_s15 }
  0xf3   :  { %p12428_p7 = scmp.lt.s32.totalorder %s12426_s23, %s12422_s6 }
  0xf5   :  { %p12429_p8 = por %p12428_p7, %p12427_p6 }
  0xf7   :  { %p12430_p9 = pnand %p12429_p8, %p12423_p5 }
  0xf9   :  { %12433 = shalt.err (!%p12430_p9)
}
  0xfa   :  { %336 = dma.hbm_to_vmem [thread:$0]  %s13149_s5, 16, %s13258_s15, [#allocation32]  }
  0xfb   :  { %s12961_s21 = smov [#allocation34]   ;;  %s12962_s29 = smov [#allocation37]  }
  0xfc   :  { %s354_s26 = sshll.u32 %s12961_s21, 4  ;;  %s379_s27 = sshll.u32 %s12962_s29, 4  ;;  %s355_s26 = int_to_ptr.vmem [resolvable:$true] %s354_s26  ;;  %s380_s27 = int_to_ptr.vmem [resolvable:$true] %s379_s27 }
  0xfd   :  { %s12434_s28 = scalar_lea.hbm %s13159_s9, 512 }
  0xfe   :  { %p12435_p10 = scmp.ne.s32.totalorder %s13159_s9, %s12434_s28  ;;  %p12438_p11 = scmp.lt.u32.totalorder %s12434_s28, %s13159_s9 }
 0x100   :  { %p12440_p12 = pnand %p12438_p11, %p12435_p10 }
 0x102   :  { %12443 = shalt.err (!%p12440_p12)
}
 0x103   :  { %s12444_s1 = scalar_lea.vmem %s355_s26, 512  ;;  %p12449_p0 = scmp.lt.s32.totalorder %s355_s26, %s355_s26 }
 0x104   :  { %p12445_p13 = scmp.ne.s32.totalorder %s355_s26, %s12444_s1  ;;  %p12450_p1 = scmp.lt.s32.totalorder %s12444_s1, %s12444_s1 }
 0x106   :  { %p12451_p2 = por %p12450_p1, %p12449_p0 }
 0x108   :  { %p12452_p3 = pnand %p12451_p2, %p12445_p13 }
 0x10a   :  { %12455 = shalt.err (!%p12452_p3)
}
 0x10b   :  { %360 = dma.hbm_to_vmem [thread:$0]  %s13159_s9, 512, %s355_s26, [#allocation35], %s12955_s7, %s12955_s7, %s12956_s12  }
 0x10c   :  { %s12456_s5 = scalar_lea.hbm %s13169_s20, 16 }
 0x10d   :  { %p12457_p4 = scmp.ne.s32.totalorder %s13169_s20, %s12456_s5  ;;  %p12460_p5 = scmp.lt.u32.totalorder %s12456_s5, %s13169_s20 }
 0x10f   :  { %p12462_p6 = pnand %p12460_p5, %p12457_p4 }
 0x111   :  { %12465 = shalt.err (!%p12462_p6)
}
 0x112   :  { %s12466_s2 = scalar_lea.vmem %s380_s27, 16  ;;  %s12470_s13 = scalar_lea.vmem %s380_s27, 32 }
 0x113   :  { %p12467_p7 = scmp.ne.s32.totalorder %s380_s27, %s12466_s2  ;;  %p12471_p8 = scmp.lt.s32.totalorder %s380_s27, %s380_s27 }
 0x114   :  { %p12472_p9 = scmp.lt.s32.totalorder %s12470_s13, %s12466_s2 }
 0x116   :  { %p12473_p10 = por %p12472_p9, %p12471_p8 }
 0x118   :  { %p12474_p11 = pnand %p12473_p10, %p12467_p7 }
 0x11a   :  { %12477 = shalt.err (!%p12474_p11)
}
 0x11b   :  { %382 = dma.hbm_to_vmem [thread:$0]  %s13169_s20, 16, %s380_s27, [#allocation38]  }
 0x11c   :  { %s12963_s0 = smov [#allocation40]   ;;  %s12964_s8 = smov [#allocation43]  }
 0x11d   :  { %s400_s9 = sshll.u32 %s12963_s0, 4  ;;  %s422_s10 = sshll.u32 %s12964_s8, 4  ;;  %s401_s9 = int_to_ptr.vmem [resolvable:$true] %s400_s9  ;;  %s13288_s10 = int_to_ptr.vmem [resolvable:$true] %s422_s10 }
 0x11e   :  { %s12478_s11 = scalar_lea.hbm %s13179_s30, 512 }
 0x11f   :  { %p12479_p12 = scmp.ne.s32.totalorder %s13179_s30, %s12478_s11  ;;  %p12482_p13 = scmp.lt.u32.totalorder %s12478_s11, %s13179_s30 }
 0x121   :  { %p12484_p0 = pnand %p12482_p13, %p12479_p12 }
 0x123   :  { %12487 = shalt.err (!%p12484_p0)
}
 0x124   :  { %s12488_s15 = scalar_lea.vmem %s401_s9, 512  ;;  %p12493_p2 = scmp.lt.s32.totalorder %s401_s9, %s401_s9 }
 0x125   :  { %p12489_p1 = scmp.ne.s32.totalorder %s401_s9, %s12488_s15  ;;  %p12494_p3 = scmp.lt.s32.totalorder %s12488_s15, %s12488_s15 }
 0x127   :  { %p12495_p4 = por %p12494_p3, %p12493_p2 }
 0x129   :  { %p12496_p5 = pnand %p12495_p4, %p12489_p1 }
 0x12b   :  { %12499 = shalt.err (!%p12496_p5)
}
 0x12c   :  { %406 = dma.hbm_to_vmem [thread:$0]  %s13179_s30, 512, %s401_s9, [#allocation41], %s12955_s7, %s12955_s7, %s12956_s12  }
 0x12d   :  { %s12500_s20 = scalar_lea.hbm %s13189_s14, 2048 }
 0x12e   :  { %p12501_p6 = scmp.ne.s32.totalorder %s13189_s14, %s12500_s20  ;;  %p12504_p7 = scmp.lt.u32.totalorder %s12500_s20, %s13189_s14 }
 0x130   :  { %p12506_p8 = pnand %p12504_p7, %p12501_p6 }
 0x132   :  { %12509 = shalt.err (!%p12506_p8)
}
 0x133   :  { %s12510_s19 = scalar_lea.vmem %s13288_s10, 2048  ;;  %p12515_p10 = scmp.lt.s32.totalorder %s13288_s10, %s13288_s10 }
 0x134   :  { %p12511_p9 = scmp.ne.s32.totalorder %s13288_s10, %s12510_s19  ;;  %p12516_p11 = scmp.lt.s32.totalorder %s12510_s19, %s12510_s19 }
 0x136   :  { %p12517_p12 = por %p12516_p11, %p12515_p10 }
 0x138   :  { %p12518_p13 = pnand %p12517_p12, %p12511_p9 }
 0x13a   :  { %12521 = shalt.err (!%p12518_p13)
}
 0x13b   :  { %s15127_s30 = sld [smem:[#allocation69_spill]]  ;;  %s12965_s16 = smov [#allocation2]  }
 0x13c   :  { %428 = dma.hbm_to_vmem [thread:$0]  %s13189_s14, 2048, %s13288_s10, [#allocation44], %s12959_s17, %s12959_s17, %s12960_s18  }
 0x13d   :  { %s121_s22 = sshll.u32 %s12965_s16, 4  ;;  %s12966_s6 = smov [#allocation6]   ;;  %s122_s22 = int_to_ptr.vmem [resolvable:$true] %s121_s22 }
 0x13e   :  { %s140_s23 = sshll.u32 %s12966_s6, 4  ;;  %s13309_s23 = int_to_ptr.vmem [resolvable:$true] %s140_s23 }
 0x141   :  { %s12522_s21 = scalar_lea.hbm %s15127_s30, 16 }
 0x142   :  { %p12523_p0 = scmp.ne.s32.totalorder %s15127_s30, %s12522_s21  ;;  %p12526_p1 = scmp.lt.u32.totalorder %s12522_s21, %s15127_s30 }
 0x144   :  { %p12528_p2 = pnand %p12526_p1, %p12523_p0 }
 0x146   :  { %12531 = shalt.err (!%p12528_p2)
}
 0x147   :  { %s12532_s26 = scalar_lea.vmem %s122_s22, 16  ;;  %s12536_s29 = scalar_lea.vmem %s122_s22, 32 }
 0x148   :  { %p12533_p3 = scmp.ne.s32.totalorder %s122_s22, %s12532_s26  ;;  %p12537_p4 = scmp.lt.s32.totalorder %s122_s22, %s122_s22 }
 0x149   :  { %p12538_p5 = scmp.lt.s32.totalorder %s12536_s29, %s12532_s26 }
 0x14b   :  { %p12539_p6 = por %p12538_p5, %p12537_p4 }
 0x14d   :  { %p12540_p7 = pnand %p12539_p6, %p12533_p3 }
 0x14f   :  { %12543 = shalt.err (!%p12540_p7)
}
 0x150   :  { %s15128_s14 = sld [smem:[#allocation70_spill]] }
 0x151   :  { %124 = dma.hbm_to_vmem [thread:$0]  %s15127_s30, 16, %s122_s22, [#allocation3]  }
 0x156   :  { %s12544_s27 = scalar_lea.hbm %s15128_s14, 256 }
 0x157   :  { %p12545_p8 = scmp.ne.s32.totalorder %s15128_s14, %s12544_s27  ;;  %p12548_p9 = scmp.lt.u32.totalorder %s12544_s27, %s15128_s14 }
 0x159   :  { %p12550_p10 = pnand %p12548_p9, %p12545_p8 }
 0x15b   :  { %12553 = shalt.err (!%p12550_p10)
}
 0x15c   :  { %s12554_s28 = scalar_lea.vmem %s13309_s23, 256  ;;  %p12559_p12 = scmp.lt.s32.totalorder %s13309_s23, %s13309_s23 }
 0x15d   :  { %p12555_p11 = scmp.ne.s32.totalorder %s13309_s23, %s12554_s28  ;;  %p12560_p13 = scmp.lt.s32.totalorder %s12554_s28, %s12554_s28 }
 0x15f   :  { %p12561_p0 = por %p12560_p13, %p12559_p12 }
 0x161   :  { %p12562_p1 = pnand %p12561_p0, %p12555_p11 }
 0x163   :  { %12565 = shalt.err (!%p12562_p1)
}
 0x164   :  { %s15129_s1 = sld [smem:[#allocation71_spill]]  ;;  %s12967_s5 = smov [#allocation9]  }
 0x165   :  { %146 = dma.hbm_to_vmem [thread:$0]  %s15128_s14, 256, %s13309_s23, [#allocation5], %s12959_s17, %s12959_s17, %s12960_s18  }
 0x166   :  { %s162_s2 = sshll.u32 %s12967_s5, 4  ;;  %s12968_s13 = smov [#allocation12]   ;;  %s163_s2 = int_to_ptr.vmem [resolvable:$true] %s162_s2 }
 0x167   :  { %s187_s0 = sshll.u32 %s12968_s13, 4  ;;  %s188_s0 = int_to_ptr.vmem [resolvable:$true] %s187_s0 }
 0x16a   :  { %s12566_s9 = scalar_lea.hbm %s15129_s1, 256 }
 0x16b   :  { %p12567_p2 = scmp.ne.s32.totalorder %s15129_s1, %s12566_s9  ;;  %p12570_p3 = scmp.lt.u32.totalorder %s12566_s9, %s15129_s1 }
 0x16d   :  { %p12572_p4 = pnand %p12570_p3, %p12567_p2 }
 0x16f   :  { %12575 = shalt.err (!%p12572_p4)
}
 0x170   :  { %s12576_s8 = scalar_lea.vmem %s163_s2, 256  ;;  %p12581_p6 = scmp.lt.s32.totalorder %s163_s2, %s163_s2 }
 0x171   :  { %p12577_p5 = scmp.ne.s32.totalorder %s163_s2, %s12576_s8  ;;  %p12582_p7 = scmp.lt.s32.totalorder %s12576_s8, %s12576_s8 }
 0x173   :  { %p12583_p8 = por %p12582_p7, %p12581_p6 }
 0x175   :  { %p12584_p9 = pnand %p12583_p8, %p12577_p5 }
 0x177   :  { %12587 = shalt.err (!%p12584_p9)
}
 0x178   :  { %s15130_s10 = sld [smem:[#allocation73_spill]] }
 0x179   :  { %168 = dma.hbm_to_vmem [thread:$0]  %s15129_s1, 256, %s163_s2, [#allocation8], %s12959_s17, %s12959_s17, %s12960_s18  }
 0x17e   :  { %s12588_s11 = scalar_lea.hbm %s15130_s10, 16 }
 0x17f   :  { %p12589_p10 = scmp.ne.s32.totalorder %s15130_s10, %s12588_s11  ;;  %p12592_p11 = scmp.lt.u32.totalorder %s12588_s11, %s15130_s10 }
 0x181   :  { %p12594_p12 = pnand %p12592_p11, %p12589_p10 }
 0x183   :  { %12597 = shalt.err (!%p12594_p12)
}
 0x184   :  { %s12598_s15 = scalar_lea.vmem %s188_s0, 16  ;;  %s12602_s20 = scalar_lea.vmem %s188_s0, 32 }
 0x185   :  { %p12599_p13 = scmp.ne.s32.totalorder %s188_s0, %s12598_s15  ;;  %p12603_p0 = scmp.lt.s32.totalorder %s188_s0, %s188_s0 }
 0x186   :  { %p12604_p1 = scmp.lt.s32.totalorder %s12602_s20, %s12598_s15 }
 0x188   :  { %p12605_p2 = por %p12604_p1, %p12603_p0 }
 0x18a   :  { %p12606_p3 = pnand %p12605_p2, %p12599_p13 }
 0x18c   :  { %12609 = shalt.err (!%p12606_p3)
}
 0x18d   :  { %s15131_s19 = sld [smem:[#allocation75_spill]]  ;;  %s12969_s30 = smov [#allocation15]  }
 0x18e   :  { %190 = dma.hbm_to_vmem [thread:$0]  %s15130_s10, 16, %s188_s0, [#allocation11]  }
 0x18f   :  { %s208_s16 = sshll.u32 %s12969_s30, 4  ;;  %s209_s16 = int_to_ptr.vmem [resolvable:$true] %s208_s16 }
 0x193   :  { %s12610_s22 = scalar_lea.hbm %s15131_s19, 2048 }
 0x194   :  { %p12611_p4 = scmp.ne.s32.totalorder %s15131_s19, %s12610_s22  ;;  %p12614_p5 = scmp.lt.u32.totalorder %s12610_s22, %s15131_s19 }
 0x196   :  { %p12616_p6 = pnand %p12614_p5, %p12611_p4 }
 0x198   :  { %12619 = shalt.err (!%p12616_p6)
}
 0x199   :  { %s12620_s6 = scalar_lea.vmem %s209_s16, 2048  ;;  %p12625_p8 = scmp.lt.s32.totalorder %s209_s16, %s209_s16 }
 0x19a   :  { %p12621_p7 = scmp.ne.s32.totalorder %s209_s16, %s12620_s6  ;;  %p12626_p9 = scmp.lt.s32.totalorder %s12620_s6, %s12620_s6 }
 0x19c   :  { %p12627_p10 = por %p12626_p9, %p12625_p8 }
 0x19e   :  { %p12628_p11 = pnand %p12627_p10, %p12621_p7 }
 0x1a0   :  { %12631 = shalt.err (!%p12628_p11)
}
 0x1a1   :  { %s12970_s23 = smov 512   ;;  %s15132_s21 = sld [smem:[#allocation76_spill]] }
 0x1a2   :  { %s12971_s26 = smov 32   ;;  %s12972_s29 = smov [#allocation18]  }
 0x1a3   :  { %214 = dma.hbm_to_vmem [thread:$0]  %s15131_s19, 2048, %s209_s16, [#allocation14], %s12970_s23, %s12970_s23, %s12971_s26  }
 0x1a4   :  { %s230_s14 = sshll.u32 %s12972_s29, 4  ;;  %s12973_s27 = smov [#allocation21]   ;;  %s231_s14 = int_to_ptr.vmem [resolvable:$true] %s230_s14 }
 0x1a5   :  { %s254_s28 = sshll.u32 %s12973_s27, 4  ;;  %s255_s28 = int_to_ptr.vmem [resolvable:$true] %s254_s28 }
 0x1a7   :  { %s12632_s1 = scalar_lea.hbm %s15132_s21, 65536 }
 0x1a8   :  { %p12633_p12 = scmp.ne.s32.totalorder %s15132_s21, %s12632_s1  ;;  %p12636_p13 = scmp.lt.u32.totalorder %s12632_s1, %s15132_s21 }
 0x1aa   :  { %p12638_p0 = pnand %p12636_p13, %p12633_p12 }
 0x1ac   :  { %12641 = shalt.err (!%p12638_p0)
}
 0x1ad   :  { %s12642_s5 = scalar_lea.vmem %s231_s14, 65536  ;;  %p12647_p2 = scmp.lt.s32.totalorder %s231_s14, %s231_s14 }
 0x1ae   :  { %p12643_p1 = scmp.ne.s32.totalorder %s231_s14, %s12642_s5  ;;  %p12648_p3 = scmp.lt.s32.totalorder %s12642_s5, %s12642_s5 }
 0x1b0   :  { %p12649_p4 = por %p12648_p3, %p12647_p2 }
 0x1b2   :  { %p12650_p5 = pnand %p12649_p4, %p12643_p1 }
 0x1b4   :  { %12653 = shalt.err (!%p12650_p5)
}
 0x1b5   :  { %s15133_s2 = sld [smem:[#allocation78_spill]] }
 0x1b6   :  { %236 = dma.hbm_to_vmem [thread:$0]  %s15132_s21, 65536, %s231_s14, [#allocation17], %s12970_s23, %s12970_s23, %s12971_s26  }
 0x1bb   :  { %s12654_s13 = scalar_lea.hbm %s15133_s2, 256 }
 0x1bc   :  { %p12655_p6 = scmp.ne.s32.totalorder %s15133_s2, %s12654_s13  ;;  %p12658_p7 = scmp.lt.u32.totalorder %s12654_s13, %s15133_s2 }
 0x1be   :  { %p12660_p8 = pnand %p12658_p7, %p12655_p6 }
 0x1c0   :  { %12663 = shalt.err (!%p12660_p8)
}
 0x1c1   :  { %s12664_s0 = scalar_lea.vmem %s255_s28, 256  ;;  %p12669_p10 = scmp.lt.s32.totalorder %s255_s28, %s255_s28 }
 0x1c2   :  { %p12665_p9 = scmp.ne.s32.totalorder %s255_s28, %s12664_s0  ;;  %p12670_p11 = scmp.lt.s32.totalorder %s12664_s0, %s12664_s0 }
 0x1c4   :  { %p12671_p12 = por %p12670_p11, %p12669_p10 }
 0x1c6   :  { %p12672_p13 = pnand %p12671_p12, %p12665_p9 }
 0x1c8   :  { %12675 = shalt.err (!%p12672_p13)
}
 0x1c9   :  { %s15134_s9 = sld [smem:[#allocation79_spill]]  ;;  %s12974_s8 = smov [#allocation24]  }
 0x1ca   :  { %260 = dma.hbm_to_vmem [thread:$0]  %s15133_s2, 256, %s255_s28, [#allocation20], %s12959_s17, %s12959_s17, %s12960_s18  }
 0x1cb   :  { %s277_s10 = sshll.u32 %s12974_s8, 4  ;;  %s12975_s11 = smov [#allocation27]   ;;  %s278_s10 = int_to_ptr.vmem [resolvable:$true] %s277_s10 }
 0x1cc   :  { %s299_s15 = sshll.u32 %s12975_s11, 4  ;;  %s300_s15 = int_to_ptr.vmem [resolvable:$true] %s299_s15 }
 0x1cf   :  { %s12676_s20 = scalar_lea.hbm %s15134_s9, 16 }
 0x1d0   :  { %p12677_p0 = scmp.ne.s32.totalorder %s15134_s9, %s12676_s20  ;;  %p12680_p1 = scmp.lt.u32.totalorder %s12676_s20, %s15134_s9 }
 0x1d2   :  { %p12682_p2 = pnand %p12680_p1, %p12677_p0 }
 0x1d4   :  { %12685 = shalt.err (!%p12682_p2)
}
 0x1d5   :  { %s12686_s19 = scalar_lea.vmem %s278_s10, 16  ;;  %s12690_s30 = scalar_lea.vmem %s278_s10, 32 }
 0x1d6   :  { %p12687_p3 = scmp.ne.s32.totalorder %s278_s10, %s12686_s19  ;;  %p12691_p4 = scmp.lt.s32.totalorder %s278_s10, %s278_s10 }
 0x1d7   :  { %p12692_p5 = scmp.lt.s32.totalorder %s12690_s30, %s12686_s19 }
 0x1d9   :  { %p12693_p6 = por %p12692_p5, %p12691_p4 }
 0x1db   :  { %p12694_p7 = pnand %p12693_p6, %p12687_p3 }
 0x1dd   :  { %12697 = shalt.err (!%p12694_p7)
}
 0x1de   :  { %s15135_s16 = sld [smem:[#allocation80_spill]] }
 0x1df   :  { %280 = dma.hbm_to_vmem [thread:$0]  %s15134_s9, 16, %s278_s10, [#allocation23]  }
 0x1e4   :  { %s12698_s22 = scalar_lea.hbm %s15135_s16, 32 }
 0x1e5   :  { %p12699_p8 = scmp.ne.s32.totalorder %s15135_s16, %s12698_s22  ;;  %p12702_p9 = scmp.lt.u32.totalorder %s12698_s22, %s15135_s16 }
 0x1e7   :  { %p12704_p10 = pnand %p12702_p9, %p12699_p8 }
 0x1e9   :  { %12707 = shalt.err (!%p12704_p10)
}
 0x1ea   :  { %s12708_s6 = scalar_lea.vmem %s300_s15, 32  ;;  %p12713_p12 = scmp.lt.s32.totalorder %s300_s15, %s300_s15 }
 0x1eb   :  { %p12709_p11 = scmp.ne.s32.totalorder %s300_s15, %s12708_s6  ;;  %p12714_p13 = scmp.lt.s32.totalorder %s12708_s6, %s12708_s6 }
 0x1ed   :  { %p12715_p0 = por %p12714_p13, %p12713_p12 }
 0x1ef   :  { %p12716_p1 = pnand %p12715_p0, %p12709_p11 }
 0x1f1   :  { %12719 = shalt.err (!%p12716_p1)
}
 0x1f2   :  { %s15136_s23 = sld [smem:[#allocation81_spill]]  ;;  %s12976_s21 = smov [#allocation30]  }
 0x1f3   :  { %302 = dma.hbm_to_vmem [thread:$0]  %s15135_s16, 32, %s300_s15, [#allocation26]  }
 0x1f4   :  { %s321_s29 = sshll.u32 %s12976_s21, 4  ;;  %s12977_s14 = smov [#allocation33]   ;;  %s322_s29 = int_to_ptr.vmem [resolvable:$true] %s321_s29 }
 0x1f5   :  { %s342_s27 = sshll.u32 %s12977_s14, 4  ;;  %s343_s27 = int_to_ptr.vmem [resolvable:$true] %s342_s27 }
 0x1f8   :  { %s12720_s28 = scalar_lea.hbm %s15136_s23, 16 }
 0x1f9   :  { %p12721_p2 = scmp.ne.s32.totalorder %s15136_s23, %s12720_s28  ;;  %p12724_p3 = scmp.lt.u32.totalorder %s12720_s28, %s15136_s23 }
 0x1fb   :  { %p12726_p4 = pnand %p12724_p3, %p12721_p2 }
 0x1fd   :  { %12729 = shalt.err (!%p12726_p4)
}
 0x1fe   :  { %s12730_s1 = scalar_lea.vmem %s322_s29, 16  ;;  %s12734_s5 = scalar_lea.vmem %s322_s29, 32 }
 0x1ff   :  { %p12731_p5 = scmp.ne.s32.totalorder %s322_s29, %s12730_s1  ;;  %p12735_p6 = scmp.lt.s32.totalorder %s322_s29, %s322_s29 }
 0x200   :  { %p12736_p7 = scmp.lt.s32.totalorder %s12734_s5, %s12730_s1 }
 0x202   :  { %p12737_p8 = por %p12736_p7, %p12735_p6 }
 0x204   :  { %p12738_p9 = pnand %p12737_p8, %p12731_p5 }
 0x206   :  { %12741 = shalt.err (!%p12738_p9)
}
 0x207   :  { %s15137_s2 = sld [smem:[#allocation83_spill]] }
 0x208   :  { %324 = dma.hbm_to_vmem [thread:$0]  %s15136_s23, 16, %s322_s29, [#allocation29]  }
 0x20d   :  { %s12742_s13 = scalar_lea.hbm %s15137_s2, 2048 }
 0x20e   :  { %p12743_p10 = scmp.ne.s32.totalorder %s15137_s2, %s12742_s13  ;;  %p12746_p11 = scmp.lt.u32.totalorder %s12742_s13, %s15137_s2 }
 0x210   :  { %p12748_p12 = pnand %p12746_p11, %p12743_p10 }
 0x212   :  { %12751 = shalt.err (!%p12748_p12)
}
 0x213   :  { %s12752_s0 = scalar_lea.vmem %s343_s27, 2048  ;;  %p12757_p0 = scmp.lt.s32.totalorder %s343_s27, %s343_s27 }
 0x214   :  { %p12753_p13 = scmp.ne.s32.totalorder %s343_s27, %s12752_s0  ;;  %p12758_p1 = scmp.lt.s32.totalorder %s12752_s0, %s12752_s0 }
 0x216   :  { %p12759_p2 = por %p12758_p1, %p12757_p0 }
 0x218   :  { %p12760_p3 = pnand %p12759_p2, %p12753_p13 }
 0x21a   :  { %12763 = shalt.err (!%p12760_p3)
}
 0x21b   :  { %s12978_s9 = smov 256   ;;  %s15138_s8 = sld [smem:[#allocation84_spill]] }
 0x21c   :  { %s12979_s10 = smov 16   ;;  %s12980_s11 = smov [#allocation36]  }
 0x21d   :  { %348 = dma.hbm_to_vmem [thread:$0]  %s15137_s2, 2048, %s343_s27, [#allocation32], %s12978_s9, %s12978_s9, %s12979_s10  }
 0x21e   :  { %s366_s15 = sshll.u32 %s12980_s11, 4  ;;  %s12981_s20 = smov [#allocation39]   ;;  %s367_s15 = int_to_ptr.vmem [resolvable:$true] %s366_s15 }
 0x21f   :  { %s388_s19 = sshll.u32 %s12981_s20, 4  ;;  %s389_s19 = int_to_ptr.vmem [resolvable:$true] %s388_s19 }
 0x221   :  { %s12764_s30 = scalar_lea.hbm %s15138_s8, 2048 }
 0x222   :  { %p12765_p4 = scmp.ne.s32.totalorder %s15138_s8, %s12764_s30  ;;  %p12768_p5 = scmp.lt.u32.totalorder %s12764_s30, %s15138_s8 }
 0x224   :  { %p12770_p6 = pnand %p12768_p5, %p12765_p4 }
 0x226   :  { %12773 = shalt.err (!%p12770_p6)
}
 0x227   :  { %s12774_s16 = scalar_lea.vmem %s367_s15, 2048  ;;  %p12779_p8 = scmp.lt.s32.totalorder %s367_s15, %s367_s15 }
 0x228   :  { %p12775_p7 = scmp.ne.s32.totalorder %s367_s15, %s12774_s16  ;;  %p12780_p9 = scmp.lt.s32.totalorder %s12774_s16, %s12774_s16 }
 0x22a   :  { %p12781_p10 = por %p12780_p9, %p12779_p8 }
 0x22c   :  { %p12782_p11 = pnand %p12781_p10, %p12775_p7 }
 0x22e   :  { %12785 = shalt.err (!%p12782_p11)
}
 0x22f   :  { %s15139_s22 = sld [smem:[#allocation85_spill]] }
 0x230   :  { %372 = dma.hbm_to_vmem [thread:$0]  %s15138_s8, 2048, %s367_s15, [#allocation35], %s12959_s17, %s12959_s17, %s12960_s18  }
 0x235   :  { %s12786_s6 = scalar_lea.hbm %s15139_s22, 2048 }
 0x236   :  { %p12787_p12 = scmp.ne.s32.totalorder %s15139_s22, %s12786_s6  ;;  %p12790_p13 = scmp.lt.u32.totalorder %s12786_s6, %s15139_s22 }
 0x238   :  { %p12792_p0 = pnand %p12790_p13, %p12787_p12 }
 0x23a   :  { %12795 = shalt.err (!%p12792_p0)
}
 0x23b   :  { %s12796_s23 = scalar_lea.vmem %s389_s19, 2048  ;;  %p12801_p2 = scmp.lt.s32.totalorder %s389_s19, %s389_s19 }
 0x23c   :  { %p12797_p1 = scmp.ne.s32.totalorder %s389_s19, %s12796_s23  ;;  %p12802_p3 = scmp.lt.s32.totalorder %s12796_s23, %s12796_s23 }
 0x23e   :  { %p12803_p4 = por %p12802_p3, %p12801_p2 }
 0x240   :  { %p12804_p5 = pnand %p12803_p4, %p12797_p1 }
 0x242   :  { %12807 = shalt.err (!%p12804_p5)
}
 0x243   :  { %s15140_s21 = sld [smem:[#allocation86_spill]]  ;;  %s12982_s17 = smov [#allocation42]  }
 0x244   :  { %394 = dma.hbm_to_vmem [thread:$0]  %s15139_s22, 2048, %s389_s19, [#allocation38], %s12955_s7, %s12955_s7, %s12956_s12  }
 0x245   :  { %s413_s18 = sshll.u32 %s12982_s17, 4  ;;  %s12983_s29 = smov [#allocation45]   ;;  %s414_s18 = int_to_ptr.vmem [resolvable:$true] %s413_s18 }
 0x246   :  { %s435_s14 = sshll.u32 %s12983_s29, 4  ;;  %s436_s14 = int_to_ptr.vmem [resolvable:$true] %s435_s14 }
 0x249   :  { %s12808_s27 = scalar_lea.hbm %s15140_s21, 32 }
 0x24a   :  { %p12809_p6 = scmp.ne.s32.totalorder %s15140_s21, %s12808_s27  ;;  %p12812_p7 = scmp.lt.u32.totalorder %s12808_s27, %s15140_s21 }
 0x24c   :  { %p12814_p8 = pnand %p12812_p7, %p12809_p6 }
 0x24e   :  { %12817 = shalt.err (!%p12814_p8)
}
 0x24f   :  { %s12818_s28 = scalar_lea.vmem %s414_s18, 32  ;;  %p12823_p10 = scmp.lt.s32.totalorder %s414_s18, %s414_s18 }
 0x250   :  { %p12819_p9 = scmp.ne.s32.totalorder %s414_s18, %s12818_s28  ;;  %p12824_p11 = scmp.lt.s32.totalorder %s12818_s28, %s12818_s28 }
 0x252   :  { %p12825_p12 = por %p12824_p11, %p12823_p10 }
 0x254   :  { %p12826_p13 = pnand %p12825_p12, %p12819_p9 }
 0x256   :  { %12829 = shalt.err (!%p12826_p13)
}
 0x257   :  { %s15141_s1 = sld [smem:[#allocation87_spill]] }
 0x258   :  { %416 = dma.hbm_to_vmem [thread:$0]  %s15140_s21, 32, %s414_s18, [#allocation41]  }
 0x25d   :  { %s12830_s7 = scalar_lea.hbm %s15141_s1, 16 }
 0x25e   :  { %p12831_p0 = scmp.ne.s32.totalorder %s15141_s1, %s12830_s7  ;;  %p12834_p1 = scmp.lt.u32.totalorder %s12830_s7, %s15141_s1 }
 0x260   :  { %p12836_p2 = pnand %p12834_p1, %p12831_p0 }
 0x262   :  { %12839 = shalt.err (!%p12836_p2)
}
 0x263   :  { %s12840_s12 = scalar_lea.vmem %s436_s14, 16  ;;  %s12844_s5 = scalar_lea.vmem %s436_s14, 32 }
 0x264   :  { %p12841_p3 = scmp.ne.s32.totalorder %s436_s14, %s12840_s12  ;;  %p12845_p4 = scmp.lt.s32.totalorder %s436_s14, %s436_s14 }
 0x265   :  { %p12846_p5 = scmp.lt.s32.totalorder %s12844_s5, %s12840_s12 }
 0x267   :  { %p12847_p6 = por %p12846_p5, %p12845_p4 }
 0x269   :  { %p12848_p7 = pnand %p12847_p6, %p12841_p3 }
 0x26b   :  { %12851 = shalt.err (!%p12848_p7)
}
 0x26c   :  { %438 = dma.hbm_to_vmem [thread:$0]  %s15141_s1, 16, %s436_s14, [#allocation44]  }
 0x26d   :  { %s12984_s2 = smov [#allocation46]   ;;  %s12852_s0 = scalar_lea.hbm %s13199_s3, 16 }
 0x26e   :  { %s445_s13 = sshll.u32 %s12984_s2, 4  ;;  %p12853_p8 = scmp.ne.s32.totalorder %s13199_s3, %s12852_s0  ;;  %s446_s13 = int_to_ptr.vmem [resolvable:$true] %s445_s13 }
 0x26f   :  { %p12856_p9 = scmp.lt.u32.totalorder %s12852_s0, %s13199_s3 }
 0x271   :  { %p12858_p10 = pnand %p12856_p9, %p12853_p8 }
 0x273   :  { %12861 = shalt.err (!%p12858_p10)
}
 0x274   :  { %s12862_s9 = scalar_lea.vmem %s446_s13, 16  ;;  %s12866_s8 = scalar_lea.vmem %s446_s13, 32 }
 0x275   :  { %p12863_p11 = scmp.ne.s32.totalorder %s446_s13, %s12862_s9  ;;  %p12867_p12 = scmp.lt.s32.totalorder %s446_s13, %s446_s13 }
 0x276   :  { %p12868_p13 = scmp.lt.s32.totalorder %s12866_s8, %s12862_s9 }
 0x278   :  { %p12869_p0 = por %p12868_p13, %p12867_p12 }
 0x27a   :  { %p12870_p1 = pnand %p12869_p0, %p12863_p11 }
 0x27c   :  { %12873 = shalt.err (!%p12870_p1)
}
 0x27d   :  { %448 = dma.hbm_to_vmem [thread:$0]  %s13199_s3, 16, %s446_s13, [#allocation47]  }
 0x27e   :  { %12874 = dma.done.wait [#allocation3], 16  }
 0x27f   :  { %12875 = vsyncadd [#allocation3], 4294967280 }
 0x280   :  { %12876 = dma.done.wait [#allocation5], 288  }
 0x281   :  { %12877 = vsyncadd [#allocation5], 4294967008 }
 0x282   :  { %12878 = dma.done.wait [#allocation8], 272  }
 0x283   :  { %12879 = vsyncadd [#allocation8], 4294967024 }
 0x284   :  { %12880 = dma.done.wait [#allocation11], 32  }
 0x285   :  { %12881 = vsyncadd [#allocation11], 4294967264 }
 0x286   :  { %12882 = dma.done.wait [#allocation14], 2080  }
 0x287   :  { %12883 = vsyncadd [#allocation14], 4294965216 }
 0x288   :  { %12884 = dma.done.wait [#allocation17], 65664  }
 0x289   :  { %12885 = vsyncadd [#allocation17], 4294901632 }
 0x28a   :  { %12886 = dma.done.wait [#allocation20], 384  }
 0x28b   :  { %12887 = vsyncadd [#allocation20], 4294966912 }
 0x28c   :  { %12888 = dma.done.wait [#allocation23], 48  }
 0x28d   :  { %12889 = vsyncadd [#allocation23], 4294967248 }
 0x28e   :  { %12890 = dma.done.wait [#allocation26], 544  }
 0x28f   :  { %12891 = vsyncadd [#allocation26], 4294966752 }
 0x290   :  { %12892 = dma.done.wait [#allocation29], 2064  }
 0x291   :  { %12893 = vsyncadd [#allocation29], 4294965232 }
 0x292   :  { %12894 = dma.done.wait [#allocation32], 2064  }
 0x293   :  { %12895 = vsyncadd [#allocation32], 4294965232 }
 0x294   :  { %12896 = dma.done.wait [#allocation35], 2560  }
 0x295   :  { %12897 = vsyncadd [#allocation35], 4294964736 }
 0x296   :  { %12898 = dma.done.wait [#allocation38], 2064  }
 0x297   :  { %12899 = vsyncadd [#allocation38], 4294965232 }
 0x298   :  { %12900 = dma.done.wait [#allocation41], 544  }
 0x299   :  { %12901 = vsyncadd [#allocation41], 4294966752 }
 0x29a   :  { %12902 = dma.done.wait [#allocation44], 2064  }
 0x29b   :  { %12903 = vsyncadd [#allocation44], 4294965232 }
 0x29c   :  { %12904 = dma.done.wait [#allocation47], 16  }
 0x29d   :  { %12905 = vsyncadd [#allocation47], 4294967280  ;;  %s15142_s3 = sld [smem:[#allocation68_spill]]  ;;  %s15143_s10 = sld [smem:[#allocation64_spill]]  ;;  %v15100_v0 = vmov 0   ;;  %v12007_v35 = vld [vmem:[#allocation6] sm:$0xff]  }
 0x29e   :  { %11989 = vset.pattern.permute.xlu0 %v15100_v0  ;;  %11990 = vset.pattern.permute.xlu1 %v15100_v0  ;;  %s15144_s11 = sld [smem:[#allocation65_spill]]  ;;  %s15145_s15 = sld [smem:[#allocation74_spill]]  ;;  %v8983_v33 = vld [vmem:[%s13204_s24] sm:$0x3]  ;;  %v15099_v36 = vmov 0.0   ;;  %v12008_v37 = vld [vmem:[#allocation6 + $0x8] sm:$0xff]  }
 0x29f   :  { %11682 = vmatprep.subr.bf16.mxu1 %v15099_v36  ;;  %vm12987_vm0 = vmmov 0   ;;  %v13440_v38 = vld [vmem:[#allocation15 + $0x10] sm:$0xff]  ;;  %vm902_vm1 = vcmask 261120   ;;  %s15146_s24 = sld [smem:[#allocation72_spill]]  ;;  %vm1135_vm2 = vcmask 523264   ;;  %s12995_s20 = smov 127  }
 0x2a0   :  { %11686 = vmatprep.mubr.msk.bf16.mxu1 %vm12987_vm0, %v15099_v36  ;;  %v13442_v39 = vld [vmem:[#allocation15 + $0x30] sm:$0xff]  ;;  %s12996_s19 = smov 2   ;;  %s12997_s30 = smov 1  }
 0x2a1   :  { %v10469_v40 = vcombine.low %v13440_v38, %v13442_v39  ;;  %v10470_v41 = vcombine.high %v13440_v38, %v13442_v39  ;;  %v13456_v50 = vld [vmem:[#allocation2] ss:$0 sm:$0xff]  ;;  %v10442_v38 = vld [vmem:[#allocation7] ss:$0 sm:$0xff]  ;;  %s15149_s16 = sld [smem:[#allocation82_spill]]  ;;  %s13000_s22 = smov 36  }
 0x2a2   :  { %s15152_s6 = sld [smem:[#allocation66_spill]] }
 0x2a3   :  { %v11991_v1 = vld [vmem:[%s15142_s3] sm:$0xff]   ;;  %v11992_v2 = vld [vmem:[%s15142_s3 + $0x8] sm:$0xff]   ;;  %v11993_v3 = vld [vmem:[%s15142_s3 + $0x10] sm:$0xff]  }
 0x2a4   :  { %11642 = vmatprep.subr.bf16.mxu0 %v11991_v1  ;;  %v11994_v4 = vld [vmem:[%s15142_s3 + $0x18] sm:$0xff]   ;;  %v11999_v5 = vld [vmem:[%s15143_s10] sm:$0xff]   ;;  %v11996_v7 = vld [vmem:[%s15142_s3 + $0x28] sm:$0xff]  }
 0x2a5   :  { %11643 = vmatpush3.bf16.msra.mxu0 %v11991_v1  ;;  %11658 = vmatprep.mubr.bf16.mxu0 %v11999_v5  ;;  %v11995_v6 = vld [vmem:[%s15142_s3 + $0x20] sm:$0xff]   ;;  %v792_v9 = vld [vmem:[%s15144_s11 + $0x10] sm:$0xff]  ;;  %v791_v10 = vld [vmem:[%s15144_s11 + $0x8] sm:$0xff] }
 0x2a6   :  { %11644 = vmatprep.subr.bf16.mxu0 %v11992_v2  ;;  %v790_v8 = vld [vmem:[%s15144_s11] sm:$0xff]  ;;  %818 = vperm.xlu1 %11990, %v792_v9   ;;  %v793_v11 = vld [vmem:[%s15144_s11 + $0x18] sm:$0xff]  ;;  %v11997_v12 = vld [vmem:[%s15142_s3 + $0x30] sm:$0xff]  }
 0x2a7   :  { %808 = vperm.xlu0 %11989, %v790_v8   ;;  %v798_v13 = vld [vmem:[%s15144_s11 + $0x40] sm:$0xff]  ;;  %v799_v14 = vld [vmem:[%s15144_s11 + $0x48] sm:$0xff]  ;;  %v11998_v15 = vld [vmem:[%s15142_s3 + $0x38] sm:$0xff]  }
 0x2a8   :  { %v800_v16 = vld [vmem:[%s15144_s11 + $0x50] sm:$0xff]  ;;  %v801_v17 = vld [vmem:[%s15144_s11 + $0x58] sm:$0xff]  ;;  %v12000_v18 = vld [vmem:[%s15143_s10 + $0x8] sm:$0xff]  }
 0x2a9   :  { %11645 = vmatpush3.bf16.msra.mxu0 %v11992_v2  ;;  %v794_v19 = vld [vmem:[%s15144_s11 + $0x20] sm:$0xff]  ;;  %v795_v20 = vld [vmem:[%s15144_s11 + $0x28] sm:$0xff]  ;;  %v12001_v21 = vld [vmem:[%s15143_s10 + $0x10] sm:$0xff]  }
 0x2aa   :  { %11646 = vmatprep.subr.bf16.mxu0 %v11993_v3  ;;  %823 = vperm.xlu1 %11990, %v793_v11   ;;  %v802_v22 = vld [vmem:[%s15144_s11 + $0x60] sm:$0xff]  ;;  %v803_v23 = vld [vmem:[%s15144_s11 + $0x68] sm:$0xff]  ;;  %v12002_v24 = vld [vmem:[%s15143_s10 + $0x18] sm:$0xff]  }
 0x2ab   :  { %813 = vperm.xlu0 %11989, %v791_v10   ;;  %v796_v25 = vld [vmem:[%s15144_s11 + $0x30] sm:$0xff]  ;;  %v797_v26 = vld [vmem:[%s15144_s11 + $0x38] sm:$0xff]  ;;  %v12003_v27 = vld [vmem:[%s15143_s10 + $0x20] sm:$0xff]  }
 0x2ac   :  { %v804_v28 = vld [vmem:[%s15144_s11 + $0x70] sm:$0xff]  ;;  %v805_v29 = vld [vmem:[%s15144_s11 + $0x78] sm:$0xff]  ;;  %v12004_v30 = vld [vmem:[%s15143_s10 + $0x28] sm:$0xff]  }
 0x2ad   :  { %11647 = vmatpush3.bf16.msra.mxu0 %v11993_v3  ;;  %v1180_v31 = vld [vmem:[%s15145_s15] sm:$0x7]  ;;  %v12005_v32 = vld [vmem:[%s15143_s10 + $0x30] sm:$0xff]   ;;  %v12006_v34 = vld [vmem:[%s15143_s10 + $0x38] sm:$0xff]  }
 0x2ae   :  { %11648 = vmatprep.subr.bf16.mxu0 %v11994_v4  ;;  %853 = vperm.xlu1 %11990, %v799_v14  }
 0x2af   :  { %848 = vperm.xlu0 %11989, %v798_v13  }
 0x2b1   :  { %11649 = vmatpush3.bf16.msra.mxu0 %v11994_v4 }
 0x2b2   :  { %11650 = vmatprep.subr.bf16.mxu0 %v11995_v6  ;;  %863 = vperm.xlu1 %11990, %v801_v17  }
 0x2b3   :  { %858 = vperm.xlu0 %11989, %v800_v16  }
 0x2b5   :  { %11651 = vmatpush3.bf16.msra.mxu0 %v11995_v6 }
 0x2b6   :  { %11652 = vmatprep.subr.bf16.mxu0 %v11996_v7  ;;  %833 = vperm.xlu1 %11990, %v795_v20  }
 0x2b7   :  { %828 = vperm.xlu0 %11989, %v794_v19  }
 0x2b9   :  { %11653 = vmatpush3.bf16.msra.mxu0 %v11996_v7 }
 0x2ba   :  { %11654 = vmatprep.subr.bf16.mxu0 %v11997_v12  ;;  %873 = vperm.xlu1 %11990, %v803_v23  }
 0x2bb   :  { %868 = vperm.xlu0 %11989, %v802_v22  }
 0x2bd   :  { %11655 = vmatpush3.bf16.msra.mxu0 %v11997_v12 }
 0x2be   :  { %11656 = vmatprep.subr.bf16.mxu0 %v11998_v15  ;;  %843 = vperm.xlu1 %11990, %v797_v26  }
 0x2bf   :  { %838 = vperm.xlu0 %11989, %v796_v25  }
 0x2c1   :  { %11657 = vmatpush3.bf16.msra.mxu0 %v11998_v15 }
 0x2c2   :  { %883 = vperm.xlu1 %11990, %v805_v29   ;;  %11674 = vmatprep.subr.bf16.mxu0 %v15099_v36 }
 0x2c3   :  { %878 = vperm.xlu0 %11989, %v804_v28  }
 0x2c4   :  { %11659 = vmatmul.mubr.bf16.vlgmr.msra.gmra.mrb[0].mxu0 %v12000_v18 }
 0x2c5   :  { %11662 = vmatprep.mubr.bf16.mxu0 %v12001_v21  ;;  %11675 = vmatpush3.bf16.msra.mxu0 %v12007_v35 }
 0x2c6   :  { %11676 = vmatprep.subr.bf16.mxu0 %v15099_v36 }
 0x2c7   :  { %1183 = vperm.xlu0 %11989, %v1180_v31  }
 0x2c9   :  { %11677 = vmatpush3.bf16.msra.mxu0 %v12008_v37 }
 0x2ca   :  { %1684 = vmatprep.subr.bf16.mxu0 %v10470_v41 }
 0x2cb   :  { %8986 = vperm.xlu0 %11989, %v8983_v33  }
 0x2cc   :  { %11663 = vmatmul.mubr.bf16.gmra.mrb[4].mxu0 %v12002_v24 }
 0x2cd   :  { %11666 = vmatprep.mubr.bf16.mxu0 %v12003_v27 }
 0x2d4   :  { %11667 = vmatmul.mubr.bf16.gmra.mrb[8].mxu0 %v12004_v30 }
 0x2d5   :  { %11670 = vmatprep.mubr.bf16.mxu0 %v12005_v32 }
 0x2dc   :  { %11671 = vmatmul.mubr.bf16.gmra.mrb[12].mxu0 %v12006_v34 }
 0x2dd   :  { %11678 = vmatprep.mubr.msk.bf16.mxu0 %vm12987_vm0, %v15099_v36 }
 0x325   :  { %v819_v43 = vpop.permute.xlu1 %818 }
 0x326   :  { %v809_v42 = vpop.permute.xlu0 %808 }
 0x329   :  { %v824_v45 = vpop.permute.xlu1 %823 }
 0x32a   :  { %v814_v44 = vpop.permute.xlu0 %813 }
 0x32d   :  { %v13450_v47 = vpop.permute.xlu1 %853 }
 0x32e   :  { %v13448_v46 = vpop.permute.xlu0 %848 }
 0x331   :  { %v13454_v49 = vpop.permute.xlu1 %863 }
 0x332   :  { %v13452_v48 = vpop.permute.xlu0 %858 }
 0x335   :  { %v834_v57 = vpop.permute.xlu1 %833 }
 0x336   :  { %v829_v52 = vpop.permute.xlu0 %828 }
 0x339   :  { %v13466_v10 = vpop.permute.xlu1 %873 }
 0x33a   :  { %v13462_v4 = vpop.permute.xlu0 %868 }
 0x33d   :  { %v844_v29 = vpop.permute.xlu1 %843 }
 0x33e   :  { %v839_v24 = vpop.permute.xlu0 %838 }
 0x397   :  { %v11660_v51 = vpop.f32.mrb[0].mxu0 }
 0x398   :  { %v720_v53 = vadd.f32 %v11660_v51, %v13456_v50  ;;  %v711_v54 = vpop.f32.mrb[1].mxu0 }
 0x399   :  { %v712_v55 = vadd.f32 %v13456_v50, %v711_v54  ;;  %v11661_v56 = vpop.f32.mrb[2].mxu0 }
 0x39a   :  { %v776_v58 = vmax.f32 %v720_v53, 0.0  ;;  %v723_v59 = vadd.f32 %v11661_v56, %v13456_v50  ;;  %v714_v60 = vpop.f32.mrb[3].mxu0 }
 0x39b   :  { %v774_v61 = vmax.f32 %v712_v55, 0.0  ;;  %v715_v62 = vadd.f32 %v13456_v50, %v714_v60 }
 0x39c   :  { %v888_v63 = vmul.f32 %v819_v43, %v776_v58  ;;  %v777_v1 = vmax.f32 %v723_v59, 0.0 }
 0x39d   :  { %v886_v2 = vmul.f32 %v809_v42, %v774_v61  ;;  %v775_v3 = vmax.f32 %v715_v62, 0.0 }
 0x39e   :  { %v905_v5 = vsel %vm902_vm1, %v888_v63, -inf  ;;  %v889_v6 = vmul.f32 %v824_v45, %v777_v1 }
 0x39f   :  { %v903_v7 = vsel %vm902_vm1, %v886_v2, -inf  ;;  %v887_v8 = vmul.f32 %v814_v44, %v775_v3  ;;  %v11664_v9 = vpop.f32.mrb[4].mxu0 }
 0x3a0   :  { %v906_v11 = vmax.f32 %v903_v7, %v905_v5  ;;  %v907_v12 = vsel %vm902_vm1, %v889_v6, -inf  ;;  %v736_v13 = vadd.f32 %v11664_v9, %v13456_v50  ;;  %v727_v14 = vpop.f32.mrb[5].mxu0 }
 0x3a1   :  { %v904_v15 = vsel %vm902_vm1, %v887_v8, -inf  ;;  %v728_v16 = vadd.f32 %v13456_v50, %v727_v14  ;;  %v11665_v17 = vpop.f32.mrb[6].mxu0 }
 0x3a2   :  { %v908_v18 = vmax.f32 %v904_v15, %v907_v12  ;;  %v780_v19 = vmax.f32 %v736_v13, 0.0  ;;  %v739_v20 = vadd.f32 %v11665_v17, %v13456_v50  ;;  %v730_v21 = vpop.f32.mrb[7].mxu0  ;;  %v879_v17 = vpop.permute.xlu0 %878 }
 0x3a3   :  { %v778_v22 = vmax.f32 %v728_v16, 0.0  ;;  %v731_v23 = vadd.f32 %v13456_v50, %v730_v21 }
 0x3a4   :  { %v781_v25 = vmax.f32 %v739_v20, 0.0  ;;  %v892_v26 = vmul.f32 %v839_v24, %v780_v19 }
 0x3a5   :  { %v890_v27 = vmul.f32 %v829_v52, %v778_v22  ;;  %v779_v28 = vmax.f32 %v731_v23, 0.0  ;;  %v884_v23 = vpop.permute.xlu1 %883 }
 0x3a6   :  { %v893_v31 = vmul.f32 %v844_v29, %v781_v25  ;;  %v913_v41 = vsel %vm902_vm1, %v892_v26, -inf }
 0x3a7   :  { %v909_v30 = vsel %vm902_vm1, %v890_v27, -inf  ;;  %v891_v32 = vmul.f32 %v834_v57, %v779_v28  ;;  %v11668_v33 = vpop.f32.mrb[8].mxu0 }
 0x3a8   :  { %v910_v34 = vmax.f32 %v906_v11, %v909_v30  ;;  %v752_v35 = vadd.f32 %v11668_v33, %v13456_v50  ;;  %v743_v37 = vpop.f32.mrb[9].mxu0  ;;  %v915_v55 = vsel %vm902_vm1, %v893_v31, -inf }
 0x3a9   :  { %v911_v42 = vsel %vm902_vm1, %v891_v32, -inf  ;;  %v744_v43 = vadd.f32 %v13456_v50, %v743_v37  ;;  %v11669_v44 = vpop.f32.mrb[10].mxu0 }
 0x3aa   :  { %v914_v45 = vmax.f32 %v910_v34, %v913_v41  ;;  %v912_v51 = vmax.f32 %v908_v18, %v911_v42  ;;  %v784_v52 = vmax.f32 %v752_v35, 0.0  ;;  %v755_v53 = vadd.f32 %v11669_v44, %v13456_v50  ;;  %v746_v54 = vpop.f32.mrb[11].mxu0 }
 0x3ab   :  { %v782_v56 = vmax.f32 %v744_v43, 0.0  ;;  %v747_v57 = vadd.f32 %v13456_v50, %v746_v54  ;;  %v12988_v44 = vmov 1983009808  }
 0x3ac   :  { %v916_v58 = vmax.f32 %v912_v51, %v915_v55  ;;  %v896_v59 = vmul.f32 %v13452_v48, %v784_v52  ;;  %v785_v60 = vmax.f32 %v755_v53, 0.0 }
 0x3ad   :  { %v894_v61 = vmul.f32 %v13448_v46, %v782_v56  ;;  %v783_v62 = vmax.f32 %v747_v57, 0.0  ;;  %v945_v56 = vld [vmem:[#allocation4] sm:$0x3] }
 0x3ae   :  { %v917_v63 = vmax.f32 %v914_v45, %v916_v58  ;;  %v926_v1 = vsel %vm902_vm1, %v896_v59, -inf  ;;  %v897_v2 = vmul.f32 %v13454_v49, %v785_v60  ;;  %v954_v45 = vlaneseq }
 0x3af   :  { %v924_v3 = vsel %vm902_vm1, %v894_v61, -inf  ;;  %v895_v5 = vmul.f32 %v13450_v47, %v783_v62  ;;  %v11672_v6 = vpop.f32.mrb[12].mxu0 }
 0x3b0   :  { %v927_v7 = vmax.f32 %v924_v3, %v926_v1  ;;  %v928_v8 = vsel %vm902_vm1, %v897_v2, -inf  ;;  %v768_v9 = vadd.f32 %v11672_v6, %v13456_v50  ;;  %v759_v48 = vpop.f32.mrb[13].mxu0  ;;  %v918_v18 = vrot.slane %v917_v63, 4  ;;  %v12009_v1 = vld [vmem:[#allocation9] sm:$0xff]  }
 0x3b1   :  { %v925_v11 = vsel %vm902_vm1, %v895_v5, -inf  ;;  %v760_v46 = vadd.f32 %v13456_v50, %v759_v48  ;;  %v11673_v12 = vpop.f32.mrb[14].mxu0  ;;  %v13500_v55 = vshrl.u32 %v954_v45, 7  ;;  %11683 = vmatpush3.bf16.msra.mxu1 %v12009_v1  ;;  %v1474_v2 = vld [vmem:[#allocation15 + $0x50] sm:$0xff] }
 0x3b2   :  { %v929_v13 = vmax.f32 %v925_v11, %v928_v8  ;;  %v788_v14 = vmax.f32 %v768_v9, 0.0  ;;  %v771_v49 = vadd.f32 %v11673_v12, %v13456_v50  ;;  %v762_v15 = vpop.f32.mrb[15].mxu0  ;;  %v919_v27 = vmax.f32 %v917_v63, %v918_v18  ;;  %v1478_v3 = vld [vmem:[#allocation15 + $0x70] sm:$0xff]  ;;  %11684 = vmatprep.subr.bf16.mxu1 %v15099_v36  ;;  %v1806_v18 = vld [vmem:[#allocation18 + $0x40] sm:$0xff] }
 0x3b3   :  { %v786_v16 = vmax.f32 %v760_v46, 0.0  ;;  %v763_v47 = vadd.f32 %v13456_v50, %v762_v15  ;;  %v10478_v5 = vcombine.high %v1474_v2, %v1478_v3  ;;  %v10477_v6 = vcombine.low %v1474_v2, %v1478_v3  ;;  %v12011_v46 = vld [vmem:[%s15146_s24] sm:$0xff]   ;;  %v1798_v15 = vld [vmem:[#allocation18] sm:$0xff] }
 0x3b4   :  { %v789_v19 = vmax.f32 %v771_v49, 0.0  ;;  %v900_v20 = vmul.f32 %v879_v17, %v788_v14  ;;  %v920_v33 = vrot.slane %v919_v27, 2  ;;  %v12013_v14 = vld [vmem:[%s15146_s24 + $0x10] sm:$0xff]   ;;  %v12014_v49 = vld [vmem:[%s15146_s24 + $0x18] sm:$0xff]  }
 0x3b5   :  { %v898_v21 = vmul.f32 %v13462_v4, %v786_v16  ;;  %v787_v22 = vmax.f32 %v763_v47, 0.0  ;;  %v1802_v16 = vld [vmem:[#allocation18 + $0x20] sm:$0xff] }
 0x3b6   :  { %v901_v25 = vmul.f32 %v884_v23, %v789_v19  ;;  %v934_v29 = vsel %vm902_vm1, %v900_v20, -inf  ;;  %v921_v35 = vmax.f32 %v919_v27, %v920_v33  ;;  %v10485_v47 = vcombine.low %v1798_v15, %v1802_v16  ;;  %v1810_v19 = vld [vmem:[#allocation18 + $0x60] sm:$0xff] }
 0x3b7   :  { %v930_v24 = vsel %vm902_vm1, %v898_v21, -inf  ;;  %v899_v26 = vmul.f32 %v13466_v10, %v787_v22  ;;  %v952_v10 = vunpack.c.l.s4 %v12988_v44  ;;  %v10486_v17 = vcombine.high %v1798_v15, %v1802_v16  ;;  %v1814_v22 = vld [vmem:[#allocation18 + $0x80] sm:$0xff]  ;;  %v1179_v15 = vld [vmem:[#allocation13] sm:$0x3] }
 0x3b8   :  { %v931_v28 = vmax.f32 %v927_v7, %v930_v24  ;;  %v936_v32 = vsel %vm902_vm1, %v901_v25, -inf  ;;  %v922_v42 = vrot.slane %v921_v35, 1  ;;  %v12010_v7 = vld [vmem:[#allocation9 + $0x8] sm:$0xff]   ;;  %v10494_v20 = vcombine.high %v1806_v18, %v1810_v19  ;;  %v1818_v23 = vld [vmem:[#allocation18 + $0xa0] sm:$0xff] }
 0x3b9   :  { %v932_v30 = vsel %vm902_vm1, %v899_v26, -inf  ;;  %v953_v54 = vunpack.c.0.s8 %v952_v10  ;;  %11685 = vmatpush3.bf16.msra.mxu1 %v12010_v7  ;;  %v10493_v21 = vcombine.low %v1806_v18, %v1810_v19  ;;  %v10502_v24 = vcombine.high %v1814_v22, %v1818_v23  ;;  %v1822_v26 = vld [vmem:[#allocation18 + $0xc0] sm:$0xff] }
 0x3ba   :  { %v935_v50 = vmax.f32 %v931_v28, %v934_v29  ;;  %v933_v31 = vmax.f32 %v929_v13, %v932_v30  ;;  %v923_v52 = vmax.f32 %v921_v35, %v922_v42  ;;  %11690 = vmatprep.subr.bf16.mxu1 %v15099_v36  ;;  %v12012_v13 = vld [vmem:[%s15146_s24 + $0x8] sm:$0xff]   ;;  %v10501_v25 = vcombine.low %v1814_v22, %v1818_v23  ;;  %v1826_v27 = vld [vmem:[#allocation18 + $0xe0] sm:$0xff] }
 0x3bb   :  { %v13503_v60 = vsub.s32 %v953_v54, %v13500_v55  ;;  %v10510_v28 = vcombine.high %v1822_v26, %v1826_v27  ;;  %v10509_v29 = vcombine.low %v1822_v26, %v1826_v27  ;;  %v1830_v30 = vld [vmem:[#allocation18 + $0x100] sm:$0xff]  ;;  %v1471_v26 = vld [vmem:[#allocation15 + $0x38] sm:$0xff] }
 0x3bc   :  { %v937_v34 = vmax.f32 %v933_v31, %v936_v32  ;;  %v946_v58 = vadd.f32 %v945_v56, %v923_v52  ;;  %v1838_v33 = vld [vmem:[#allocation18 + $0x140] sm:$0xff] }
 0x3bd   :  { %v1854_v44 = vld [vmem:[#allocation18 + $0x1c0] sm:$0xff] }
 0x3be   :  { %v938_v4 = vmax.f32 %v935_v50, %v937_v34  ;;  %v1834_v50 = vld [vmem:[#allocation18 + $0x120] sm:$0xff] }
 0x3bf   :  { %v10518_v31 = vcombine.high %v1830_v30, %v1834_v50  ;;  %v10517_v32 = vcombine.low %v1830_v30, %v1834_v50  ;;  %v1842_v34 = vld [vmem:[#allocation18 + $0x160] sm:$0xff]  ;;  %v1479_v30 = vld [vmem:[#allocation15 + $0x78] sm:$0xff] }
 0x3c0   :  { %v939_v37 = vrot.slane %v938_v4, 4  ;;  %v10525_v35 = vcombine.low %v1838_v33, %v1842_v34  ;;  %v1858_v10 = vld [vmem:[#allocation18 + $0x1e0] sm:$0xff] }
 0x3c1   :  { %v10542_v45 = vcombine.high %v1854_v44, %v1858_v10  ;;  %v1862_v52 = vld [vmem:[#allocation18 + $0x200] sm:$0xff] }
 0x3c2   :  { %v940_v41 = vmax.f32 %v938_v4, %v939_v37  ;;  %v10526_v4 = vcombine.high %v1838_v33, %v1842_v34  ;;  %v1846_v37 = vld [vmem:[#allocation18 + $0x180] sm:$0xff]  ;;  %v1803_v33 = vld [vmem:[#allocation18 + $0x28] sm:$0xff] }
 0x3c3   :  { %v1469_v18 = vld [vmem:[#allocation15 + $0x28] sm:$0xff] }
 0x3c4   :  { %v941_v43 = vrot.slane %v940_v41, 2  ;;  %v1477_v22 = vld [vmem:[#allocation15 + $0x68] sm:$0xff] }
 0x3c6   :  { %v942_v51 = vmax.f32 %v940_v41, %v941_v43  ;;  %v1850_v41 = vld [vmem:[#allocation18 + $0x1a0] sm:$0xff] }
 0x3c7   :  { %v10534_v42 = vcombine.high %v1846_v37, %v1850_v41  ;;  %v10533_v43 = vcombine.low %v1846_v37, %v1850_v41  ;;  %v1811_v37 = vld [vmem:[#allocation18 + $0x68] sm:$0xff] }
 0x3c8   :  { %v943_v53 = vrot.slane %v942_v51, 1 }
 0x3ca   :  { %v944_v57 = vmax.f32 %v942_v51, %v943_v53  ;;  %v10541_v51 = vcombine.low %v1854_v44, %v1858_v10  ;;  %v1866_v53 = vld [vmem:[#allocation18 + $0x220] sm:$0xff]  ;;  %v1819_v44 = vld [vmem:[#allocation18 + $0xa8] sm:$0xff] }
 0x3cb   :  { %v10550_v54 = vcombine.high %v1862_v52, %v1866_v53 }
 0x3cc   :  { %v947_v59 = vadd.f32 %v945_v56, %v944_v57  ;;  %v10549_v56 = vcombine.low %v1862_v52, %v1866_v53  ;;  %v1870_v57 = vld [vmem:[#allocation18 + $0x240] sm:$0xff]  ;;  %v1827_v52 = vld [vmem:[#allocation18 + $0xe8] sm:$0xff] }
 0x3ce   :  { %v950_v61 = vcombine.low %v946_v58, %v947_v59  ;;  %v1874_v58 = vld [vmem:[#allocation18 + $0x260] sm:$0xff] }
 0x3cf   :  { %v10558_v59 = vcombine.high %v1870_v57, %v1874_v58 }
 0x3d0   :  { %v957_v62 = vrot.slane %v950_v61, %v13503_v60  ;;  %v10557_v61 = vcombine.low %v1870_v57, %v1874_v58  ;;  %v1835_v57 = vld [vmem:[#allocation18 + $0x128] sm:$0xff] }
 0x3d2   :  { %v959_v63 = vpack.c.bf16 %v957_v62, %v957_v62  ;;  %v10446_v62 = vld [vmem:[#allocation10] ss:$0 sm:$0xff] }
 0x3d4   :  { %11679 = vmatmul.mubr.msk.bf16.vlgmr.msra.gmra.mrb[16].mxu0 %vm902_vm1, %v959_v63 }
 0x3d5   :  { %1685 = vmatpush1.bf16.msra.mxu0 %v10469_v40  ;;  %1716 = vmatprep.mubr.bf16.mxu0 %v15100_v0 }
 0x3d6   :  { %1686 = vmatprep.subr.bf16.mxu0 %v10478_v5 }
 0x3d9   :  { %1687 = vmatpush1.bf16.msra.mxu0 %v10477_v6 }
 0x3da   :  { %4912 = vmatprep.subr.bf16.mxu0 %v10486_v17  ;;  %v1465_v17 = vld [vmem:[#allocation15 + $0x8] sm:$0xff] }
 0x3db   :  { %v10467_v23 = vcombine.low %v1465_v17, %v1469_v18 }
 0x4a7   :  { %v1020_v39 = vpop.f32.mrb[16].mxu0 }
 0x4a8   :  { %v1021_v40 = vadd.f32 %v10442_v38, %v1020_v39  ;;  %v11680_v8 = vpop.f32.mrb[17].mxu0  ;;  %v1464_v38 = vld [vmem:[#allocation15] sm:$0xff] }
 0x4a9   :  { %v1023_v9 = vpop.f32.mrb[18].mxu0  ;;  %v1468_v39 = vld [vmem:[#allocation15 + $0x20] sm:$0xff] }
 0x4aa   :  { %v13513_v48 = vmax.f32 %v1021_v40, 0.0  ;;  %v11681_v11 = vpop.f32.mrb[19].mxu0  ;;  %v10465_v16 = vcombine.low %v1464_v38, %v1468_v39 }
 0x4ac   :  { %v13518_v12 = vpack.c.bf16 %v13513_v48, %v13513_v48 }
 0x4ae   :  { %11687 = vmatmul.mubr.msk.bf16.vlgmr.msra.gmra.mrb[0].mxu1 %vm902_vm1, %v13518_v12  ;;  %10483 = vmatmul.mubr.msk.bf16.vlgmr.msra.gmra.mrb[20].mxu0 %vm902_vm1, %v13518_v12 }
 0x4af   :  { %11691 = vmatpush3.bf16.msra.mxu1 %v12011_v46  ;;  %11698 = vmatprep.mubr.msk.bf16.mxu1 %vm12987_vm0, %v15099_v36  ;;  %v10466_v46 = vcombine.high %v1464_v38, %v1468_v39  ;;  %v1855_v39 = vld [vmem:[#allocation18 + $0x1c8] sm:$0xff] }
 0x4b0   :  { %11692 = vmatprep.subr.bf16.mxu1 %v15099_v36  ;;  %4913 = vmatpush1.bf16.msra.mxu0 %v10485_v47 }
 0x4b1   :  { %4914 = vmatprep.subr.bf16.mxu0 %v10494_v20  ;;  %v10468_v20 = vcombine.high %v1465_v17, %v1469_v18  ;;  %v1878_v18 = vld [vmem:[#allocation18 + $0x280] sm:$0xff] }
 0x4b3   :  { %11693 = vmatpush3.bf16.msra.mxu1 %v12012_v13 }
 0x4b4   :  { %11694 = vmatprep.subr.bf16.mxu1 %v15099_v36  ;;  %4915 = vmatpush1.bf16.msra.mxu0 %v10493_v21  ;;  %v1473_v21 = vld [vmem:[#allocation15 + $0x48] sm:$0xff] }
 0x4b5   :  { %4916 = vmatprep.subr.bf16.mxu0 %v10502_v24  ;;  %v10476_v24 = vcombine.high %v1473_v21, %v1477_v22  ;;  %v10475_v27 = vcombine.low %v1473_v21, %v1477_v22  ;;  %v1883_v22 = vld [vmem:[#allocation18 + $0x2a8] sm:$0xff] }
 0x4b7   :  { %11695 = vmatpush3.bf16.msra.mxu1 %v12013_v14  ;;  %v1472_v14 = vld [vmem:[#allocation15 + $0x40] sm:$0xff] }
 0x4b8   :  { %11696 = vmatprep.subr.bf16.mxu1 %v15099_v36  ;;  %4917 = vmatpush1.bf16.msra.mxu0 %v10501_v25  ;;  %v1467_v25 = vld [vmem:[#allocation15 + $0x18] sm:$0xff] }
 0x4b9   :  { %4918 = vmatprep.subr.bf16.mxu0 %v10510_v28  ;;  %v10472_v28 = vcombine.high %v1467_v25, %v1471_v26  ;;  %v10471_v50 = vcombine.low %v1467_v25, %v1471_v26  ;;  %v1886_v26 = vld [vmem:[#allocation18 + $0x2c0] sm:$0xff] }
 0x4bb   :  { %11697 = vmatpush3.bf16.msra.mxu1 %v12014_v49  ;;  %v1476_v49 = vld [vmem:[#allocation15 + $0x60] sm:$0xff] }
 0x4bc   :  { %11702 = vmatprep.subr.bf16.mxu1 %v15099_v36  ;;  %4919 = vmatpush1.bf16.msra.mxu0 %v10509_v29  ;;  %v10474_v47 = vcombine.high %v1472_v14, %v1476_v49  ;;  %v10473_v19 = vcombine.low %v1472_v14, %v1476_v49  ;;  %v1475_v29 = vld [vmem:[#allocation15 + $0x58] sm:$0xff]  ;;  %v1871_v49 = vld [vmem:[#allocation18 + $0x248] sm:$0xff] }
 0x4bd   :  { %4920 = vmatprep.subr.bf16.mxu0 %v10518_v31  ;;  %v10480_v31 = vcombine.high %v1475_v29, %v1479_v30  ;;  %v10479_v34 = vcombine.low %v1475_v29, %v1479_v30  ;;  %v1891_v30 = vld [vmem:[#allocation18 + $0x2e8] sm:$0xff] }
 0x4c0   :  { %4921 = vmatpush1.bf16.msra.mxu0 %v10517_v32  ;;  %v1799_v32 = vld [vmem:[#allocation18 + $0x8] sm:$0xff] }
 0x4c1   :  { %4922 = vmatprep.subr.bf16.mxu0 %v10526_v4  ;;  %v10488_v4 = vcombine.high %v1799_v32, %v1803_v33  ;;  %v10487_v41 = vcombine.low %v1799_v32, %v1803_v33  ;;  %v1894_v33 = vld [vmem:[#allocation18 + $0x300] sm:$0xff] }
 0x4c4   :  { %4923 = vmatpush1.bf16.msra.mxu0 %v10525_v35  ;;  %v1807_v35 = vld [vmem:[#allocation18 + $0x48] sm:$0xff] }
 0x4c5   :  { %4924 = vmatprep.subr.bf16.mxu0 %v10534_v42  ;;  %v10496_v42 = vcombine.high %v1807_v35, %v1811_v37  ;;  %v10495_v10 = vcombine.low %v1807_v35, %v1811_v37  ;;  %v1899_v37 = vld [vmem:[#allocation18 + $0x328] sm:$0xff] }
 0x4c8   :  { %4925 = vmatpush1.bf16.msra.mxu0 %v10533_v43  ;;  %v1815_v43 = vld [vmem:[#allocation18 + $0x88] sm:$0xff] }
 0x4c9   :  { %4926 = vmatprep.subr.bf16.mxu0 %v10542_v45  ;;  %v10504_v45 = vcombine.high %v1815_v43, %v1819_v44  ;;  %v10503_v53 = vcombine.low %v1815_v43, %v1819_v44  ;;  %v1902_v44 = vld [vmem:[#allocation18 + $0x340] sm:$0xff] }
 0x4cc   :  { %4927 = vmatpush1.bf16.msra.mxu0 %v10541_v51  ;;  %v1823_v51 = vld [vmem:[#allocation18 + $0xc8] sm:$0xff] }
 0x4cd   :  { %4928 = vmatprep.subr.bf16.mxu0 %v10550_v54  ;;  %v10512_v54 = vcombine.high %v1823_v51, %v1827_v52  ;;  %v10511_v58 = vcombine.low %v1823_v51, %v1827_v52  ;;  %v1907_v52 = vld [vmem:[#allocation18 + $0x368] sm:$0xff] }
 0x4d0   :  { %4929 = vmatpush1.bf16.msra.mxu0 %v10549_v56  ;;  %v1831_v56 = vld [vmem:[#allocation18 + $0x108] sm:$0xff] }
 0x4d1   :  { %4930 = vmatprep.subr.bf16.mxu0 %v10558_v59  ;;  %v10520_v59 = vcombine.high %v1831_v56, %v1835_v57 }
 0x4d4   :  { %4931 = vmatpush1.bf16.msra.mxu0 %v10557_v61  ;;  %v1839_v61 = vld [vmem:[#allocation18 + $0x148] sm:$0xff] }
 0x581   :  { %v1088_v63 = vpop.f32.mrb[0].mxu1  ;;  %v13533_v1 = vpop.f32.mrb[20].mxu0 }
 0x582   :  { %v1089_v2 = vadd.f32 %v10446_v62, %v1088_v63  ;;  %v11688_v3 = vpop.f32.mrb[1].mxu1  ;;  %v13535_v5 = vpop.f32.mrb[21].mxu0  ;;  %v1843_v62 = vld [vmem:[#allocation18 + $0x168] sm:$0xff]  ;;  %v10519_v63 = vcombine.low %v1831_v56, %v1835_v57  ;;  %v1910_v57 = vld [vmem:[#allocation18 + $0x380] sm:$0xff] }
 0x583   :  { %v1091_v6 = vpop.f32.mrb[2].mxu1  ;;  %v1722_v7 = vpop.f32.mrb[22].mxu0  ;;  %v1847_v3 = vld [vmem:[#allocation18 + $0x188] sm:$0xff] }
 0x584   :  { %v1094_v40 = vmax.f32 %v1089_v2, 0.0  ;;  %v11689_v8 = vpop.f32.mrb[3].mxu1  ;;  %v1723_v9 = vpop.f32.mrb[23].mxu0  ;;  %v10528_v2 = vcombine.high %v1839_v61, %v1843_v62  ;;  %v1851_v6 = vld [vmem:[#allocation18 + $0x1a8] sm:$0xff]  ;;  %v10527_v7 = vcombine.low %v1839_v61, %v1843_v62 }
 0x585   :  { %v10536_v38 = vcombine.high %v1847_v3, %v1851_v6  ;;  %v10535_v8 = vcombine.low %v1847_v3, %v1851_v6  ;;  %v1911_v61 = vld [vmem:[#allocation18 + $0x388] sm:$0xff]  ;;  %v1918_v6 = vld [vmem:[#allocation18 + $0x3c0] sm:$0xff] }
 0x586   :  { %v1095_v11 = vpack.c.bf16 %v1094_v40, %v1094_v40  ;;  %v1859_v40 = vld [vmem:[#allocation18 + $0x1e8] sm:$0xff] }
 0x587   :  { %v10544_v9 = vcombine.high %v1855_v39, %v1859_v40  ;;  %v1915_v62 = vld [vmem:[#allocation18 + $0x3a8] sm:$0xff] }
 0x588   :  { %11699 = vmatmul.mubr.msk.bf16.vlgmr.msra.gmra.mrb[4].mxu1 %vm1135_vm2, %v1095_v11  ;;  %v1137_v13 = vsel %vm1135_vm2, %v1095_v11, 0  ;;  %v1863_v11 = vld [vmem:[#allocation18 + $0x208] sm:$0xff]  ;;  %v10600_v3 = vcombine.high %v1911_v61, %v1915_v62 }
 0x589   :  { %11703 = vmatpush3.bf16.xpose.msra.mxu1 %v1137_v13  ;;  %11704 = vmatprep.mubr.msk.bf16.mxu1 %vm12987_vm0, %v15099_v36  ;;  %v10543_v13 = vcombine.low %v1855_v39, %v1859_v40  ;;  %v1923_v40 = vld [vmem:[#allocation18 + $0x3e8] sm:$0xff] }
 0x58a   :  { %1602 = vmatprep.subr.bf16.mxu1 %v10466_v46  ;;  %v1867_v46 = vld [vmem:[#allocation18 + $0x228] sm:$0xff] }
 0x58b   :  { %v10552_v14 = vcombine.high %v1863_v11, %v1867_v46 }
 0x590   :  { %11705 = vmatmul.mubr.msk.bf16.vlgmr.msra.gmra.mrb[8].mxu1 %vm1135_vm2, %v1179_v15  ;;  %v1875_v15 = vld [vmem:[#allocation18 + $0x268] sm:$0xff] }
 0x591   :  { %1603 = vmatpush1.bf16.msra.mxu1 %v10465_v16  ;;  %1634 = vmatprep.mubr.bf16.mxu1 %v15100_v0  ;;  %v10551_v16 = vcombine.low %v1863_v11, %v1867_v46  ;;  %v10559_v17 = vcombine.low %v1871_v49, %v1875_v15  ;;  %v13548_v46 = vld [vmem:[#allocation18 + $0x400] sm:$0xff] }
 0x592   :  { %1604 = vmatprep.subr.bf16.mxu1 %v10474_v47  ;;  %v10560_v47 = vcombine.high %v1871_v49, %v1875_v15  ;;  %v13556_v15 = vld [vmem:[#allocation18 + $0x428] sm:$0xff] }
 0x595   :  { %1605 = vmatpush1.bf16.msra.mxu1 %v10473_v19  ;;  %v1882_v19 = vld [vmem:[#allocation18 + $0x2a0] sm:$0xff] }
 0x596   :  { %1643 = vmatprep.subr.bf16.mxu1 %v10468_v20  ;;  %v1879_v20 = vld [vmem:[#allocation18 + $0x288] sm:$0xff]  ;;  %v10566_v21 = vcombine.high %v1878_v18, %v1882_v19 }
 0x597   :  { %v10568_v25 = vcombine.high %v1879_v20, %v1883_v22 }
 0x598   :  { %10481 = vmatmul.mubr.msk.bf16.vlgmr.msra.gmra.mrb[12].mxu1 %vm902_vm1, %v13518_v12  ;;  %4932 = vmatprep.subr.bf16.mxu0 %v10566_v21 }
 0x599   :  { %1644 = vmatpush1.bf16.msra.mxu1 %v10467_v23  ;;  %1675 = vmatprep.mubr.bf16.mxu1 %v15100_v0  ;;  %v10565_v23 = vcombine.low %v1878_v18, %v1882_v19  ;;  %v10450_v18 = vld [vmem:[#allocation12] ss:$0 sm:$0xff] }
 0x59a   :  { %1645 = vmatprep.subr.bf16.mxu1 %v10476_v24  ;;  %v10567_v24 = vcombine.low %v1879_v20, %v1883_v22 }
 0x59b   :  { %4933 = vmatpush1.bf16.msra.mxu0 %v10565_v23 }
 0x59d   :  { %1646 = vmatpush1.bf16.msra.mxu1 %v10475_v27  ;;  %v1890_v27 = vld [vmem:[#allocation18 + $0x2e0] sm:$0xff] }
 0x59e   :  { %1725 = vmatprep.subr.bf16.mxu1 %v10472_v28  ;;  %v1887_v28 = vld [vmem:[#allocation18 + $0x2c8] sm:$0xff]  ;;  %v10574_v29 = vcombine.high %v1886_v26, %v1890_v27 }
 0x59f   :  { %v10576_v32 = vcombine.high %v1887_v28, %v1891_v30 }
 0x5a0   :  { %10482 = vmatmul.mubr.msk.bf16.vlgmr.msra.gmra.mrb[16].mxu1 %vm902_vm1, %v13518_v12  ;;  %4934 = vmatprep.subr.bf16.mxu0 %v10574_v29  ;;  %v13570_v29 = vsub.s32 0, %v13500_v55 }
 0x5a1   :  { %1726 = vmatpush1.bf16.msra.mxu1 %v10471_v50  ;;  %1757 = vmatprep.mubr.bf16.mxu1 %v15100_v0  ;;  %v10573_v50 = vcombine.low %v1886_v26, %v1890_v27 }
 0x5a2   :  { %1727 = vmatprep.subr.bf16.mxu1 %v10480_v31  ;;  %v10575_v31 = vcombine.low %v1887_v28, %v1891_v30 }
 0x5a3   :  { %4935 = vmatpush1.bf16.msra.mxu0 %v10573_v50 }
 0x5a5   :  { %1728 = vmatpush1.bf16.msra.mxu1 %v10479_v34  ;;  %v1898_v34 = vld [vmem:[#allocation18 + $0x320] sm:$0xff] }
 0x5a6   :  { %5076 = vmatprep.subr.bf16.mxu1 %v10488_v4  ;;  %v1895_v4 = vld [vmem:[#allocation18 + $0x308] sm:$0xff]  ;;  %v10582_v35 = vcombine.high %v1894_v33, %v1898_v34 }
 0x5a7   :  { %v10584_v43 = vcombine.high %v1895_v4, %v1899_v37 }
 0x5a8   :  { %10484 = vmatmul.mubr.msk.bf16.vlgmr.msra.gmra.mrb[20].mxu1 %vm902_vm1, %v13518_v12  ;;  %4936 = vmatprep.subr.bf16.mxu0 %v10582_v35 }
 0x5a9   :  { %5077 = vmatpush1.bf16.msra.mxu1 %v10487_v41  ;;  %v10581_v41 = vcombine.low %v1894_v33, %v1898_v34  ;;  %v13575_v33 = vld [vmem:[#allocation16] sm:$0xff] }
 0x5aa   :  { %5078 = vmatprep.subr.bf16.mxu1 %v10496_v42  ;;  %v10583_v42 = vcombine.low %v1895_v4, %v1899_v37  ;;  %v1496_v4 = vsub.s32 3, %v13500_v55  ;;  %v1485_v37 = vrot.slane %v13575_v33, %v13570_v29 }
 0x5ab   :  { %4937 = vmatpush1.bf16.msra.mxu0 %v10581_v41  ;;  %v13580_v41 = vld [vmem:[#allocation18 + $0x440] sm:$0xff] }
 0x5ad   :  { %5079 = vmatpush1.bf16.msra.mxu1 %v10495_v10  ;;  %v1906_v10 = vld [vmem:[#allocation18 + $0x360] sm:$0xff] }
 0x5ae   :  { %5080 = vmatprep.subr.bf16.mxu1 %v10504_v45  ;;  %v1903_v45 = vld [vmem:[#allocation18 + $0x348] sm:$0xff]  ;;  %v10590_v51 = vcombine.high %v1902_v44, %v1906_v10 }
 0x5af   :  { %v10592_v56 = vcombine.high %v1903_v45, %v1907_v52 }
 0x5b0   :  { %4938 = vmatprep.subr.bf16.mxu0 %v10590_v51 }
 0x5b1   :  { %5081 = vmatpush1.bf16.msra.mxu1 %v10503_v53  ;;  %v10589_v53 = vcombine.low %v1902_v44, %v1906_v10  ;;  %v13586_v44 = vld [vmem:[#allocation18 + $0x448] sm:$0xff] }
 0x5b2   :  { %5082 = vmatprep.subr.bf16.mxu1 %v10512_v54  ;;  %v10591_v54 = vcombine.low %v1903_v45, %v1907_v52  ;;  %v13588_v10 = vld [vmem:[#allocation18 + $0x468] sm:$0xff] }
 0x5b3   :  { %4939 = vmatpush1.bf16.msra.mxu0 %v10589_v53  ;;  %v1497_v53 = vrot.slane %v13575_v33, %v1496_v4 }
 0x5b5   :  { %5083 = vmatpush1.bf16.msra.mxu1 %v10511_v58  ;;  %v1914_v58 = vld [vmem:[#allocation18 + $0x3a0] sm:$0xff] }
 0x5b6   :  { %5084 = vmatprep.subr.bf16.mxu1 %v10520_v59  ;;  %v10598_v59 = vcombine.high %v1910_v57, %v1914_v58 }
 0x5b8   :  { %4940 = vmatprep.subr.bf16.mxu0 %v10598_v59  ;;  %v10623_v59 = vcombine.low %v13586_v44, %v13588_v10 }
 0x5b9   :  { %5085 = vmatpush1.bf16.msra.mxu1 %v10519_v63  ;;  %v10597_v63 = vcombine.low %v1910_v57, %v1914_v58 }
 0x5ba   :  { %5086 = vmatprep.subr.bf16.mxu1 %v10528_v2  ;;  %v10599_v2 = vcombine.low %v1911_v61, %v1915_v62 }
 0x5bb   :  { %4941 = vmatpush1.bf16.msra.mxu0 %v10597_v63 }
 0x5bd   :  { %5087 = vmatpush1.bf16.msra.mxu1 %v10527_v7  ;;  %v1922_v7 = vld [vmem:[#allocation18 + $0x3e0] sm:$0xff] }
 0x5be   :  { %5088 = vmatprep.subr.bf16.mxu1 %v10536_v38  ;;  %v1919_v38 = vld [vmem:[#allocation18 + $0x3c8] sm:$0xff]  ;;  %v10606_v39 = vcombine.high %v1918_v6, %v1922_v7 }
 0x5bf   :  { %v10608_v11 = vcombine.high %v1919_v38, %v1923_v40 }
 0x5c0   :  { %4942 = vmatprep.subr.bf16.mxu0 %v10606_v39 }
 0x5c1   :  { %5089 = vmatpush1.bf16.msra.mxu1 %v10535_v8  ;;  %v10605_v8 = vcombine.low %v1918_v6, %v1922_v7  ;;  %v15093_v6 = vmov 2131351028  }
 0x5c2   :  { %5090 = vmatprep.subr.bf16.mxu1 %v10544_v9  ;;  %v10607_v9 = vcombine.low %v1919_v38, %v1923_v40 }
 0x5c3   :  { %4943 = vmatpush1.bf16.msra.mxu0 %v10605_v8  ;;  %v10624_v8 = vcombine.high %v13586_v44, %v13588_v10  ;;  %v1959_v10 = vld [vmem:[#allocation18 + $0x508] sm:$0xff] }
 0x5c5   :  { %5091 = vmatpush1.bf16.msra.mxu1 %v10543_v13  ;;  %v13550_v13 = vld [vmem:[#allocation18 + $0x420] sm:$0xff] }
 0x5c6   :  { %5092 = vmatprep.subr.bf16.mxu1 %v10552_v14  ;;  %v13552_v14 = vld [vmem:[#allocation18 + $0x408] sm:$0xff]  ;;  %v10614_v49 = vcombine.high %v13548_v46, %v13550_v13 }
 0x5c8   :  { %4953 = vmatprep.subr.bf16.mxu0 %v10614_v49 }
 0x5c9   :  { %5093 = vmatpush1.bf16.msra.mxu1 %v10551_v16  ;;  %v10613_v16 = vcombine.low %v13548_v46, %v13550_v13  ;;  %v1950_v46 = vld [vmem:[#allocation18 + $0x4c0] sm:$0xff] }
 0x5ca   :  { %5094 = vmatprep.subr.bf16.mxu1 %v10560_v47  ;;  %v10615_v47 = vcombine.low %v13552_v14, %v13556_v15 }
 0x5cd   :  { %5095 = vmatpush1.bf16.msra.mxu1 %v10559_v17  ;;  %v10616_v17 = vcombine.high %v13552_v14, %v13556_v15 }
 0x5ce   :  { %5096 = vmatprep.subr.bf16.mxu1 %v10568_v25 }
 0x5d1   :  { %5097 = vmatpush1.bf16.msra.mxu1 %v10567_v24 }
 0x5d2   :  { %5098 = vmatprep.subr.bf16.mxu1 %v10576_v32 }
 0x5d5   :  { %5099 = vmatpush1.bf16.msra.mxu1 %v10575_v31  ;;  %v13573_v31 = vsub.s32 1, %v13500_v55 }
 0x5d6   :  { %5100 = vmatprep.subr.bf16.mxu1 %v10584_v43  ;;  %v13584_v43 = vld [vmem:[#allocation18 + $0x460] sm:$0xff] }
 0x5d7   :  { %v10621_v57 = vcombine.low %v13580_v41, %v13584_v43  ;;  %v10622_v58 = vcombine.high %v13580_v41, %v13584_v43  ;;  %v1962_v41 = vld [vmem:[#allocation18 + $0x520] sm:$0xff] }
 0x5d9   :  { %5101 = vmatpush1.bf16.msra.mxu1 %v10583_v42  ;;  %v1489_v42 = vrot.slane %v13575_v33, %v13573_v31 }
 0x5da   :  { %5102 = vmatprep.subr.bf16.mxu1 %v10592_v56 }
 0x5dd   :  { %5103 = vmatpush1.bf16.msra.mxu1 %v10591_v54 }
 0x5de   :  { %5104 = vmatprep.subr.bf16.mxu1 %v10600_v3 }
 0x5e1   :  { %5105 = vmatpush1.bf16.msra.mxu1 %v10599_v2  ;;  %v15095_v2 = vmov 2475754826  }
 0x5e2   :  { %5106 = vmatprep.subr.bf16.mxu1 %v10608_v11  ;;  %v15097_v11 = vmov 683565275  }
 0x5e5   :  { %5107 = vmatpush1.bf16.msra.mxu1 %v10607_v9 }
 0x5e6   :  { %5117 = vmatprep.subr.bf16.mxu1 %v10616_v17 }
 0x65b   :  { %v1173_v19 = vpop.f32.mrb[4].mxu1 }
 0x65c   :  { %v13564_v20 = vadd.f32 %v10450_v18, %v1173_v19  ;;  %v11700_v21 = vpop.f32.mrb[5].mxu1  ;;  %v13616_v19 = vld [vmem:[#allocation18 + $0x480] sm:$0xff] }
 0x65d   :  { %v1176_v22 = vpop.f32.mrb[6].mxu1  ;;  %v13618_v21 = vld [vmem:[#allocation18 + $0x4a0] sm:$0xff] }
 0x65e   :  { %v1232_v23 = vand.u32 2139095040, %v13564_v20  ;;  %v11701_v24 = vpop.f32.mrb[7].mxu1  ;;  %v1229_v45 = vand.u32 2147483647, %v13564_v20  ;;  %vm1231_vm13 = vcmp.lt.s32.totalorder %v13564_v20, 0 }
 0x660   :  { %v1233_v25 = vshrl.u32 %v1232_v23, 23  ;;  %v13604_v63 = vand.u32 8388607, %v1229_v45  ;;  %v15091_v23 = vmov 2102212464  }
 0x661   :  { %vm1230_vm14 = vcmp.le.f32.partialorder %v1229_v45, 0.7853982 }
 0x662   :  { %v10457_v26 = vadd.s32 4294967169, %v1233_v25 }
 0x663   :  { %v13567_v27 = vpop.f32.mrb[8].mxu1 }
 0x664   :  { %v1239_v28 = vadd.s32 1, %v10457_v26  ;;  %v11706_v30 = vpop.f32.mrb[9].mxu1 }
 0x665   :  { %v1226_v50 = vpop.f32.mrb[10].mxu1 }
 0x666   :  { %vm1240_vm3 = vcmp.gt.s32.totalorder %v1239_v28, 0  ;;  %v11707_v32 = vpop.f32.mrb[11].mxu1  ;;  %v15089_v50 = vmov 920167782  }
 0x667   :  { %v1241_v34 = vsel %vm1240_vm3, %v1239_v28, 0 }
 0x668   :  { %v1243_v35 = vand.u32 31, %v1241_v34  ;;  %v13610_v38 = vshrl.u32 %v1241_v34, 5 }
 0x66a   :  { %v13591_v51 = vsub.s32 32, %v1243_v35  ;;  %v1246_v49 = vshll.u32 %v15097_v11, %v1243_v35  ;;  %v1249_v17 = vshll.u32 %v15095_v2, %v1243_v35  ;;  %v1252_v22 = vshll.u32 %v15093_v6, %v1243_v35 }
 0x66b   :  { %v1636_v52 = vpop.f32.mrb[12].mxu1  ;;  %v1255_v25 = vshll.u32 %v15091_v23, %v1243_v35  ;;  %vm1261_vm6 = vcmp.lt.s32.totalorder %v13610_v38, 1  ;;  %vm1264_vm7 = vcmp.lt.s32.totalorder %v13610_v38, 4  ;;  %vm1263_vm8 = vcmp.lt.s32.totalorder %v13610_v38, 3 }
 0x66c   :  { %v1637_v54 = vadd.f32 %v1636_v52, %v1485_v37  ;;  %v1638_v56 = vpop.f32.mrb[13].mxu1  ;;  %v1247_v3 = vshrl.u32 %v15095_v2, %v13591_v51  ;;  %v1250_v7 = vshrl.u32 %v15093_v6, %v13591_v51  ;;  %v1253_v24 = vshrl.u32 %v15091_v23, %v13591_v51  ;;  %v12136_v23 = vld [vmem:[#allocation36 + $0x70] sm:$0xff]  }
 0x66d   :  { %v1639_v61 = vadd.f32 %v1638_v56, %v1489_v42  ;;  %v1640_v62 = vpop.f32.mrb[14].mxu1  ;;  %v1256_v32 = vshrl.u32 %v15089_v50, %v13591_v51  ;;  %v1258_v42 = vshll.u32 %v15089_v50, %v1243_v35  ;;  %v15087_v52 = vmov 1326507024   ;;  %v12148_v2 = vld [vmem:[#allocation39 + $0x24] ss:$8 sps:$4 sm:$0xff]  }
 0x66e   :  { %vm1766_vm4 = vcmp.gt.f32.partialorder %v1637_v54, 0.0  ;;  %v1774_v39 = vmul.f32 0.2, %v1637_v54  ;;  %v1641_v40 = vpop.f32.mrb[15].mxu1  ;;  %v1248_v28 = vor.u32 %v1247_v3, %v1246_v49  ;;  %v1251_v30 = vor.u32 %v1250_v7, %v1249_v17  ;;  %v13639_v7 = vld [vmem:[#allocation18 + $0x488] sm:$0xff] }
 0x66f   :  { %vm1767_vm5 = vcmp.gt.f32.partialorder %v1639_v61, 0.0  ;;  %v1775_v9 = vmul.f32 0.2, %v1639_v61  ;;  %v1254_v37 = vor.u32 %v1253_v24, %v1252_v22  ;;  %v10630_v3 = vcombine.high %v13616_v19, %v13618_v21 }
 0x670   :  { %v1782_v18 = vsel %vm1766_vm4, %v1637_v54, %v1774_v39  ;;  %v1259_v54 = vshrl.u32 %v15087_v52, %v13591_v51  ;;  %v13641_v39 = vld [vmem:[#allocation18 + $0x4a8] sm:$0xff]  ;;  %v1257_v40 = vor.u32 %v1256_v32, %v1255_v25  ;;  %v1269_v22 = vsel %vm1261_vm6, %v1248_v28, %v1251_v30 }
 0x671   :  { %v1783_v26 = vsel %vm1767_vm5, %v1639_v61, %v1775_v9  ;;  %v13631_v56 = vpack.c.bf16 %v1782_v18, %v1782_v18  ;;  %v10629_v61 = vcombine.low %v13616_v19, %v13618_v21  ;;  %v1237_v9 = vor.u32 8388608, %v13604_v63 }
 0x672   :  { %v13626_v34 = vpack.c.bf16 %v1783_v26, %v1783_v26  ;;  %v1260_v49 = vor.u32 %v1259_v54, %v1258_v42  ;;  %v1270_v24 = vsel %vm1264_vm7, %v1257_v40, 920167782  ;;  %v10632_v63 = vcombine.high %v13639_v7, %v13641_v39  ;;  %v1955_v42 = vld [vmem:[#allocation18 + $0x4e8] sm:$0xff] }
 0x673   :  { %v13633_v62 = vpop.f32.mrb[16].mxu1  ;;  %vm1262_vm9 = vcmp.lt.s32.totalorder %v13610_v38, 2  ;;  %v1266_v25 = vsel %vm1264_vm7, %v1254_v37, 2102212464  ;;  %v1271_v26 = vsel %vm1263_vm8, %v1254_v37, %v1270_v24  ;;  %v1245_v13 = vshrl.u32 %v15097_v11, %v13591_v51  ;;  %v1970_v38 = vld [vmem:[#allocation18 + $0x560] sm:$0xff] }
 0x674   :  { %v1679_v35 = vpop.f32.mrb[17].mxu1  ;;  %4944 = vmatprep.mubr.bf16.mxu0 %v13626_v34  ;;  %5108 = vmatprep.mubr.bf16.mxu1 %v13626_v34  ;;  %v1272_v14 = vsel %vm1262_vm9, %v1269_v22, %v1271_v26  ;;  %v10631_v15 = vcombine.low %v13639_v7, %v13641_v39  ;;  %v1273_v54 = vsel %vm1261_vm6, %v1251_v30, %v1254_v37 }
 0x675   :  { %v1680_v17 = vadd.f32 %v1679_v35, %v1497_v53  ;;  %v1681_v18 = vpop.f32.mrb[18].mxu1  ;;  %4945 = vmatmul.mubr.bf16.vlgmr.msra.gmra.mrb[24].mxu0 %v13631_v56  ;;  %5109 = vmatmul.mubr.bf16.vlgmr.msra.gmra.mrb[24].mxu1 %v13631_v56  ;;  %v1265_v51 = vsel %vm1261_vm6, %v1245_v13, %v1248_v28  ;;  %v1966_v13 = vld [vmem:[#allocation18 + $0x540] sm:$0xff] }
 0x676   :  { %4954 = vmatpush1.bf16.msra.mxu0 %v10613_v16  ;;  %5118 = vmatpush1.bf16.msra.mxu1 %v10615_v47  ;;  %v1682_v53 = vpop.f32.mrb[19].mxu1  ;;  %v1954_v16 = vld [vmem:[#allocation18 + $0x4e0] sm:$0xff]  ;;  %v1951_v47 = vld [vmem:[#allocation18 + $0x4c8] sm:$0xff]  ;;  %v1267_v18 = vsel %vm1263_vm8, %v1251_v30, %v1266_v25 }
 0x677   :  { %vm1769_vm10 = vcmp.gt.f32.partialorder %v1680_v17, 0.0  ;;  %v1777_v32 = vmul.f32 0.2, %v1680_v17  ;;  %4955 = vmatprep.subr.bf16.mxu0 %v10622_v58  ;;  %5119 = vmatprep.subr.bf16.mxu1 %v10624_v8  ;;  %v1274_v58 = vsel %vm1264_vm7, %v1260_v49, 1326507024  ;;  %v1277_v8 = vshll.u32 %v1237_v9, 8 }
 0x678   :  { %v1275_v7 = vsel %vm1263_vm8, %v1257_v40, %v1274_v58  ;;  %v10638_v40 = vcombine.high %v1950_v46, %v1954_v16  ;;  %v10640_v49 = vcombine.high %v1951_v47, %v1955_v42  ;;  %v1268_v22 = vsel %vm1262_vm9, %v1265_v51, %v1267_v18  ;;  %v1971_v58 = vld [vmem:[#allocation18 + $0x568] sm:$0xff] }
 0x679   :  { %v1785_v35 = vsel %vm1769_vm10, %v1680_v17, %v1777_v32  ;;  %v1276_v37 = vsel %vm1262_vm9, %v1273_v54, %v1275_v7  ;;  %v13697_v28 = vmul.u32.u64.low %v1277_v8, %v1272_v14  ;;  %v13698_v9 = vmul.u32.u64.high %v1277_v8, %v1272_v14, %v13697_v28  ;;  %v1958_v17 = vld [vmem:[#allocation18 + $0x500] sm:$0xff]  ;;  %v1967_v54 = vld [vmem:[#allocation18 + $0x548] sm:$0xff] }
 0x67a   :  { %v13687_v39 = vpack.c.bf16 %v1785_v35, %v1785_v35  ;;  %4956 = vmatpush1.bf16.msra.mxu0 %v10621_v57  ;;  %5120 = vmatpush1.bf16.msra.mxu1 %v10623_v59  ;;  %v13703_v43 = vmul.u32.u64.low %v1277_v8, %v1276_v37  ;;  %v13704_v57 = vmul.u32.u64.high %v1277_v8, %v1276_v37, %v13703_v43  ;;  %v1963_v59 = vld [vmem:[#allocation18 + $0x528] sm:$0xff]  ;;  %v10637_v53 = vcombine.low %v1950_v46, %v1954_v16 }
 0x67b   :  { %v13701_v30 = vpop.f32.mrb[20].mxu1  ;;  %4957 = vmatprep.subr.bf16.mxu0 %v10630_v3  ;;  %5121 = vmatprep.subr.bf16.mxu1 %v10632_v63  ;;  %v10639_v63 = vcombine.low %v1951_v47, %v1955_v42  ;;  %v10646_v25 = vcombine.high %v1958_v17, %v1962_v41  ;;  %v1287_v26 = vadd.s32 1, %v13698_v9  ;;  %v10648_v32 = vcombine.high %v1959_v10, %v1963_v59  ;;  %v1974_v47 = vld [vmem:[#allocation18 + $0x580] sm:$0xff]  ;;  %v1975_v35 = vld [vmem:[#allocation18 + $0x588] sm:$0xff] }
 0x67c   :  { %v13706_v44 = vpop.f32.mrb[21].mxu1  ;;  %4985 = vmatprep.mubr.bf16.mxu0 %v13687_v39  ;;  %5149 = vmatprep.mubr.bf16.mxu1 %v13687_v39  ;;  %v1284_v14 = vmul.u32 %v1277_v8, %v1268_v22  ;;  %vm1286_vm11 = vc.u32 %v13704_v57, %v13697_v28  ;;  %v10647_v46 = vcombine.low %v1959_v10, %v1963_v59  ;;  %v1978_v8 = vld [vmem:[#allocation18 + $0x5a0] sm:$0xff]  ;;  %v1979_v51 = vld [vmem:[#allocation18 + $0x5a8] sm:$0xff]  ;;  %vm1321_vm8 = vweird.f32 %v13564_v20 }
 0x67d   :  { %v1763_v3 = vpop.f32.mrb[22].mxu1  ;;  %v1288_v19 = vsel %vm1286_vm11, %v1287_v26, %v13698_v9  ;;  %v10656_v16 = vcombine.high %v1967_v54, %v1971_v58  ;;  %v10653_v7 = vcombine.low %v1966_v13, %v1970_v38  ;;  %v10655_v37 = vcombine.low %v1967_v54, %v1971_v58  ;;  %v1983_v43 = vld [vmem:[#allocation18 + $0x5c8] sm:$0xff]  ;;  %v1994_v26 = vld [vmem:[#allocation18 + $0x620] sm:$0xff] }
 0x67e   :  { %4958 = vmatpush1.bf16.msra.mxu0 %v10629_v61  ;;  %5122 = vmatpush1.bf16.msra.mxu1 %v10631_v15  ;;  %v1764_v24 = vpop.f32.mrb[23].mxu1  ;;  %v1289_v21 = vadd.s32 %v1288_v19, %v1284_v14  ;;  %v10645_v61 = vcombine.low %v1958_v17, %v1962_v41  ;;  %v10654_v15 = vcombine.high %v1966_v13, %v1970_v38  ;;  %v1986_v41 = vld [vmem:[#allocation18 + $0x5e0] sm:$0xff]  ;;  %v1987_v10 = vld [vmem:[#allocation18 + $0x5e8] sm:$0xff] }
 0x67f   :  { %4959 = vmatprep.subr.bf16.mxu0 %v10638_v40  ;;  %5123 = vmatprep.subr.bf16.mxu1 %v10640_v49  ;;  %v10662_v9 = vcombine.high %v1974_v47, %v1978_v8  ;;  %v10664_v40 = vcombine.high %v1975_v35, %v1979_v51  ;;  %v1982_v49 = vld [vmem:[#allocation18 + $0x5c0] sm:$0xff]  ;;  %v10661_v22 = vcombine.low %v1974_v47, %v1978_v8  ;;  %v1995_v13 = vld [vmem:[#allocation18 + $0x628] sm:$0xff] }
 0x680   :  { %v1290_v42 = vadd.s32 536870912, %v1289_v21  ;;  %v10663_v3 = vcombine.low %v1975_v35, %v1979_v51  ;;  %v10670_v24 = vcombine.high %v1982_v49, %v1986_v41  ;;  %v10669_v38 = vcombine.low %v1982_v49, %v1986_v41 }
 0x681   :  { %v10671_v54 = vcombine.low %v1983_v43, %v1987_v10 }
 0x682   :  { %4960 = vmatpush1.bf16.msra.mxu0 %v10637_v53  ;;  %5124 = vmatpush1.bf16.msra.mxu1 %v10639_v63  ;;  %v13719_v18 = vshrl.u32 %v1290_v42, 30  ;;  %v10672_v53 = vcombine.high %v1983_v43, %v1987_v10  ;;  %v1990_v63 = vld [vmem:[#allocation18 + $0x600] sm:$0xff] }
 0x683   :  { %4961 = vmatprep.subr.bf16.mxu0 %v10646_v25  ;;  %5125 = vmatprep.subr.bf16.mxu1 %v10648_v32  ;;  %v1991_v32 = vld [vmem:[#allocation18 + $0x608] sm:$0xff]  ;;  %v10678_v58 = vcombine.high %v1990_v63, %v1994_v26  ;;  %v10677_v42 = vcombine.low %v1990_v63, %v1994_v26 }
 0x684   :  { %v1292_v17 = vshll.u32 %v13719_v18, 30  ;;  %v10680_v19 = vcombine.high %v1991_v32, %v1995_v13  ;;  %v10679_v8 = vcombine.low %v1991_v32, %v1995_v13  ;;  %v2018_v32 = vld [vmem:[#allocation18 + $0x6e0] sm:$0xff]  ;;  %v2015_v13 = vld [vmem:[#allocation18 + $0x6c8] sm:$0xff] }
 0x686   :  { %4962 = vmatpush1.bf16.msra.mxu0 %v10645_v61  ;;  %5126 = vmatpush1.bf16.msra.mxu1 %v10647_v46  ;;  %v1293_v59 = vsub.s32 %v1289_v21, %v1292_v17  ;;  %v1998_v21 = vld [vmem:[#allocation18 + $0x640] sm:$0xff]  ;;  %v1285_v17 = vadd.s32 %v13697_v28, %v13704_v57 }
 0x687   :  { %4963 = vmatprep.subr.bf16.mxu0 %v10654_v15  ;;  %5127 = vmatprep.subr.bf16.mxu1 %v10656_v16  ;;  %v2002_v46 = vld [vmem:[#allocation18 + $0x660] sm:$0xff]  ;;  %v1999_v15 = vld [vmem:[#allocation18 + $0x648] sm:$0xff] }
 0x688   :  { %v1295_v25 = vsub.s32 0, %v1293_v59  ;;  %v2003_v16 = vld [vmem:[#allocation18 + $0x668] sm:$0xff]  ;;  %v10686_v35 = vcombine.high %v1998_v21, %v2002_v46  ;;  %v10685_v10 = vcombine.low %v1998_v21, %v2002_v46  ;;  %v2022_v21 = vld [vmem:[#allocation18 + $0x700] sm:$0xff] }
 0x689   :  { %v10688_v51 = vcombine.high %v1999_v15, %v2003_v16  ;;  %v2026_v46 = vld [vmem:[#allocation18 + $0x720] sm:$0xff] }
 0x68a   :  { %4964 = vmatpush1.bf16.msra.mxu0 %v10653_v7  ;;  %5128 = vmatpush1.bf16.msra.mxu1 %v10655_v37  ;;  %v10458_v14 = vmin.u32 %v1295_v25, %v1293_v59  ;;  %v2006_v7 = vld [vmem:[#allocation18 + $0x680] sm:$0xff] }
 0x68b   :  { %4965 = vmatprep.subr.bf16.mxu0 %v10662_v9  ;;  %5129 = vmatprep.subr.bf16.mxu1 %v10664_v40  ;;  %v2010_v37 = vld [vmem:[#allocation18 + $0x6a0] sm:$0xff]  ;;  %v2007_v9 = vld [vmem:[#allocation18 + $0x688] sm:$0xff] }
 0x68c   :  { %v1297_v61 = vclz %v10458_v14  ;;  %v2011_v40 = vld [vmem:[#allocation18 + $0x6a8] sm:$0xff]  ;;  %v10693_v28 = vcombine.low %v2006_v7, %v2010_v37 }
 0x68d   :  { %v2019_v14 = vld [vmem:[#allocation18 + $0x6e8] sm:$0xff]  ;;  %v10695_v57 = vcombine.low %v2007_v9, %v2011_v40 }
 0x68e   :  { %4966 = vmatpush1.bf16.msra.mxu0 %v10661_v22  ;;  %5130 = vmatpush1.bf16.msra.mxu1 %v10663_v3  ;;  %v10459_v47 = vadd.s32 4294967294, %v1297_v61  ;;  %v10687_v22 = vcombine.low %v1999_v15, %v2003_v16  ;;  %v10694_v3 = vcombine.high %v2006_v7, %v2010_v37  ;;  %v2023_v15 = vld [vmem:[#allocation18 + $0x708] sm:$0xff]  ;;  %v1492_v16 = vsub.s32 2, %v13500_v55  ;;  %v2030_v37 = vld [vmem:[#allocation18 + $0x740] sm:$0xff] }
 0x68f   :  { %4967 = vmatprep.subr.bf16.mxu0 %v10670_v24  ;;  %5131 = vmatprep.subr.bf16.mxu1 %v10672_v53  ;;  %v10696_v24 = vcombine.high %v2007_v9, %v2011_v40  ;;  %v2014_v53 = vld [vmem:[#allocation18 + $0x6c0] sm:$0xff] }
 0x690   :  { %vm10460_vm12 = vcmp.lt.s32.totalorder %v10459_v47, 0  ;;  %v2034_v9 = vld [vmem:[#allocation18 + $0x760] sm:$0xff] }
 0x691   :  { %v1300_v49 = vsel %vm10460_vm12, 0, %v10459_v47 }
 0x692   :  { %4968 = vmatpush1.bf16.msra.mxu0 %v10669_v38  ;;  %5132 = vmatpush1.bf16.msra.mxu1 %v10671_v54  ;;  %v1301_v41 = vsub.s32 32, %v1300_v49  ;;  %v1305_v43 = vsub.s32 4294967266, %v1300_v49  ;;  %v1302_v63 = vshll.u32 %v1293_v59, %v1300_v49  ;;  %v2027_v59 = vld [vmem:[#allocation18 + $0x728] sm:$0xff]  ;;  %v1315_v49 = vsub.s32 4, %v13719_v18 }
 0x693   :  { %4969 = vmatprep.subr.bf16.mxu0 %v10678_v58  ;;  %5133 = vmatprep.subr.bf16.mxu1 %v10680_v19  ;;  %v10702_v58 = vcombine.high %v2014_v53, %v2018_v32  ;;  %v10704_v19 = vcombine.high %v2015_v13, %v2019_v14  ;;  %v10712_v7 = vcombine.high %v2023_v15, %v2027_v59 }
 0x694   :  { %v1303_v25 = vshrl.u32 %v1285_v17, %v1301_v41  ;;  %v1306_v26 = vadd.s32 127, %v1305_v43  ;;  %v1504_v17 = vsub.s32 5, %v13500_v55  ;;  %v2031_v41 = vld [vmem:[#allocation18 + $0x748] sm:$0xff] }
 0x695   :  { %v2035_v43 = vld [vmem:[#allocation18 + $0x768] sm:$0xff] }
 0x696   :  { %4970 = vmatpush1.bf16.msra.mxu0 %v10677_v42  ;;  %5134 = vmatpush1.bf16.msra.mxu1 %v10679_v8  ;;  %v1304_v38 = vor.u32 %v1303_v25, %v1302_v63  ;;  %v1307_v54 = vshll.u32 %v1306_v26, 23  ;;  %v10701_v8 = vcombine.low %v2014_v53, %v2018_v32  ;;  %v10718_v53 = vcombine.high %v2030_v37, %v2034_v9  ;;  %v2038_v25 = vld [vmem:[#allocation18 + $0x780] sm:$0xff] }
 0x697   :  { %4971 = vmatprep.subr.bf16.mxu0 %v10686_v35  ;;  %5135 = vmatprep.subr.bf16.mxu1 %v10688_v51  ;;  %v10703_v35 = vcombine.low %v2015_v13, %v2019_v14  ;;  %v10710_v51 = vcombine.high %v2022_v21, %v2026_v46  ;;  %v10720_v63 = vcombine.high %v2031_v41, %v2035_v43  ;;  %v2042_v14 = vld [vmem:[#allocation18 + $0x7a0] sm:$0xff] }
 0x698   :  { %v1308_v61 = vor.u32 4788187, %v1307_v54  ;;  %v1311_v42 = vcvt.s32.f32 %v1304_v38  ;;  %v1316_v32 = vsel %vm1231_vm13, %v1315_v49, %v13719_v18  ;;  %v1505_v13 = vrot.slane %v13575_v33, %v1504_v17  ;;  %v2039_v38 = vld [vmem:[#allocation18 + $0x788] sm:$0xff] }
 0x699   :  { %v2043_v54 = vld [vmem:[#allocation18 + $0x7a8] sm:$0xff]  ;;  %v1318_v45 = vsel %vm1230_vm14, 0, %v1316_v32  ;;  %v10726_v18 = vcombine.high %v2038_v25, %v2042_v14 }
 0x69a   :  { %4972 = vmatpush1.bf16.msra.mxu0 %v10685_v10  ;;  %5136 = vmatpush1.bf16.msra.mxu1 %v10687_v22  ;;  %v1309_v47 = vand.u32 2147483647, %v1308_v61  ;;  %v1493_v10 = vrot.slane %v13575_v33, %v1492_v16  ;;  %v2046_v61 = vld [vmem:[#allocation18 + $0x7c0] sm:$0xff]  ;;  %v1721_v33 = vadd.f32 %v13535_v5, %v1505_v13  ;;  %v2059_v49 = vld [vmem:[#allocation18 + $0x828] sm:$0xff] }
 0x69b   :  { %4973 = vmatprep.subr.bf16.mxu0 %v10694_v3  ;;  %5137 = vmatprep.subr.bf16.mxu1 %v10696_v24  ;;  %v10709_v3 = vcombine.low %v2022_v21, %v2026_v46  ;;  %v10711_v24 = vcombine.low %v2023_v15, %v2027_v59  ;;  %v10728_v21 = vcombine.high %v2039_v38, %v2043_v54  ;;  %v2050_v46 = vld [vmem:[#allocation18 + $0x7e0] sm:$0xff]  ;;  %v2047_v15 = vld [vmem:[#allocation18 + $0x7c8] sm:$0xff] }
 0x69c   :  { %v1312_v40 = vmul.f32 %v1311_v42, %v1309_v47  ;;  %v2051_v59 = vld [vmem:[#allocation18 + $0x7e8] sm:$0xff]  ;;  %v1322_v47 = vadd.s32 3, %v1318_v45  ;;  %vm1771_vm2 = vcmp.gt.f32.partialorder %v1721_v33, 0.0 }
 0x69e   :  { %4974 = vmatpush1.bf16.msra.mxu0 %v10693_v28  ;;  %5138 = vmatpush1.bf16.msra.mxu1 %v10695_v57  ;;  %v1313_v22 = vxor.u32 2147483648, %v1312_v40  ;;  %v10717_v57 = vcombine.low %v2030_v37, %v2034_v9  ;;  %v1779_v37 = vmul.f32 0.2, %v1721_v33  ;;  %v2058_v9 = vld [vmem:[#allocation18 + $0x820] sm:$0xff]  ;;  %v1323_v5 = vand.u32 3, %v1322_v47 }
 0x69f   :  { %4975 = vmatprep.subr.bf16.mxu0 %v10702_v58  ;;  %5139 = vmatprep.subr.bf16.mxu1 %v10704_v19  ;;  %v1678_v58 = vadd.f32 %v13633_v62, %v1493_v10  ;;  %v10719_v19 = vcombine.low %v2031_v41, %v2035_v43  ;;  %v10725_v62 = vcombine.low %v2038_v25, %v2042_v14 }
 0x6a0   :  { %v1314_v26 = vsel %vm1231_vm13, %v1313_v22, %v1312_v40  ;;  %v2055_v40 = vld [vmem:[#allocation18 + $0x808] sm:$0xff]  ;;  %v10733_v43 = vcombine.low %v2046_v61, %v2050_v46  ;;  %v10735_v10 = vcombine.low %v2047_v15, %v2051_v59  ;;  %v1426_v22 = vand.u32 3, %v1318_v45 }
 0x6a1   :  { %v1317_v28 = vsel %vm1230_vm14, %v13564_v20, %v1314_v26  ;;  %v1776_v42 = vmul.f32 0.2, %v1678_v58  ;;  %vm1768_vm15 = vcmp.gt.f32.partialorder %v1678_v58, 0.0  ;;  %v1787_v25 = vsel %vm1771_vm2, %v1721_v33, %v1779_v37 }
 0x6a2   :  { %4976 = vmatpush1.bf16.msra.mxu0 %v10701_v8  ;;  %5140 = vmatpush1.bf16.msra.mxu1 %v10703_v35  ;;  %12181 = vcosq.f32 %v1317_v28  ;;  %v10727_v8 = vcombine.low %v2039_v38, %v2043_v54  ;;  %v10734_v35 = vcombine.high %v2046_v61, %v2050_v46  ;;  %vm1328_vm3 = vcmp.eq.s32.totalorder %v1323_v5, 2  ;;  %v2062_v54 = vld [vmem:[#allocation18 + $0x840] sm:$0xff] }
 0x6a3   :  { %4977 = vmatprep.subr.bf16.mxu0 %v10710_v51  ;;  %5141 = vmatprep.subr.bf16.mxu1 %v10712_v7  ;;  %12183 = vsinq.f32 %v1317_v28  ;;  %v10736_v51 = vcombine.high %v2047_v15, %v2051_v59  ;;  %v2054_v7 = vld [vmem:[#allocation18 + $0x800] sm:$0xff]  ;;  %v1784_v41 = vsel %vm1768_vm15, %v1678_v58, %v1776_v42  ;;  %v10743_v38 = vcombine.low %v2055_v40, %v2059_v49  ;;  %v2063_v58 = vld [vmem:[#allocation18 + $0x848] sm:$0xff] }
 0x6a4   :  { %v10741_v32 = vcombine.low %v2054_v7, %v2058_v9  ;;  %v13740_v13 = vpack.c.bf16 %v1784_v41, %v1784_v41  ;;  %v2066_v28 = vld [vmem:[#allocation18 + $0x860] sm:$0xff]  ;;  %vm1325_vm4 = vcmp.eq.s32.totalorder %v1323_v5, 0  ;;  %vm1428_vm5 = vcmp.eq.s32.totalorder %v1426_v22, 0  ;;  %v2079_v41 = vld [vmem:[#allocation18 + $0x8c8] sm:$0xff] }
 0x6a5   :  { %vm1431_vm6 = vcmp.eq.s32.totalorder %v1426_v22, 2  ;;  %vm1324_vm7 = vcmp.lt.s32.totalorder %v1323_v5, 2  ;;  %v10750_v33 = vcombine.high %v2062_v54, %v2066_v28  ;;  %v2070_v46 = vld [vmem:[#allocation18 + $0x880] sm:$0xff]  ;;  %v13743_v59 = vpack.c.bf16 %v1787_v25, %v1787_v25  ;;  %v2087_v25 = vld [vmem:[#allocation18 + $0x908] sm:$0xff] }
 0x6a6   :  { %4978 = vmatpush1.bf16.msra.mxu0 %v10709_v3  ;;  %5142 = vmatpush1.bf16.msra.mxu1 %v10711_v24  ;;  %v10742_v24 = vcombine.high %v2054_v7, %v2058_v9  ;;  %v2074_v15 = vld [vmem:[#allocation18 + $0x8a0] sm:$0xff]  ;;  %vm1427_vm9 = vcmp.lt.s32.totalorder %v1426_v22, 2  ;;  %vm1458_vm13 = vcmask 7168   ;;  %vm1460_vm14 = vcmask 15360  }
 0x6a7   :  { %4979 = vmatprep.subr.bf16.mxu0 %v10718_v53  ;;  %5143 = vmatprep.subr.bf16.mxu1 %v10720_v63  ;;  %v10744_v53 = vcombine.high %v2055_v40, %v2059_v49  ;;  %v10758_v37 = vcombine.high %v2070_v46, %v2074_v15  ;;  %v2078_v40 = vld [vmem:[#allocation18 + $0x8c0] sm:$0xff]  ;;  %vm1462_vm15 = vcmask 23552   ;;  %vm5696_vm2 = vcmask 1041408  }
 0x6a8   :  { %v2082_v49 = vld [vmem:[#allocation18 + $0x8e0] sm:$0xff] }
 0x6aa   :  { %4980 = vmatpush1.bf16.msra.mxu0 %v10717_v57  ;;  %5144 = vmatpush1.bf16.msra.mxu1 %v10719_v19  ;;  %v2067_v19 = vld [vmem:[#allocation18 + $0x868] sm:$0xff] }
 0x6ab   :  { %4981 = vmatprep.subr.bf16.mxu0 %v10726_v18  ;;  %5145 = vmatprep.subr.bf16.mxu1 %v10728_v21  ;;  %v10752_v42 = vcombine.high %v2063_v58, %v2067_v19  ;;  %v10751_v7 = vcombine.low %v2063_v58, %v2067_v19  ;;  %v2095_v58 = vld [vmem:[#allocation18 + $0x948] sm:$0xff] }
 0x6ac   :  { %v12182_v3 = vpop.eup %12181  ;;  %v2099_v19 = vld [vmem:[#allocation18 + $0x968] sm:$0xff] }
 0x6ad   :  { %v12184_v63 = vpop.eup %12183  ;;  %v1329_v26 = vxor.u32 2147483648, %v12182_v3 }
 0x6ae   :  { %4982 = vmatpush1.bf16.msra.mxu0 %v10725_v62  ;;  %5146 = vmatpush1.bf16.msra.mxu1 %v10727_v8  ;;  %v1326_v14 = vxor.u32 2147483648, %v12184_v63  ;;  %v2071_v62 = vld [vmem:[#allocation18 + $0x888] sm:$0xff] }
 0x6af   :  { %4983 = vmatprep.subr.bf16.mxu0 %v10734_v35  ;;  %5147 = vmatprep.subr.bf16.mxu1 %v10736_v51  ;;  %v1330_v57 = vsel %vm1328_vm3, %v1329_v26, %v12184_v63  ;;  %v1433_v21 = vsel %vm1431_vm6, %v1329_v26, %v12184_v63  ;;  %v2075_v8 = vld [vmem:[#allocation18 + $0x8a8] sm:$0xff]  ;;  %v10749_v51 = vcombine.low %v2062_v54, %v2066_v28  ;;  %v2090_v63 = vld [vmem:[#allocation18 + $0x920] sm:$0xff]  ;;  %vm5985_vm3 = vcmask 1041409  }
 0x6b0   :  { %v1327_v45 = vsel %vm1325_vm4, %v12182_v3, %v1326_v14  ;;  %v1430_v18 = vsel %vm1428_vm5, %v12182_v3, %v1326_v14  ;;  %v10760_v9 = vcombine.high %v2071_v62, %v2075_v8  ;;  %v10759_v22 = vcombine.low %v2071_v62, %v2075_v8  ;;  %v2091_v26 = vld [vmem:[#allocation18 + $0x928] sm:$0xff]  ;;  %v2094_v28 = vld [vmem:[#allocation18 + $0x940] sm:$0xff] }
 0x6b1   :  { %v1331_v61 = vsel %vm1324_vm7, %v1327_v45, %v1330_v57  ;;  %v1434_v35 = vsel %vm1427_vm9, %v1430_v18, %v1433_v21  ;;  %v10766_v3 = vcombine.high %v2078_v40, %v2082_v49  ;;  %v10776_v54 = vcombine.high %v2087_v25, %v2091_v26  ;;  %v2098_v57 = vld [vmem:[#allocation18 + $0x960] sm:$0xff] }
 0x6b2   :  { %4984 = vmatpush1.bf16.msra.mxu0 %v10733_v43  ;;  %5148 = vmatpush1.bf16.msra.mxu1 %v10735_v10  ;;  %v13747_v47 = vsel %vm1321_vm8, nan, %v1331_v61  ;;  %v1435_v5 = vsel %vm1321_vm8, nan, %v1434_v35  ;;  %v2083_v43 = vld [vmem:[#allocation18 + $0x8e8] sm:$0xff]  ;;  %v10757_v10 = vcombine.low %v2070_v46, %v2074_v15  ;;  %v10775_v18 = vcombine.low %v2087_v25, %v2091_v26  ;;  %v2106_v46 = vld [vmem:[#allocation18 + $0x9a0] sm:$0xff] }
 0x6b3   :  { %4994 = vmatprep.subr.bf16.mxu0 %v10742_v24  ;;  %5158 = vmatprep.subr.bf16.mxu1 %v10744_v53  ;;  %v10768_v24 = vcombine.high %v2079_v41, %v2083_v43  ;;  %v2086_v53 = vld [vmem:[#allocation18 + $0x900] sm:$0xff]  ;;  %v10767_v14 = vcombine.low %v2079_v41, %v2083_v43  ;;  %v10782_v21 = vcombine.high %v2094_v28, %v2098_v57  ;;  %v2103_v15 = vld [vmem:[#allocation18 + $0x988] sm:$0xff]  ;;  %vm6661_vm4 = vcmask 1040384  }
 0x6b4   :  { %1442 = vrot.lane.b32.xlu1 %v13747_v47, %s12995_s20  ;;  %v10773_v45 = vcombine.low %v2086_v53, %v2090_v63  ;;  %v10784_v61 = vcombine.high %v2095_v58, %v2099_v19  ;;  %v10781_v62 = vcombine.low %v2094_v28, %v2098_v57  ;;  %v10783_v8 = vcombine.low %v2095_v58, %v2099_v19 }
 0x6b5   :  { %4986 = vmatmul.mubr.bf16.vlgmr.msra.gmra.mrb[24].mxu0 %v13740_v13  ;;  %5150 = vmatmul.mubr.bf16.vlgmr.msra.gmra.mrb[24].mxu1 %v13740_v13  ;;  %vm7133_vm5 = vcmask 310272   ;;  %vm9115_vm6 = vcmask 31744  }
 0x6b6   :  { %4995 = vmatpush1.bf16.msra.mxu0 %v10741_v32  ;;  %5026 = vmatprep.mubr.bf16.mxu0 %v13743_v59  ;;  %v10765_v32 = vcombine.low %v2078_v40, %v2082_v49  ;;  %v2115_v40 = vld [vmem:[#allocation18 + $0x9e8] sm:$0xff] }
 0x6b7   :  { %5159 = vmatpush1.bf16.msra.mxu1 %v10743_v38  ;;  %5190 = vmatprep.mubr.bf16.mxu1 %v13743_v59  ;;  %v10774_v38 = vcombine.high %v2086_v53, %v2090_v63 }
 0x6b8   :  { %4996 = vmatprep.subr.bf16.mxu0 %v10750_v33  ;;  %5160 = vmatprep.subr.bf16.mxu1 %v10752_v42  ;;  %v2102_v33 = vld [vmem:[#allocation18 + $0x980] sm:$0xff]  ;;  %v2107_v42 = vld [vmem:[#allocation18 + $0x9a8] sm:$0xff] }
 0x6b9   :  { %1437 = vrot.lane.b32.xlu1 %v1435_v5, %s12995_s20  ;;  %v10790_v35 = vcombine.high %v2102_v33, %v2106_v46  ;;  %v10789_v49 = vcombine.low %v2102_v33, %v2106_v46 }
 0x6ba   :  { %4997 = vmatpush1.bf16.msra.mxu0 %v10749_v51  ;;  %v10792_v51 = vcombine.high %v2103_v15, %v2107_v42 }
 0x6bb   :  { %5161 = vmatpush1.bf16.msra.mxu1 %v10751_v7  ;;  %4998 = vmatprep.subr.bf16.mxu0 %v10758_v37  ;;  %v2110_v7 = vld [vmem:[#allocation18 + $0x9c0] sm:$0xff] }
 0x6bc   :  { %5162 = vmatprep.subr.bf16.mxu1 %v10760_v9  ;;  %v2114_v37 = vld [vmem:[#allocation18 + $0x9e0] sm:$0xff]  ;;  %v2111_v9 = vld [vmem:[#allocation18 + $0x9c8] sm:$0xff] }
 0x6bd   :  { %1451 = vrot.lane.b32.xlu1 %v1435_v5, %s12996_s19  ;;  %v10791_v5 = vcombine.low %v2103_v15, %v2107_v42  ;;  %v10798_v41 = vcombine.high %v2110_v7, %v2114_v37  ;;  %v10800_v43 = vcombine.high %v2111_v9, %v2115_v40  ;;  %v10797_v53 = vcombine.low %v2110_v7, %v2114_v37 }
 0x6be   :  { %4999 = vmatpush1.bf16.msra.mxu0 %v10757_v10  ;;  %v2118_v10 = vld [vmem:[#allocation18 + $0xa00] sm:$0xff]  ;;  %v10799_v63 = vcombine.low %v2111_v9, %v2115_v40 }
 0x6bf   :  { %5163 = vmatpush1.bf16.msra.mxu1 %v10759_v22  ;;  %5000 = vmatprep.subr.bf16.mxu0 %v10766_v3  ;;  %v2122_v22 = vld [vmem:[#allocation18 + $0xa20] sm:$0xff]  ;;  %v2119_v3 = vld [vmem:[#allocation18 + $0xa08] sm:$0xff] }
 0x6c0   :  { %5164 = vmatprep.subr.bf16.mxu1 %v10768_v24  ;;  %v2123_v24 = vld [vmem:[#allocation18 + $0xa28] sm:$0xff]  ;;  %v10806_v25 = vcombine.high %v2118_v10, %v2122_v22  ;;  %v10805_v28 = vcombine.low %v2118_v10, %v2122_v22 }
 0x6c1   :  { %v10808_v26 = vcombine.high %v2119_v3, %v2123_v24  ;;  %v10807_v57 = vcombine.low %v2119_v3, %v2123_v24  ;;  %v1500_v24 = vsub.s32 4, %v13500_v55 }
 0x6c2   :  { %5001 = vmatpush1.bf16.msra.mxu0 %v10765_v32  ;;  %v2126_v32 = vld [vmem:[#allocation18 + $0xa40] sm:$0xff] }
 0x6c3   :  { %5165 = vmatpush1.bf16.msra.mxu1 %v10767_v14  ;;  %5002 = vmatprep.subr.bf16.mxu0 %v10774_v38  ;;  %v2130_v14 = vld [vmem:[#allocation18 + $0xa60] sm:$0xff]  ;;  %v2127_v38 = vld [vmem:[#allocation18 + $0xa48] sm:$0xff] }
 0x6c4   :  { %5166 = vmatprep.subr.bf16.mxu1 %v10776_v54  ;;  %v2131_v54 = vld [vmem:[#allocation18 + $0xa68] sm:$0xff]  ;;  %v10814_v58 = vcombine.high %v2126_v32, %v2130_v14  ;;  %v10813_v33 = vcombine.low %v2126_v32, %v2130_v14  ;;  %v1512_v14 = vsub.s32 7, %v13500_v55 }
 0x6c5   :  { %v10816_v19 = vcombine.high %v2127_v38, %v2131_v54  ;;  %v10815_v46 = vcombine.low %v2127_v38, %v2131_v54  ;;  %v2163_v32 = vld [vmem:[#allocation18 + $0xb68] sm:$0xff] }
 0x6c6   :  { %5003 = vmatpush1.bf16.msra.mxu0 %v10773_v45  ;;  %v2134_v45 = vld [vmem:[#allocation18 + $0xa80] sm:$0xff] }
 0x6c7   :  { %5167 = vmatpush1.bf16.msra.mxu1 %v10775_v18  ;;  %5004 = vmatprep.subr.bf16.mxu0 %v10782_v21  ;;  %v2138_v18 = vld [vmem:[#allocation18 + $0xaa0] sm:$0xff]  ;;  %v2135_v21 = vld [vmem:[#allocation18 + $0xa88] sm:$0xff] }
 0x6c8   :  { %5168 = vmatprep.subr.bf16.mxu1 %v10784_v61  ;;  %v2139_v61 = vld [vmem:[#allocation18 + $0xaa8] sm:$0xff]  ;;  %v10822_v15 = vcombine.high %v2134_v45, %v2138_v18  ;;  %v10821_v7 = vcombine.low %v2134_v45, %v2138_v18  ;;  %v2166_v45 = vld [vmem:[#allocation18 + $0xb80] sm:$0xff] }
 0x6c9   :  { %v10824_v42 = vcombine.high %v2135_v21, %v2139_v61  ;;  %v10823_v37 = vcombine.low %v2135_v21, %v2139_v61  ;;  %v2170_v18 = vld [vmem:[#allocation18 + $0xba0] sm:$0xff]  ;;  %v2167_v21 = vld [vmem:[#allocation18 + $0xb88] sm:$0xff] }
 0x6ca   :  { %5005 = vmatpush1.bf16.msra.mxu0 %v10781_v62  ;;  %v2142_v62 = vld [vmem:[#allocation18 + $0xac0] sm:$0xff]  ;;  %v2171_v61 = vld [vmem:[#allocation18 + $0xba8] sm:$0xff] }
 0x6cb   :  { %5169 = vmatpush1.bf16.msra.mxu1 %v10783_v8  ;;  %5006 = vmatprep.subr.bf16.mxu0 %v10790_v35  ;;  %v2146_v8 = vld [vmem:[#allocation18 + $0xae0] sm:$0xff]  ;;  %v2143_v35 = vld [vmem:[#allocation18 + $0xac8] sm:$0xff] }
 0x6cc   :  { %5170 = vmatprep.subr.bf16.mxu1 %v10792_v51  ;;  %v2147_v51 = vld [vmem:[#allocation18 + $0xae8] sm:$0xff]  ;;  %v10830_v9 = vcombine.high %v2142_v62, %v2146_v8  ;;  %v10829_v10 = vcombine.low %v2142_v62, %v2146_v8  ;;  %v10856_v8 = vcombine.high %v2167_v21, %v2171_v61 }
 0x6cd   :  { %v10832_v40 = vcombine.high %v2143_v35, %v2147_v51  ;;  %v10831_v22 = vcombine.low %v2143_v35, %v2147_v51  ;;  %v2174_v35 = vld [vmem:[#allocation18 + $0xbc0] sm:$0xff] }
 0x6ce   :  { %5007 = vmatpush1.bf16.msra.mxu0 %v10789_v49  ;;  %v2150_v49 = vld [vmem:[#allocation18 + $0xb00] sm:$0xff] }
 0x6cf   :  { %5171 = vmatpush1.bf16.msra.mxu1 %v10791_v5  ;;  %5008 = vmatprep.subr.bf16.mxu0 %v10798_v41  ;;  %v2154_v5 = vld [vmem:[#allocation18 + $0xb20] sm:$0xff]  ;;  %v2151_v41 = vld [vmem:[#allocation18 + $0xb08] sm:$0xff] }
 0x6d0   :  { %5172 = vmatprep.subr.bf16.mxu1 %v10800_v43  ;;  %v2155_v43 = vld [vmem:[#allocation18 + $0xb28] sm:$0xff]  ;;  %v10838_v3 = vcombine.high %v2150_v49, %v2154_v5  ;;  %v10837_v38 = vcombine.low %v2150_v49, %v2154_v5  ;;  %v2178_v51 = vld [vmem:[#allocation18 + $0xbe0] sm:$0xff]  ;;  %v10855_v49 = vcombine.low %v2167_v21, %v2171_v61 }
 0x6d1   :  { %v10839_v54 = vcombine.low %v2151_v41, %v2155_v43  ;;  %v10862_v5 = vcombine.high %v2174_v35, %v2178_v51 }
 0x6d2   :  { %5009 = vmatpush1.bf16.msra.mxu0 %v10797_v53  ;;  %v10840_v53 = vcombine.high %v2151_v41, %v2155_v43 }
 0x6d3   :  { %5173 = vmatpush1.bf16.msra.mxu1 %v10799_v63  ;;  %5010 = vmatprep.subr.bf16.mxu0 %v10806_v25  ;;  %v2158_v63 = vld [vmem:[#allocation18 + $0xb40] sm:$0xff] }
 0x6d4   :  { %5174 = vmatprep.subr.bf16.mxu1 %v10808_v26  ;;  %v2162_v25 = vld [vmem:[#allocation18 + $0xb60] sm:$0xff]  ;;  %v2159_v26 = vld [vmem:[#allocation18 + $0xb48] sm:$0xff] }
 0x6d6   :  { %5011 = vmatpush1.bf16.msra.mxu0 %v10805_v28  ;;  %v10846_v28 = vcombine.high %v2158_v63, %v2162_v25 }
 0x6d7   :  { %5175 = vmatpush1.bf16.msra.mxu1 %v10807_v57  ;;  %5012 = vmatprep.subr.bf16.mxu0 %v10814_v58  ;;  %v13758_v57 = vld [vmem:[#allocation16] sm:$0xff] }
 0x6d8   :  { %5176 = vmatprep.subr.bf16.mxu1 %v10816_v19  ;;  %v1501_v58 = vrot.slane %v13758_v57, %v1500_v24  ;;  %v10848_v19 = vcombine.high %v2159_v26, %v2163_v32 }
 0x6da   :  { %5013 = vmatpush1.bf16.msra.mxu0 %v10813_v33  ;;  %v1513_v33 = vrot.slane %v13758_v57, %v1512_v14  ;;  %v1719_v62 = vadd.f32 %v13533_v1, %v1501_v58  ;;  %v2183_v1 = vld [vmem:[#allocation18 + $0xc08] sm:$0xff] }
 0x6db   :  { %5177 = vmatpush1.bf16.msra.mxu1 %v10815_v46  ;;  %5014 = vmatprep.subr.bf16.mxu0 %v10822_v15  ;;  %v10845_v46 = vcombine.low %v2158_v63, %v2162_v25  ;;  %v10847_v15 = vcombine.low %v2159_v26, %v2163_v32  ;;  %v10861_v63 = vcombine.low %v2174_v35, %v2178_v51 }
 0x6dc   :  { %5178 = vmatprep.subr.bf16.mxu1 %v10824_v42  ;;  %v10854_v42 = vcombine.high %v2166_v45, %v2170_v18  ;;  %v1778_v41 = vmul.f32 0.2, %v1719_v62  ;;  %vm1770_vm10 = vcmp.gt.f32.partialorder %v1719_v62, 0.0 }
 0x6de   :  { %5015 = vmatpush1.bf16.msra.mxu0 %v10821_v7  ;;  %v2175_v7 = vld [vmem:[#allocation18 + $0xbc8] sm:$0xff]  ;;  %v1786_v26 = vsel %vm1770_vm10, %v1719_v62, %v1778_v41 }
 0x6df   :  { %5179 = vmatpush1.bf16.msra.mxu1 %v10823_v37  ;;  %5016 = vmatprep.subr.bf16.mxu0 %v10830_v9  ;;  %v2179_v37 = vld [vmem:[#allocation18 + $0xbe8] sm:$0xff]  ;;  %v1762_v9 = vadd.f32 %v13706_v44, %v1513_v33  ;;  %v2198_v33 = vld [vmem:[#allocation18 + $0xc80] sm:$0xff] }
 0x6e0   :  { %5180 = vmatprep.subr.bf16.mxu1 %v10832_v40  ;;  %v10853_v40 = vcombine.low %v2166_v45, %v2170_v18  ;;  %v10864_v43 = vcombine.high %v2175_v7, %v2179_v37  ;;  %v10863_v44 = vcombine.low %v2175_v7, %v2179_v37  ;;  %v2195_v45 = vld [vmem:[#allocation18 + $0xc68] sm:$0xff]  ;;  %v13768_v18 = vpack.c.bf16 %v1786_v26, %v1786_v26 }
 0x6e1   :  { %vm1773_vm11 = vcmp.gt.f32.partialorder %v1762_v9, 0.0  ;;  %v2199_v62 = vld [vmem:[#allocation18 + $0xc88] sm:$0xff] }
 0x6e2   :  { %5017 = vmatpush1.bf16.msra.mxu0 %v10829_v10  ;;  %v2182_v10 = vld [vmem:[#allocation18 + $0xc00] sm:$0xff] }
 0x6e3   :  { %5181 = vmatpush1.bf16.msra.mxu1 %v10831_v22  ;;  %5018 = vmatprep.subr.bf16.mxu0 %v10838_v3  ;;  %v2186_v22 = vld [vmem:[#allocation18 + $0xc20] sm:$0xff]  ;;  %v2187_v3 = vld [vmem:[#allocation18 + $0xc28] sm:$0xff] }
 0x6e4   :  { %5182 = vmatprep.subr.bf16.mxu1 %v10840_v53  ;;  %v1781_v53 = vmul.f32 0.2, %v1762_v9  ;;  %v10870_v25 = vcombine.high %v2182_v10, %v2186_v22  ;;  %v10872_v32 = vcombine.high %v2183_v1, %v2187_v3  ;;  %v10869_v58 = vcombine.low %v2182_v10, %v2186_v22 }
 0x6e5   :  { %v10871_v21 = vcombine.low %v2183_v1, %v2187_v3  ;;  %v2214_v1 = vld [vmem:[#allocation18 + $0xd00] sm:$0xff] }
 0x6e6   :  { %5019 = vmatpush1.bf16.msra.mxu0 %v10837_v38  ;;  %v2190_v38 = vld [vmem:[#allocation18 + $0xc40] sm:$0xff] }
 0x6e7   :  { %5183 = vmatpush1.bf16.msra.mxu1 %v10839_v54  ;;  %5020 = vmatprep.subr.bf16.mxu0 %v10846_v28  ;;  %v2194_v54 = vld [vmem:[#allocation18 + $0xc60] sm:$0xff]  ;;  %v1789_v28 = vsel %vm1773_vm11, %v1762_v9, %v1781_v53  ;;  %v2215_v53 = vld [vmem:[#allocation18 + $0xd08] sm:$0xff] }
 0x6e8   :  { %5184 = vmatprep.subr.bf16.mxu1 %v10848_v19  ;;  %v2191_v19 = vld [vmem:[#allocation18 + $0xc48] sm:$0xff]  ;;  %v10878_v61 = vcombine.high %v2190_v38, %v2194_v54  ;;  %v10877_v35 = vcombine.low %v2190_v38, %v2194_v54  ;;  %v2206_v9 = vld [vmem:[#allocation18 + $0xcc0] sm:$0xff] }
 0x6e9   :  { %v10879_v51 = vcombine.low %v2191_v19, %v2195_v45  ;;  %v2218_v3 = vld [vmem:[#allocation18 + $0xd20] sm:$0xff] }
 0x6ea   :  { %5021 = vmatpush1.bf16.msra.mxu0 %v10845_v46  ;;  %v2202_v46 = vld [vmem:[#allocation18 + $0xca0] sm:$0xff]  ;;  %v10902_v26 = vcombine.high %v2214_v1, %v2218_v3 }
 0x6eb   :  { %5185 = vmatpush1.bf16.msra.mxu1 %v10847_v15  ;;  %5022 = vmatprep.subr.bf16.mxu0 %v10854_v42  ;;  %v13770_v15 = vpack.c.bf16 %v1789_v28, %v1789_v28  ;;  %v10880_v42 = vcombine.high %v2191_v19, %v2195_v45  ;;  %v10886_v7 = vcombine.high %v2198_v33, %v2202_v46  ;;  %v2222_v38 = vld [vmem:[#allocation18 + $0xd40] sm:$0xff]  ;;  %v2223_v28 = vld [vmem:[#allocation18 + $0xd48] sm:$0xff] }
 0x6ec   :  { %5186 = vmatprep.subr.bf16.mxu1 %v10856_v8  ;;  %v2203_v8 = vld [vmem:[#allocation18 + $0xca8] sm:$0xff]  ;;  %v10885_v41 = vcombine.low %v2198_v33, %v2202_v46  ;;  %v2226_v54 = vld [vmem:[#allocation18 + $0xd60] sm:$0xff]  ;;  %v10901_v19 = vcombine.low %v2214_v1, %v2218_v3 }
 0x6ed   :  { %v10888_v37 = vcombine.high %v2199_v62, %v2203_v8  ;;  %v2230_v33 = vld [vmem:[#allocation18 + $0xd80] sm:$0xff]  ;;  %v2247_v3 = vld [vmem:[#allocation18 + $0xe08] sm:$0xff] }
 0x6ee   :  { %5023 = vmatpush1.bf16.msra.mxu0 %v10853_v40  ;;  %v2210_v40 = vld [vmem:[#allocation18 + $0xce0] sm:$0xff] }
 0x6ef   :  { %5187 = vmatpush1.bf16.msra.mxu1 %v10855_v49  ;;  %5024 = vmatprep.subr.bf16.mxu0 %v10862_v5  ;;  %v2207_v49 = vld [vmem:[#allocation18 + $0xcc8] sm:$0xff]  ;;  %v10894_v10 = vcombine.high %v2206_v9, %v2210_v40  ;;  %v2234_v46 = vld [vmem:[#allocation18 + $0xda0] sm:$0xff] }
 0x6f0   :  { %5188 = vmatprep.subr.bf16.mxu1 %v10864_v43  ;;  %v2211_v5 = vld [vmem:[#allocation18 + $0xce8] sm:$0xff]  ;;  %v10887_v43 = vcombine.low %v2199_v62, %v2203_v8  ;;  %v10909_v8 = vcombine.low %v2222_v38, %v2226_v54  ;;  %v2250_v1 = vld [vmem:[#allocation18 + $0xe20] sm:$0xff] }
 0x6f1   :  { %v10896_v22 = vcombine.high %v2207_v49, %v2211_v5  ;;  %v2235_v62 = vld [vmem:[#allocation18 + $0xda8] sm:$0xff] }
 0x6f2   :  { %5025 = vmatpush1.bf16.msra.mxu0 %v10861_v63  ;;  %v2219_v63 = vld [vmem:[#allocation18 + $0xd28] sm:$0xff] }
 0x6f3   :  { %5189 = vmatpush1.bf16.msra.mxu1 %v10863_v44  ;;  %5035 = vmatprep.subr.bf16.mxu0 %v10870_v25  ;;  %v10893_v44 = vcombine.low %v2206_v9, %v2210_v40  ;;  %v10895_v25 = vcombine.low %v2207_v49, %v2211_v5  ;;  %v10903_v45 = vcombine.low %v2215_v53, %v2219_v63  ;;  %v2242_v9 = vld [vmem:[#allocation18 + $0xde0] sm:$0xff]  ;;  %v2239_v40 = vld [vmem:[#allocation18 + $0xdc8] sm:$0xff] }
 0x6f4   :  { %5199 = vmatprep.subr.bf16.mxu1 %v10872_v32  ;;  %v10904_v32 = vcombine.high %v2215_v53, %v2219_v63  ;;  %v2243_v49 = vld [vmem:[#allocation18 + $0xde8] sm:$0xff]  ;;  %v10917_v5 = vcombine.low %v2230_v33, %v2234_v46 }
 0x6f5   :  { %5027 = vmatmul.mubr.bf16.vlgmr.msra.gmra.mrb[24].mxu0 %v13768_v18  ;;  %v2251_v53 = vld [vmem:[#allocation18 + $0xe28] sm:$0xff] }
 0x6f6   :  { %5191 = vmatmul.mubr.bf16.vlgmr.msra.gmra.mrb[24].mxu1 %v13768_v18  ;;  %5036 = vmatpush1.bf16.msra.mxu0 %v10869_v58  ;;  %v2227_v58 = vld [vmem:[#allocation18 + $0xd68] sm:$0xff] }
 0x6f7   :  { %5067 = vmatprep.mubr.bf16.mxu0 %v13770_v15  ;;  %5200 = vmatpush1.bf16.msra.mxu1 %v10871_v21  ;;  %v10910_v21 = vcombine.high %v2222_v38, %v2226_v54  ;;  %v2258_v38 = vld [vmem:[#allocation18 + $0xe60] sm:$0xff]  ;;  %v2255_v54 = vld [vmem:[#allocation18 + $0xe48] sm:$0xff] }
 0x6f8   :  { %5231 = vmatprep.mubr.bf16.mxu1 %v13770_v15  ;;  %5037 = vmatprep.subr.bf16.mxu0 %v10878_v61  ;;  %v10912_v61 = vcombine.high %v2223_v28, %v2227_v58 }
 0x6f9   :  { %5201 = vmatprep.subr.bf16.mxu1 %v10880_v42  ;;  %v2231_v42 = vld [vmem:[#allocation18 + $0xd88] sm:$0xff] }
 0x6fa   :  { %5038 = vmatpush1.bf16.msra.mxu0 %v10877_v35  ;;  %v10911_v35 = vcombine.low %v2223_v28, %v2227_v58  ;;  %v2259_v28 = vld [vmem:[#allocation18 + $0xe68] sm:$0xff] }
 0x6fb   :  { %5202 = vmatpush1.bf16.msra.mxu1 %v10879_v51  ;;  %5039 = vmatprep.subr.bf16.mxu0 %v10886_v7  ;;  %v10918_v51 = vcombine.high %v2230_v33, %v2234_v46  ;;  %v10920_v7 = vcombine.high %v2231_v42, %v2235_v62  ;;  %v2266_v33 = vld [vmem:[#allocation18 + $0xea0] sm:$0xff]  ;;  %v2263_v46 = vld [vmem:[#allocation18 + $0xe88] sm:$0xff] }
 0x6fc   :  { %5203 = vmatprep.subr.bf16.mxu1 %v10888_v37  ;;  %v2238_v37 = vld [vmem:[#allocation18 + $0xdc0] sm:$0xff] }
 0x6fd   :  { %v10925_v63 = vcombine.low %v2238_v37, %v2242_v9 }
 0x6fe   :  { %5040 = vmatpush1.bf16.msra.mxu0 %v10885_v41  ;;  %v10919_v41 = vcombine.low %v2231_v42, %v2235_v62  ;;  %v2267_v42 = vld [vmem:[#allocation18 + $0xea8] sm:$0xff] }
 0x6ff   :  { %5204 = vmatpush1.bf16.msra.mxu1 %v10887_v43  ;;  %5041 = vmatprep.subr.bf16.mxu0 %v10894_v10  ;;  %v10926_v43 = vcombine.high %v2238_v37, %v2242_v9  ;;  %v10928_v10 = vcombine.high %v2239_v40, %v2243_v49  ;;  %v2274_v37 = vld [vmem:[#allocation18 + $0xee0] sm:$0xff]  ;;  %v2271_v9 = vld [vmem:[#allocation18 + $0xec8] sm:$0xff] }
 0x700   :  { %5205 = vmatprep.subr.bf16.mxu1 %v10896_v22  ;;  %v2246_v22 = vld [vmem:[#allocation18 + $0xe00] sm:$0xff] }
 0x701   :  { %v10933_v58 = vcombine.low %v2246_v22, %v2250_v1 }
 0x702   :  { %5042 = vmatpush1.bf16.msra.mxu0 %v10893_v44  ;;  %v10927_v44 = vcombine.low %v2239_v40, %v2243_v49  ;;  %v2275_v40 = vld [vmem:[#allocation18 + $0xee8] sm:$0xff] }
 0x703   :  { %5206 = vmatpush1.bf16.msra.mxu1 %v10895_v25  ;;  %5043 = vmatprep.subr.bf16.mxu0 %v10902_v26  ;;  %v10934_v25 = vcombine.high %v2246_v22, %v2250_v1  ;;  %v10936_v26 = vcombine.high %v2247_v3, %v2251_v53  ;;  %v2282_v22 = vld [vmem:[#allocation18 + $0xf20] sm:$0xff]  ;;  %v2279_v1 = vld [vmem:[#allocation18 + $0xf08] sm:$0xff] }
 0x704   :  { %5207 = vmatprep.subr.bf16.mxu1 %v10904_v32  ;;  %v2254_v32 = vld [vmem:[#allocation18 + $0xe40] sm:$0xff] }
 0x705   :  { %v10941_v62 = vcombine.low %v2254_v32, %v2258_v38 }
 0x706   :  { %5044 = vmatpush1.bf16.msra.mxu0 %v10901_v19  ;;  %v10935_v19 = vcombine.low %v2247_v3, %v2251_v53  ;;  %v2283_v3 = vld [vmem:[#allocation18 + $0xf28] sm:$0xff] }
 0x707   :  { %5208 = vmatpush1.bf16.msra.mxu1 %v10903_v45  ;;  %5045 = vmatprep.subr.bf16.mxu0 %v10910_v21  ;;  %v10942_v45 = vcombine.high %v2254_v32, %v2258_v38  ;;  %v10944_v21 = vcombine.high %v2255_v54, %v2259_v28  ;;  %v2286_v32 = vld [vmem:[#allocation18 + $0xf40] sm:$0xff] }
 0x708   :  { %5209 = vmatprep.subr.bf16.mxu1 %v10912_v61  ;;  %v2262_v61 = vld [vmem:[#allocation18 + $0xe80] sm:$0xff] }
 0x709   :  { %v10949_v49 = vcombine.low %v2262_v61, %v2266_v33  ;;  %v2290_v38 = vld [vmem:[#allocation18 + $0xf60] sm:$0xff] }
 0x70a   :  { %5046 = vmatpush1.bf16.msra.mxu0 %v10909_v8  ;;  %v10943_v8 = vcombine.low %v2255_v54, %v2259_v28  ;;  %v2287_v54 = vld [vmem:[#allocation18 + $0xf48] sm:$0xff] }
 0x70b   :  { %5210 = vmatpush1.bf16.msra.mxu1 %v10911_v35  ;;  %5047 = vmatprep.subr.bf16.mxu0 %v10918_v51  ;;  %v10950_v35 = vcombine.high %v2262_v61, %v2266_v33  ;;  %v10952_v51 = vcombine.high %v2263_v46, %v2267_v42  ;;  %v2291_v28 = vld [vmem:[#allocation18 + $0xf68] sm:$0xff]  ;;  %v2294_v33 = vld [vmem:[#allocation18 + $0xf80] sm:$0xff] }
 0x70c   :  { %5211 = vmatprep.subr.bf16.mxu1 %v10920_v7  ;;  %v2270_v7 = vld [vmem:[#allocation18 + $0xec0] sm:$0xff]  ;;  %v10976_v61 = vcombine.high %v2287_v54, %v2291_v28 }
 0x70d   :  { %v10957_v53 = vcombine.low %v2270_v7, %v2274_v37 }
 0x70e   :  { %5048 = vmatpush1.bf16.msra.mxu0 %v10917_v5  ;;  %v10951_v5 = vcombine.low %v2263_v46, %v2267_v42  ;;  %v2298_v46 = vld [vmem:[#allocation18 + $0xfa0] sm:$0xff]  ;;  %v2295_v42 = vld [vmem:[#allocation18 + $0xf88] sm:$0xff] }
 0x70f   :  { %5212 = vmatpush1.bf16.msra.mxu1 %v10919_v41  ;;  %5049 = vmatprep.subr.bf16.mxu0 %v10926_v43  ;;  %v10958_v41 = vcombine.high %v2270_v7, %v2274_v37  ;;  %v10960_v43 = vcombine.high %v2271_v9, %v2275_v40  ;;  %v10982_v37 = vcombine.high %v2294_v33, %v2298_v46 }
 0x710   :  { %5213 = vmatprep.subr.bf16.mxu1 %v10928_v10  ;;  %v2278_v10 = vld [vmem:[#allocation18 + $0xf00] sm:$0xff] }
 0x712   :  { %5050 = vmatpush1.bf16.msra.mxu0 %v10925_v63  ;;  %v10959_v63 = vcombine.low %v2271_v9, %v2275_v40  ;;  %v2302_v40 = vld [vmem:[#allocation18 + $0xfc0] sm:$0xff] }
 0x713   :  { %5214 = vmatpush1.bf16.msra.mxu1 %v10927_v44  ;;  %5051 = vmatprep.subr.bf16.mxu0 %v10934_v25  ;;  %v10966_v44 = vcombine.high %v2278_v10, %v2282_v22  ;;  %v1508_v25 = vsub.s32 6, %v13500_v55 }
 0x714   :  { %5215 = vmatprep.subr.bf16.mxu1 %v10936_v26  ;;  %v10968_v26 = vcombine.high %v2279_v1, %v2283_v3 }
 0x716   :  { %5052 = vmatpush1.bf16.msra.mxu0 %v10933_v58  ;;  %v10965_v58 = vcombine.low %v2278_v10, %v2282_v22 }
 0x717   :  { %5216 = vmatpush1.bf16.msra.mxu1 %v10935_v19  ;;  %5053 = vmatprep.subr.bf16.mxu0 %v10942_v45  ;;  %v10967_v19 = vcombine.low %v2279_v1, %v2283_v3  ;;  %v10974_v45 = vcombine.high %v2286_v32, %v2290_v38  ;;  %v1800_v3 = vld [vmem:[#allocation18 + $0x10] sm:$0xff] }
 0x718   :  { %5217 = vmatprep.subr.bf16.mxu1 %v10944_v21  ;;  %v1509_v21 = vrot.slane %v13758_v57, %v1508_v25 }
 0x71a   :  { %5054 = vmatpush1.bf16.msra.mxu0 %v10941_v62  ;;  %v2299_v62 = vld [vmem:[#allocation18 + $0xfa8] sm:$0xff] }
 0x71b   :  { %5218 = vmatpush1.bf16.msra.mxu1 %v10943_v8  ;;  %5055 = vmatprep.subr.bf16.mxu0 %v10950_v35  ;;  %v10973_v8 = vcombine.low %v2286_v32, %v2290_v38  ;;  %v10975_v35 = vcombine.low %v2287_v54, %v2291_v28  ;;  %v10984_v9 = vcombine.high %v2295_v42, %v2299_v62 }
 0x71c   :  { %5219 = vmatprep.subr.bf16.mxu1 %v10952_v51  ;;  %v1760_v51 = vadd.f32 %v13701_v30, %v1509_v21  ;;  %v10983_v10 = vcombine.low %v2295_v42, %v2299_v62 }
 0x71e   :  { %5056 = vmatpush1.bf16.msra.mxu0 %v10949_v49  ;;  %v2306_v49 = vld [vmem:[#allocation18 + $0xfe0] sm:$0xff]  ;;  %v1780_v22 = vmul.f32 0.2, %v1760_v51  ;;  %vm1772_vm12 = vcmp.gt.f32.partialorder %v1760_v51, 0.0 }
 0x71f   :  { %5220 = vmatpush1.bf16.msra.mxu1 %v10951_v5  ;;  %5057 = vmatprep.subr.bf16.mxu0 %v10958_v41  ;;  %v2303_v5 = vld [vmem:[#allocation18 + $0xfc8] sm:$0xff]  ;;  %v10990_v30 = vcombine.high %v2302_v40, %v2306_v49  ;;  %v10989_v32 = vcombine.low %v2302_v40, %v2306_v49 }
 0x720   :  { %5221 = vmatprep.subr.bf16.mxu1 %v10960_v43  ;;  %v2307_v41 = vld [vmem:[#allocation18 + $0xfe8] sm:$0xff]  ;;  %v10981_v43 = vcombine.low %v2294_v33, %v2298_v46  ;;  %v1788_v28 = vsel %vm1772_vm12, %v1760_v51, %v1780_v22  ;;  %v1813_v33 = vld [vmem:[#allocation18 + $0x78] sm:$0xff] }
 0x721   :  { %v10992_v1 = vcombine.high %v2303_v5, %v2307_v41  ;;  %v10991_v38 = vcombine.low %v2303_v5, %v2307_v41  ;;  %v13783_v46 = vpack.c.bf16 %v1788_v28, %v1788_v28  ;;  %v1824_v5 = vld [vmem:[#allocation18 + $0xd0] sm:$0xff] }
 0x722   :  { %5058 = vmatpush1.bf16.msra.mxu0 %v10957_v53  ;;  %v1804_v53 = vld [vmem:[#allocation18 + $0x30] sm:$0xff] }
 0x723   :  { %5222 = vmatpush1.bf16.msra.mxu1 %v10959_v63  ;;  %5059 = vmatprep.subr.bf16.mxu0 %v10966_v44  ;;  %v1446_v63 = vsub.f32 0.0, %v13564_v20  ;;  %v1801_v44 = vld [vmem:[#allocation18 + $0x18] sm:$0xff]  ;;  %v10490_v54 = vcombine.high %v1800_v3, %v1804_v53  ;;  %v10489_v21 = vcombine.low %v1800_v3, %v1804_v53  ;;  %v1828_v41 = vld [vmem:[#allocation18 + $0xf0] sm:$0xff] }
 0x724   :  { %5223 = vmatprep.subr.bf16.mxu1 %v10968_v26  ;;  %v1805_v26 = vld [vmem:[#allocation18 + $0x38] sm:$0xff]  ;;  %v1832_v53 = vld [vmem:[#allocation18 + $0x110] sm:$0xff] }
 0x725   :  { %v10491_v42 = vcombine.low %v1801_v44, %v1805_v26  ;;  %v1840_v28 = vld [vmem:[#allocation18 + $0x150] sm:$0xff] }
 0x726   :  { %5060 = vmatpush1.bf16.msra.mxu0 %v10965_v58  ;;  %v1443_v7 = vpop.permute.xlu1 %1442  ;;  %v10492_v58 = vcombine.high %v1801_v44, %v1805_v26  ;;  %v1833_v44 = vld [vmem:[#allocation18 + $0x118] sm:$0xff] }
 0x727   :  { %5224 = vmatpush1.bf16.msra.mxu1 %v10967_v19  ;;  %5061 = vmatprep.subr.bf16.mxu0 %v10974_v45  ;;  %v1445_v57 = vmul.f32 %v1443_v7, %v13747_v47  ;;  %v1808_v19 = vld [vmem:[#allocation18 + $0x50] sm:$0xff]  ;;  %v1817_v7 = vld [vmem:[#allocation18 + $0x98] sm:$0xff] }
 0x728   :  { %5225 = vmatprep.subr.bf16.mxu1 %v10976_v61  ;;  %v1812_v45 = vld [vmem:[#allocation18 + $0x70] sm:$0xff]  ;;  %v1809_v61 = vld [vmem:[#allocation18 + $0x58] sm:$0xff] }
 0x729   :  { %1448 = vrot.lane.b32.xlu0 %v1445_v57, %s12997_s30  ;;  %v10498_v62 = vcombine.high %v1808_v19, %v1812_v45  ;;  %v10500_v51 = vcombine.high %v1809_v61, %v1813_v33  ;;  %v10499_v40 = vcombine.low %v1809_v61, %v1813_v33  ;;  %v1837_v26 = vld [vmem:[#allocation18 + $0x138] sm:$0xff] }
 0x72a   :  { %5062 = vmatpush1.bf16.msra.mxu0 %v10973_v8  ;;  %v1816_v8 = vld [vmem:[#allocation18 + $0x90] sm:$0xff]  ;;  %v10523_v61 = vcombine.low %v1833_v44, %v1837_v26 }
 0x72b   :  { %5226 = vmatpush1.bf16.msra.mxu1 %v10975_v35  ;;  %5063 = vmatprep.subr.bf16.mxu0 %v10982_v37  ;;  %v1820_v35 = vld [vmem:[#allocation18 + $0xb0] sm:$0xff]  ;;  %v1821_v37 = vld [vmem:[#allocation18 + $0xb8] sm:$0xff] }
 0x72c   :  { %5227 = vmatprep.subr.bf16.mxu1 %v10984_v9  ;;  %v10497_v9 = vcombine.low %v1808_v19, %v1812_v45  ;;  %v10506_v57 = vcombine.high %v1816_v8, %v1820_v35  ;;  %v10508_v49 = vcombine.high %v1817_v7, %v1821_v37  ;;  %v10505_v22 = vcombine.low %v1816_v8, %v1820_v35  ;;  %v1841_v19 = vld [vmem:[#allocation18 + $0x158] sm:$0xff]  ;;  %v1852_v8 = vld [vmem:[#allocation18 + $0x1b0] sm:$0xff] }
 0x72d   :  { %1455 = vrot.lane.b32.xlu0 %v1446_v63, %s12997_s30  ;;  %v1836_v63 = vld [vmem:[#allocation18 + $0x130] sm:$0xff]  ;;  %v1845_v45 = vld [vmem:[#allocation18 + $0x178] sm:$0xff] }
 0x72e   :  { %5064 = vmatpush1.bf16.msra.mxu0 %v10981_v43  ;;  %v1825_v43 = vld [vmem:[#allocation18 + $0xd8] sm:$0xff] }
 0x72f   :  { %5228 = vmatpush1.bf16.msra.mxu1 %v10983_v10  ;;  %5065 = vmatprep.subr.bf16.mxu0 %v10990_v30  ;;  %v1829_v10 = vld [vmem:[#allocation18 + $0xf8] sm:$0xff]  ;;  %v10507_v30 = vcombine.low %v1817_v7, %v1821_v37  ;;  %v10531_v37 = vcombine.low %v1841_v19, %v1845_v45 }
 0x730   :  { %5229 = vmatprep.subr.bf16.mxu1 %v10992_v1  ;;  %v10514_v1 = vcombine.high %v1824_v5, %v1828_v41  ;;  %v10516_v3 = vcombine.high %v1825_v43, %v1829_v10  ;;  %v1849_v35 = vld [vmem:[#allocation18 + $0x198] sm:$0xff] }
 0x732   :  { %5066 = vmatpush1.bf16.msra.mxu0 %v10989_v32  ;;  %v10515_v32 = vcombine.low %v1825_v43, %v1829_v10 }
 0x733   :  { %5230 = vmatpush1.bf16.msra.mxu1 %v10991_v38  ;;  %5240 = vmatprep.subr.bf16.mxu0 %v10490_v54  ;;  %v10522_v38 = vcombine.high %v1832_v53, %v1836_v63  ;;  %v10524_v54 = vcombine.high %v1833_v44, %v1837_v26 }
 0x734   :  { %5404 = vmatprep.subr.bf16.mxu1 %v10492_v58  ;;  %v1844_v58 = vld [vmem:[#allocation18 + $0x170] sm:$0xff] }
 0x735   :  { %5068 = vmatmul.mubr.bf16.vlgmr.msra.gmra.mrb[24].mxu0 %v13783_v46  ;;  %v10530_v33 = vcombine.high %v1840_v28, %v1844_v58  ;;  %v10529_v7 = vcombine.low %v1840_v28, %v1844_v58  ;;  %v1873_v28 = vld [vmem:[#allocation18 + $0x258] sm:$0xff] }
 0x736   :  { %5232 = vmatmul.mubr.bf16.vlgmr.msra.gmra.mrb[24].mxu1 %v13783_v46  ;;  %5241 = vmatpush1.bf16.msra.mxu0 %v10489_v21  ;;  %v10521_v21 = vcombine.low %v1832_v53, %v1836_v63  ;;  %v1865_v53 = vld [vmem:[#allocation18 + $0x218] sm:$0xff] }
 0x737   :  { %5272 = vmatprep.mubr.bf16.mxu0 %v13626_v34  ;;  %5405 = vmatpush1.bf16.msra.mxu1 %v10491_v42  ;;  %v10532_v42 = vcombine.high %v1841_v19, %v1845_v45  ;;  %v1869_v63 = vld [vmem:[#allocation18 + $0x238] sm:$0xff] }
 0x738   :  { %5436 = vmatprep.mubr.bf16.mxu1 %v13626_v34  ;;  %5242 = vmatprep.subr.bf16.mxu0 %v10498_v62  ;;  %v10513_v34 = vcombine.low %v1824_v5, %v1828_v41  ;;  %v1848_v62 = vld [vmem:[#allocation18 + $0x190] sm:$0xff]  ;;  %v1857_v5 = vld [vmem:[#allocation18 + $0x1d8] sm:$0xff]  ;;  %v10555_v45 = vcombine.low %v1865_v53, %v1869_v63 }
 0x739   :  { %5406 = vmatprep.subr.bf16.mxu1 %v10500_v51  ;;  %v1853_v51 = vld [vmem:[#allocation18 + $0x1b8] sm:$0xff]  ;;  %v10537_v43 = vcombine.low %v1848_v62, %v1852_v8 }
 0x73a   :  { %5243 = vmatpush1.bf16.msra.mxu0 %v10497_v9  ;;  %v10538_v9 = vcombine.high %v1848_v62, %v1852_v8  ;;  %v1861_v41 = vld [vmem:[#allocation18 + $0x1f8] sm:$0xff]  ;;  %v10539_v10 = vcombine.low %v1849_v35, %v1853_v51 }
 0x73b   :  { %5407 = vmatpush1.bf16.msra.mxu1 %v10499_v40  ;;  %5244 = vmatprep.subr.bf16.mxu0 %v10506_v57  ;;  %v10540_v40 = vcombine.high %v1849_v35, %v1853_v51  ;;  %v1856_v57 = vld [vmem:[#allocation18 + $0x1d0] sm:$0xff]  ;;  %v10547_v26 = vcombine.low %v1857_v5, %v1861_v41  ;;  %v1877_v58 = vld [vmem:[#allocation18 + $0x278] sm:$0xff] }
 0x73c   :  { %5408 = vmatprep.subr.bf16.mxu1 %v10508_v49  ;;  %v1860_v49 = vld [vmem:[#allocation18 + $0x1f0] sm:$0xff]  ;;  %v1881_v62 = vld [vmem:[#allocation18 + $0x298] sm:$0xff]  ;;  %v10563_v51 = vcombine.low %v1873_v28, %v1877_v58 }
 0x73d   :  { %v10545_v44 = vcombine.low %v1856_v57, %v1860_v49  ;;  %v1885_v8 = vld [vmem:[#allocation18 + $0x2b8] sm:$0xff] }
 0x73e   :  { %5245 = vmatpush1.bf16.msra.mxu0 %v10505_v22  ;;  %v10546_v22 = vcombine.high %v1856_v57, %v1860_v49  ;;  %v1889_v57 = vld [vmem:[#allocation18 + $0x2d8] sm:$0xff] }
 0x73f   :  { %5409 = vmatpush1.bf16.msra.mxu1 %v10507_v30  ;;  %5246 = vmatprep.subr.bf16.mxu0 %v10514_v1  ;;  %v10548_v30 = vcombine.high %v1857_v5, %v1861_v41  ;;  %v1864_v1 = vld [vmem:[#allocation18 + $0x210] sm:$0xff]  ;;  %v1893_v49 = vld [vmem:[#allocation18 + $0x2f8] sm:$0xff]  ;;  %v10571_v41 = vcombine.low %v1881_v62, %v1885_v8 }
 0x740   :  { %5410 = vmatprep.subr.bf16.mxu1 %v10516_v3  ;;  %v1868_v3 = vld [vmem:[#allocation18 + $0x230] sm:$0xff] }
 0x741   :  { %v10553_v19 = vcombine.low %v1864_v1, %v1868_v3 }
 0x742   :  { %5247 = vmatpush1.bf16.msra.mxu0 %v10513_v34  ;;  %v10554_v34 = vcombine.high %v1864_v1, %v1868_v3  ;;  %v1897_v1 = vld [vmem:[#allocation18 + $0x318] sm:$0xff] }
 0x743   :  { %5411 = vmatpush1.bf16.msra.mxu1 %v10515_v32  ;;  %5248 = vmatprep.subr.bf16.mxu0 %v10522_v38  ;;  %v10556_v32 = vcombine.high %v1865_v53, %v1869_v63  ;;  %v1872_v38 = vld [vmem:[#allocation18 + $0x250] sm:$0xff]  ;;  %v1901_v3 = vld [vmem:[#allocation18 + $0x338] sm:$0xff]  ;;  %v10579_v63 = vcombine.low %v1889_v57, %v1893_v49 }
 0x744   :  { %5412 = vmatprep.subr.bf16.mxu1 %v10524_v54  ;;  %v1876_v54 = vld [vmem:[#allocation18 + $0x270] sm:$0xff] }
 0x745   :  { %v10561_v35 = vcombine.low %v1872_v38, %v1876_v54 }
 0x746   :  { %5249 = vmatpush1.bf16.msra.mxu0 %v10521_v21  ;;  %v10562_v21 = vcombine.high %v1872_v38, %v1876_v54  ;;  %v1905_v38 = vld [vmem:[#allocation18 + $0x358] sm:$0xff] }
 0x747   :  { %5413 = vmatpush1.bf16.msra.mxu1 %v10523_v61  ;;  %5250 = vmatprep.subr.bf16.mxu0 %v10530_v33  ;;  %v10564_v61 = vcombine.high %v1873_v28, %v1877_v58  ;;  %v1880_v33 = vld [vmem:[#allocation18 + $0x290] sm:$0xff]  ;;  %v1909_v54 = vld [vmem:[#allocation18 + $0x378] sm:$0xff]  ;;  %v10587_v58 = vcombine.low %v1897_v1, %v1901_v3 }
 0x748   :  { %5414 = vmatprep.subr.bf16.mxu1 %v10532_v42  ;;  %v1884_v42 = vld [vmem:[#allocation18 + $0x2b0] sm:$0xff] }
 0x749   :  { %v10569_v5 = vcombine.low %v1880_v33, %v1884_v42 }
 0x74a   :  { %5251 = vmatpush1.bf16.msra.mxu0 %v10529_v7  ;;  %v10570_v7 = vcombine.high %v1880_v33, %v1884_v42  ;;  %v1913_v33 = vld [vmem:[#allocation18 + $0x398] sm:$0xff] }
 0x74b   :  { %5415 = vmatpush1.bf16.msra.mxu1 %v10531_v37  ;;  %5252 = vmatprep.subr.bf16.mxu0 %v10538_v9  ;;  %v10572_v37 = vcombine.high %v1881_v62, %v1885_v8  ;;  %v1888_v9 = vld [vmem:[#allocation18 + $0x2d0] sm:$0xff]  ;;  %v1917_v42 = vld [vmem:[#allocation18 + $0x3b8] sm:$0xff]  ;;  %v10595_v8 = vcombine.low %v1905_v38, %v1909_v54 }
 0x74c   :  { %5416 = vmatprep.subr.bf16.mxu1 %v10540_v40  ;;  %v1892_v40 = vld [vmem:[#allocation18 + $0x2f0] sm:$0xff] }
 0x74d   :  { %v10577_v53 = vcombine.low %v1888_v9, %v1892_v40 }
 0x74e   :  { %5253 = vmatpush1.bf16.msra.mxu0 %v10537_v43  ;;  %v10578_v43 = vcombine.high %v1888_v9, %v1892_v40  ;;  %v1921_v9 = vld [vmem:[#allocation18 + $0x3d8] sm:$0xff] }
 0x74f   :  { %5417 = vmatpush1.bf16.msra.mxu1 %v10539_v10  ;;  %5254 = vmatprep.subr.bf16.mxu0 %v10546_v22  ;;  %v10580_v10 = vcombine.high %v1889_v57, %v1893_v49  ;;  %v1896_v22 = vld [vmem:[#allocation18 + $0x310] sm:$0xff]  ;;  %v1925_v40 = vld [vmem:[#allocation18 + $0x3f8] sm:$0xff]  ;;  %v10603_v49 = vcombine.low %v1913_v33, %v1917_v42 }
 0x750   :  { %5418 = vmatprep.subr.bf16.mxu1 %v10548_v30  ;;  %v1900_v30 = vld [vmem:[#allocation18 + $0x330] sm:$0xff] }
 0x751   :  { %v10585_v28 = vcombine.low %v1896_v22, %v1900_v30 }
 0x752   :  { %5255 = vmatpush1.bf16.msra.mxu0 %v10545_v44  ;;  %v10586_v44 = vcombine.high %v1896_v22, %v1900_v30  ;;  %v1929_v22 = vld [vmem:[#allocation18 + $0x418] sm:$0xff] }
 0x753   :  { %5419 = vmatpush1.bf16.msra.mxu1 %v10547_v26  ;;  %5256 = vmatprep.subr.bf16.mxu0 %v10554_v34  ;;  %v10588_v26 = vcombine.high %v1897_v1, %v1901_v3  ;;  %v1904_v34 = vld [vmem:[#allocation18 + $0x350] sm:$0xff]  ;;  %v1933_v30 = vld [vmem:[#allocation18 + $0x438] sm:$0xff]  ;;  %v10611_v3 = vcombine.low %v1921_v9, %v1925_v40 }
 0x754   :  { %5420 = vmatprep.subr.bf16.mxu1 %v10556_v32  ;;  %v1908_v32 = vld [vmem:[#allocation18 + $0x370] sm:$0xff] }
 0x755   :  { %v10593_v62 = vcombine.low %v1904_v34, %v1908_v32 }
 0x756   :  { %5257 = vmatpush1.bf16.msra.mxu0 %v10553_v19  ;;  %v10594_v19 = vcombine.high %v1904_v34, %v1908_v32  ;;  %v1937_v32 = vld [vmem:[#allocation18 + $0x458] sm:$0xff] }
 0x757   :  { %5421 = vmatpush1.bf16.msra.mxu1 %v10555_v45  ;;  %5258 = vmatprep.subr.bf16.mxu0 %v10562_v21  ;;  %v10596_v45 = vcombine.high %v1905_v38, %v1909_v54  ;;  %v1912_v21 = vld [vmem:[#allocation18 + $0x390] sm:$0xff]  ;;  %v1941_v38 = vld [vmem:[#allocation18 + $0x478] sm:$0xff]  ;;  %v10619_v54 = vcombine.low %v1929_v22, %v1933_v30 }
 0x758   :  { %5422 = vmatprep.subr.bf16.mxu1 %v10564_v61  ;;  %v1916_v61 = vld [vmem:[#allocation18 + $0x3b0] sm:$0xff] }
 0x759   :  { %v10601_v57 = vcombine.low %v1912_v21, %v1916_v61 }
 0x75a   :  { %5259 = vmatpush1.bf16.msra.mxu0 %v10561_v35  ;;  %v10602_v35 = vcombine.high %v1912_v21, %v1916_v61  ;;  %v1945_v21 = vld [vmem:[#allocation18 + $0x498] sm:$0xff] }
 0x75b   :  { %5423 = vmatpush1.bf16.msra.mxu1 %v10563_v51  ;;  %5260 = vmatprep.subr.bf16.mxu0 %v10570_v7  ;;  %v10604_v51 = vcombine.high %v1913_v33, %v1917_v42  ;;  %v1920_v7 = vld [vmem:[#allocation18 + $0x3d0] sm:$0xff]  ;;  %v1949_v61 = vld [vmem:[#allocation18 + $0x4b8] sm:$0xff]  ;;  %v10627_v42 = vcombine.low %v1937_v32, %v1941_v38 }
 0x75c   :  { %5424 = vmatprep.subr.bf16.mxu1 %v10572_v37  ;;  %v1924_v37 = vld [vmem:[#allocation18 + $0x3f0] sm:$0xff] }
 0x75d   :  { %v10609_v1 = vcombine.low %v1920_v7, %v1924_v37 }
 0x75e   :  { %5261 = vmatpush1.bf16.msra.mxu0 %v10569_v5  ;;  %v10610_v5 = vcombine.high %v1920_v7, %v1924_v37  ;;  %v1953_v7 = vld [vmem:[#allocation18 + $0x4d8] sm:$0xff] }
 0x75f   :  { %5425 = vmatpush1.bf16.msra.mxu1 %v10571_v41  ;;  %5262 = vmatprep.subr.bf16.mxu0 %v10578_v43  ;;  %v10612_v41 = vcombine.high %v1921_v9, %v1925_v40  ;;  %v1928_v43 = vld [vmem:[#allocation18 + $0x410] sm:$0xff]  ;;  %v1957_v37 = vld [vmem:[#allocation18 + $0x4f8] sm:$0xff] }
 0x760   :  { %5426 = vmatprep.subr.bf16.mxu1 %v10580_v10  ;;  %v1932_v10 = vld [vmem:[#allocation18 + $0x430] sm:$0xff] }
 0x761   :  { %v10617_v34 = vcombine.low %v1928_v43, %v1932_v10 }
 0x762   :  { %5263 = vmatpush1.bf16.msra.mxu0 %v10577_v53  ;;  %v10618_v53 = vcombine.high %v1928_v43, %v1932_v10  ;;  %v1965_v43 = vld [vmem:[#allocation18 + $0x538] sm:$0xff]  ;;  %v10643_v10 = vcombine.low %v1953_v7, %v1957_v37 }
 0x763   :  { %5427 = vmatpush1.bf16.msra.mxu1 %v10579_v63  ;;  %5264 = vmatprep.subr.bf16.mxu0 %v10586_v44  ;;  %v10620_v63 = vcombine.high %v1929_v22, %v1933_v30  ;;  %v1936_v44 = vld [vmem:[#allocation18 + $0x450] sm:$0xff] }
 0x764   :  { %5428 = vmatprep.subr.bf16.mxu1 %v10588_v26  ;;  %v1940_v26 = vld [vmem:[#allocation18 + $0x470] sm:$0xff] }
 0x765   :  { %v10625_v33 = vcombine.low %v1936_v44, %v1940_v26 }
 0x766   :  { %5265 = vmatpush1.bf16.msra.mxu0 %v10585_v28  ;;  %v10626_v28 = vcombine.high %v1936_v44, %v1940_v26 }
 0x767   :  { %5429 = vmatpush1.bf16.msra.mxu1 %v10587_v58  ;;  %5266 = vmatprep.subr.bf16.mxu0 %v10594_v19  ;;  %v1944_v58 = vld [vmem:[#allocation18 + $0x490] sm:$0xff] }
 0x768   :  { %5430 = vmatprep.subr.bf16.mxu1 %v10596_v45  ;;  %v1948_v19 = vld [vmem:[#allocation18 + $0x4b0] sm:$0xff]  ;;  %v10628_v45 = vcombine.high %v1937_v32, %v1941_v38 }
 0x769   :  { %v10633_v9 = vcombine.low %v1944_v58, %v1948_v19  ;;  %v1976_v38 = vld [vmem:[#allocation18 + $0x590] sm:$0xff] }
 0x76a   :  { %5267 = vmatpush1.bf16.msra.mxu0 %v10593_v62  ;;  %v10634_v62 = vcombine.high %v1944_v58, %v1948_v19  ;;  %v1981_v58 = vld [vmem:[#allocation18 + $0x5b8] sm:$0xff] }
 0x76b   :  { %5431 = vmatpush1.bf16.msra.mxu1 %v10595_v8  ;;  %5268 = vmatprep.subr.bf16.mxu0 %v10602_v35  ;;  %v10636_v8 = vcombine.high %v1945_v21, %v1949_v61  ;;  %v1952_v35 = vld [vmem:[#allocation18 + $0x4d0] sm:$0xff] }
 0x76c   :  { %5432 = vmatprep.subr.bf16.mxu1 %v10604_v51  ;;  %v1956_v51 = vld [vmem:[#allocation18 + $0x4f0] sm:$0xff] }
 0x76d   :  { %v10642_v40 = vcombine.high %v1952_v35, %v1956_v51 }
 0x76e   :  { %5269 = vmatpush1.bf16.msra.mxu0 %v10601_v57  ;;  %v10644_v57 = vcombine.high %v1953_v7, %v1957_v37 }
 0x76f   :  { %5433 = vmatpush1.bf16.msra.mxu1 %v10603_v49  ;;  %5270 = vmatprep.subr.bf16.mxu0 %v10610_v5  ;;  %v1960_v49 = vld [vmem:[#allocation18 + $0x510] sm:$0xff] }
 0x770   :  { %5434 = vmatprep.subr.bf16.mxu1 %v10612_v41  ;;  %v1964_v5 = vld [vmem:[#allocation18 + $0x530] sm:$0xff]  ;;  %v1961_v41 = vld [vmem:[#allocation18 + $0x518] sm:$0xff] }
 0x771   :  { %v10650_v22 = vcombine.high %v1960_v49, %v1964_v5  ;;  %v10652_v30 = vcombine.high %v1961_v41, %v1965_v43  ;;  %v10649_v44 = vcombine.low %v1960_v49, %v1964_v5  ;;  %v10651_v26 = vcombine.low %v1961_v41, %v1965_v43 }
 0x772   :  { %5271 = vmatpush1.bf16.msra.mxu0 %v10609_v1  ;;  %v1968_v1 = vld [vmem:[#allocation18 + $0x550] sm:$0xff] }
 0x773   :  { %5435 = vmatpush1.bf16.msra.mxu1 %v10611_v3  ;;  %5281 = vmatprep.subr.bf16.mxu0 %v10618_v53  ;;  %v1972_v3 = vld [vmem:[#allocation18 + $0x570] sm:$0xff]  ;;  %v1969_v53 = vld [vmem:[#allocation18 + $0x558] sm:$0xff] }
 0x774   :  { %5445 = vmatprep.subr.bf16.mxu1 %v10620_v63  ;;  %v1973_v63 = vld [vmem:[#allocation18 + $0x578] sm:$0xff]  ;;  %v10657_v19 = vcombine.low %v1968_v1, %v1972_v3 }
 0x775   :  { %5273 = vmatmul.mubr.bf16.vlgmr.msra.gmra.mrb[28].mxu0 %v13631_v56  ;;  %v10660_v32 = vcombine.high %v1969_v53, %v1973_v63 }
 0x776   :  { %5437 = vmatmul.mubr.bf16.vlgmr.msra.gmra.mrb[28].mxu1 %v13631_v56  ;;  %5282 = vmatpush1.bf16.msra.mxu0 %v10617_v34  ;;  %v10635_v56 = vcombine.low %v1945_v21, %v1949_v61  ;;  %v10658_v34 = vcombine.high %v1968_v1, %v1972_v3  ;;  %v13793_v3 = vpop.permute.xlu0 %1183 }
 0x777   :  { %5313 = vmatprep.mubr.bf16.mxu0 %v13687_v39  ;;  %5446 = vmatpush1.bf16.msra.mxu1 %v10619_v54  ;;  %v1980_v54 = vld [vmem:[#allocation18 + $0x5b0] sm:$0xff] }
 0x778   :  { %5477 = vmatprep.mubr.bf16.mxu1 %v13687_v39  ;;  %5283 = vmatprep.subr.bf16.mxu0 %v10626_v28  ;;  %v10641_v39 = vcombine.low %v1952_v35, %v1956_v51  ;;  %v1977_v28 = vld [vmem:[#allocation18 + $0x598] sm:$0xff]  ;;  %v10666_v21 = vcombine.high %v1976_v38, %v1980_v54  ;;  %v10665_v35 = vcombine.low %v1976_v38, %v1980_v54 }
 0x779   :  { %5447 = vmatprep.subr.bf16.mxu1 %v10628_v45  ;;  %v10659_v45 = vcombine.low %v1969_v53, %v1973_v63  ;;  %v10668_v61 = vcombine.high %v1977_v28, %v1981_v58  ;;  %v10667_v51 = vcombine.low %v1977_v28, %v1981_v58  ;;  %v2013_v38 = vld [vmem:[#allocation18 + $0x6b8] sm:$0xff] }
 0x77a   :  { %5284 = vmatpush1.bf16.msra.mxu0 %v10625_v33  ;;  %v1984_v33 = vld [vmem:[#allocation18 + $0x5d0] sm:$0xff] }
 0x77b   :  { %5448 = vmatpush1.bf16.msra.mxu1 %v10627_v42  ;;  %5285 = vmatprep.subr.bf16.mxu0 %v10634_v62  ;;  %v1988_v42 = vld [vmem:[#allocation18 + $0x5f0] sm:$0xff]  ;;  %v1985_v62 = vld [vmem:[#allocation18 + $0x5d8] sm:$0xff] }
 0x77c   :  { %5449 = vmatprep.subr.bf16.mxu1 %v10636_v8  ;;  %v1989_v8 = vld [vmem:[#allocation18 + $0x5f8] sm:$0xff]  ;;  %v10674_v7 = vcombine.high %v1984_v33, %v1988_v42  ;;  %v10673_v49 = vcombine.low %v1984_v33, %v1988_v42  ;;  %v1438_v33 = vpop.permute.xlu1 %1437 }
 0x77d   :  { %v10676_v37 = vcombine.high %v1985_v62, %v1989_v8  ;;  %v10675_v5 = vcombine.low %v1985_v62, %v1989_v8  ;;  %v2017_v42 = vld [vmem:[#allocation18 + $0x6d8] sm:$0xff] }
 0x77e   :  { %5286 = vmatpush1.bf16.msra.mxu0 %v10633_v9  ;;  %v1992_v9 = vld [vmem:[#allocation18 + $0x610] sm:$0xff]  ;;  %v2021_v62 = vld [vmem:[#allocation18 + $0x6f8] sm:$0xff] }
 0x77f   :  { %5450 = vmatpush1.bf16.msra.mxu1 %v10635_v56  ;;  %5287 = vmatprep.subr.bf16.mxu0 %v10642_v40  ;;  %v1996_v56 = vld [vmem:[#allocation18 + $0x630] sm:$0xff]  ;;  %v1993_v40 = vld [vmem:[#allocation18 + $0x618] sm:$0xff] }
 0x780   :  { %5451 = vmatprep.subr.bf16.mxu1 %v10644_v57  ;;  %v1997_v57 = vld [vmem:[#allocation18 + $0x638] sm:$0xff]  ;;  %v10682_v41 = vcombine.high %v1992_v9, %v1996_v56  ;;  %v10681_v1 = vcombine.low %v1992_v9, %v1996_v56  ;;  %v2024_v9 = vld [vmem:[#allocation18 + $0x710] sm:$0xff] }
 0x781   :  { %v10684_v43 = vcombine.high %v1993_v40, %v1997_v57  ;;  %v10683_v53 = vcombine.low %v1993_v40, %v1997_v57  ;;  %v2028_v40 = vld [vmem:[#allocation18 + $0x730] sm:$0xff]  ;;  %v2025_v57 = vld [vmem:[#allocation18 + $0x718] sm:$0xff] }
 0x782   :  { %5288 = vmatpush1.bf16.msra.mxu0 %v10641_v39  ;;  %v2000_v39 = vld [vmem:[#allocation18 + $0x650] sm:$0xff] }
 0x783   :  { %5452 = vmatpush1.bf16.msra.mxu1 %v10643_v10  ;;  %5289 = vmatprep.subr.bf16.mxu0 %v10650_v22  ;;  %v2004_v10 = vld [vmem:[#allocation18 + $0x670] sm:$0xff]  ;;  %v2001_v22 = vld [vmem:[#allocation18 + $0x658] sm:$0xff] }
 0x784   :  { %5453 = vmatprep.subr.bf16.mxu1 %v10652_v30  ;;  %v2005_v30 = vld [vmem:[#allocation18 + $0x678] sm:$0xff]  ;;  %v10690_v63 = vcombine.high %v2000_v39, %v2004_v10  ;;  %v10689_v54 = vcombine.low %v2000_v39, %v2004_v10  ;;  %v1452_v39 = vpop.permute.xlu1 %1451  ;;  %v10714_v10 = vcombine.high %v2024_v9, %v2028_v40 }
 0x785   :  { %v10691_v28 = vcombine.low %v2001_v22, %v2005_v30 }
 0x786   :  { %5290 = vmatpush1.bf16.msra.mxu0 %v10649_v44  ;;  %v10692_v44 = vcombine.high %v2001_v22, %v2005_v30  ;;  %v2036_v30 = vld [vmem:[#allocation18 + $0x770] sm:$0xff] }
 0x787   :  { %5454 = vmatpush1.bf16.msra.mxu1 %v10651_v26  ;;  %5291 = vmatprep.subr.bf16.mxu0 %v10658_v34  ;;  %v2008_v26 = vld [vmem:[#allocation18 + $0x690] sm:$0xff] }
 0x788   :  { %5455 = vmatprep.subr.bf16.mxu1 %v10660_v32  ;;  %v2012_v34 = vld [vmem:[#allocation18 + $0x6b0] sm:$0xff]  ;;  %v2009_v32 = vld [vmem:[#allocation18 + $0x698] sm:$0xff] }
 0x789   :  { %v10698_v58 = vcombine.high %v2008_v26, %v2012_v34  ;;  %v10697_v8 = vcombine.low %v2008_v26, %v2012_v34  ;;  %v10713_v34 = vcombine.low %v2024_v9, %v2028_v40 }
 0x78a   :  { %5292 = vmatpush1.bf16.msra.mxu0 %v10657_v19  ;;  %v10700_v19 = vcombine.high %v2009_v32, %v2013_v38 }
 0x78b   :  { %5456 = vmatpush1.bf16.msra.mxu1 %v10659_v45  ;;  %5293 = vmatprep.subr.bf16.mxu0 %v10666_v21  ;;  %v2016_v45 = vld [vmem:[#allocation18 + $0x6d0] sm:$0xff] }
 0x78c   :  { %5457 = vmatprep.subr.bf16.mxu1 %v10668_v61  ;;  %v2020_v21 = vld [vmem:[#allocation18 + $0x6f0] sm:$0xff]  ;;  %v13795_v61 = vpop.permute.xlu0 %8986 }
 0x78d   :  { %15147 = vst [vmem:[#allocation88_spill] sm:$0xff] %v13795_v61 }
 0x78e   :  { %5294 = vmatpush1.bf16.msra.mxu0 %v10665_v35  ;;  %v10699_v35 = vcombine.low %v2009_v32, %v2013_v38 }
 0x78f   :  { %5458 = vmatpush1.bf16.msra.mxu1 %v10667_v51  ;;  %5295 = vmatprep.subr.bf16.mxu0 %v10674_v7  ;;  %v10706_v51 = vcombine.high %v2016_v45, %v2020_v21  ;;  %v1440_v7 = vmul.f32 %v1438_v33, %v13747_v47  ;;  %v2032_v47 = vld [vmem:[#allocation18 + $0x750] sm:$0xff] }
 0x790   :  { %5459 = vmatprep.subr.bf16.mxu1 %v10676_v37  ;;  %v10708_v37 = vcombine.high %v2017_v42, %v2021_v62  ;;  %v10722_v38 = vcombine.high %v2032_v47, %v2036_v30 }
 0x792   :  { %5296 = vmatpush1.bf16.msra.mxu0 %v10673_v49  ;;  %v2029_v49 = vld [vmem:[#allocation18 + $0x738] sm:$0xff] }
 0x793   :  { %5460 = vmatpush1.bf16.msra.mxu1 %v10675_v5  ;;  %5297 = vmatprep.subr.bf16.mxu0 %v10682_v41  ;;  %v10705_v41 = vcombine.low %v2016_v45, %v2020_v21  ;;  %v10716_v22 = vcombine.high %v2025_v57, %v2029_v49  ;;  %v10715_v32 = vcombine.low %v2025_v57, %v2029_v49  ;;  %v2045_v45 = vld [vmem:[#allocation18 + $0x7b8] sm:$0xff]  ;;  %v2056_v57 = vld [vmem:[#allocation18 + $0x810] sm:$0xff] }
 0x794   :  { %5461 = vmatprep.subr.bf16.mxu1 %v10684_v43  ;;  %v10707_v43 = vcombine.low %v2017_v42, %v2021_v62  ;;  %v10721_v21 = vcombine.low %v2032_v47, %v2036_v30  ;;  %v2060_v49 = vld [vmem:[#allocation18 + $0x830] sm:$0xff] }
 0x795   :  { %v2064_v47 = vld [vmem:[#allocation18 + $0x850] sm:$0xff] }
 0x796   :  { %5298 = vmatpush1.bf16.msra.mxu0 %v10681_v1  ;;  %v2068_v30 = vld [vmem:[#allocation18 + $0x870] sm:$0xff] }
 0x797   :  { %5462 = vmatpush1.bf16.msra.mxu1 %v10683_v53  ;;  %5299 = vmatprep.subr.bf16.mxu0 %v10690_v63  ;;  %v2033_v63 = vld [vmem:[#allocation18 + $0x758] sm:$0xff] }
 0x798   :  { %5463 = vmatprep.subr.bf16.mxu1 %v10692_v44  ;;  %v2037_v44 = vld [vmem:[#allocation18 + $0x778] sm:$0xff] }
 0x799   :  { %v10723_v33 = vcombine.low %v2033_v63, %v2037_v44 }
 0x79a   :  { %5300 = vmatpush1.bf16.msra.mxu0 %v10689_v54  ;;  %v10724_v54 = vcombine.high %v2033_v63, %v2037_v44  ;;  %v2069_v63 = vld [vmem:[#allocation18 + $0x878] sm:$0xff] }
 0x79b   :  { %5464 = vmatpush1.bf16.msra.mxu1 %v10691_v28  ;;  %5301 = vmatprep.subr.bf16.mxu0 %v10698_v58  ;;  %v1449_v56 = vpop.permute.xlu0 %1448  ;;  %v2040_v28 = vld [vmem:[#allocation18 + $0x790] sm:$0xff] }
 0x79c   :  { %5465 = vmatprep.subr.bf16.mxu1 %v10700_v19  ;;  %v1459_v5 = vsel %vm1458_vm13, %v1440_v7, %v1449_v56  ;;  %v2044_v58 = vld [vmem:[#allocation18 + $0x7b0] sm:$0xff]  ;;  %v2041_v19 = vld [vmem:[#allocation18 + $0x798] sm:$0xff] }
 0x79d   :  { %v1461_v53 = vsel %vm1460_vm14, %v1459_v5, %v1452_v39  ;;  %v10730_v42 = vcombine.high %v2040_v28, %v2044_v58  ;;  %v10732_v62 = vcombine.high %v2041_v19, %v2045_v45  ;;  %v2053_v7 = vld [vmem:[#allocation18 + $0x7f8] sm:$0xff]  ;;  %v10731_v9 = vcombine.low %v2041_v19, %v2045_v45 }
 0x79e   :  { %5302 = vmatpush1.bf16.msra.mxu0 %v10697_v8  ;;  %v2048_v8 = vld [vmem:[#allocation18 + $0x7d0] sm:$0xff]  ;;  %v2057_v5 = vld [vmem:[#allocation18 + $0x818] sm:$0xff] }
 0x79f   :  { %5466 = vmatpush1.bf16.msra.mxu1 %v10699_v35  ;;  %5303 = vmatprep.subr.bf16.mxu0 %v10706_v51  ;;  %v1456_v1 = vpop.permute.xlu0 %1455  ;;  %v2052_v35 = vld [vmem:[#allocation18 + $0x7f0] sm:$0xff]  ;;  %v2049_v51 = vld [vmem:[#allocation18 + $0x7d8] sm:$0xff] }
 0x7a0   :  { %5467 = vmatprep.subr.bf16.mxu1 %v10708_v37  ;;  %v1463_v26 = vsel %vm1462_vm15, %v1461_v53, %v1456_v1  ;;  %v10729_v37 = vcombine.low %v2040_v28, %v2044_v58  ;;  %v10738_v56 = vcombine.high %v2048_v8, %v2052_v35  ;;  %v10740_v40 = vcombine.high %v2049_v51, %v2053_v7  ;;  %v2065_v53 = vld [vmem:[#allocation18 + $0x858] sm:$0xff] }
 0x7a1   :  { %7123 = vrot.lane.b32.xlu1 %v1463_v26, %s12971_s26  ;;  %v10739_v39 = vcombine.low %v2049_v51, %v2053_v7  ;;  %v10745_v1 = vcombine.low %v2056_v57, %v2060_v49  ;;  %v10754_v26 = vcombine.high %v2064_v47, %v2068_v30  ;;  %v2077_v28 = vld [vmem:[#allocation18 + $0x8b8] sm:$0xff]  ;;  %v10753_v58 = vcombine.low %v2064_v47, %v2068_v30  ;;  %s15148_s26 = sld [smem:[#allocation77_spill]] }
 0x7a2   :  { %5304 = vmatpush1.bf16.msra.mxu0 %v10705_v41  ;;  %v2061_v41 = vld [vmem:[#allocation18 + $0x838] sm:$0xff]  ;;  %v10755_v19 = vcombine.low %v2065_v53, %v2069_v63 }
 0x7a3   :  { %5468 = vmatpush1.bf16.msra.mxu1 %v10707_v43  ;;  %5305 = vmatprep.subr.bf16.mxu0 %v10714_v10  ;;  %v10737_v43 = vcombine.low %v2048_v8, %v2052_v35  ;;  %v10746_v10 = vcombine.high %v2056_v57, %v2060_v49  ;;  %v10747_v44 = vcombine.low %v2057_v5, %v2061_v41  ;;  %v2085_v8 = vld [vmem:[#allocation18 + $0x8f8] sm:$0xff] }
 0x7a4   :  { %5469 = vmatprep.subr.bf16.mxu1 %v10716_v22  ;;  %v10748_v22 = vcombine.high %v2057_v5, %v2061_v41  ;;  %v2096_v41 = vld [vmem:[#allocation18 + $0x950] sm:$0xff] }
 0x7a6   :  { %5306 = vmatpush1.bf16.msra.mxu0 %v10713_v34  ;;  %v2072_v34 = vld [vmem:[#allocation18 + $0x890] sm:$0xff] }
 0x7a7   :  { %5470 = vmatpush1.bf16.msra.mxu1 %v10715_v32  ;;  %5307 = vmatprep.subr.bf16.mxu0 %v10722_v38  ;;  %v2076_v32 = vld [vmem:[#allocation18 + $0x8b0] sm:$0xff]  ;;  %v10756_v38 = vcombine.high %v2065_v53, %v2069_v63 }
 0x7a8   :  { %5471 = vmatprep.subr.bf16.mxu1 %v10724_v54  ;;  %v2073_v54 = vld [vmem:[#allocation18 + $0x898] sm:$0xff]  ;;  %v10762_v45 = vcombine.high %v2072_v34, %v2076_v32  ;;  %v10761_v35 = vcombine.low %v2072_v34, %v2076_v32  ;;  %v2104_v53 = vld [vmem:[#allocation18 + $0x990] sm:$0xff] }
 0x7a9   :  { %v2108_v63 = vld [vmem:[#allocation18 + $0x9b0] sm:$0xff] }
 0x7aa   :  { %5308 = vmatpush1.bf16.msra.mxu0 %v10721_v21  ;;  %v10764_v21 = vcombine.high %v2073_v54, %v2077_v28 }
 0x7ab   :  { %5472 = vmatpush1.bf16.msra.mxu1 %v10723_v33  ;;  %5309 = vmatprep.subr.bf16.mxu0 %v10730_v42  ;;  %v2080_v33 = vld [vmem:[#allocation18 + $0x8d0] sm:$0xff] }
 0x7ac   :  { %5473 = vmatprep.subr.bf16.mxu1 %v10732_v62  ;;  %v2084_v42 = vld [vmem:[#allocation18 + $0x8f0] sm:$0xff]  ;;  %v2081_v62 = vld [vmem:[#allocation18 + $0x8d8] sm:$0xff] }
 0x7ad   :  { %v10770_v51 = vcombine.high %v2080_v33, %v2084_v42  ;;  %v10772_v7 = vcombine.high %v2081_v62, %v2085_v8  ;;  %v10771_v57 = vcombine.low %v2081_v62, %v2085_v8  ;;  %v2120_v8 = vld [vmem:[#allocation18 + $0xa10] sm:$0xff] }
 0x7ae   :  { %5310 = vmatpush1.bf16.msra.mxu0 %v10729_v37  ;;  %v2088_v37 = vld [vmem:[#allocation18 + $0x910] sm:$0xff] }
 0x7af   :  { %5474 = vmatpush1.bf16.msra.mxu1 %v10731_v9  ;;  %5311 = vmatprep.subr.bf16.mxu0 %v10738_v56  ;;  %v2092_v9 = vld [vmem:[#allocation18 + $0x930] sm:$0xff]  ;;  %v2089_v56 = vld [vmem:[#allocation18 + $0x918] sm:$0xff] }
 0x7b0   :  { %5475 = vmatprep.subr.bf16.mxu1 %v10740_v40  ;;  %v2093_v40 = vld [vmem:[#allocation18 + $0x938] sm:$0xff]  ;;  %v10778_v49 = vcombine.high %v2088_v37, %v2092_v9 }
 0x7b1   :  { %v10780_v5 = vcombine.high %v2089_v56, %v2093_v40  ;;  %v10779_v47 = vcombine.low %v2089_v56, %v2093_v40  ;;  %v2128_v40 = vld [vmem:[#allocation18 + $0xa50] sm:$0xff] }
 0x7b2   :  { %5312 = vmatpush1.bf16.msra.mxu0 %v10737_v43  ;;  %v2100_v43 = vld [vmem:[#allocation18 + $0x970] sm:$0xff] }
 0x7b3   :  { %5476 = vmatpush1.bf16.msra.mxu1 %v10739_v39  ;;  %5322 = vmatprep.subr.bf16.mxu0 %v10746_v10  ;;  %v2097_v39 = vld [vmem:[#allocation18 + $0x958] sm:$0xff]  ;;  %v10786_v30 = vcombine.high %v2096_v41, %v2100_v43  ;;  %v10785_v34 = vcombine.low %v2096_v41, %v2100_v43 }
 0x7b4   :  { %5486 = vmatprep.subr.bf16.mxu1 %v10748_v22  ;;  %v2101_v10 = vld [vmem:[#allocation18 + $0x978] sm:$0xff]  ;;  %v10777_v22 = vcombine.low %v2088_v37, %v2092_v9 }
 0x7b5   :  { %5314 = vmatmul.mubr.bf16.vlgmr.msra.gmra.mrb[28].mxu0 %v13740_v13  ;;  %v10787_v32 = vcombine.low %v2097_v39, %v2101_v10 }
 0x7b6   :  { %5478 = vmatmul.mubr.bf16.vlgmr.msra.gmra.mrb[28].mxu1 %v13740_v13  ;;  %5323 = vmatpush1.bf16.msra.mxu0 %v10745_v1  ;;  %v10763_v13 = vcombine.low %v2073_v54, %v2077_v28  ;;  %v10788_v1 = vcombine.high %v2097_v39, %v2101_v10  ;;  %v2112_v28 = vld [vmem:[#allocation18 + $0x9d0] sm:$0xff] }
 0x7b7   :  { %5354 = vmatprep.mubr.bf16.mxu0 %v13743_v59  ;;  %5487 = vmatpush1.bf16.msra.mxu1 %v10747_v44  ;;  %v2105_v44 = vld [vmem:[#allocation18 + $0x998] sm:$0xff]  ;;  %v2136_v10 = vld [vmem:[#allocation18 + $0xa90] sm:$0xff] }
 0x7b8   :  { %5518 = vmatprep.mubr.bf16.mxu1 %v13743_v59  ;;  %5324 = vmatprep.subr.bf16.mxu0 %v10754_v26  ;;  %v10769_v59 = vcombine.low %v2080_v33, %v2084_v42  ;;  %v2109_v26 = vld [vmem:[#allocation18 + $0x9b8] sm:$0xff] }
 0x7b9   :  { %5488 = vmatprep.subr.bf16.mxu1 %v10756_v38  ;;  %v10794_v38 = vcombine.high %v2104_v53, %v2108_v63  ;;  %v10796_v54 = vcombine.high %v2105_v44, %v2109_v26  ;;  %v10795_v33 = vcombine.low %v2105_v44, %v2109_v26  ;;  %v2144_v26 = vld [vmem:[#allocation18 + $0xad0] sm:$0xff] }
 0x7ba   :  { %5325 = vmatpush1.bf16.msra.mxu0 %v10753_v58  ;;  %v2116_v58 = vld [vmem:[#allocation18 + $0x9f0] sm:$0xff] }
 0x7bb   :  { %5489 = vmatpush1.bf16.msra.mxu1 %v10755_v19  ;;  %5326 = vmatprep.subr.bf16.mxu0 %v10762_v45  ;;  %v2113_v19 = vld [vmem:[#allocation18 + $0x9d8] sm:$0xff]  ;;  %v10802_v42 = vcombine.high %v2112_v28, %v2116_v58 }
 0x7bc   :  { %5490 = vmatprep.subr.bf16.mxu1 %v10764_v21  ;;  %v2117_v45 = vld [vmem:[#allocation18 + $0x9f8] sm:$0xff]  ;;  %v10793_v21 = vcombine.low %v2104_v53, %v2108_v63 }
 0x7bd   :  { %v10804_v62 = vcombine.high %v2113_v19, %v2117_v45  ;;  %v10803_v37 = vcombine.low %v2113_v19, %v2117_v45  ;;  %v2152_v45 = vld [vmem:[#allocation18 + $0xb10] sm:$0xff] }
 0x7be   :  { %5327 = vmatpush1.bf16.msra.mxu0 %v10761_v35  ;;  %v2124_v35 = vld [vmem:[#allocation18 + $0xa30] sm:$0xff] }
 0x7bf   :  { %5491 = vmatpush1.bf16.msra.mxu1 %v10763_v13  ;;  %5328 = vmatprep.subr.bf16.mxu0 %v10770_v51  ;;  %v2121_v13 = vld [vmem:[#allocation18 + $0xa18] sm:$0xff]  ;;  %v10810_v9 = vcombine.high %v2120_v8, %v2124_v35 }
 0x7c0   :  { %5492 = vmatprep.subr.bf16.mxu1 %v10772_v7  ;;  %v2125_v51 = vld [vmem:[#allocation18 + $0xa38] sm:$0xff]  ;;  %v10801_v7 = vcombine.low %v2112_v28, %v2116_v58 }
 0x7c1   :  { %v10812_v56 = vcombine.high %v2121_v13, %v2125_v51  ;;  %v10811_v41 = vcombine.low %v2121_v13, %v2125_v51  ;;  %v2160_v51 = vld [vmem:[#allocation18 + $0xb50] sm:$0xff] }
 0x7c2   :  { %5329 = vmatpush1.bf16.msra.mxu0 %v10769_v59  ;;  %v2132_v59 = vld [vmem:[#allocation18 + $0xa70] sm:$0xff] }
 0x7c3   :  { %5493 = vmatpush1.bf16.msra.mxu1 %v10771_v57  ;;  %5330 = vmatprep.subr.bf16.mxu0 %v10778_v49  ;;  %v2129_v57 = vld [vmem:[#allocation18 + $0xa58] sm:$0xff]  ;;  %v10818_v43 = vcombine.high %v2128_v40, %v2132_v59 }
 0x7c4   :  { %5494 = vmatprep.subr.bf16.mxu1 %v10780_v5  ;;  %v2133_v49 = vld [vmem:[#allocation18 + $0xa78] sm:$0xff]  ;;  %v10809_v5 = vcombine.low %v2120_v8, %v2124_v35 }
 0x7c5   :  { %v10820_v39 = vcombine.high %v2129_v57, %v2133_v49  ;;  %v10819_v53 = vcombine.low %v2129_v57, %v2133_v49  ;;  %v2168_v49 = vld [vmem:[#allocation18 + $0xb90] sm:$0xff] }
 0x7c6   :  { %5331 = vmatpush1.bf16.msra.mxu0 %v10777_v22  ;;  %v2140_v22 = vld [vmem:[#allocation18 + $0xab0] sm:$0xff] }
 0x7c7   :  { %5495 = vmatpush1.bf16.msra.mxu1 %v10779_v47  ;;  %5332 = vmatprep.subr.bf16.mxu0 %v10786_v30  ;;  %v2137_v47 = vld [vmem:[#allocation18 + $0xa98] sm:$0xff]  ;;  %v10826_v63 = vcombine.high %v2136_v10, %v2140_v22 }
 0x7c8   :  { %5496 = vmatprep.subr.bf16.mxu1 %v10788_v1  ;;  %v2141_v30 = vld [vmem:[#allocation18 + $0xab8] sm:$0xff]  ;;  %v10817_v1 = vcombine.low %v2128_v40, %v2132_v59 }
 0x7c9   :  { %v10828_v44 = vcombine.high %v2137_v47, %v2141_v30  ;;  %v10827_v28 = vcombine.low %v2137_v47, %v2141_v30  ;;  %v2176_v30 = vld [vmem:[#allocation18 + $0xbd0] sm:$0xff] }
 0x7ca   :  { %5333 = vmatpush1.bf16.msra.mxu0 %v10785_v34  ;;  %v2148_v34 = vld [vmem:[#allocation18 + $0xaf0] sm:$0xff] }
 0x7cb   :  { %5497 = vmatpush1.bf16.msra.mxu1 %v10787_v32  ;;  %5334 = vmatprep.subr.bf16.mxu0 %v10794_v38  ;;  %v2145_v32 = vld [vmem:[#allocation18 + $0xad8] sm:$0xff]  ;;  %v10834_v58 = vcombine.high %v2144_v26, %v2148_v34 }
 0x7cc   :  { %5498 = vmatprep.subr.bf16.mxu1 %v10796_v54  ;;  %v2149_v38 = vld [vmem:[#allocation18 + $0xaf8] sm:$0xff]  ;;  %v10825_v54 = vcombine.low %v2136_v10, %v2140_v22 }
 0x7cd   :  { %v10836_v19 = vcombine.high %v2145_v32, %v2149_v38  ;;  %v10835_v8 = vcombine.low %v2145_v32, %v2149_v38  ;;  %v2184_v38 = vld [vmem:[#allocation18 + $0xc10] sm:$0xff] }
 0x7ce   :  { %5335 = vmatpush1.bf16.msra.mxu0 %v10793_v21  ;;  %v2156_v21 = vld [vmem:[#allocation18 + $0xb30] sm:$0xff] }
 0x7cf   :  { %5499 = vmatpush1.bf16.msra.mxu1 %v10795_v33  ;;  %5336 = vmatprep.subr.bf16.mxu0 %v10802_v42  ;;  %v2153_v33 = vld [vmem:[#allocation18 + $0xb18] sm:$0xff]  ;;  %v10842_v35 = vcombine.high %v2152_v45, %v2156_v21 }
 0x7d0   :  { %5500 = vmatprep.subr.bf16.mxu1 %v10804_v62  ;;  %v2157_v42 = vld [vmem:[#allocation18 + $0xb38] sm:$0xff]  ;;  %v10833_v62 = vcombine.low %v2144_v26, %v2148_v34 }
 0x7d1   :  { %v10844_v13 = vcombine.high %v2153_v33, %v2157_v42  ;;  %v10843_v40 = vcombine.low %v2153_v33, %v2157_v42  ;;  %v2192_v42 = vld [vmem:[#allocation18 + $0xc50] sm:$0xff] }
 0x7d2   :  { %5337 = vmatpush1.bf16.msra.mxu0 %v10801_v7  ;;  %v2164_v7 = vld [vmem:[#allocation18 + $0xb70] sm:$0xff] }
 0x7d3   :  { %5501 = vmatpush1.bf16.msra.mxu1 %v10803_v37  ;;  %5338 = vmatprep.subr.bf16.mxu0 %v10810_v9  ;;  %v2161_v37 = vld [vmem:[#allocation18 + $0xb58] sm:$0xff]  ;;  %v10850_v59 = vcombine.high %v2160_v51, %v2164_v7 }
 0x7d4   :  { %5502 = vmatprep.subr.bf16.mxu1 %v10812_v56  ;;  %v2165_v9 = vld [vmem:[#allocation18 + $0xb78] sm:$0xff]  ;;  %v10841_v56 = vcombine.low %v2152_v45, %v2156_v21 }
 0x7d5   :  { %v10852_v57 = vcombine.high %v2161_v37, %v2165_v9  ;;  %v10851_v10 = vcombine.low %v2161_v37, %v2165_v9  ;;  %v2200_v37 = vld [vmem:[#allocation18 + $0xc90] sm:$0xff] }
 0x7d6   :  { %5339 = vmatpush1.bf16.msra.mxu0 %v10809_v5  ;;  %v2172_v5 = vld [vmem:[#allocation18 + $0xbb0] sm:$0xff] }
 0x7d7   :  { %5503 = vmatpush1.bf16.msra.mxu1 %v10811_v41  ;;  %5340 = vmatprep.subr.bf16.mxu0 %v10818_v43  ;;  %v2169_v41 = vld [vmem:[#allocation18 + $0xb98] sm:$0xff]  ;;  %v10858_v22 = vcombine.high %v2168_v49, %v2172_v5  ;;  %v2204_v9 = vld [vmem:[#allocation18 + $0xcb0] sm:$0xff] }
 0x7d8   :  { %5504 = vmatprep.subr.bf16.mxu1 %v10820_v39  ;;  %v2173_v43 = vld [vmem:[#allocation18 + $0xbb8] sm:$0xff]  ;;  %v10849_v39 = vcombine.low %v2160_v51, %v2164_v7 }
 0x7d9   :  { %v10860_v47 = vcombine.high %v2169_v41, %v2173_v43  ;;  %v10859_v26 = vcombine.low %v2169_v41, %v2173_v43  ;;  %v2208_v43 = vld [vmem:[#allocation18 + $0xcd0] sm:$0xff] }
 0x7da   :  { %5341 = vmatpush1.bf16.msra.mxu0 %v10817_v1  ;;  %v2180_v1 = vld [vmem:[#allocation18 + $0xbf0] sm:$0xff] }
 0x7db   :  { %5505 = vmatpush1.bf16.msra.mxu1 %v10819_v53  ;;  %5342 = vmatprep.subr.bf16.mxu0 %v10826_v63  ;;  %v2177_v53 = vld [vmem:[#allocation18 + $0xbd8] sm:$0xff]  ;;  %v10866_v34 = vcombine.high %v2176_v30, %v2180_v1 }
 0x7dc   :  { %5506 = vmatprep.subr.bf16.mxu1 %v10828_v44  ;;  %v2181_v63 = vld [vmem:[#allocation18 + $0xbf8] sm:$0xff]  ;;  %v10857_v44 = vcombine.low %v2168_v49, %v2172_v5  ;;  %v10890_v5 = vcombine.high %v2200_v37, %v2204_v9 }
 0x7dd   :  { %v10868_v32 = vcombine.high %v2177_v53, %v2181_v63  ;;  %v10867_v45 = vcombine.low %v2177_v53, %v2181_v63  ;;  %v2216_v53 = vld [vmem:[#allocation18 + $0xd10] sm:$0xff] }
 0x7de   :  { %5343 = vmatpush1.bf16.msra.mxu0 %v10825_v54  ;;  %v2188_v54 = vld [vmem:[#allocation18 + $0xc30] sm:$0xff] }
 0x7df   :  { %5507 = vmatpush1.bf16.msra.mxu1 %v10827_v28  ;;  %5344 = vmatprep.subr.bf16.mxu0 %v10834_v58  ;;  %v2185_v28 = vld [vmem:[#allocation18 + $0xc18] sm:$0xff]  ;;  %v10874_v21 = vcombine.high %v2184_v38, %v2188_v54  ;;  %v2220_v63 = vld [vmem:[#allocation18 + $0xd30] sm:$0xff] }
 0x7e0   :  { %5508 = vmatprep.subr.bf16.mxu1 %v10836_v19  ;;  %v2189_v58 = vld [vmem:[#allocation18 + $0xc38] sm:$0xff]  ;;  %v10865_v19 = vcombine.low %v2176_v30, %v2180_v1 }
 0x7e1   :  { %v10876_v33 = vcombine.high %v2185_v28, %v2189_v58  ;;  %v10875_v51 = vcombine.low %v2185_v28, %v2189_v58  ;;  %v2228_v28 = vld [vmem:[#allocation18 + $0xd70] sm:$0xff]  ;;  %v2225_v58 = vld [vmem:[#allocation18 + $0xd58] sm:$0xff] }
 0x7e2   :  { %5345 = vmatpush1.bf16.msra.mxu0 %v10833_v62  ;;  %v2196_v62 = vld [vmem:[#allocation18 + $0xc70] sm:$0xff] }
 0x7e3   :  { %5509 = vmatpush1.bf16.msra.mxu1 %v10835_v8  ;;  %5346 = vmatprep.subr.bf16.mxu0 %v10842_v35  ;;  %v10873_v8 = vcombine.low %v2184_v38, %v2188_v54  ;;  %v2193_v35 = vld [vmem:[#allocation18 + $0xc58] sm:$0xff]  ;;  %v10882_v7 = vcombine.high %v2192_v42, %v2196_v62  ;;  %v2224_v54 = vld [vmem:[#allocation18 + $0xd50] sm:$0xff] }
 0x7e4   :  { %5510 = vmatprep.subr.bf16.mxu1 %v10844_v13  ;;  %v2197_v13 = vld [vmem:[#allocation18 + $0xc78] sm:$0xff] }
 0x7e5   :  { %v10883_v49 = vcombine.low %v2193_v35, %v2197_v13 }
 0x7e6   :  { %5347 = vmatpush1.bf16.msra.mxu0 %v10841_v56  ;;  %v10884_v56 = vcombine.high %v2193_v35, %v2197_v13  ;;  %v2236_v35 = vld [vmem:[#allocation18 + $0xdb0] sm:$0xff] }
 0x7e7   :  { %5511 = vmatpush1.bf16.msra.mxu1 %v10843_v40  ;;  %5348 = vmatprep.subr.bf16.mxu0 %v10850_v59  ;;  %v2201_v40 = vld [vmem:[#allocation18 + $0xc98] sm:$0xff] }
 0x7e8   :  { %5512 = vmatprep.subr.bf16.mxu1 %v10852_v57  ;;  %v2205_v59 = vld [vmem:[#allocation18 + $0xcb8] sm:$0xff]  ;;  %v10881_v57 = vcombine.low %v2192_v42, %v2196_v62  ;;  %v10914_v42 = vcombine.high %v2224_v54, %v2228_v28 }
 0x7e9   :  { %v10892_v41 = vcombine.high %v2201_v40, %v2205_v59 }
 0x7ea   :  { %5349 = vmatpush1.bf16.msra.mxu0 %v10849_v39  ;;  %v2212_v39 = vld [vmem:[#allocation18 + $0xcf0] sm:$0xff] }
 0x7eb   :  { %5513 = vmatpush1.bf16.msra.mxu1 %v10851_v10  ;;  %5350 = vmatprep.subr.bf16.mxu0 %v10858_v22  ;;  %v2209_v10 = vld [vmem:[#allocation18 + $0xcd8] sm:$0xff]  ;;  %v10898_v30 = vcombine.high %v2208_v43, %v2212_v39 }
 0x7ec   :  { %5514 = vmatprep.subr.bf16.mxu1 %v10860_v47  ;;  %v2213_v22 = vld [vmem:[#allocation18 + $0xcf8] sm:$0xff]  ;;  %v10889_v47 = vcombine.low %v2200_v37, %v2204_v9 }
 0x7ed   :  { %v10900_v1 = vcombine.high %v2209_v10, %v2213_v22 }
 0x7ee   :  { %5351 = vmatpush1.bf16.msra.mxu0 %v10857_v44  ;;  %v2217_v44 = vld [vmem:[#allocation18 + $0xd18] sm:$0xff] }
 0x7ef   :  { %5515 = vmatpush1.bf16.msra.mxu1 %v10859_v26  ;;  %5352 = vmatprep.subr.bf16.mxu0 %v10866_v34  ;;  %v2221_v26 = vld [vmem:[#allocation18 + $0xd38] sm:$0xff]  ;;  %v10899_v34 = vcombine.low %v2209_v10, %v2213_v22 }
 0x7f0   :  { %5516 = vmatprep.subr.bf16.mxu1 %v10868_v32  ;;  %v10906_v32 = vcombine.high %v2216_v53, %v2220_v63  ;;  %v10908_v38 = vcombine.high %v2217_v44, %v2221_v26  ;;  %v2241_v22 = vld [vmem:[#allocation18 + $0xdd8] sm:$0xff] }
 0x7f2   :  { %5353 = vmatpush1.bf16.msra.mxu0 %v10865_v19  ;;  %v2229_v19 = vld [vmem:[#allocation18 + $0xd78] sm:$0xff] }
 0x7f3   :  { %5517 = vmatpush1.bf16.msra.mxu1 %v10867_v45  ;;  %5363 = vmatprep.subr.bf16.mxu0 %v10874_v21  ;;  %v10905_v45 = vcombine.low %v2216_v53, %v2220_v63  ;;  %v13808_v21 = vld [vmem:[#allocation19] sm:$0xff]  ;;  %v10916_v62 = vcombine.high %v2225_v58, %v2229_v19 }
 0x7f4   :  { %5527 = vmatprep.subr.bf16.mxu1 %v10876_v33  ;;  %v10907_v33 = vcombine.low %v2217_v44, %v2221_v26  ;;  %v2315_v13 = vrot.slane %v13808_v21, %v13570_v29  ;;  %v2323_v37 = vrot.slane %v13808_v21, %v1492_v16  ;;  %v2319_v9 = vrot.slane %v13808_v21, %v13573_v31 }
 0x7f5   :  { %5355 = vmatmul.mubr.bf16.vlgmr.msra.gmra.mrb[28].mxu0 %v13768_v18 }
 0x7f6   :  { %5519 = vmatmul.mubr.bf16.vlgmr.msra.gmra.mrb[28].mxu1 %v13768_v18  ;;  %5364 = vmatpush1.bf16.msra.mxu0 %v10873_v8  ;;  %v10891_v18 = vcombine.low %v2201_v40, %v2205_v59  ;;  %v2232_v8 = vld [vmem:[#allocation18 + $0xd90] sm:$0xff]  ;;  %v2327_v40 = vrot.slane %v13808_v21, %v1496_v4  ;;  %v10915_v59 = vcombine.low %v2225_v58, %v2229_v19 }
 0x7f7   :  { %5395 = vmatprep.mubr.bf16.mxu0 %v13770_v15  ;;  %5528 = vmatpush1.bf16.msra.mxu1 %v10875_v51  ;;  %v2233_v51 = vld [vmem:[#allocation18 + $0xd98] sm:$0xff]  ;;  %v10921_v63 = vcombine.low %v2232_v8, %v2236_v35  ;;  %v2252_v19 = vld [vmem:[#allocation18 + $0xe30] sm:$0xff] }
 0x7f8   :  { %5559 = vmatprep.mubr.bf16.mxu1 %v13770_v15  ;;  %5365 = vmatprep.subr.bf16.mxu0 %v10882_v7  ;;  %v10897_v15 = vcombine.low %v2208_v43, %v2212_v39  ;;  %v2237_v7 = vld [vmem:[#allocation18 + $0xdb8] sm:$0xff]  ;;  %v2244_v43 = vld [vmem:[#allocation18 + $0xdf0] sm:$0xff] }
 0x7f9   :  { %5529 = vmatprep.subr.bf16.mxu1 %v10884_v56  ;;  %v10913_v56 = vcombine.low %v2224_v54, %v2228_v28  ;;  %v2248_v28 = vld [vmem:[#allocation18 + $0xe10] sm:$0xff] }
 0x7fa   :  { %5366 = vmatpush1.bf16.msra.mxu0 %v10881_v57  ;;  %v10922_v57 = vcombine.high %v2232_v8, %v2236_v35 }
 0x7fb   :  { %5530 = vmatpush1.bf16.msra.mxu1 %v10883_v49  ;;  %5367 = vmatprep.subr.bf16.mxu0 %v10890_v5  ;;  %v10924_v5 = vcombine.high %v2233_v51, %v2237_v7 }
 0x7fc   :  { %5531 = vmatprep.subr.bf16.mxu1 %v10892_v41  ;;  %v2240_v41 = vld [vmem:[#allocation18 + $0xdd0] sm:$0xff] }
 0x7fe   :  { %5368 = vmatpush1.bf16.msra.mxu0 %v10889_v47  ;;  %v2245_v47 = vld [vmem:[#allocation18 + $0xdf8] sm:$0xff] }
 0x7ff   :  { %5532 = vmatpush1.bf16.msra.mxu1 %v10891_v18  ;;  %5369 = vmatprep.subr.bf16.mxu0 %v10898_v30  ;;  %v10932_v54 = vcombine.high %v2241_v22, %v2245_v47  ;;  %v10931_v35 = vcombine.low %v2241_v22, %v2245_v47  ;;  %v2264_v47 = vld [vmem:[#allocation18 + $0xe90] sm:$0xff] }
 0x800   :  { %5533 = vmatprep.subr.bf16.mxu1 %v10900_v1 }
 0x802   :  { %5370 = vmatpush1.bf16.msra.mxu0 %v10897_v15  ;;  %v10923_v15 = vcombine.low %v2233_v51, %v2237_v7  ;;  %v2260_v51 = vld [vmem:[#allocation18 + $0xe70] sm:$0xff]  ;;  %v10938_v7 = vcombine.high %v2248_v28, %v2252_v19 }
 0x803   :  { %5534 = vmatpush1.bf16.msra.mxu1 %v10899_v34  ;;  %5371 = vmatprep.subr.bf16.mxu0 %v10906_v32  ;;  %v10930_v34 = vcombine.high %v2240_v41, %v2244_v43 }
 0x804   :  { %5535 = vmatprep.subr.bf16.mxu1 %v10908_v38 }
 0x806   :  { %5372 = vmatpush1.bf16.msra.mxu0 %v10905_v45  ;;  %v2249_v45 = vld [vmem:[#allocation18 + $0xe18] sm:$0xff] }
 0x807   :  { %5536 = vmatpush1.bf16.msra.mxu1 %v10907_v33  ;;  %5373 = vmatprep.subr.bf16.mxu0 %v10914_v42  ;;  %v2253_v33 = vld [vmem:[#allocation18 + $0xe38] sm:$0xff] }
 0x808   :  { %v5069_v49 = vpop.f32.mrb[24].mxu0  ;;  %5537 = vmatprep.subr.bf16.mxu1 %v10916_v62  ;;  %v10929_v62 = vcombine.low %v2240_v41, %v2244_v43  ;;  %v10939_v41 = vcombine.low %v2249_v45, %v2253_v33 }
 0x809   :  { %v11746_v39 = vadd.f32 %v5069_v49, %v2315_v13  ;;  %v5233_v10 = vpop.f32.mrb[24].mxu1  ;;  %v5071_v16 = vpop.f32.mrb[25].mxu0  ;;  %v2256_v13 = vld [vmem:[#allocation18 + $0xe50] sm:$0xff]  ;;  %v2261_v49 = vld [vmem:[#allocation18 + $0xe78] sm:$0xff] }
 0x80a   :  { %v11748_v18 = vadd.f32 %v5233_v10, %v2323_v37  ;;  %v11747_v30 = vadd.f32 %v5071_v16, %v2319_v9  ;;  %v5235_v1 = vpop.f32.mrb[25].mxu1  ;;  %v5073_v53 = vpop.f32.mrb[26].mxu0  ;;  %5374 = vmatpush1.bf16.msra.mxu0 %v10913_v56  ;;  %v10940_v37 = vcombine.high %v2249_v45, %v2253_v33  ;;  %v10946_v43 = vcombine.high %v2256_v13, %v2260_v51 }
 0x80b   :  { %v11749_v4 = vadd.f32 %v5235_v1, %v2327_v40  ;;  %v5237_v44 = vpop.f32.mrb[26].mxu1  ;;  %5538 = vmatpush1.bf16.msra.mxu1 %v10915_v59  ;;  %v5074_v26 = vpop.f32.mrb[27].mxu0  ;;  %5375 = vmatprep.subr.bf16.mxu0 %v10922_v57  ;;  %v2257_v57 = vld [vmem:[#allocation18 + $0xe58] sm:$0xff] }
 0x80c   :  { %v5576_v32 = vcombine.low %v11746_v39, %v11747_v30  ;;  %v5238_v38 = vpop.f32.mrb[27].mxu1  ;;  %5539 = vmatprep.subr.bf16.mxu1 %v10924_v5  ;;  %v10937_v5 = vcombine.low %v2248_v28, %v2252_v19  ;;  %v10945_v30 = vcombine.low %v2256_v13, %v2260_v51  ;;  %v10947_v1 = vcombine.low %v2257_v57, %v2261_v49 }
 0x80d   :  { %v5577_v58 = vcombine.low %v11748_v18, %v11749_v4  ;;  %v2268_v18 = vld [vmem:[#allocation18 + $0xeb0] sm:$0xff]  ;;  %v10948_v53 = vcombine.high %v2257_v57, %v2261_v49  ;;  %v2269_v4 = vld [vmem:[#allocation18 + $0xeb8] sm:$0xff] }
 0x80e   :  { %v5584_v42 = vrot.slane %v5576_v32, %v13503_v60  ;;  %5376 = vmatpush1.bf16.msra.mxu0 %v10921_v63  ;;  %v2265_v63 = vld [vmem:[#allocation18 + $0xe98] sm:$0xff]  ;;  %v13834_v32 = vld [vmem:[#allocation18 + $0xed0] sm:$0xff]  ;;  %v10954_v19 = vcombine.high %v2264_v47, %v2268_v18 }
 0x80f   :  { %v5591_v8 = vrot.slane %v5577_v58, %v13503_v60  ;;  %5540 = vmatpush1.bf16.msra.mxu1 %v10923_v15  ;;  %5377 = vmatprep.subr.bf16.mxu0 %v10930_v34  ;;  %v13836_v38 = vld [vmem:[#allocation18 + $0xef0] sm:$0xff]  ;;  %v10953_v58 = vcombine.low %v2264_v47, %v2268_v18 }
 0x810   :  { %5541 = vmatprep.subr.bf16.mxu1 %v10932_v54  ;;  %v10962_v57 = vcombine.high %v13834_v32, %v13836_v38 }
 0x811   :  { %v5592_v9 = vcombine.low %v5584_v42, %v5591_v8  ;;  %v5593_v56 = vcombine.high %v5584_v42, %v5591_v8  ;;  %v10997_v40 = vcombine.low %v5591_v8, %v5591_v8  ;;  %v10999_v59 = vcombine.high %v5591_v8, %v5591_v8 }
 0x812   :  { %5378 = vmatpush1.bf16.msra.mxu0 %v10929_v62  ;;  %v10955_v42 = vcombine.low %v2265_v63, %v2269_v4  ;;  %v10956_v62 = vcombine.high %v2265_v63, %v2269_v4  ;;  %v10961_v8 = vcombine.low %v13834_v32, %v13836_v38 }
 0x813   :  { %v5619_v39 = vrot.slane %v5592_v9, %v13503_v60  ;;  %v13824_v10 = vrot.slane %v10997_v40, %v13503_v60  ;;  %v5653_v16 = vrot.slane %v5593_v56, %v13503_v60  ;;  %v13828_v22 = vrot.slane %v10999_v59, %v13503_v60  ;;  %5542 = vmatpush1.bf16.msra.mxu1 %v10931_v35 }
 0x814   :  { %5379 = vmatprep.subr.bf16.mxu0 %v10938_v7  ;;  %5543 = vmatprep.subr.bf16.mxu1 %v10940_v37  ;;  %v2273_v7 = vld [vmem:[#allocation18 + $0xed8] sm:$0xff] }
 0x815   :  { %v5627_v44 = vcombine.high %v5619_v39, %v5619_v39  ;;  %v5628_v26 = vcombine.high %v13824_v10, %v13824_v10  ;;  %v5661_v15 = vcombine.high %v5653_v16, %v5653_v16  ;;  %v5662_v34 = vcombine.high %v13828_v22, %v13828_v22  ;;  %v2277_v37 = vld [vmem:[#allocation18 + $0xef8] sm:$0xff] }
 0x816   :  { %v5697_v54 = vsel %vm5696_vm2, %v5619_v39, -inf  ;;  %v5753_v28 = vsel %vm5696_vm2, %v5653_v16, -inf  ;;  %5380 = vmatpush1.bf16.msra.mxu0 %v10937_v5  ;;  %v2284_v39 = vld [vmem:[#allocation18 + $0xf30] sm:$0xff] }
 0x817   :  { %v5698_v45 = vrot.slane %v5697_v54, 4  ;;  %v5754_v33 = vrot.slane %v5753_v28, 4  ;;  %5544 = vmatpush1.bf16.msra.mxu1 %v10939_v41  ;;  %5381 = vmatprep.subr.bf16.mxu0 %v10946_v43  ;;  %v5704_v35 = vsel %vm5696_vm2, %v5627_v44, -inf  ;;  %v5760_v13 = vsel %vm5696_vm2, %v5661_v15, -inf  ;;  %v2280_v43 = vld [vmem:[#allocation18 + $0xf10] sm:$0xff]  ;;  %v2285_v15 = vld [vmem:[#allocation18 + $0xf38] sm:$0xff] }
 0x818   :  { %5545 = vmatprep.subr.bf16.mxu1 %v10948_v53  ;;  %v5718_v51 = vsel %vm5696_vm2, %v5628_v26, -inf  ;;  %v5705_v9 = vrot.slane %v5704_v35, 4  ;;  %v5761_v56 = vrot.slane %v5760_v13, 4  ;;  %v5774_v59 = vsel %vm5696_vm2, %v5662_v34, -inf }
 0x819   :  { %v5719_v40 = vrot.slane %v5718_v51, 4  ;;  %v5775_v49 = vrot.slane %v5774_v59, 4  ;;  %v5699_v5 = vmax.f32 %v5697_v54, %v5698_v45  ;;  %v5755_v41 = vmax.f32 %v5753_v28, %v5754_v33  ;;  %v2288_v45 = vld [vmem:[#allocation18 + $0xf50] sm:$0xff] }
 0x81a   :  { %5382 = vmatpush1.bf16.msra.mxu0 %v10945_v30  ;;  %v5706_v16 = vmax.f32 %v5704_v35, %v5705_v9  ;;  %v5762_v47 = vmax.f32 %v5760_v13, %v5761_v56  ;;  %v10964_v53 = vcombine.high %v2273_v7, %v2277_v37  ;;  %v10963_v26 = vcombine.low %v2273_v7, %v2277_v37  ;;  %v2281_v30 = vld [vmem:[#allocation18 + $0xf18] sm:$0xff]  ;;  %v2292_v33 = vld [vmem:[#allocation18 + $0xf70] sm:$0xff] }
 0x81b   :  { %5546 = vmatpush1.bf16.msra.mxu1 %v10947_v1  ;;  %5383 = vmatprep.subr.bf16.mxu0 %v10954_v19  ;;  %v5720_v18 = vmax.f32 %v5718_v51, %v5719_v40  ;;  %v5776_v63 = vmax.f32 %v5774_v59, %v5775_v49  ;;  %v5700_v4 = vrot.slane %v5699_v5, 2  ;;  %v5756_v44 = vrot.slane %v5755_v41, 2  ;;  %v2289_v40 = vld [vmem:[#allocation18 + $0xf58] sm:$0xff] }
 0x81c   :  { %5547 = vmatprep.subr.bf16.mxu1 %v10956_v62  ;;  %v5707_v34 = vrot.slane %v5706_v16, 2  ;;  %v5763_v32 = vrot.slane %v5762_v47, 2  ;;  %v10970_v54 = vcombine.high %v2280_v43, %v2284_v39  ;;  %v10972_v51 = vcombine.high %v2281_v30, %v2285_v15  ;;  %v2293_v59 = vld [vmem:[#allocation18 + $0xf78] sm:$0xff] }
 0x81d   :  { %v5721_v38 = vrot.slane %v5720_v18, 2  ;;  %v5777_v1 = vrot.slane %v5776_v63, 2  ;;  %v5701_v28 = vmax.f32 %v5699_v5, %v5700_v4  ;;  %v5757_v19 = vmax.f32 %v5755_v41, %v5756_v44 }
 0x81e   :  { %5384 = vmatpush1.bf16.msra.mxu0 %v10953_v58  ;;  %v5708_v62 = vmax.f32 %v5706_v16, %v5707_v34  ;;  %v5764_v35 = vmax.f32 %v5762_v47, %v5763_v32  ;;  %v10969_v56 = vcombine.low %v2280_v43, %v2284_v39  ;;  %v10971_v5 = vcombine.low %v2281_v30, %v2285_v15  ;;  %v2296_v16 = vld [vmem:[#allocation18 + $0xf90] sm:$0xff]  ;;  %v2297_v32 = vld [vmem:[#allocation18 + $0xf98] sm:$0xff] }
 0x81f   :  { %5548 = vmatpush1.bf16.msra.mxu1 %v10955_v42  ;;  %5385 = vmatprep.subr.bf16.mxu0 %v10962_v57  ;;  %v5722_v13 = vmax.f32 %v5720_v18, %v5721_v38  ;;  %v5778_v7 = vmax.f32 %v5776_v63, %v5777_v1  ;;  %v5702_v37 = vrot.slane %v5701_v28, 1  ;;  %v5758_v9 = vrot.slane %v5757_v19, 1  ;;  %v2300_v47 = vld [vmem:[#allocation18 + $0xfb0] sm:$0xff]  ;;  %v2301_v38 = vld [vmem:[#allocation18 + $0xfb8] sm:$0xff] }
 0x820   :  { %5549 = vmatprep.subr.bf16.mxu1 %v10964_v53  ;;  %v5709_v58 = vrot.slane %v5708_v62, 1  ;;  %v5765_v49 = vrot.slane %v5764_v35, 1  ;;  %v10978_v41 = vcombine.high %v2288_v45, %v2292_v33  ;;  %v10980_v44 = vcombine.high %v2289_v40, %v2293_v59 }
 0x821   :  { %v5703_v42 = vmax.f32 %v5701_v28, %v5702_v37  ;;  %v5759_v57 = vmax.f32 %v5757_v19, %v5758_v9  ;;  %v5723_v4 = vrot.slane %v5722_v13, 1  ;;  %v5779_v63 = vrot.slane %v5778_v7, 1  ;;  %v2304_v37 = vld [vmem:[#allocation18 + $0xfd0] sm:$0xff]  ;;  %v2305_v9 = vld [vmem:[#allocation18 + $0xfd8] sm:$0xff] }
 0x822   :  { %5386 = vmatpush1.bf16.msra.mxu0 %v10961_v8  ;;  %v5710_v18 = vmax.f32 %v5708_v62, %v5709_v58  ;;  %v5766_v53 = vmax.f32 %v5764_v35, %v5765_v49  ;;  %v10977_v34 = vcombine.low %v2288_v45, %v2292_v33  ;;  %v10979_v15 = vcombine.low %v2289_v40, %v2293_v59  ;;  %v2308_v45 = vld [vmem:[#allocation18 + $0xff0] sm:$0xff]  ;;  %v2309_v58 = vld [vmem:[#allocation18 + $0xff8] sm:$0xff] }
 0x823   :  { %5550 = vmatpush1.bf16.msra.mxu1 %v10963_v26  ;;  %5387 = vmatprep.subr.bf16.mxu0 %v10970_v54  ;;  %v5809_v43 = vpack.c.bf16 %v5703_v42, %v5703_v42  ;;  %v5817_v39 = vpack.c.bf16 %v5759_v57, %v5759_v57  ;;  %v10986_v26 = vcombine.high %v2296_v16, %v2300_v47  ;;  %v5767_v42 = vsel %vm5696_vm2, %v13828_v22, -inf  ;;  %v12019_v22 = vld [vmem:[%s15148_s26 + $0x80] sm:$0xff]  }
 0x824   :  { %5551 = vmatprep.subr.bf16.mxu1 %v10972_v51  ;;  %v5810_v8 = vpack.c.bf16 %v5710_v18, %v5710_v18  ;;  %v5818_v30 = vpack.c.bf16 %v5766_v53, %v5766_v53  ;;  %v5724_v62 = vmax.f32 %v5722_v13, %v5723_v4  ;;  %v5780_v35 = vmax.f32 %v5778_v7, %v5779_v63  ;;  %v12017_v4 = vld [vmem:[%s15148_s26 + $0xc0] sm:$0xff]  }
 0x825   :  { %v5969_v54 = vunpack.c.l.b16 %v5809_v43  ;;  %v5977_v1 = vunpack.c.l.b16 %v5817_v39  ;;  %v10988_v51 = vcombine.high %v2297_v32, %v2301_v38  ;;  %v10985_v40 = vcombine.low %v2296_v16, %v2300_v47  ;;  %v12016_v47 = vld [vmem:[%s15148_s26 + $0x40] sm:$0xff]   ;;  %v12020_v39 = vld [vmem:[%s15148_s26 + $0x48] sm:$0xff]  }
 0x826   :  { %5388 = vmatpush1.bf16.msra.mxu0 %v10969_v56  ;;  %v5970_v28 = vunpack.c.l.b16 %v5810_v8  ;;  %v5978_v19 = vunpack.c.l.b16 %v5818_v30  ;;  %v10987_v59 = vcombine.low %v2297_v32, %v2301_v38  ;;  %v10994_v49 = vcombine.high %v2304_v37, %v2308_v45  ;;  %v12021_v32 = vld [vmem:[%s15148_s26 + $0xc8] sm:$0xff]  }
 0x827   :  { %5552 = vmatpush1.bf16.msra.mxu1 %v10971_v5  ;;  %5389 = vmatprep.subr.bf16.mxu0 %v10978_v41  ;;  %v13849_v33 = vsel %vm5985_vm3, %v5977_v1, %v5969_v54  ;;  %v5812_v13 = vpack.c.bf16 %v5724_v62, %v5724_v62  ;;  %v5820_v7 = vpack.c.bf16 %v5780_v35, %v5780_v35  ;;  %v5711_v41 = vsel %vm5696_vm2, %v13824_v10, -inf  ;;  %v12018_v10 = vld [vmem:[%s15148_s26] sm:$0xff]   ;;  %v12024_v54 = vld [vmem:[%s15148_s26 + $0x50] sm:$0xff]   ;;  %v12028_v35 = vld [vmem:[%s15148_s26 + $0x58] sm:$0xff]  }
 0x828   :  { %5553 = vmatprep.subr.bf16.mxu1 %v10980_v44  ;;  %v5987_v56 = vsel %vm5985_vm3, %v5978_v19, %v5970_v28  ;;  %v10996_v5 = vcombine.high %v2305_v9, %v2309_v58  ;;  %v10993_v57 = vcombine.low %v2304_v37, %v2308_v45  ;;  %v10995_v16 = vcombine.low %v2305_v9, %v2309_v58  ;;  %v12025_v1 = vld [vmem:[%s15148_s26 + $0xd0] sm:$0xff]   ;;  %v12030_v9 = vld [vmem:[%s15148_s26 + $0x18] sm:$0xff]  }
 0x829   :  { %v5972_v18 = vunpack.c.l.b16 %v5812_v13  ;;  %v5980_v53 = vunpack.c.l.b16 %v5820_v7  ;;  %v5712_v63 = vrot.slane %v5711_v41, 4  ;;  %v5768_v44 = vrot.slane %v5767_v42, 4  ;;  %v12027_v62 = vld [vmem:[%s15148_s26 + $0x90] sm:$0xff]   ;;  %v12031_v58 = vld [vmem:[%s15148_s26 + $0x98] sm:$0xff]   ;;  %v12034_v13 = vld [vmem:[%s15148_s26 + $0x20] sm:$0xff]  }
 0x82a   :  { %5390 = vmatpush1.bf16.msra.mxu0 %v10977_v34  ;;  %v5995_v34 = vpack.c.b16 %v5987_v56, %v5987_v56  ;;  %v12032_v56 = vld [vmem:[%s15148_s26 + $0x60] sm:$0xff]  }
 0x82b   :  { %5554 = vmatpush1.bf16.msra.mxu1 %v10979_v15  ;;  %5391 = vmatprep.subr.bf16.mxu0 %v10986_v26  ;;  %v5989_v43 = vsel %vm5985_vm3, %v5980_v53, %v5972_v18  ;;  %v5713_v38 = vmax.f32 %v5711_v41, %v5712_v63  ;;  %v5769_v8 = vmax.f32 %v5767_v42, %v5768_v44  ;;  %v12022_v15 = vld [vmem:[%s15148_s26 + $0x8] sm:$0xff]   ;;  %v12035_v7 = vld [vmem:[%s15148_s26 + $0xa0] sm:$0xff]   ;;  %v12040_v18 = vld [vmem:[%s15148_s26 + $0x70] sm:$0xff]  }
 0x82c   :  { %5555 = vmatprep.subr.bf16.mxu1 %v10988_v51  ;;  %v5997_v30 = vpack.c.b16 %v5989_v43, %v5989_v43  ;;  %v12023_v26 = vld [vmem:[%s15148_s26 + $0x88] sm:$0xff]   ;;  %v12029_v51 = vld [vmem:[%s15148_s26 + $0xd8] sm:$0xff]   ;;  %v12041_v53 = vld [vmem:[%s15148_s26 + $0xf0] sm:$0xff]  }
 0x82d   :  { %v5714_v28 = vrot.slane %v5713_v38, 2  ;;  %v5770_v19 = vrot.slane %v5769_v8, 2  ;;  %v12037_v41 = vld [vmem:[%s15148_s26 + $0xe8] sm:$0xff]   ;;  %v12042_v44 = vld [vmem:[%s15148_s26 + $0x30] sm:$0xff]   ;;  %v12045_v43 = vld [vmem:[%s15148_s26 + $0xf8] sm:$0xff]  }
 0x82e   :  { %5392 = vmatpush1.bf16.msra.mxu0 %v10985_v40  ;;  %v12033_v40 = vld [vmem:[%s15148_s26 + $0xe0] sm:$0xff]  }
 0x82f   :  { %5556 = vmatpush1.bf16.msra.mxu1 %v10987_v59  ;;  %5393 = vmatprep.subr.bf16.mxu0 %v10994_v49  ;;  %v5715_v37 = vmax.f32 %v5713_v38, %v5714_v28  ;;  %v5771_v45 = vmax.f32 %v5769_v8, %v5770_v19  ;;  %v12047_v38 = vld [vmem:[%s15148_s26 + $0xb8] sm:$0xff]   ;;  %v12051_v28 = vld [vmem:[%s15148_s26 + $0x180] sm:$0xff]   ;;  %v12052_v19 = vld [vmem:[%s15148_s26 + $0x148] sm:$0xff]  }
 0x830   :  { %5557 = vmatprep.subr.bf16.mxu1 %v10996_v5  ;;  %v12036_v5 = vld [vmem:[%s15148_s26 + $0x68] sm:$0xff]  }
 0x831   :  { %v5716_v59 = vrot.slane %v5715_v37, 1  ;;  %v5772_v49 = vrot.slane %v5771_v45, 1 }
 0x832   :  { %5394 = vmatpush1.bf16.msra.mxu0 %v10993_v57 }
 0x833   :  { %5558 = vmatpush1.bf16.msra.mxu1 %v10995_v16  ;;  %11276 = vmatprep.subr.bf16.mxu0 %v12016_v47  ;;  %v5717_v42 = vmax.f32 %v5715_v37, %v5716_v59  ;;  %v5773_v57 = vmax.f32 %v5771_v45, %v5772_v49  ;;  %v12038_v16 = vld [vmem:[%s15148_s26 + $0x28] sm:$0xff]   ;;  %v12058_v37 = vld [vmem:[%s15148_s26 + $0x110] sm:$0xff]   ;;  %v12064_v59 = vld [vmem:[%s15148_s26 + $0x160] sm:$0xff]  }
 0x834   :  { %11298 = vmatprep.subr.bf16.mxu1 %v12017_v4  ;;  %v12039_v47 = vld [vmem:[%s15148_s26 + $0xa8] sm:$0xff]   ;;  %v12059_v45 = vld [vmem:[%s15148_s26 + $0x190] sm:$0xff]   ;;  %v12065_v49 = vld [vmem:[%s15148_s26 + $0x1e0] sm:$0xff]  }
 0x835   :  { %5396 = vmatmul.mubr.bf16.vlgmr.msra.gmra.mrb[28].mxu0 %v13783_v46  ;;  %v5811_v4 = vpack.c.bf16 %v5717_v42, %v5717_v42  ;;  %v5819_v63 = vpack.c.bf16 %v5773_v57, %v5773_v57  ;;  %v12070_v42 = vld [vmem:[%s15148_s26 + $0x128] sm:$0xff]  }
 0x836   :  { %5560 = vmatmul.mubr.bf16.vlgmr.msra.gmra.mrb[28].mxu1 %v13783_v46  ;;  %11277 = vmatpush3.bf16.msra.mxu0 %v12018_v10  ;;  %v12026_v46 = vld [vmem:[%s15148_s26 + $0x10] sm:$0xff]   ;;  %v12071_v57 = vld [vmem:[%s15148_s26 + $0x1a8] sm:$0xff]  }
 0x837   :  { %6426 = vmatprep.mubr.bf16.mxu0 %v5995_v34  ;;  %11299 = vmatpush3.bf16.msra.mxu1 %v12019_v22  ;;  %v12043_v10 = vld [vmem:[%s15148_s26 + $0xb0] sm:$0xff]   ;;  %v12044_v22 = vld [vmem:[%s15148_s26 + $0x78] sm:$0xff]   ;;  %v5979_v34 = vunpack.c.l.b16 %v5819_v63 }
 0x838   :  { %6466 = vmatprep.mubr.bf16.mxu1 %v5997_v30  ;;  %11278 = vmatprep.subr.bf16.mxu0 %v12020_v39  ;;  %v5971_v39 = vunpack.c.l.b16 %v5811_v4  ;;  %v5994_v30 = vpack.c.b16 %v13849_v33, %v13849_v33  ;;  %v12054_v33 = vld [vmem:[%s15148_s26 + $0x108] sm:$0xff]   ;;  %v12076_v4 = vld [vmem:[%s15148_s26 + $0x178] sm:$0xff]  }
 0x839   :  { %11300 = vmatprep.subr.bf16.mxu1 %v12021_v32  ;;  %v12046_v32 = vld [vmem:[%s15148_s26 + $0x38] sm:$0xff]  }
 0x83a   :  { %11279 = vmatpush3.bf16.msra.mxu0 %v12022_v15  ;;  %v5988_v8 = vsel %vm5985_vm3, %v5979_v34, %v5971_v39  ;;  %v12077_v63 = vld [vmem:[%s15148_s26 + $0x1f8] sm:$0xff]   ;;  %v2335_v39 = vrot.slane %v13808_v21, %v1504_v17  ;;  %v2343_v34 = vrot.slane %v13808_v21, %v1512_v14  ;;  %v12998_v14 = vmov 65535  }
 0x83b   :  { %11301 = vmatpush3.bf16.msra.mxu1 %v12023_v26  ;;  %11280 = vmatprep.subr.bf16.mxu0 %v12024_v54  ;;  %v5996_v15 = vpack.c.b16 %v5988_v8, %v5988_v8  ;;  %v12048_v26 = vld [vmem:[%s15148_s26 + $0x140] sm:$0xff]  }
 0x83c   :  { %11302 = vmatprep.subr.bf16.mxu1 %v12025_v1  ;;  %v12049_v54 = vld [vmem:[%s15148_s26 + $0x1c0] sm:$0xff]  }
 0x83d   :  { %v12050_v1 = vld [vmem:[%s15148_s26 + $0x100] sm:$0xff]  }
 0x83e   :  { %11281 = vmatpush3.bf16.msra.mxu0 %v12026_v46  ;;  %v12053_v46 = vld [vmem:[%s15148_s26 + $0x1c8] sm:$0xff]  }
 0x83f   :  { %11303 = vmatpush3.bf16.msra.mxu1 %v12027_v62  ;;  %11282 = vmatprep.subr.bf16.mxu0 %v12028_v35  ;;  %v12055_v62 = vld [vmem:[%s15148_s26 + $0x188] sm:$0xff]   ;;  %v12056_v35 = vld [vmem:[%s15148_s26 + $0x150] sm:$0xff]  }
 0x840   :  { %11304 = vmatprep.subr.bf16.mxu1 %v12029_v51  ;;  %v12057_v51 = vld [vmem:[%s15148_s26 + $0x1d0] sm:$0xff]  }
 0x842   :  { %11283 = vmatpush3.bf16.msra.mxu0 %v12030_v9  ;;  %v12060_v9 = vld [vmem:[%s15148_s26 + $0x158] sm:$0xff]  }
 0x843   :  { %11305 = vmatpush3.bf16.msra.mxu1 %v12031_v58  ;;  %11284 = vmatprep.subr.bf16.mxu0 %v12032_v56  ;;  %v12061_v58 = vld [vmem:[%s15148_s26 + $0x1d8] sm:$0xff]  }
 0x844   :  { %11306 = vmatprep.subr.bf16.mxu1 %v12033_v40  ;;  %v12062_v56 = vld [vmem:[%s15148_s26 + $0x118] sm:$0xff]  }
 0x845   :  { %v12063_v40 = vld [vmem:[%s15148_s26 + $0x198] sm:$0xff]  }
 0x846   :  { %11285 = vmatpush3.bf16.msra.mxu0 %v12034_v13  ;;  %v12066_v13 = vld [vmem:[%s15148_s26 + $0x120] sm:$0xff]  }
 0x847   :  { %11307 = vmatpush3.bf16.msra.mxu1 %v12035_v7  ;;  %11286 = vmatprep.subr.bf16.mxu0 %v12036_v5  ;;  %v12067_v7 = vld [vmem:[%s15148_s26 + $0x1a0] sm:$0xff]   ;;  %v12068_v5 = vld [vmem:[%s15148_s26 + $0x168] sm:$0xff]  }
 0x848   :  { %11308 = vmatprep.subr.bf16.mxu1 %v12037_v41  ;;  %v12069_v41 = vld [vmem:[%s15148_s26 + $0x1e8] sm:$0xff]  }
 0x84a   :  { %11287 = vmatpush3.bf16.msra.mxu0 %v12038_v16  ;;  %v12072_v16 = vld [vmem:[%s15148_s26 + $0x170] sm:$0xff]  }
 0x84b   :  { %11309 = vmatpush3.bf16.msra.mxu1 %v12039_v47  ;;  %11288 = vmatprep.subr.bf16.mxu0 %v12040_v18  ;;  %v12073_v47 = vld [vmem:[%s15148_s26 + $0x1f0] sm:$0xff]  }
 0x84c   :  { %11310 = vmatprep.subr.bf16.mxu1 %v12041_v53  ;;  %v12074_v18 = vld [vmem:[%s15148_s26 + $0x130] sm:$0xff]  }
 0x84d   :  { %v12075_v53 = vld [vmem:[%s15148_s26 + $0x1b0] sm:$0xff]  }
 0x84e   :  { %11289 = vmatpush3.bf16.msra.mxu0 %v12042_v44  ;;  %v12078_v44 = vld [vmem:[%s15148_s26 + $0x138] sm:$0xff]  }
 0x84f   :  { %11311 = vmatpush3.bf16.msra.mxu1 %v12043_v10  ;;  %11290 = vmatprep.subr.bf16.mxu0 %v12044_v22  ;;  %v12079_v10 = vld [vmem:[%s15148_s26 + $0x1b8] sm:$0xff]   ;;  %v2331_v22 = vrot.slane %v13808_v21, %v1500_v24 }
 0x850   :  { %11312 = vmatprep.subr.bf16.mxu1 %v12045_v43  ;;  %v2339_v43 = vrot.slane %v13808_v21, %v1508_v25  ;;  %v6662_v21 = vsel %vm6661_vm4, 4294967295, %v12998_v14 }
 0x852   :  { %11291 = vmatpush3.bf16.msra.mxu0 %v12046_v32 }
 0x853   :  { %11313 = vmatpush3.bf16.msra.mxu1 %v12047_v38  ;;  %11320 = vmatprep.subr.bf16.mxu0 %v12048_v26 }
 0x854   :  { %11342 = vmatprep.subr.bf16.mxu1 %v12049_v54 }
 0x855   :  { %6427 = vmatmul.mubr.bf16.vlgmr.msra.gmra.mrb[32].mxu0 %v5994_v30 }
 0x856   :  { %6467 = vmatmul.mubr.bf16.vlgmr.msra.gmra.mrb[32].mxu1 %v5996_v15  ;;  %11321 = vmatpush3.bf16.msra.mxu0 %v12050_v1 }
 0x857   :  { %11343 = vmatpush3.bf16.msra.mxu1 %v12051_v28  ;;  %11322 = vmatprep.subr.bf16.mxu0 %v12052_v19 }
 0x858   :  { %11344 = vmatprep.subr.bf16.mxu1 %v12053_v46 }
 0x85a   :  { %11323 = vmatpush3.bf16.msra.mxu0 %v12054_v33 }
 0x85b   :  { %11345 = vmatpush3.bf16.msra.mxu1 %v12055_v62  ;;  %11324 = vmatprep.subr.bf16.mxu0 %v12056_v35 }
 0x85c   :  { %11346 = vmatprep.subr.bf16.mxu1 %v12057_v51 }
 0x85e   :  { %11325 = vmatpush3.bf16.msra.mxu0 %v12058_v37 }
 0x85f   :  { %11347 = vmatpush3.bf16.msra.mxu1 %v12059_v45  ;;  %11326 = vmatprep.subr.bf16.mxu0 %v12060_v9 }
 0x860   :  { %11348 = vmatprep.subr.bf16.mxu1 %v12061_v58 }
 0x862   :  { %11327 = vmatpush3.bf16.msra.mxu0 %v12062_v56 }
 0x863   :  { %11349 = vmatpush3.bf16.msra.mxu1 %v12063_v40  ;;  %11328 = vmatprep.subr.bf16.mxu0 %v12064_v59  ;;  %v13947_v59 = vsel %vm5696_vm2, %v6662_v21, 0 }
 0x864   :  { %11350 = vmatprep.subr.bf16.mxu1 %v12065_v49 }
 0x866   :  { %11329 = vmatpush3.bf16.msra.mxu0 %v12066_v13 }
 0x867   :  { %11351 = vmatpush3.bf16.msra.mxu1 %v12067_v7  ;;  %11330 = vmatprep.subr.bf16.mxu0 %v12068_v5 }
 0x868   :  { %11352 = vmatprep.subr.bf16.mxu1 %v12069_v41 }
 0x86a   :  { %11331 = vmatpush3.bf16.msra.mxu0 %v12070_v42 }
 0x86b   :  { %11353 = vmatpush3.bf16.msra.mxu1 %v12071_v57  ;;  %11332 = vmatprep.subr.bf16.mxu0 %v12072_v16 }
 0x86c   :  { %11354 = vmatprep.subr.bf16.mxu1 %v12073_v47 }
 0x86e   :  { %11333 = vmatpush3.bf16.msra.mxu0 %v12074_v18 }
 0x86f   :  { %11355 = vmatpush3.bf16.msra.mxu1 %v12075_v53  ;;  %11334 = vmatprep.subr.bf16.mxu0 %v12076_v4 }
 0x870   :  { %11356 = vmatprep.subr.bf16.mxu1 %v12077_v63 }
 0x872   :  { %11335 = vmatpush3.bf16.msra.mxu0 %v12078_v44 }
 0x873   :  { %11357 = vmatpush3.bf16.msra.mxu1 %v12079_v10  ;;  %11708 = vmatprep.subr.bf16.mxu0 %v15099_v36 }
 0x874   :  { %11716 = vmatprep.subr.bf16.mxu1 %v15099_v36 }
 0x908   :  { %v5397_v32 = vpop.f32.mrb[28].mxu0 }
 0x909   :  { %v11750_v38 = vadd.f32 %v5397_v32, %v2331_v22  ;;  %v5561_v8 = vpop.f32.mrb[28].mxu1  ;;  %v5399_v30 = vpop.f32.mrb[29].mxu0 }
 0x90a   :  { %v11752_v15 = vadd.f32 %v5561_v8, %v2339_v43  ;;  %v11751_v26 = vadd.f32 %v5399_v30, %v2335_v39  ;;  %v5563_v54 = vpop.f32.mrb[29].mxu1  ;;  %v5401_v24 = vpop.f32.mrb[30].mxu0 }
 0x90b   :  { %v11753_v1 = vadd.f32 %v5563_v54, %v2343_v34  ;;  %v5565_v28 = vpop.f32.mrb[30].mxu1  ;;  %v5402_v19 = vpop.f32.mrb[31].mxu0 }
 0x90c   :  { %v5594_v25 = vcombine.low %v11750_v38, %v11751_v26  ;;  %v5566_v46 = vpop.f32.mrb[31].mxu1 }
 0x90d   :  { %v5595_v33 = vcombine.low %v11752_v15, %v11753_v1 }
 0x90e   :  { %v5602_v17 = vrot.slane %v5594_v25, %v13503_v60 }
 0x90f   :  { %v5609_v62 = vrot.slane %v5595_v33, %v13503_v60 }
 0x911   :  { %v5610_v35 = vcombine.low %v5602_v17, %v5609_v62  ;;  %v5611_v51 = vcombine.high %v5602_v17, %v5609_v62  ;;  %v10998_v37 = vcombine.low %v5609_v62, %v5609_v62  ;;  %v11000_v45 = vcombine.high %v5609_v62, %v5609_v62 }
 0x913   :  { %v5636_v9 = vrot.slane %v5610_v35, %v13503_v60  ;;  %v5643_v58 = vrot.slane %v10998_v37, %v13503_v60  ;;  %v5670_v56 = vrot.slane %v5611_v51, %v13503_v60  ;;  %v5677_v40 = vrot.slane %v11000_v45, %v13503_v60 }
 0x915   :  { %v5644_v49 = vcombine.high %v5636_v9, %v5636_v9  ;;  %v5645_v13 = vcombine.high %v5643_v58, %v5643_v58  ;;  %v5678_v7 = vcombine.high %v5670_v56, %v5670_v56  ;;  %v5679_v5 = vcombine.high %v5677_v40, %v5677_v40 }
 0x916   :  { %v5725_v41 = vsel %vm5696_vm2, %v5636_v9, -inf  ;;  %v5739_v42 = vsel %vm5696_vm2, %v5643_v58, -inf  ;;  %v5781_v57 = vsel %vm5696_vm2, %v5670_v56, -inf  ;;  %v5795_v16 = vsel %vm5696_vm2, %v5677_v40, -inf }
 0x917   :  { %v5726_v47 = vrot.slane %v5725_v41, 4  ;;  %v5740_v18 = vrot.slane %v5739_v42, 4  ;;  %v5782_v53 = vrot.slane %v5781_v57, 4  ;;  %v5796_v4 = vrot.slane %v5795_v16, 4 }
 0x918   :  { %v5732_v63 = vsel %vm5696_vm2, %v5644_v49, -inf  ;;  %v5788_v44 = vsel %vm5696_vm2, %v5678_v7, -inf  ;;  %v5746_v10 = vsel %vm5696_vm2, %v5645_v13, -inf  ;;  %v5802_v22 = vsel %vm5696_vm2, %v5679_v5, -inf }
 0x919   :  { %v5733_v43 = vrot.slane %v5732_v63, 4  ;;  %v5789_v39 = vrot.slane %v5788_v44, 4  ;;  %v5747_v34 = vrot.slane %v5746_v10, 4  ;;  %v5803_v32 = vrot.slane %v5802_v22, 4 }
 0x91a   :  { %v5727_v38 = vmax.f32 %v5725_v41, %v5726_v47  ;;  %v5783_v8 = vmax.f32 %v5781_v57, %v5782_v53  ;;  %v5741_v30 = vmax.f32 %v5739_v42, %v5740_v18  ;;  %v5797_v15 = vmax.f32 %v5795_v16, %v5796_v4 }
 0x91b   :  { %v5734_v26 = vmax.f32 %v5732_v63, %v5733_v43  ;;  %v5790_v54 = vmax.f32 %v5788_v44, %v5789_v39  ;;  %v5748_v24 = vmax.f32 %v5746_v10, %v5747_v34  ;;  %v5804_v1 = vmax.f32 %v5802_v22, %v5803_v32 }
 0x91c   :  { %v5728_v28 = vrot.slane %v5727_v38, 2  ;;  %v5784_v19 = vrot.slane %v5783_v8, 2  ;;  %v5742_v25 = vrot.slane %v5741_v30, 2  ;;  %v5798_v46 = vrot.slane %v5797_v15, 2 }
 0x91d   :  { %v5735_v33 = vrot.slane %v5734_v26, 2  ;;  %v5791_v17 = vrot.slane %v5790_v54, 2  ;;  %v5749_v62 = vrot.slane %v5748_v24, 2  ;;  %v5805_v14 = vrot.slane %v5804_v1, 2 }
 0x91e   :  { %v5729_v21 = vmax.f32 %v5727_v38, %v5728_v28  ;;  %v5785_v35 = vmax.f32 %v5783_v8, %v5784_v19  ;;  %v5743_v51 = vmax.f32 %v5741_v30, %v5742_v25  ;;  %v5799_v37 = vmax.f32 %v5797_v15, %v5798_v46  ;;  %v6657_v46 = vld [vmem:[#allocation22] sm:$0x3] }
 0x91f   :  { %v5736_v45 = vmax.f32 %v5734_v26, %v5735_v33  ;;  %v5792_v9 = vmax.f32 %v5790_v54, %v5791_v17  ;;  %v5750_v58 = vmax.f32 %v5748_v24, %v5749_v62  ;;  %v5806_v56 = vmax.f32 %v5804_v1, %v5805_v14 }
 0x920   :  { %v5730_v40 = vrot.slane %v5729_v21, 1  ;;  %v5786_v49 = vrot.slane %v5785_v35, 1  ;;  %v5744_v13 = vrot.slane %v5743_v51, 1  ;;  %v5800_v7 = vrot.slane %v5799_v37, 1 }
 0x921   :  { %v5737_v5 = vrot.slane %v5736_v45, 1  ;;  %v5793_v41 = vrot.slane %v5792_v9, 1  ;;  %v5751_v42 = vrot.slane %v5750_v58, 1  ;;  %v5807_v57 = vrot.slane %v5806_v56, 1 }
 0x922   :  { %v5731_v16 = vmax.f32 %v5729_v21, %v5730_v40  ;;  %v5787_v47 = vmax.f32 %v5785_v35, %v5786_v49  ;;  %v5745_v18 = vmax.f32 %v5743_v51, %v5744_v13  ;;  %v5801_v53 = vmax.f32 %v5799_v37, %v5800_v7  ;;  %v12080_v40 = vld [vmem:[#allocation21] sm:$0xff]  }
 0x923   :  { %v5738_v4 = vmax.f32 %v5736_v45, %v5737_v5  ;;  %v5794_v63 = vmax.f32 %v5792_v9, %v5793_v41  ;;  %v5752_v44 = vmax.f32 %v5750_v58, %v5751_v42  ;;  %v5808_v10 = vmax.f32 %v5806_v56, %v5807_v57 }
 0x924   :  { %v5813_v22 = vpack.c.bf16 %v5731_v16, %v5731_v16  ;;  %v5821_v43 = vpack.c.bf16 %v5787_v47, %v5787_v47  ;;  %v5815_v39 = vpack.c.bf16 %v5745_v18, %v5745_v18  ;;  %v5823_v34 = vpack.c.bf16 %v5801_v53, %v5801_v53  ;;  %v12081_v47 = vld [vmem:[#allocation21 + $0x8] sm:$0xff]   ;;  %v12084_v18 = vld [vmem:[#allocation25 + $0x4] ss:$8 sps:$4 sm:$0xff]   ;;  %v12082_v53 = vld [vmem:[#allocation25] ss:$8 sps:$4 sm:$0xff]  }
 0x925   :  { %v5814_v32 = vpack.c.bf16 %v5738_v4, %v5738_v4  ;;  %v5822_v38 = vpack.c.bf16 %v5794_v63, %v5794_v63  ;;  %v5816_v8 = vpack.c.bf16 %v5752_v44, %v5752_v44  ;;  %v5824_v30 = vpack.c.bf16 %v5808_v10, %v5808_v10  ;;  %v12087_v4 = vld [vmem:[#allocation25 + $0x14] ss:$8 sps:$4 sm:$0xff]   ;;  %v12085_v63 = vld [vmem:[#allocation25 + $0x10] ss:$8 sps:$4 sm:$0xff]   ;;  %v12088_v44 = vld [vmem:[#allocation28 + $0x40] sm:$0xff]  }
 0x926   :  { %v5973_v15 = vunpack.c.l.b16 %v5813_v22  ;;  %v5981_v26 = vunpack.c.l.b16 %v5821_v43  ;;  %v5975_v54 = vunpack.c.l.b16 %v5815_v39  ;;  %v5983_v24 = vunpack.c.l.b16 %v5823_v34  ;;  %v12089_v10 = vld [vmem:[#allocation28] sm:$0xff]   ;;  %v12092_v22 = vld [vmem:[#allocation28 + $0x50] sm:$0xff]   ;;  %v12094_v39 = vld [vmem:[#allocation28 + $0x58] sm:$0xff]  }
 0x927   :  { %v5974_v1 = vunpack.c.l.b16 %v5814_v32  ;;  %v5982_v28 = vunpack.c.l.b16 %v5822_v38  ;;  %v5976_v19 = vunpack.c.l.b16 %v5816_v8  ;;  %v5984_v25 = vunpack.c.l.b16 %v5824_v30  ;;  %v12093_v43 = vld [vmem:[#allocation28 + $0x10] sm:$0xff]   ;;  %v12095_v34 = vld [vmem:[#allocation28 + $0x18] sm:$0xff]   ;;  %v12096_v32 = vld [vmem:[#allocation28 + $0x60] sm:$0xff]  }
 0x928   :  { %v11292_v33 = vpop.f32.mrb[32].mxu0  ;;  %v5990_v17 = vsel %vm5985_vm3, %v5981_v26, %v5973_v15  ;;  %v5992_v62 = vsel %vm5985_vm3, %v5983_v24, %v5975_v54  ;;  %v6665_v49 = vand.u32 %v13947_v59, %v6657_v46  ;;  %v6656_v59 = vpack.c.bf16 %v13564_v20, %v13564_v20  ;;  %v12090_v20 = vld [vmem:[#allocation28 + $0x48] sm:$0xff]   ;;  %v12097_v38 = vld [vmem:[#allocation28 + $0x20] sm:$0xff]  }
 0x929   :  { %v11314_v14 = vpop.f32.mrb[32].mxu1  ;;  %v11293_v21 = vpop.f32.mrb[33].mxu0  ;;  %v5991_v35 = vsel %vm5985_vm3, %v5982_v28, %v5974_v1  ;;  %v5993_v51 = vsel %vm5985_vm3, %v5984_v25, %v5976_v19  ;;  %v5998_v41 = vpack.c.b16 %v5990_v17, %v5990_v17  ;;  %v6000_v42 = vpack.c.b16 %v5992_v62, %v5992_v62  ;;  %v12098_v8 = vld [vmem:[#allocation28 + $0x68] sm:$0xff]  }
 0x92a   :  { %v11294_v37 = vadd.f32 %v11293_v21, %v11292_v33  ;;  %v11315_v45 = vpop.f32.mrb[33].mxu1  ;;  %v11295_v9 = vpop.f32.mrb[34].mxu0  ;;  %v5999_v58 = vpack.c.b16 %v5991_v35, %v5991_v35  ;;  %v6001_v56 = vpack.c.b16 %v5993_v51, %v5993_v51  ;;  %v12099_v30 = vld [vmem:[#allocation28 + $0x28] sm:$0xff]   ;;  %v12999_v15 = vmov 1966171168  }
 0x92b   :  { %v11316_v13 = vadd.f32 %v11315_v45, %v11314_v14  ;;  %v11317_v7 = vpop.f32.mrb[34].mxu1  ;;  %v11296_v5 = vpop.f32.mrb[35].mxu0  ;;  %v6556_v26 = vunpack.c.l.s4 %v12999_v15  ;;  %v12103_v15 = vld [vmem:[#allocation28 + $0x38] sm:$0xff]  }
 0x92c   :  { %6506 = vmatprep.mubr.bf16.mxu0 %v5999_v58  ;;  %6546 = vmatprep.mubr.bf16.mxu1 %v6001_v56  ;;  %v11318_v57 = vpop.f32.mrb[35].mxu1  ;;  %v11069_v58 = vld [vmem:[#allocation24] ss:$0 sm:$0xff] }
 0x92d   :  { %v6469_v16 = vadd.f32 %v11316_v13, %v11294_v37  ;;  %6507 = vmatmul.mubr.bf16.vlgmr.msra.gmra.mrb[36].mxu0 %v5998_v41  ;;  %6547 = vmatmul.mubr.bf16.vlgmr.msra.gmra.mrb[36].mxu1 %v6000_v42  ;;  %v6557_v19 = vunpack.c.0.s8 %v6556_v26  ;;  %v13989_v26 = vld [vmem:[#allocation34 + $0x4] ss:$8 sps:$4 sm:$0xff]  }
 0x92e   :  { %11709 = vmatpush3.bf16.msra.mxu0 %v12080_v40  ;;  %11717 = vmatpush3.bf16.msra.mxu1 %v6665_v49 }
 0x92f   :  { %11710 = vmatprep.subr.bf16.mxu0 %v15099_v36  ;;  %11712 = vmatprep.mubr.msk.bf16.mxu0 %vm12987_vm0, %v15099_v36  ;;  %v13975_v35 = vsub.s32 %v6557_v19, %v13500_v55 }
 0x930   :  { %11718 = vmatprep.mubr.msk.bf16.mxu1 %vm12987_vm0, %v15099_v36  ;;  %11369 = vmatprep.subr.bf16.mxu1 %v12088_v44 }
 0x932   :  { %11711 = vmatpush3.bf16.msra.mxu0 %v12081_v47 }
 0x933   :  { %6789 = vmatprep.subr.bf16.mxu0 %v12084_v18 }
 0x935   :  { %11713 = vmatmul.mubr.msk.bf16.vlgmr.msra.gmra.mrb[40].mxu0 %vm902_vm1, %v13518_v12  ;;  %11719 = vmatmul.mubr.msk.bf16.vlgmr.msra.gmra.mrb[40].mxu1 %vm1462_vm15, %v6656_v59  ;;  %v12091_v12 = vld [vmem:[#allocation28 + $0x8] sm:$0xff]   ;;  %v6732_v59 = vrot.slane %v11069_v58, %v13503_v60 }
 0x936   :  { %6821 = vmatprep.mubr.bf16.mxu0 %v15100_v0  ;;  %6790 = vmatpush1.bf16.msra.mxu0 %v12082_v53  ;;  %v13999_v58 = vld [vmem:[#allocation34] ss:$8 sps:$4 sm:$0xff]  }
 0x937   :  { %6791 = vmatprep.subr.bf16.mxu0 %v12087_v4  ;;  %11370 = vmatpush3.bf16.msra.mxu1 %v12089_v10 }
 0x938   :  { %11371 = vmatprep.subr.bf16.mxu1 %v12090_v20  ;;  %v6733_v20 = vcombine.high %v6732_v59, %v6732_v59 }
 0x93a   :  { %6792 = vmatpush1.bf16.msra.mxu0 %v12085_v63 }
 0x93b   :  { %11722 = vmatprep.subr.bf16.mxu0 %v15099_v36  ;;  %11372 = vmatpush3.bf16.msra.mxu1 %v12091_v12 }
 0x93c   :  { %11373 = vmatprep.subr.bf16.mxu1 %v12092_v22 }
 0x93f   :  { %11374 = vmatpush3.bf16.msra.mxu1 %v12093_v43 }
 0x940   :  { %11375 = vmatprep.subr.bf16.mxu1 %v12094_v39 }
 0x943   :  { %11376 = vmatpush3.bf16.msra.mxu1 %v12095_v34 }
 0x944   :  { %11377 = vmatprep.subr.bf16.mxu1 %v12096_v32 }
 0x947   :  { %11378 = vmatpush3.bf16.msra.mxu1 %v12097_v38  ;;  %v12100_v38 = vld [vmem:[#allocation28 + $0x70] sm:$0xff]  }
 0x948   :  { %11379 = vmatprep.subr.bf16.mxu1 %v12098_v8  ;;  %v12101_v8 = vld [vmem:[#allocation28 + $0x30] sm:$0xff]  }
 0x94b   :  { %11380 = vmatpush3.bf16.msra.mxu1 %v12099_v30  ;;  %v12102_v30 = vld [vmem:[#allocation28 + $0x78] sm:$0xff]  }
 0x94c   :  { %11381 = vmatprep.subr.bf16.mxu1 %v12100_v38  ;;  %v12120_v38 = vld [vmem:[%s15149_s16 + $0x20] sm:$0xff]  }
 0x94f   :  { %11382 = vmatpush3.bf16.msra.mxu1 %v12101_v8 }
 0x950   :  { %11383 = vmatprep.subr.bf16.mxu1 %v12102_v30  ;;  %v12121_v30 = vld [vmem:[%s15149_s16 + $0x28] sm:$0xff]  }
 0x953   :  { %11384 = vmatpush3.bf16.msra.mxu1 %v12103_v15 }
 0x954   :  { %11742 = vmatprep.subr.bf16.mxu1 %v13989_v26 }
 0xa00   :  { %v11336_v54 = vpop.f32.mrb[36].mxu0  ;;  %v11358_v24 = vpop.f32.mrb[36].mxu1 }
 0xa01   :  { %v11337_v1 = vpop.f32.mrb[37].mxu0  ;;  %v11359_v28 = vpop.f32.mrb[37].mxu1 }
 0xa02   :  { %v11338_v25 = vadd.f32 %v11337_v1, %v11336_v54  ;;  %v11360_v46 = vadd.f32 %v11359_v28, %v11358_v24  ;;  %v11339_v33 = vpop.f32.mrb[38].mxu0  ;;  %v11361_v17 = vpop.f32.mrb[38].mxu1  ;;  %v6754_v24 = vld [vmem:[#allocation27] sm:$0x3] }
 0xa03   :  { %v11340_v62 = vpop.f32.mrb[39].mxu0  ;;  %v11362_v14 = vpop.f32.mrb[39].mxu1  ;;  %v6759_v28 = vrot.slane %v6754_v24, %v13570_v29  ;;  %v6763_v19 = vrot.slane %v6754_v24, %v13573_v31  ;;  %v12122_v24 = vld [vmem:[%s15149_s16 + $0x30] sm:$0xff]  }
 0xa04   :  { %v6509_v21 = vadd.f32 %v11338_v25, %v6469_v16 }
 0xa06   :  { %v6549_v51 = vadd.f32 %v11360_v46, %v6509_v21 }
 0xa08   :  { %v6561_v37 = vrot.slane %v6549_v51, %v13975_v35  ;;  %v6637_v45 = vpop.f32.mrb[40].mxu0  ;;  %v6701_v9 = vpop.f32.mrb[40].mxu1 }
 0xa09   :  { %v11714_v56 = vpop.f32.mrb[41].mxu0  ;;  %v11720_v40 = vpop.f32.mrb[41].mxu1  ;;  %v6650_v7 = vrot.slane %v6637_v45, %v13503_v60  ;;  %v6714_v47 = vrot.slane %v6701_v9, %v13503_v60 }
 0xa0a   :  { %v6562_v49 = vcombine.high %v6561_v37, %v6561_v37  ;;  %v6569_v13 = vrot.slane %v6561_v37, %v13975_v35  ;;  %v6640_v5 = vpop.f32.mrb[42].mxu0  ;;  %v6704_v41 = vpop.f32.mrb[42].mxu1 }
 0xa0b   :  { %v11715_v42 = vpop.f32.mrb[43].mxu0  ;;  %v11721_v57 = vpop.f32.mrb[43].mxu1  ;;  %v6651_v53 = vcombine.high %v6650_v7, %v6650_v7  ;;  %v6715_v44 = vcombine.high %v6714_v47, %v6714_v47  ;;  %v12112_v41 = vld [vmem:[#allocation40 + $0x4] ss:$8 sps:$4 sm:$0xff]  }
 0xa0c   :  { %v6576_v55 = vrot.slane %v6562_v49, %v13975_v35  ;;  %v6580_v16 = vrot.slane %v6569_v13, %v13570_v29  ;;  %v14002_v49 = vld [vmem:[#allocation34 + $0x14] ss:$8 sps:$4 sm:$0xff]   ;;  %v14005_v13 = vld [vmem:[#allocation34 + $0x10] ss:$8 sps:$4 sm:$0xff]   ;;  %v12110_v42 = vld [vmem:[#allocation40] ss:$8 sps:$4 sm:$0xff]  }
 0xa0e   :  { %v6584_v18 = vrot.slane %v6576_v55, %v13570_v29  ;;  %v6654_v4 = vadd.f32 %v6650_v7, %v6580_v16  ;;  %v12115_v16 = vld [vmem:[#allocation40 + $0x14] ss:$8 sps:$4 sm:$0xff]  }
 0xa10   :  { %v6655_v63 = vadd.f32 %v6651_v53, %v6584_v18  ;;  %v6718_v10 = vadd.f32 %v6714_v47, %v6654_v4  ;;  %v12113_v47 = vld [vmem:[#allocation40 + $0x10] ss:$8 sps:$4 sm:$0xff]  }
 0xa12   :  { %v6719_v12 = vadd.f32 %v6715_v44, %v6655_v63  ;;  %v6736_v22 = vadd.f32 %v6732_v59, %v6718_v10 }
 0xa14   :  { %v6737_v43 = vadd.f32 %v6733_v20, %v6719_v12 }
 0xa16   :  { %v6740_v39 = vcombine.low %v6736_v22, %v6737_v43  ;;  %v12116_v22 = vld [vmem:[%s15149_s16] sm:$0xff]   ;;  %v12117_v43 = vld [vmem:[%s15149_s16 + $0x8] sm:$0xff]  }
 0xa18   :  { %v6747_v34 = vrot.slane %v6740_v39, %v13503_v60  ;;  %v12118_v39 = vld [vmem:[%s15149_s16 + $0x10] sm:$0xff]  }
 0xa1a   :  { %v6749_v32 = vpack.c.bf16 %v6747_v34, %v6747_v34  ;;  %v12119_v34 = vld [vmem:[%s15149_s16 + $0x18] sm:$0xff]  }
 0xa1c   :  { %11074 = vmatmul.mubr.msk.bf16.vlgmr.msra.gmra.mrb[44].mxu0 %vm902_vm1, %v6749_v32  ;;  %v7143_v54 = vrot.slane %v6749_v32, %v13975_v35 }
 0xa1d   :  { %11738 = vmatprep.mubr.msk.bf16.mxu0 %vm12987_vm0, %v15099_v36  ;;  %11723 = vmatpush3.bf16.msra.mxu0 %v12116_v22  ;;  %vm7131_vm0 = vcmask 293888  }
 0xa1e   :  { %v13994_v1 = vrot.slane %v7143_v54, %v13975_v35  ;;  %v7144_v7 = vcombine.high %v7143_v54, %v7143_v54  ;;  %11724 = vmatprep.subr.bf16.mxu0 %v15099_v36 }
 0xa20   :  { %v7160_v25 = vunpack.i.h.s16 %v13994_v1  ;;  %v7158_v57 = vrot.slane %v7144_v7, %v13975_v35  ;;  %v11101_v32 = vpack.i.b16 %v13994_v1, %v13994_v1  ;;  %v12123_v1 = vld [vmem:[%s15149_s16 + $0x38] sm:$0xff]  }
 0xa21   :  { %11725 = vmatpush3.bf16.msra.mxu0 %v12117_v43 }
 0xa22   :  { %v7164_v21 = vpack.i.b16 %v7160_v25, %v7160_v25  ;;  %v11102_v59 = vpack.i.b16 %v7158_v57, %v7158_v57  ;;  %v7162_v63 = vunpack.i.h.s16 %v7158_v57  ;;  %11726 = vmatprep.subr.bf16.mxu0 %v15099_v36  ;;  %v7170_v8 = vrot.slane %v11101_v32, %v13570_v29 }
 0xa24   :  { %v7174_v56 = vrot.slane %v7164_v21, %v13570_v29  ;;  %v7178_v18 = vrot.slane %v11102_v59, %v13570_v29  ;;  %v7166_v44 = vpack.i.b16 %v7162_v63, %v7162_v63  ;;  %v7184_v15 = vpack.i.b16 %v7170_v8, %v7170_v8  ;;  %v14124_v21 = vld [vmem:[#allocation33 + $0x48] sm:$0xff] }
 0xa25   :  { %11727 = vmatpush3.bf16.msra.mxu0 %v12118_v39  ;;  %v14149_v39 = vld [vmem:[#allocation33 + $0x78] sm:$0xff]  ;;  %v12127_v8 = vld [vmem:[#allocation36 + $0x8] sm:$0xff]  }
 0xa26   :  { %v7191_v5 = vpack.i.b16 %v7174_v56, %v7174_v56  ;;  %v7198_v53 = vpack.i.b16 %v7178_v18, %v7178_v18  ;;  %v7182_v10 = vrot.slane %v7166_v44, %v13570_v29  ;;  %11728 = vmatprep.subr.bf16.mxu0 %v15099_v36  ;;  %v14068_v54 = vrot.slane %v7184_v15, %v13570_v29  ;;  %v14142_v44 = vld [vmem:[#allocation33 + $0x68] sm:$0xff]  ;;  %v12128_v15 = vld [vmem:[#allocation36 + $0x50] sm:$0xff]  }
 0xa28   :  { %v14012_v55 = vrot.slane %v7191_v5, %v13570_v29  ;;  %v14022_v4 = vrot.slane %v7198_v53, %v13570_v29  ;;  %v7205_v20 = vpack.i.b16 %v7182_v10, %v7182_v10 }
 0xa29   :  { %11729 = vmatpush3.bf16.msra.mxu0 %v12119_v34 }
 0xa2a   :  { %v14038_v12 = vrot.slane %v7205_v20, %v13570_v29  ;;  %11730 = vmatprep.subr.bf16.mxu0 %v15099_v36 }
 0xa2d   :  { %11731 = vmatpush3.bf16.msra.mxu0 %v12120_v38 }
 0xa2e   :  { %11732 = vmatprep.subr.bf16.mxu0 %v15099_v36 }
 0xa31   :  { %11733 = vmatpush3.bf16.msra.mxu0 %v12121_v30 }
 0xa32   :  { %11734 = vmatprep.subr.bf16.mxu0 %v15099_v36 }
 0xa35   :  { %11735 = vmatpush3.bf16.msra.mxu0 %v12122_v24 }
 0xa36   :  { %11736 = vmatprep.subr.bf16.mxu0 %v15099_v36 }
 0xa39   :  { %11737 = vmatpush3.bf16.msra.mxu0 %v12123_v1 }
 0xa3a   :  { %7263 = vmatprep.subr.bf16.mxu0 %v13989_v26 }
 0xaef   :  { %v6823_v46 = vpop.f32.mrb[44].mxu0 }
 0xaf0   :  { %v6824_v33 = vadd.f32 %v6823_v46, %v6759_v28  ;;  %v6825_v17 = vpop.f32.mrb[45].mxu0  ;;  %v11075_v28 = vld [vmem:[#allocation30] ss:$0 sm:$0xff] }
 0xaf1   :  { %v6826_v62 = vadd.f32 %v6825_v17, %v6763_v19  ;;  %v6827_v14 = vpop.f32.mrb[46].mxu0 }
 0xaf2   :  { %v6830_v51 = vmax.f32 %v6824_v33, 0.0  ;;  %v6828_v37 = vpop.f32.mrb[47].mxu0  ;;  %v14122_v14 = vld [vmem:[#allocation33 + $0x40] sm:$0xff] }
 0xaf3   :  { %v6831_v45 = vmax.f32 %v6826_v62, 0.0 }
 0xaf4   :  { %v6832_v40 = vpack.c.bf16 %v6830_v51, %v6830_v51 }
 0xaf5   :  { %v6833_v9 = vpack.c.bf16 %v6831_v45, %v6831_v45  ;;  %v14126_v45 = vld [vmem:[#allocation33 + $0x50] sm:$0xff] }
 0xaf7   :  { %7001 = vmatprep.mubr.bf16.mxu1 %v6833_v9 }
 0xaf8   :  { %7002 = vmatmul.mubr.bf16.vlgmr.msra.gmra.mrb[44].mxu1 %v6832_v40  ;;  %v14129_v40 = vld [vmem:[#allocation33 + $0x58] sm:$0xff] }
 0xaf9   :  { %11744 = vmatpush1.bf16.msra.mxu1 %v13999_v58  ;;  %7355 = vmatprep.mubr.bf16.mxu1 %v15100_v0 }
 0xafa   :  { %11743 = vmatprep.subr.bf16.mxu1 %v14002_v49 }
 0xafd   :  { %11745 = vmatpush1.bf16.msra.mxu1 %v14005_v13 }
 0xafe   :  { %8000 = vmatprep.subr.bf16.mxu1 %v12112_v41 }
 0xb00   :  { %11113 = vmatmul.mubr.msk.bf16.vlgmr.msra.gmra.mrb[48].mxu1 %vm902_vm1, %v14012_v55 }
 0xb01   :  { %7365 = vmatprep.mubr.bf16.mxu1 %v15100_v0  ;;  %8001 = vmatpush1.bf16.msra.mxu1 %v12110_v42 }
 0xb02   :  { %8002 = vmatprep.subr.bf16.mxu1 %v12115_v16  ;;  %v12124_v16 = vld [vmem:[#allocation36 + $0x40] sm:$0xff]  }
 0xb05   :  { %8003 = vmatpush1.bf16.msra.mxu1 %v12113_v47 }
 0xb08   :  { %11114 = vmatmul.mubr.msk.bf16.gmra.mrb[52].mxu1 %vm902_vm1, %v14012_v55 }
 0xb09   :  { %7375 = vmatprep.mubr.bf16.mxu1 %v15100_v0 }
 0xb10   :  { %11115 = vmatmul.mubr.msk.bf16.gmra.mrb[56].mxu1 %vm902_vm1, %v14022_v4 }
 0xb11   :  { %7385 = vmatprep.mubr.bf16.mxu1 %v15100_v0 }
 0xb18   :  { %11116 = vmatmul.mubr.msk.bf16.gmra.mrb[60].mxu1 %vm902_vm1, %v14022_v4 }
 0xb19   :  { %7395 = vmatprep.mubr.bf16.mxu1 %v15100_v0 }
 0xb20   :  { %11117 = vmatmul.mubr.msk.bf16.gmra.mrb[64].mxu1 %vm902_vm1, %v14022_v4 }
 0xb21   :  { %7405 = vmatprep.mubr.bf16.mxu1 %v15100_v0 }
 0xb28   :  { %11118 = vmatmul.mubr.msk.bf16.gmra.mrb[68].mxu1 %vm902_vm1, %v14022_v4 }
 0xb29   :  { %7415 = vmatprep.mubr.bf16.mxu1 %v15100_v0 }
 0xb30   :  { %11119 = vmatmul.mubr.msk.bf16.gmra.mrb[72].mxu1 %vm902_vm1, %v14038_v12 }
 0xb31   :  { %7425 = vmatprep.mubr.bf16.mxu1 %v15100_v0 }
 0xb38   :  { %11120 = vmatmul.mubr.msk.bf16.gmra.mrb[76].mxu1 %vm902_vm1, %v14038_v12 }
 0xb39   :  { %7435 = vmatprep.mubr.bf16.mxu1 %v15100_v0 }
 0xb40   :  { %11121 = vmatmul.mubr.msk.bf16.gmra.mrb[80].mxu1 %vm902_vm1, %v14038_v12 }
 0xb41   :  { %7445 = vmatprep.mubr.bf16.mxu1 %v15100_v0 }
 0xb48   :  { %11122 = vmatmul.mubr.msk.bf16.gmra.mrb[84].mxu1 %vm902_vm1, %v14038_v12 }
 0xb49   :  { %8032 = vmatprep.mubr.bf16.mxu1 %v15100_v0 }
 0xb50   :  { %11144 = vmatmul.mubr.msk.bf16.vlgmr.msra.gmra.mrb[88].mxu1 %vm902_vm1, %v14068_v54 }
 0xb51   :  { %8042 = vmatprep.mubr.bf16.mxu1 %v15100_v0 }
 0xb58   :  { %11145 = vmatmul.mubr.msk.bf16.gmra.mrb[92].mxu1 %vm902_vm1, %v14068_v54 }
 0xb59   :  { %8052 = vmatprep.mubr.bf16.mxu1 %v15100_v0 }
 0xb60   :  { %11146 = vmatmul.mubr.msk.bf16.gmra.mrb[96].mxu1 %vm902_vm1, %v14068_v54 }
 0xb61   :  { %8062 = vmatprep.mubr.bf16.mxu1 %v15100_v0 }
 0xb68   :  { %11147 = vmatmul.mubr.msk.bf16.gmra.mrb[100].mxu1 %vm902_vm1, %v14068_v54 }
 0xb69   :  { %8072 = vmatprep.mubr.bf16.mxu1 %v15100_v0 }
 0xb70   :  { %11148 = vmatmul.mubr.msk.bf16.gmra.mrb[104].mxu1 %vm902_vm1, %v14012_v55 }
 0xb71   :  { %8082 = vmatprep.mubr.bf16.mxu1 %v15100_v0 }
 0xb78   :  { %11149 = vmatmul.mubr.msk.bf16.gmra.mrb[108].mxu1 %vm902_vm1, %v14012_v55 }
 0xb79   :  { %8092 = vmatprep.mubr.bf16.mxu1 %v15100_v0 }
 0xb80   :  { %11150 = vmatmul.mubr.msk.bf16.gmra.mrb[112].mxu1 %vm902_vm1, %v14012_v55 }
 0xb81   :  { %8102 = vmatprep.mubr.bf16.mxu1 %v15100_v0 }
 0xb88   :  { %11151 = vmatmul.mubr.msk.bf16.gmra.mrb[116].mxu1 %vm902_vm1, %v14012_v55 }
 0xb89   :  { %8112 = vmatprep.mubr.bf16.mxu1 %v15100_v0 }
 0xb90   :  { %11152 = vmatmul.mubr.msk.bf16.gmra.mrb[120].mxu1 %vm902_vm1, %v14022_v4 }
 0xb91   :  { %8122 = vmatprep.mubr.bf16.mxu1 %v15100_v0 }
 0xb98   :  { %11153 = vmatmul.mubr.msk.bf16.gmra.mrb[124].mxu1 %vm902_vm1, %v14022_v4 }
 0xb99   :  { %8132 = vmatprep.mubr.bf16.mxu1 %v15100_v0 }
 0xba0   :  { %11154 = vmatmul.mubr.msk.bf16.gmra.mrb[128].mxu1 %vm902_vm1, %v14022_v4 }
 0xba1   :  { %8142 = vmatprep.mubr.bf16.mxu1 %v15100_v0 }
 0xba8   :  { %11155 = vmatmul.mubr.msk.bf16.gmra.mrb[132].mxu1 %vm902_vm1, %v14022_v4  ;;  %v14137_v4 = vld [vmem:[#allocation33 + $0x60] sm:$0xff] }
 0xba9   :  { %8152 = vmatprep.mubr.bf16.mxu1 %v15100_v0 }
 0xbb0   :  { %11156 = vmatmul.mubr.msk.bf16.gmra.mrb[136].mxu1 %vm902_vm1, %v14038_v12 }
 0xbb1   :  { %8162 = vmatprep.mubr.bf16.mxu1 %v15100_v0 }
 0xbb8   :  { %11157 = vmatmul.mubr.msk.bf16.gmra.mrb[140].mxu1 %vm902_vm1, %v14038_v12 }
 0xbb9   :  { %8172 = vmatprep.mubr.bf16.mxu1 %v15100_v0 }
 0xbc0   :  { %11158 = vmatmul.mubr.msk.bf16.gmra.mrb[144].mxu1 %vm902_vm1, %v14038_v12 }
 0xbc1   :  { %8182 = vmatprep.mubr.bf16.mxu1 %v15100_v0 }
 0xbc8   :  { %11159 = vmatmul.mubr.msk.bf16.gmra.mrb[148].mxu1 %vm902_vm1, %v14038_v12  ;;  %v14146_v12 = vld [vmem:[#allocation33 + $0x70] sm:$0xff] }
 0xbc9   :  { %8305 = vmatprep.mubr.bf16.mxu1 %v15100_v0 }
 0xbcb   :  { %v11385_v26 = vpop.f32.mrb[44].mxu1 }
 0xbcc   :  { %v11386_v19 = vpop.f32.mrb[45].mxu1 }
 0xbcd   :  { %v11387_v25 = vadd.f32 %v11386_v19, %v11385_v26  ;;  %v11388_v46 = vpop.f32.mrb[46].mxu1  ;;  %v14157_v19 = vld [vmem:[#allocation33] sm:$0xff] }
 0xbce   :  { %v11389_v33 = vpop.f32.mrb[47].mxu1  ;;  %v14161_v46 = vld [vmem:[#allocation33 + $0x8] sm:$0xff] }
 0xbcf   :  { %v7004_v17 = vadd.f32 %v11387_v25, %v11075_v28  ;;  %v12129_v33 = vld [vmem:[#allocation36 + $0x10] sm:$0xff]  }
 0xbd1   :  { %v7009_v62 = vmax.f32 %v7004_v17, 0.0 }
 0xbd3   :  { %v7010_v51 = vpack.c.bf16 %v7009_v62, %v7009_v62  ;;  %v7357_v37 = vpop.f32.mrb[48].mxu1 }
 0xbd4   :  { %v7480_v9 = vadd.f32 %v7357_v37, %v14122_v14  ;;  %v7359_v56 = vpop.f32.mrb[49].mxu1  ;;  %v12130_v37 = vld [vmem:[#allocation36 + $0x58] sm:$0xff]  }
 0xbd5   :  { %v7481_v7 = vadd.f32 %v7359_v56, %v14124_v21  ;;  %11739 = vmatmul.mubr.bf16.vlgmr.msra.gmra.mrb[48].mxu0 %v7010_v51  ;;  %v7361_v5 = vpop.f32.mrb[50].mxu1  ;;  %v14165_v51 = vld [vmem:[#allocation33 + $0x10] sm:$0xff] }
 0xbd6   :  { %v7482_v41 = vadd.f32 %v7361_v5, %v14126_v45  ;;  %7264 = vmatpush1.bf16.msra.mxu0 %v13999_v58  ;;  %v7363_v42 = vpop.f32.mrb[51].mxu1  ;;  %7295 = vmatprep.mubr.bf16.mxu0 %v15100_v0  ;;  %v7544_v47 = vmax.f32 %v7480_v9, 0.0  ;;  %v12125_v58 = vld [vmem:[#allocation36] sm:$0xff]  }
 0xbd7   :  { %v7483_v57 = vadd.f32 %v7363_v42, %v14129_v40  ;;  %7265 = vmatprep.subr.bf16.mxu0 %v14002_v49  ;;  %v7545_v18 = vmax.f32 %v7481_v7, 0.0  ;;  %v12126_v49 = vld [vmem:[#allocation36 + $0x48] sm:$0xff]   ;;  %v14168_v7 = vld [vmem:[#allocation33 + $0x18] sm:$0xff] }
 0xbd8   :  { %v7546_v59 = vmax.f32 %v7482_v41, 0.0 }
 0xbd9   :  { %v7547_v53 = vmax.f32 %v7483_v57, 0.0 }
 0xbda   :  { %v14139_v63 = vpack.c.bf16 %v7546_v59, %v7544_v47  ;;  %7266 = vmatpush1.bf16.msra.mxu0 %v14005_v13 }
 0xbdb   :  { %v14144_v10 = vpack.c.bf16 %v7547_v53, %v7545_v18  ;;  %v7367_v20 = vpop.f32.mrb[52].mxu1  ;;  %11400 = vmatprep.subr.bf16.mxu0 %v12124_v16 }
 0xbdc   :  { %v7484_v22 = vadd.f32 %v7367_v20, %v14137_v4  ;;  %v7369_v43 = vpop.f32.mrb[53].mxu1 }
 0xbdd   :  { %v7485_v34 = vadd.f32 %v7369_v43, %v14142_v44  ;;  %11107 = vmatmul.mubr.msk.bf16.vlgmr.msra.gmra.mrb[52].mxu0 %vm902_vm1, %v14068_v54  ;;  %v7371_v13 = vpop.f32.mrb[54].mxu1 }
 0xbde   :  { %v7486_v32 = vadd.f32 %v7371_v13, %v14146_v12  ;;  %v7373_v38 = vpop.f32.mrb[55].mxu1  ;;  %7305 = vmatprep.mubr.bf16.mxu0 %v15100_v0  ;;  %11401 = vmatpush3.bf16.msra.mxu0 %v12125_v58  ;;  %v7548_v24 = vmax.f32 %v7484_v22, 0.0  ;;  %v14176_v58 = vld [vmem:[#allocation33 + $0x20] sm:$0xff] }
 0xbdf   :  { %v7487_v30 = vadd.f32 %v7373_v38, %v14149_v39  ;;  %11402 = vmatprep.subr.bf16.mxu0 %v12126_v49  ;;  %v7549_v26 = vmax.f32 %v7485_v34, 0.0  ;;  %v14180_v49 = vld [vmem:[#allocation33 + $0x28] sm:$0xff]  ;;  %v14184_v34 = vld [vmem:[#allocation33 + $0x30] sm:$0xff]  ;;  %v14187_v38 = vld [vmem:[#allocation33 + $0x38] sm:$0xff] }
 0xbe0   :  { %v7550_v1 = vmax.f32 %v7486_v32, 0.0 }
 0xbe1   :  { %v7551_v28 = vmax.f32 %v7487_v30, 0.0 }
 0xbe2   :  { %v14159_v25 = vpack.c.bf16 %v7550_v1, %v7548_v24  ;;  %11403 = vmatpush3.bf16.msra.mxu0 %v12127_v8 }
 0xbe3   :  { %v14163_v17 = vpack.c.bf16 %v7551_v28, %v7549_v26  ;;  %v7377_v62 = vpop.f32.mrb[56].mxu1  ;;  %11404 = vmatprep.subr.bf16.mxu0 %v12128_v15 }
 0xbe4   :  { %v7488_v9 = vadd.f32 %v7377_v62, %v14157_v19  ;;  %v7379_v56 = vpop.f32.mrb[57].mxu1 }
 0xbe5   :  { %v7489_v5 = vadd.f32 %v7379_v56, %v14161_v46  ;;  %11108 = vmatmul.mubr.msk.bf16.gmra.mrb[56].mxu0 %vm902_vm1, %v14068_v54  ;;  %v7381_v41 = vpop.f32.mrb[58].mxu1 }
 0xbe6   :  { %v7490_v42 = vadd.f32 %v7381_v41, %v14165_v51  ;;  %v7383_v57 = vpop.f32.mrb[59].mxu1  ;;  %7315 = vmatprep.mubr.bf16.mxu0 %v15100_v0  ;;  %11405 = vmatpush3.bf16.msra.mxu0 %v12129_v33  ;;  %v7552_v47 = vmax.f32 %v7488_v9, 0.0 }
 0xbe7   :  { %v7491_v16 = vadd.f32 %v7383_v57, %v14168_v7  ;;  %11406 = vmatprep.subr.bf16.mxu0 %v12130_v37  ;;  %v7553_v18 = vmax.f32 %v7489_v5, 0.0 }
 0xbe8   :  { %v7554_v59 = vmax.f32 %v7490_v42, 0.0 }
 0xbe9   :  { %v7555_v53 = vmax.f32 %v7491_v16, 0.0 }
 0xbea   :  { %v14178_v20 = vpack.c.bf16 %v7554_v59, %v7552_v47 }
 0xbeb   :  { %v14182_v22 = vpack.c.bf16 %v7555_v53, %v7553_v18  ;;  %v7387_v43 = vpop.f32.mrb[60].mxu1 }
 0xbec   :  { %v7492_v13 = vadd.f32 %v7387_v43, %v14176_v58  ;;  %v7389_v32 = vpop.f32.mrb[61].mxu1 }
 0xbed   :  { %v7493_v8 = vadd.f32 %v7389_v32, %v14180_v49  ;;  %11109 = vmatmul.mubr.msk.bf16.gmra.mrb[60].mxu0 %vm902_vm1, %v14068_v54  ;;  %v7391_v30 = vpop.f32.mrb[62].mxu1 }
 0xbee   :  { %v7494_v15 = vadd.f32 %v7391_v30, %v14184_v34  ;;  %v7393_v24 = vpop.f32.mrb[63].mxu1  ;;  %7325 = vmatprep.mubr.bf16.mxu0 %v15100_v0  ;;  %v7556_v26 = vmax.f32 %v7492_v13, 0.0 }
 0xbef   :  { %v7495_v1 = vadd.f32 %v7393_v24, %v14187_v38  ;;  %v7557_v33 = vmax.f32 %v7493_v8, 0.0 }
 0xbf0   :  { %v7558_v28 = vmax.f32 %v7494_v15, 0.0 }
 0xbf1   :  { %v7559_v62 = vmax.f32 %v7495_v1, 0.0 }
 0xbf2   :  { %v14195_v37 = vpack.c.bf16 %v7558_v28, %v7556_v26 }
 0xbf3   :  { %v14197_v9 = vpack.c.bf16 %v7559_v62, %v7557_v33  ;;  %v7397_v56 = vpop.f32.mrb[64].mxu1 }
 0xbf4   :  { %v7496_v5 = vadd.f32 %v7397_v56, %v14122_v14  ;;  %v7399_v41 = vpop.f32.mrb[65].mxu1 }
 0xbf5   :  { %v7497_v42 = vadd.f32 %v7399_v41, %v14124_v21  ;;  %11110 = vmatmul.mubr.msk.bf16.gmra.mrb[64].mxu0 %vm902_vm1, %v14068_v54  ;;  %v7401_v57 = vpop.f32.mrb[66].mxu1 }
 0xbf6   :  { %v7498_v16 = vadd.f32 %v7401_v57, %v14126_v45  ;;  %v7403_v47 = vpop.f32.mrb[67].mxu1  ;;  %7335 = vmatprep.mubr.bf16.mxu0 %v15100_v0  ;;  %v7560_v18 = vmax.f32 %v7496_v5, 0.0 }
 0xbf7   :  { %v7499_v59 = vadd.f32 %v7403_v47, %v14129_v40  ;;  %v7561_v43 = vmax.f32 %v7497_v42, 0.0 }
 0xbf8   :  { %v7562_v53 = vmax.f32 %v7498_v16, 0.0 }
 0xbf9   :  { %v7563_v13 = vmax.f32 %v7499_v59, 0.0 }
 0xbfa   :  { %v14206_v32 = vpack.c.bf16 %v7562_v53, %v7560_v18 }
 0xbfb   :  { %v14208_v8 = vpack.c.bf16 %v7563_v13, %v7561_v43  ;;  %v7407_v30 = vpop.f32.mrb[68].mxu1 }
 0xbfc   :  { %v7500_v15 = vadd.f32 %v7407_v30, %v14137_v4  ;;  %v7409_v54 = vpop.f32.mrb[69].mxu1 }
 0xbfd   :  { %v7501_v24 = vadd.f32 %v7409_v54, %v14142_v44  ;;  %11111 = vmatmul.mubr.msk.bf16.gmra.mrb[68].mxu0 %vm902_vm1, %v14012_v55  ;;  %v7411_v1 = vpop.f32.mrb[70].mxu1 }
 0xbfe   :  { %v7502_v26 = vadd.f32 %v7411_v1, %v14146_v12  ;;  %v7413_v28 = vpop.f32.mrb[71].mxu1  ;;  %7345 = vmatprep.mubr.bf16.mxu0 %v15100_v0  ;;  %v7564_v62 = vmax.f32 %v7500_v15, 0.0 }
 0xbff   :  { %v7503_v33 = vadd.f32 %v7413_v28, %v14149_v39  ;;  %v7565_v5 = vmax.f32 %v7501_v24, 0.0 }
 0xc00   :  { %v7566_v56 = vmax.f32 %v7502_v26, 0.0 }
 0xc01   :  { %v7567_v41 = vmax.f32 %v7503_v33, 0.0 }
 0xc02   :  { %v14217_v42 = vpack.c.bf16 %v7566_v56, %v7564_v62 }
 0xc03   :  { %v14219_v57 = vpack.c.bf16 %v7567_v41, %v7565_v5  ;;  %v7417_v16 = vpop.f32.mrb[72].mxu1 }
 0xc04   :  { %v7504_v47 = vadd.f32 %v7417_v16, %v14157_v19  ;;  %v7419_v59 = vpop.f32.mrb[73].mxu1 }
 0xc05   :  { %v7505_v18 = vadd.f32 %v7419_v59, %v14161_v46  ;;  %11112 = vmatmul.mubr.msk.bf16.gmra.mrb[72].mxu0 %vm902_vm1, %v14012_v55  ;;  %v7421_v53 = vpop.f32.mrb[74].mxu1 }
 0xc06   :  { %v7506_v43 = vadd.f32 %v7421_v53, %v14165_v51  ;;  %v7423_v13 = vpop.f32.mrb[75].mxu1  ;;  %v7568_v15 = vmax.f32 %v7504_v47, 0.0 }
 0xc07   :  { %v7507_v30 = vadd.f32 %v7423_v13, %v14168_v7  ;;  %v7569_v24 = vmax.f32 %v7505_v18, 0.0 }
 0xc08   :  { %v7570_v54 = vmax.f32 %v7506_v43, 0.0 }
 0xc09   :  { %v7571_v1 = vmax.f32 %v7507_v30, 0.0 }
 0xc0a   :  { %v14227_v26 = vpack.c.bf16 %v7570_v54, %v7568_v15 }
 0xc0b   :  { %v14229_v28 = vpack.c.bf16 %v7571_v1, %v7569_v24  ;;  %v7427_v33 = vpop.f32.mrb[76].mxu1 }
 0xc0c   :  { %v7508_v62 = vadd.f32 %v7427_v33, %v14176_v58  ;;  %v7429_v56 = vpop.f32.mrb[77].mxu1 }
 0xc0d   :  { %v7509_v55 = vadd.f32 %v7429_v56, %v14180_v49  ;;  %v7431_v5 = vpop.f32.mrb[78].mxu1 }
 0xc0e   :  { %v7510_v41 = vadd.f32 %v7431_v5, %v14184_v34  ;;  %v7433_v16 = vpop.f32.mrb[79].mxu1  ;;  %v7572_v47 = vmax.f32 %v7508_v62, 0.0 }
 0xc0f   :  { %v7511_v59 = vadd.f32 %v7433_v16, %v14187_v38  ;;  %v7573_v18 = vmax.f32 %v7509_v55, 0.0 }
 0xc10   :  { %v7574_v53 = vmax.f32 %v7510_v41, 0.0 }
 0xc11   :  { %v7575_v43 = vmax.f32 %v7511_v59, 0.0 }
 0xc12   :  { %v14235_v13 = vpack.c.bf16 %v7574_v53, %v7572_v47 }
 0xc13   :  { %v14237_v30 = vpack.c.bf16 %v7575_v43, %v7573_v18  ;;  %v7437_v15 = vpop.f32.mrb[80].mxu1 }
 0xc14   :  { %v7512_v54 = vadd.f32 %v7437_v15, %v14122_v14  ;;  %v7439_v24 = vpop.f32.mrb[81].mxu1 }
 0xc15   :  { %v7513_v1 = vadd.f32 %v7439_v24, %v14124_v21  ;;  %v7441_v33 = vpop.f32.mrb[82].mxu1 }
 0xc16   :  { %v7514_v56 = vadd.f32 %v7441_v33, %v14126_v45  ;;  %v7443_v5 = vpop.f32.mrb[83].mxu1  ;;  %v7576_v62 = vmax.f32 %v7512_v54, 0.0 }
 0xc17   :  { %v7515_v16 = vadd.f32 %v7443_v5, %v14129_v40  ;;  %v7577_v55 = vmax.f32 %v7513_v1, 0.0 }
 0xc18   :  { %v7578_v41 = vmax.f32 %v7514_v56, 0.0 }
 0xc19   :  { %v7579_v59 = vmax.f32 %v7515_v16, 0.0 }
 0xc1a   :  { %v14243_v47 = vpack.c.bf16 %v7578_v41, %v7576_v62 }
 0xc1b   :  { %v14245_v53 = vpack.c.bf16 %v7579_v59, %v7577_v55  ;;  %v7447_v18 = vpop.f32.mrb[84].mxu1  ;;  %v12131_v55 = vld [vmem:[#allocation36 + $0x18] sm:$0xff]   ;;  %v12132_v59 = vld [vmem:[#allocation36 + $0x60] sm:$0xff]  }
 0xc1c   :  { %v7516_v43 = vadd.f32 %v7447_v18, %v14137_v4  ;;  %v7449_v15 = vpop.f32.mrb[85].mxu1  ;;  %11407 = vmatpush3.bf16.msra.mxu0 %v12131_v55  ;;  %v12133_v18 = vld [vmem:[#allocation36 + $0x20] sm:$0xff]  }
 0xc1d   :  { %v7517_v24 = vadd.f32 %v7449_v15, %v14142_v44  ;;  %v7451_v52 = vpop.f32.mrb[86].mxu1  ;;  %11408 = vmatprep.subr.bf16.mxu0 %v12132_v59  ;;  %v12134_v15 = vld [vmem:[#allocation36 + $0x68] sm:$0xff]  }
 0xc1e   :  { %v7518_v33 = vadd.f32 %v7451_v52, %v14146_v12  ;;  %v7453_v50 = vpop.f32.mrb[87].mxu1  ;;  %v7580_v54 = vmax.f32 %v7516_v43, 0.0  ;;  %v12135_v52 = vld [vmem:[#allocation36 + $0x28] sm:$0xff]   ;;  %v12138_v43 = vld [vmem:[#allocation36 + $0x78] sm:$0xff]  }
 0xc1f   :  { %v7519_v5 = vadd.f32 %v7453_v50, %v14149_v39  ;;  %v7581_v1 = vmax.f32 %v7517_v24, 0.0  ;;  %v12137_v50 = vld [vmem:[#allocation36 + $0x30] sm:$0xff]   ;;  %v12139_v24 = vld [vmem:[#allocation36 + $0x38] sm:$0xff]  }
 0xc20   :  { %v7582_v56 = vmax.f32 %v7518_v33, 0.0  ;;  %11409 = vmatpush3.bf16.msra.mxu0 %v12133_v18  ;;  %v11092_v33 = vld [vmem:[#allocation31] ss:$0 sm:$0xff] }
 0xc21   :  { %v7583_v16 = vmax.f32 %v7519_v5, 0.0  ;;  %11410 = vmatprep.subr.bf16.mxu0 %v12134_v15 }
 0xc22   :  { %v14251_v62 = vpack.c.bf16 %v7582_v56, %v7580_v54 }
 0xc23   :  { %v14253_v41 = vpack.c.bf16 %v7583_v16, %v7581_v1 }
 0xc24   :  { %11411 = vmatpush3.bf16.msra.mxu0 %v12135_v52 }
 0xc25   :  { %11412 = vmatprep.subr.bf16.mxu0 %v12136_v23 }
 0xc28   :  { %11413 = vmatpush3.bf16.msra.mxu0 %v12137_v50 }
 0xc29   :  { %11414 = vmatprep.subr.bf16.mxu0 %v12138_v43  ;;  %v12140_v43 = vld [vmem:[#allocation39] ss:$8 sps:$4 sm:$0xff]  }
 0xc2c   :  { %11415 = vmatpush3.bf16.msra.mxu0 %v12139_v24  ;;  %v12142_v24 = vld [vmem:[#allocation39 + $0x4] ss:$8 sps:$4 sm:$0xff]  }
 0xc2d   :  { %8273 = vmatprep.subr.bf16.mxu1 %v12142_v24 }
 0xc2e   :  { %8274 = vmatpush1.bf16.msra.mxu1 %v12140_v43 }
 0xca8   :  { %v7116_v5 = vpop.f32.mrb[48].mxu0 }
 0xca9   :  { %v7117_v54 = vadd.f32 %v11092_v33, %v7116_v5  ;;  %v11740_v56 = vpop.f32.mrb[49].mxu0  ;;  %v12145_v33 = vld [vmem:[#allocation39 + $0x14] ss:$8 sps:$4 sm:$0xff]  }
 0xcaa   :  { %v7119_v1 = vpop.f32.mrb[50].mxu0  ;;  %8275 = vmatprep.subr.bf16.mxu1 %v12145_v33 }
 0xcab   :  { %7127 = vrot.lane.b32.xlu0 %v7117_v54, %s13000_s22  ;;  %v11741_v16 = vpop.f32.mrb[51].mxu0 }
 0xcac   :  { %v12143_v16 = vld [vmem:[#allocation39 + $0x10] ss:$8 sps:$4 sm:$0xff]  }
 0xcad   :  { %8276 = vmatpush1.bf16.msra.mxu1 %v12143_v16 }
 0xcae   :  { %8277 = vmatprep.subr.bf16.mxu1 %v12148_v2 }
 0xcb0   :  { %v7297_v55 = vpop.f32.mrb[52].mxu0 }
 0xcb1   :  { %v7456_v59 = vadd.f32 %v7297_v55, %v14157_v19  ;;  %v7299_v18 = vpop.f32.mrb[53].mxu0 }
 0xcb2   :  { %v7457_v15 = vadd.f32 %v7299_v18, %v14161_v46  ;;  %v7301_v52 = vpop.f32.mrb[54].mxu0 }
 0xcb3   :  { %v7458_v23 = vadd.f32 %v7301_v52, %v14165_v51  ;;  %v7303_v50 = vpop.f32.mrb[55].mxu0  ;;  %v7520_v5 = vmax.f32 %v7456_v59, 0.0  ;;  %v12146_v59 = vld [vmem:[#allocation39 + $0x20] ss:$8 sps:$4 sm:$0xff]  }
 0xcb4   :  { %v7459_v6 = vadd.f32 %v7303_v50, %v14168_v7  ;;  %v7521_v54 = vmax.f32 %v7457_v15, 0.0  ;;  %8278 = vmatpush1.bf16.msra.mxu1 %v12146_v59 }
 0xcb5   :  { %v7522_v56 = vmax.f32 %v7458_v23, 0.0 }
 0xcb6   :  { %v7523_v1 = vmax.f32 %v7459_v6, 0.0  ;;  %v12151_v6 = vld [vmem:[#allocation39 + $0x34] ss:$8 sps:$4 sm:$0xff]  }
 0xcb7   :  { %v7584_v55 = vpack.c.bf16 %v7522_v56, %v7520_v5  ;;  %8279 = vmatprep.subr.bf16.mxu1 %v12151_v6 }
 0xcb8   :  { %v7585_v18 = vpack.c.bf16 %v7523_v1, %v7521_v54  ;;  %v7307_v11 = vpop.f32.mrb[56].mxu0 }
 0xcb9   :  { %v7460_v52 = vadd.f32 %v7307_v11, %v14176_v58  ;;  %v7309_v36 = vpop.f32.mrb[57].mxu0  ;;  %v12149_v11 = vld [vmem:[#allocation39 + $0x30] ss:$8 sps:$4 sm:$0xff]  }
 0xcba   :  { %v7461_v0 = vadd.f32 %v7309_v36, %v14180_v49  ;;  %v7311_v61 = vpop.f32.mrb[58].mxu0  ;;  %7783 = vmatprep.mubr.bf16.mxu0 %v7585_v18  ;;  %v12154_v36 = vld [vmem:[#allocation39 + $0x44] ss:$8 sps:$4 sm:$0xff]   ;;  %8280 = vmatpush1.bf16.msra.mxu1 %v12149_v11  ;;  %v12152_v18 = vld [vmem:[#allocation39 + $0x40] ss:$8 sps:$4 sm:$0xff]  }
 0xcbb   :  { %v7462_v23 = vadd.f32 %v7311_v61, %v14184_v34  ;;  %v7313_v15 = vpop.f32.mrb[59].mxu0  ;;  %7784 = vmatmul.mubr.bf16.vlgmr.msra.gmra.mrb[76].mxu0 %v7584_v55  ;;  %v7524_v43 = vmax.f32 %v7460_v52, 0.0  ;;  %8281 = vmatprep.subr.bf16.mxu1 %v12154_v36 }
 0xcbc   :  { %v7463_v50 = vadd.f32 %v7313_v15, %v14187_v38  ;;  %v7525_v33 = vmax.f32 %v7461_v0, 0.0 }
 0xcbd   :  { %v7526_v24 = vmax.f32 %v7462_v23, 0.0 }
 0xcbe   :  { %v7527_v5 = vmax.f32 %v7463_v50, 0.0  ;;  %8282 = vmatpush1.bf16.msra.mxu1 %v12152_v18 }
 0xcbf   :  { %v7586_v56 = vpack.c.bf16 %v7526_v24, %v7524_v43 }
 0xcc0   :  { %v7587_v54 = vpack.c.bf16 %v7527_v5, %v7525_v33  ;;  %v7317_v1 = vpop.f32.mrb[60].mxu0 }
 0xcc1   :  { %v7464_v16 = vadd.f32 %v7317_v1, %v14122_v14  ;;  %v7319_v61 = vpop.f32.mrb[61].mxu0 }
 0xcc2   :  { %v7465_v55 = vadd.f32 %v7319_v61, %v14124_v21  ;;  %v7321_v2 = vpop.f32.mrb[62].mxu0  ;;  %7791 = vmatprep.mubr.bf16.mxu0 %v7587_v54 }
 0xcc3   :  { %v7466_v52 = vadd.f32 %v7321_v2, %v14126_v45  ;;  %v7323_v0 = vpop.f32.mrb[63].mxu0  ;;  %7792 = vmatmul.mubr.bf16.gmra.mrb[80].mxu0 %v7586_v56  ;;  %v7528_v23 = vmax.f32 %v7464_v16, 0.0 }
 0xcc4   :  { %v7467_v59 = vadd.f32 %v7323_v0, %v14129_v40  ;;  %v7529_v6 = vmax.f32 %v7465_v55, 0.0 }
 0xcc5   :  { %v7530_v15 = vmax.f32 %v7466_v52, 0.0 }
 0xcc6   :  { %v7531_v50 = vmax.f32 %v7467_v59, 0.0 }
 0xcc7   :  { %v7588_v14 = vpack.c.bf16 %v7530_v15, %v7528_v23 }
 0xcc8   :  { %v7589_v43 = vpack.c.bf16 %v7531_v50, %v7529_v6  ;;  %v7327_v24 = vpop.f32.mrb[64].mxu0 }
 0xcc9   :  { %v7468_v21 = vadd.f32 %v7327_v24, %v14137_v4  ;;  %v7329_v33 = vpop.f32.mrb[65].mxu0 }
 0xcca   :  { %v7469_v5 = vadd.f32 %v7329_v33, %v14142_v44  ;;  %v7331_v11 = vpop.f32.mrb[66].mxu0  ;;  %7799 = vmatprep.mubr.bf16.mxu0 %v7589_v43 }
 0xccb   :  { %v7470_v45 = vadd.f32 %v7331_v11, %v14146_v12  ;;  %v7333_v56 = vpop.f32.mrb[67].mxu0  ;;  %7800 = vmatmul.mubr.bf16.gmra.mrb[84].mxu0 %v7588_v14  ;;  %v7532_v36 = vmax.f32 %v7468_v21, 0.0 }
 0xccc   :  { %v7471_v40 = vadd.f32 %v7333_v56, %v14149_v39  ;;  %v7533_v1 = vmax.f32 %v7469_v5, 0.0 }
 0xccd   :  { %v7534_v54 = vmax.f32 %v7470_v45, 0.0 }
 0xcce   :  { %v7535_v16 = vmax.f32 %v7471_v40, 0.0 }
 0xccf   :  { %v7590_v61 = vpack.c.bf16 %v7534_v54, %v7532_v36  ;;  %v12166_v54 = vld [vmem:[#allocation43 + $0x48] sm:$0xff]  }
 0xcd0   :  { %v7591_v55 = vpack.c.bf16 %v7535_v16, %v7533_v1  ;;  %v7337_v2 = vpop.f32.mrb[68].mxu0  ;;  %v12168_v16 = vld [vmem:[#allocation43 + $0x50] sm:$0xff]  }
 0xcd1   :  { %v7472_v4 = vadd.f32 %v7337_v2, %v14157_v19  ;;  %v7339_v18 = vpop.f32.mrb[69].mxu0 }
 0xcd2   :  { %v7473_v44 = vadd.f32 %v7339_v18, %v14161_v46  ;;  %v7341_v52 = vpop.f32.mrb[70].mxu0  ;;  %7807 = vmatprep.mubr.bf16.mxu0 %v7591_v55 }
 0xcd3   :  { %v7474_v12 = vadd.f32 %v7341_v52, %v14165_v51  ;;  %v7343_v0 = vpop.f32.mrb[71].mxu0  ;;  %7808 = vmatmul.mubr.bf16.gmra.mrb[88].mxu0 %v7590_v61  ;;  %v7536_v59 = vmax.f32 %v7472_v4, 0.0 }
 0xcd4   :  { %v7475_v39 = vadd.f32 %v7343_v0, %v14168_v7  ;;  %v7537_v15 = vmax.f32 %v7473_v44, 0.0  ;;  %v12169_v44 = vld [vmem:[#allocation43 + $0x10] sm:$0xff]   ;;  %v12170_v0 = vld [vmem:[#allocation43 + $0x58] sm:$0xff]  }
 0xcd5   :  { %v7538_v23 = vmax.f32 %v7474_v12, 0.0 }
 0xcd6   :  { %v7539_v6 = vmax.f32 %v7475_v39, 0.0  ;;  %v15150_v39 = vmov 0  }
 0xcd7   :  { %v7592_v50 = vpack.c.bf16 %v7538_v23, %v7536_v59  ;;  %v12171_v23 = vld [vmem:[#allocation43 + $0x18] sm:$0xff]  }
 0xcd8   :  { %v7593_v14 = vpack.c.bf16 %v7539_v6, %v7537_v15  ;;  %v7347_v43 = vpop.f32.mrb[72].mxu0 }
 0xcd9   :  { %v7476_v19 = vadd.f32 %v7347_v43, %v14176_v58  ;;  %v7349_v24 = vpop.f32.mrb[73].mxu0  ;;  %v12163_v58 = vld [vmem:[#allocation39 + $0x74] ss:$8 sps:$4 sm:$0xff]  }
 0xcda   :  { %v7477_v46 = vadd.f32 %v7349_v24, %v14180_v49  ;;  %v7351_v21 = vpop.f32.mrb[74].mxu0  ;;  %7815 = vmatprep.mubr.bf16.mxu0 %v7593_v14  ;;  %v12161_v49 = vld [vmem:[#allocation39 + $0x70] ss:$8 sps:$4 sm:$0xff]   ;;  %v12172_v14 = vld [vmem:[#allocation43 + $0x60] sm:$0xff]  }
 0xcdb   :  { %v7478_v51 = vadd.f32 %v7351_v21, %v14184_v34  ;;  %v7353_v33 = vpop.f32.mrb[75].mxu0  ;;  %7816 = vmatmul.mubr.bf16.gmra.mrb[92].mxu0 %v7592_v50  ;;  %v7540_v5 = vmax.f32 %v7476_v19, 0.0 }
 0xcdc   :  { %v7479_v7 = vadd.f32 %v7353_v33, %v14187_v38  ;;  %v7541_v45 = vmax.f32 %v7477_v46, 0.0 }
 0xcdd   :  { %v7542_v11 = vmax.f32 %v7478_v51, 0.0  ;;  %v12173_v51 = vld [vmem:[#allocation43 + $0x20] sm:$0xff]  }
 0xcde   :  { %v7543_v56 = vmax.f32 %v7479_v7, 0.0 }
 0xcdf   :  { %v7594_v40 = vpack.c.bf16 %v7542_v11, %v7540_v5  ;;  %v12174_v5 = vld [vmem:[#allocation43 + $0x68] sm:$0xff]  }
 0xce0   :  { %v7595_v36 = vpack.c.bf16 %v7543_v56, %v7541_v45 }
 0xce2   :  { %7823 = vmatprep.mubr.bf16.mxu0 %v7595_v36 }
 0xce3   :  { %7824 = vmatmul.mubr.bf16.gmra.mrb[96].mxu0 %v7594_v40 }
 0xce4   :  { %7831 = vmatprep.mubr.bf16.mxu0 %v14144_v10  ;;  %v12155_v10 = vld [vmem:[#allocation39 + $0x50] ss:$8 sps:$4 sm:$0xff]  }
 0xceb   :  { %7832 = vmatmul.mubr.bf16.gmra.mrb[100].mxu0 %v14139_v63  ;;  %v12157_v63 = vld [vmem:[#allocation39 + $0x54] ss:$8 sps:$4 sm:$0xff]  }
 0xcec   :  { %7839 = vmatprep.mubr.bf16.mxu0 %v14163_v17  ;;  %8283 = vmatprep.subr.bf16.mxu1 %v12157_v63  ;;  %v12158_v17 = vld [vmem:[#allocation39 + $0x60] ss:$8 sps:$4 sm:$0xff]  }
 0xced   :  { %8284 = vmatpush1.bf16.msra.mxu1 %v12155_v10 }
 0xcf3   :  { %7840 = vmatmul.mubr.bf16.gmra.mrb[104].mxu0 %v14159_v25  ;;  %v12160_v25 = vld [vmem:[#allocation39 + $0x64] ss:$8 sps:$4 sm:$0xff]  }
 0xcf4   :  { %7847 = vmatprep.mubr.bf16.mxu0 %v14182_v22  ;;  %8285 = vmatprep.subr.bf16.mxu1 %v12160_v25 }
 0xcf5   :  { %8286 = vmatpush1.bf16.msra.mxu1 %v12158_v17 }
 0xcf6   :  { %8287 = vmatprep.subr.bf16.mxu1 %v12163_v58 }
 0xcf9   :  { %8288 = vmatpush1.bf16.msra.mxu1 %v12161_v49 }
 0xcfb   :  { %7848 = vmatmul.mubr.bf16.gmra.mrb[108].mxu0 %v14178_v20  ;;  %v7124_v20 = vpop.permute.xlu1 %7123 }
 0xcfc   :  { %7855 = vmatprep.mubr.bf16.mxu0 %v14197_v9  ;;  %v7130_v22 = vsel %vm902_vm1, %v13513_v48, %v7124_v20  ;;  %vm9118_vm1 = vcmask 1043456  }
 0xd03   :  { %7856 = vmatmul.mubr.bf16.gmra.mrb[112].mxu0 %v14195_v37 }
 0xd04   :  { %7863 = vmatprep.mubr.bf16.mxu0 %v14208_v8 }
 0xd0b   :  { %7864 = vmatmul.mubr.bf16.gmra.mrb[116].mxu0 %v14206_v32  ;;  %v14302_v32 = vld [vmem:[#allocation37] ss:$0 sm:$0xff] }
 0xd0c   :  { %7871 = vmatprep.mubr.bf16.mxu0 %v14219_v57 }
 0xd13   :  { %7872 = vmatmul.mubr.bf16.gmra.mrb[120].mxu0 %v14217_v42 }
 0xd14   :  { %7879 = vmatprep.mubr.bf16.mxu0 %v14229_v28 }
 0xd1b   :  { %7880 = vmatmul.mubr.bf16.gmra.mrb[124].mxu0 %v14227_v26 }
 0xd1c   :  { %7887 = vmatprep.mubr.bf16.mxu0 %v14237_v30  ;;  %v12164_v30 = vld [vmem:[#allocation43 + $0x40] sm:$0xff]  }
 0xd1d   :  { %v7128_v34 = vpop.permute.xlu0 %7127  ;;  %11512 = vmatprep.subr.bf16.mxu0 %v12164_v30 }
 0xd1e   :  { %v7132_v38 = vsel %vm7131_vm0, %v7130_v22, %v7128_v34 }
 0xd1f   :  { %v7134_v37 = vsel %vm7133_vm5, %v7132_v38, 0.0 }
 0xd20   :  { %7135 = vst [vmem:[%s13209_s25] sm:$0xf] %v7134_v37  ;;  %s15151_s25 = sld [smem:[#allocation67_spill]] }
 0xd23   :  { %7888 = vmatmul.mubr.bf16.gmra.mrb[128].mxu0 %v14235_v13  ;;  %v12165_v13 = vld [vmem:[#allocation43] sm:$0xff]  }
 0xd24   :  { %7895 = vmatprep.mubr.bf16.mxu0 %v14245_v53  ;;  %11513 = vmatpush3.bf16.msra.mxu0 %v12165_v13 }
 0xd25   :  { %11514 = vmatprep.subr.bf16.mxu0 %v12166_v54 }
 0xd2b   :  { %7896 = vmatmul.mubr.bf16.gmra.mrb[132].mxu0 %v14243_v47  ;;  %v12167_v47 = vld [vmem:[#allocation43 + $0x8] sm:$0xff]  }
 0xd2c   :  { %7903 = vmatprep.mubr.bf16.mxu0 %v14253_v41  ;;  %11515 = vmatpush3.bf16.msra.mxu0 %v12167_v47 }
 0xd2d   :  { %11516 = vmatprep.subr.bf16.mxu0 %v12168_v16 }
 0xd30   :  { %11517 = vmatpush3.bf16.msra.mxu0 %v12169_v44 }
 0xd31   :  { %11518 = vmatprep.subr.bf16.mxu0 %v12170_v0 }
 0xd33   :  { %7904 = vmatmul.mubr.bf16.gmra.mrb[136].mxu0 %v14251_v62 }
 0xd34   :  { %11519 = vmatpush3.bf16.msra.mxu0 %v12171_v23 }
 0xd35   :  { %11520 = vmatprep.subr.bf16.mxu0 %v12172_v14 }
 0xd38   :  { %11521 = vmatpush3.bf16.msra.mxu0 %v12173_v51 }
 0xd39   :  { %11522 = vmatprep.subr.bf16.mxu0 %v12174_v5 }
 0xd8e   :  { %v11416_v9 = vpop.f32.mrb[76].mxu0 }
 0xd8f   :  { %v11417_v8 = vpop.f32.mrb[77].mxu0 }
 0xd90   :  { %v11418_v48 = vadd.f32 %v11417_v8, %v11416_v9  ;;  %v11419_v42 = vpop.f32.mrb[78].mxu0 }
 0xd91   :  { %v11420_v57 = vpop.f32.mrb[79].mxu0 }
 0xd92   :  { %v7786_v26 = vadd.f32 %v11418_v48, %v14302_v32  ;;  %v11421_v28 = vadd.f32 %v11420_v57, %v11419_v42 }
 0xd94   :  { %v7789_v53 = vadd.f32 %v11421_v28, %v14302_v32  ;;  %v7912_v41 = vmax.f32 %v7786_v26, 0.0 }
 0xd96   :  { %v7913_v62 = vmax.f32 %v7789_v53, 0.0  ;;  %v11422_v1 = vpop.f32.mrb[80].mxu0 }
 0xd97   :  { %v11423_v61 = vpop.f32.mrb[81].mxu0 }
 0xd98   :  { %v7944_v55 = vpack.c.bf16 %v7913_v62, %v7912_v41  ;;  %v11424_v2 = vadd.f32 %v11423_v61, %v11422_v1  ;;  %v11425_v4 = vpop.f32.mrb[82].mxu0 }
 0xd99   :  { %v11426_v18 = vpop.f32.mrb[83].mxu0 }
 0xd9a   :  { %v7794_v52 = vadd.f32 %v11424_v2, %v14302_v32  ;;  %v11427_v12 = vadd.f32 %v11426_v18, %v11425_v4  ;;  %8306 = vmatmul.mubr.bf16.vlgmr.msra.gmra.mrb[88].mxu1 %v7944_v55 }
 0xd9b   :  { %8315 = vmatprep.mubr.bf16.mxu1 %v15150_v39 }
 0xd9c   :  { %v7797_v59 = vadd.f32 %v11427_v12, %v14302_v32  ;;  %v7914_v15 = vmax.f32 %v7794_v52, 0.0 }
 0xd9e   :  { %v7915_v6 = vmax.f32 %v7797_v59, 0.0  ;;  %v11428_v50 = vpop.f32.mrb[84].mxu0 }
 0xd9f   :  { %v11429_v43 = vpop.f32.mrb[85].mxu0 }
 0xda0   :  { %v11430_v19 = vadd.f32 %v11429_v43, %v11428_v50  ;;  %v11431_v24 = vpop.f32.mrb[86].mxu0  ;;  %v7945_v46 = vpack.c.bf16 %v7915_v6, %v7914_v15 }
 0xda1   :  { %v11432_v21 = vpop.f32.mrb[87].mxu0 }
 0xda2   :  { %v7802_v33 = vadd.f32 %v11430_v19, %v14302_v32  ;;  %v11433_v7 = vadd.f32 %v11432_v21, %v11431_v24  ;;  %8316 = vmatmul.mubr.bf16.gmra.mrb[92].mxu1 %v7945_v46 }
 0xda3   :  { %8325 = vmatprep.mubr.bf16.mxu1 %v15150_v39 }
 0xda4   :  { %v7805_v11 = vadd.f32 %v11433_v7, %v14302_v32  ;;  %v7916_v45 = vmax.f32 %v7802_v33, 0.0 }
 0xda6   :  { %v7917_v56 = vmax.f32 %v7805_v11, 0.0  ;;  %v11434_v40 = vpop.f32.mrb[88].mxu0 }
 0xda7   :  { %v11435_v36 = vpop.f32.mrb[89].mxu0 }
 0xda8   :  { %v11436_v10 = vadd.f32 %v11435_v36, %v11434_v40  ;;  %v11437_v63 = vpop.f32.mrb[90].mxu0  ;;  %v7946_v25 = vpack.c.bf16 %v7917_v56, %v7916_v45 }
 0xda9   :  { %v11438_v17 = vpop.f32.mrb[91].mxu0 }
 0xdaa   :  { %v7810_v58 = vadd.f32 %v11436_v10, %v14302_v32  ;;  %v11439_v20 = vadd.f32 %v11438_v17, %v11437_v63  ;;  %8326 = vmatmul.mubr.bf16.gmra.mrb[96].mxu1 %v7946_v25 }
 0xdab   :  { %8335 = vmatprep.mubr.bf16.mxu1 %v15150_v39 }
 0xdac   :  { %v7813_v49 = vadd.f32 %v11439_v20, %v14302_v32  ;;  %v7918_v22 = vmax.f32 %v7810_v58, 0.0 }
 0xdae   :  { %v7919_v34 = vmax.f32 %v7813_v49, 0.0  ;;  %v11440_v38 = vpop.f32.mrb[92].mxu0 }
 0xdaf   :  { %v11441_v37 = vpop.f32.mrb[93].mxu0 }
 0xdb0   :  { %v11442_v9 = vadd.f32 %v11441_v37, %v11440_v38  ;;  %v11443_v8 = vpop.f32.mrb[94].mxu0  ;;  %v7947_v48 = vpack.c.bf16 %v7919_v34, %v7918_v22 }
 0xdb1   :  { %v11444_v42 = vpop.f32.mrb[95].mxu0 }
 0xdb2   :  { %v7818_v57 = vadd.f32 %v11442_v9, %v14302_v32  ;;  %v11445_v26 = vadd.f32 %v11444_v42, %v11443_v8  ;;  %8336 = vmatmul.mubr.bf16.gmra.mrb[100].mxu1 %v7947_v48 }
 0xdb3   :  { %8345 = vmatprep.mubr.bf16.mxu1 %v15150_v39 }
 0xdb4   :  { %v7821_v28 = vadd.f32 %v11445_v26, %v14302_v32  ;;  %v7920_v30 = vmax.f32 %v7818_v57, 0.0 }
 0xdb6   :  { %v7921_v13 = vmax.f32 %v7821_v28, 0.0  ;;  %v11446_v54 = vpop.f32.mrb[96].mxu0 }
 0xdb7   :  { %v11447_v53 = vpop.f32.mrb[97].mxu0 }
 0xdb8   :  { %v11448_v47 = vadd.f32 %v11447_v53, %v11446_v54  ;;  %v11449_v41 = vpop.f32.mrb[98].mxu0  ;;  %v7948_v62 = vpack.c.bf16 %v7921_v13, %v7920_v30 }
 0xdb9   :  { %v11450_v1 = vpop.f32.mrb[99].mxu0 }
 0xdba   :  { %v7826_v16 = vadd.f32 %v11448_v47, %v14302_v32  ;;  %v11451_v61 = vadd.f32 %v11450_v1, %v11449_v41  ;;  %8346 = vmatmul.mubr.bf16.gmra.mrb[104].mxu1 %v7948_v62 }
 0xdbb   :  { %8355 = vmatprep.mubr.bf16.mxu1 %v15150_v39 }
 0xdbc   :  { %v7829_v55 = vadd.f32 %v11451_v61, %v14302_v32  ;;  %v7922_v2 = vmax.f32 %v7826_v16, 0.0 }
 0xdbe   :  { %v7923_v4 = vmax.f32 %v7829_v55, 0.0  ;;  %v11452_v18 = vpop.f32.mrb[100].mxu0 }
 0xdbf   :  { %v11453_v44 = vpop.f32.mrb[101].mxu0 }
 0xdc0   :  { %v11454_v52 = vadd.f32 %v11453_v44, %v11452_v18  ;;  %v11455_v12 = vpop.f32.mrb[102].mxu0  ;;  %v7949_v0 = vpack.c.bf16 %v7923_v4, %v7922_v2 }
 0xdc1   :  { %v11456_v59 = vpop.f32.mrb[103].mxu0 }
 0xdc2   :  { %v7834_v23 = vadd.f32 %v11454_v52, %v14302_v32  ;;  %v11457_v15 = vadd.f32 %v11456_v59, %v11455_v12  ;;  %8356 = vmatmul.mubr.bf16.gmra.mrb[108].mxu1 %v7949_v0 }
 0xdc3   :  { %8365 = vmatprep.mubr.bf16.mxu1 %v15150_v39 }
 0xdc4   :  { %v7837_v6 = vadd.f32 %v11457_v15, %v14302_v32  ;;  %v7924_v50 = vmax.f32 %v7834_v23, 0.0 }
 0xdc6   :  { %v7925_v14 = vmax.f32 %v7837_v6, 0.0  ;;  %v11458_v43 = vpop.f32.mrb[104].mxu0 }
 0xdc7   :  { %v11459_v19 = vpop.f32.mrb[105].mxu0 }
 0xdc8   :  { %v11460_v24 = vadd.f32 %v11459_v19, %v11458_v43  ;;  %v11461_v46 = vpop.f32.mrb[106].mxu0  ;;  %v7950_v21 = vpack.c.bf16 %v7925_v14, %v7924_v50 }
 0xdc9   :  { %v11462_v51 = vpop.f32.mrb[107].mxu0 }
 0xdca   :  { %v7842_v33 = vadd.f32 %v11460_v24, %v14302_v32  ;;  %v11463_v7 = vadd.f32 %v11462_v51, %v11461_v46  ;;  %8366 = vmatmul.mubr.bf16.gmra.mrb[112].mxu1 %v7950_v21  ;;  %v12175_v21 = vld [vmem:[#allocation43 + $0x28] sm:$0xff]  }
 0xdcb   :  { %8375 = vmatprep.mubr.bf16.mxu1 %v15150_v39  ;;  %11523 = vmatpush3.bf16.msra.mxu0 %v12175_v21 }
 0xdcc   :  { %v7845_v5 = vadd.f32 %v11463_v7, %v14302_v32  ;;  %v7926_v11 = vmax.f32 %v7842_v33, 0.0 }
 0xdce   :  { %v7927_v45 = vmax.f32 %v7845_v5, 0.0  ;;  %v11464_v56 = vpop.f32.mrb[108].mxu0 }
 0xdcf   :  { %v11465_v40 = vpop.f32.mrb[109].mxu0 }
 0xdd0   :  { %v11466_v36 = vadd.f32 %v11465_v40, %v11464_v56  ;;  %v11467_v10 = vpop.f32.mrb[110].mxu0  ;;  %v7951_v63 = vpack.c.bf16 %v7927_v45, %v7926_v11  ;;  %v12176_v11 = vld [vmem:[#allocation43 + $0x70] sm:$0xff]   ;;  %v12178_v56 = vld [vmem:[#allocation43 + $0x78] sm:$0xff]  }
 0xdd1   :  { %v11468_v25 = vpop.f32.mrb[111].mxu0  ;;  %v12177_v45 = vld [vmem:[#allocation43 + $0x30] sm:$0xff]   ;;  %11524 = vmatprep.subr.bf16.mxu0 %v12176_v11 }
 0xdd2   :  { %v7850_v17 = vadd.f32 %v11466_v36, %v14302_v32  ;;  %v11469_v58 = vadd.f32 %v11468_v25, %v11467_v10  ;;  %8376 = vmatmul.mubr.bf16.gmra.mrb[116].mxu1 %v7951_v63  ;;  %11525 = vmatpush3.bf16.msra.mxu0 %v12177_v45 }
 0xdd3   :  { %8385 = vmatprep.mubr.bf16.mxu1 %v15150_v39  ;;  %11526 = vmatprep.subr.bf16.mxu0 %v12178_v56 }
 0xdd4   :  { %v7853_v20 = vadd.f32 %v11469_v58, %v14302_v32  ;;  %v7928_v49 = vmax.f32 %v7850_v17, 0.0 }
 0xdd6   :  { %v7929_v22 = vmax.f32 %v7853_v20, 0.0  ;;  %v11470_v34 = vpop.f32.mrb[112].mxu0  ;;  %v12179_v20 = vld [vmem:[#allocation43 + $0x38] sm:$0xff]  }
 0xdd7   :  { %v11471_v38 = vpop.f32.mrb[113].mxu0  ;;  %11527 = vmatpush3.bf16.msra.mxu0 %v12179_v20 }
 0xdd8   :  { %v11472_v37 = vadd.f32 %v11471_v38, %v11470_v34  ;;  %v11473_v9 = vpop.f32.mrb[114].mxu0  ;;  %v7952_v8 = vpack.c.bf16 %v7929_v22, %v7928_v49 }
 0xdd9   :  { %v11474_v48 = vpop.f32.mrb[115].mxu0 }
 0xdda   :  { %v7858_v42 = vadd.f32 %v11472_v37, %v14302_v32  ;;  %v11475_v57 = vadd.f32 %v11474_v48, %v11473_v9  ;;  %8386 = vmatmul.mubr.bf16.gmra.mrb[120].mxu1 %v7952_v8 }
 0xddb   :  { %8395 = vmatprep.mubr.bf16.mxu1 %v15150_v39 }
 0xddc   :  { %v7861_v26 = vadd.f32 %v11475_v57, %v14302_v32  ;;  %v7930_v28 = vmax.f32 %v7858_v42, 0.0 }
 0xdde   :  { %v7931_v30 = vmax.f32 %v7861_v26, 0.0  ;;  %v11476_v13 = vpop.f32.mrb[116].mxu0 }
 0xddf   :  { %v11477_v54 = vpop.f32.mrb[117].mxu0 }
 0xde0   :  { %v11478_v53 = vadd.f32 %v11477_v54, %v11476_v13  ;;  %v11479_v47 = vpop.f32.mrb[118].mxu0  ;;  %v7953_v41 = vpack.c.bf16 %v7931_v30, %v7930_v28 }
 0xde1   :  { %v11480_v62 = vpop.f32.mrb[119].mxu0 }
 0xde2   :  { %v7866_v1 = vadd.f32 %v11478_v53, %v14302_v32  ;;  %v11481_v16 = vadd.f32 %v11480_v62, %v11479_v47  ;;  %8396 = vmatmul.mubr.bf16.gmra.mrb[124].mxu1 %v7953_v41 }
 0xde3   :  { %8405 = vmatprep.mubr.bf16.mxu1 %v15150_v39 }
 0xde4   :  { %v7869_v61 = vadd.f32 %v11481_v16, %v14302_v32  ;;  %v7932_v55 = vmax.f32 %v7866_v1, 0.0 }
 0xde6   :  { %v7933_v2 = vmax.f32 %v7869_v61, 0.0  ;;  %v11482_v4 = vpop.f32.mrb[120].mxu0 }
 0xde7   :  { %v11483_v18 = vpop.f32.mrb[121].mxu0 }
 0xde8   :  { %v11484_v44 = vadd.f32 %v11483_v18, %v11482_v4  ;;  %v11485_v52 = vpop.f32.mrb[122].mxu0  ;;  %v7954_v12 = vpack.c.bf16 %v7933_v2, %v7932_v55 }
 0xde9   :  { %v11486_v0 = vpop.f32.mrb[123].mxu0 }
 0xdea   :  { %v7874_v59 = vadd.f32 %v11484_v44, %v14302_v32  ;;  %v11487_v23 = vadd.f32 %v11486_v0, %v11485_v52  ;;  %8406 = vmatmul.mubr.bf16.gmra.mrb[128].mxu1 %v7954_v12  ;;  %v8466_v0 = vld [vmem:[#allocation42] sm:$0x3] }
 0xdeb   :  { %8415 = vmatprep.mubr.bf16.mxu1 %v15150_v39 }
 0xdec   :  { %v7877_v15 = vadd.f32 %v11487_v23, %v14302_v32  ;;  %v7934_v6 = vmax.f32 %v7874_v59, 0.0  ;;  %v14352_v59 = vrot.slane %v8466_v0, %v13570_v29  ;;  %v14355_v23 = vrot.slane %v8466_v0, %v13573_v31 }
 0xdee   :  { %v7935_v50 = vmax.f32 %v7877_v15, 0.0  ;;  %v11488_v14 = vpop.f32.mrb[124].mxu0 }
 0xdef   :  { %v11489_v43 = vpop.f32.mrb[125].mxu0 }
 0xdf0   :  { %v11490_v19 = vadd.f32 %v11489_v43, %v11488_v14  ;;  %v11491_v24 = vpop.f32.mrb[126].mxu0  ;;  %v7955_v46 = vpack.c.bf16 %v7935_v50, %v7934_v6 }
 0xdf1   :  { %v11492_v51 = vpop.f32.mrb[127].mxu0 }
 0xdf2   :  { %v7882_v33 = vadd.f32 %v11490_v19, %v14302_v32  ;;  %v11493_v7 = vadd.f32 %v11492_v51, %v11491_v24  ;;  %8416 = vmatmul.mubr.bf16.gmra.mrb[132].mxu1 %v7955_v46 }
 0xdf3   :  { %8425 = vmatprep.mubr.bf16.mxu1 %v15150_v39 }
 0xdf4   :  { %v7885_v5 = vadd.f32 %v11493_v7, %v14302_v32  ;;  %v7936_v40 = vmax.f32 %v7882_v33, 0.0 }
 0xdf6   :  { %v7937_v36 = vmax.f32 %v7885_v5, 0.0  ;;  %v11494_v10 = vpop.f32.mrb[128].mxu0 }
 0xdf7   :  { %v11495_v63 = vpop.f32.mrb[129].mxu0 }
 0xdf8   :  { %v11496_v25 = vadd.f32 %v11495_v63, %v11494_v10  ;;  %v11497_v17 = vpop.f32.mrb[130].mxu0  ;;  %v7956_v58 = vpack.c.bf16 %v7937_v36, %v7936_v40 }
 0xdf9   :  { %v11498_v49 = vpop.f32.mrb[131].mxu0 }
 0xdfa   :  { %v7890_v22 = vadd.f32 %v11496_v25, %v14302_v32  ;;  %v11499_v34 = vadd.f32 %v11498_v49, %v11497_v17  ;;  %8426 = vmatmul.mubr.bf16.gmra.mrb[136].mxu1 %v7956_v58 }
 0xdfb   :  { %8435 = vmatprep.mubr.bf16.mxu1 %v15150_v39 }
 0xdfc   :  { %v7893_v38 = vadd.f32 %v11499_v34, %v14302_v32  ;;  %v7938_v37 = vmax.f32 %v7890_v22, 0.0 }
 0xdfe   :  { %v7939_v9 = vmax.f32 %v7893_v38, 0.0  ;;  %v11500_v8 = vpop.f32.mrb[132].mxu0 }
 0xdff   :  { %v11501_v48 = vpop.f32.mrb[133].mxu0 }
 0xe00   :  { %v11502_v42 = vadd.f32 %v11501_v48, %v11500_v8  ;;  %v11503_v57 = vpop.f32.mrb[134].mxu0  ;;  %v7957_v26 = vpack.c.bf16 %v7939_v9, %v7938_v37 }
 0xe01   :  { %v11504_v28 = vpop.f32.mrb[135].mxu0 }
 0xe02   :  { %v7898_v30 = vadd.f32 %v11502_v42, %v14302_v32  ;;  %v11505_v13 = vadd.f32 %v11504_v28, %v11503_v57  ;;  %8436 = vmatmul.mubr.bf16.gmra.mrb[140].mxu1 %v7957_v26 }
 0xe03   :  { %8445 = vmatprep.mubr.bf16.mxu1 %v15150_v39 }
 0xe04   :  { %v7901_v54 = vadd.f32 %v11505_v13, %v14302_v32  ;;  %v7940_v53 = vmax.f32 %v7898_v30, 0.0 }
 0xe06   :  { %v7941_v47 = vmax.f32 %v7901_v54, 0.0  ;;  %v11506_v41 = vpop.f32.mrb[136].mxu0 }
 0xe07   :  { %v11507_v62 = vpop.f32.mrb[137].mxu0 }
 0xe08   :  { %v11508_v1 = vadd.f32 %v11507_v62, %v11506_v41  ;;  %v11509_v16 = vpop.f32.mrb[138].mxu0  ;;  %v7958_v61 = vpack.c.bf16 %v7941_v47, %v7940_v53 }
 0xe09   :  { %v11510_v55 = vpop.f32.mrb[139].mxu0 }
 0xe0a   :  { %v7906_v2 = vadd.f32 %v11508_v1, %v14302_v32  ;;  %v11511_v4 = vadd.f32 %v11510_v55, %v11509_v16  ;;  %8446 = vmatmul.mubr.bf16.gmra.mrb[144].mxu1 %v7958_v61 }
 0xe0b   :  { %8455 = vmatprep.mubr.bf16.mxu1 %v15150_v39 }
 0xe0c   :  { %v7909_v18 = vadd.f32 %v11511_v4, %v14302_v32  ;;  %v7942_v44 = vmax.f32 %v7906_v2, 0.0 }
 0xe0e   :  { %v7943_v52 = vmax.f32 %v7909_v18, 0.0 }
 0xe10   :  { %v7959_v12 = vpack.c.bf16 %v7943_v52, %v7942_v44 }
 0xe12   :  { %8456 = vmatmul.mubr.bf16.gmra.mrb[148].mxu1 %v7959_v12 }
 0xe6d   :  { %v8307_v15 = vpop.f32.mrb[88].mxu1 }
 0xe6e   :  { %v8478_v6 = vadd.f32 %v14352_v59, %v8307_v15  ;;  %v8309_v50 = vpop.f32.mrb[89].mxu1 }
 0xe6f   :  { %v8479_v14 = vadd.f32 %v14355_v23, %v8309_v50  ;;  %v8311_v39 = vpop.f32.mrb[90].mxu1 }
 0xe70   :  { %v8480_v32 = vadd.f32 %v14352_v59, %v8311_v39  ;;  %v8313_v43 = vpop.f32.mrb[91].mxu1  ;;  %v8542_v24 = vmax.f32 %v8478_v6, 0.0 }
 0xe71   :  { %v8481_v19 = vadd.f32 %v14355_v23, %v8313_v43  ;;  %v8543_v21 = vmax.f32 %v8479_v14, 0.0 }
 0xe72   :  { %v8544_v46 = vmax.f32 %v8480_v32, 0.0 }
 0xe73   :  { %v8545_v51 = vmax.f32 %v8481_v19, 0.0 }
 0xe74   :  { %v8606_v33 = vpack.c.bf16 %v8544_v46, %v8542_v24 }
 0xe75   :  { %v8607_v7 = vpack.c.bf16 %v8545_v51, %v8543_v21  ;;  %v8317_v5 = vpop.f32.mrb[92].mxu1 }
 0xe76   :  { %v8482_v11 = vadd.f32 %v14352_v59, %v8317_v5  ;;  %v8319_v45 = vpop.f32.mrb[93].mxu1 }
 0xe77   :  { %v8483_v56 = vadd.f32 %v14355_v23, %v8319_v45  ;;  %v8321_v40 = vpop.f32.mrb[94].mxu1  ;;  %8805 = vmatprep.mubr.bf16.mxu0 %v8607_v7 }
 0xe78   :  { %v8484_v36 = vadd.f32 %v14352_v59, %v8321_v40  ;;  %v8323_v10 = vpop.f32.mrb[95].mxu1  ;;  %8806 = vmatmul.mubr.bf16.vlgmr.msra.gmra.mrb[140].mxu0 %v8606_v33  ;;  %v8546_v25 = vmax.f32 %v8482_v11, 0.0 }
 0xe79   :  { %v8485_v63 = vadd.f32 %v14355_v23, %v8323_v10  ;;  %v8547_v58 = vmax.f32 %v8483_v56, 0.0 }
 0xe7a   :  { %v8548_v17 = vmax.f32 %v8484_v36, 0.0 }
 0xe7b   :  { %v8549_v20 = vmax.f32 %v8485_v63, 0.0 }
 0xe7c   :  { %v8608_v49 = vpack.c.bf16 %v8548_v17, %v8546_v25 }
 0xe7d   :  { %v8609_v22 = vpack.c.bf16 %v8549_v20, %v8547_v58  ;;  %v8327_v34 = vpop.f32.mrb[96].mxu1 }
 0xe7e   :  { %v8486_v38 = vadd.f32 %v14352_v59, %v8327_v34  ;;  %v8329_v37 = vpop.f32.mrb[97].mxu1 }
 0xe7f   :  { %v8487_v9 = vadd.f32 %v14355_v23, %v8329_v37  ;;  %v8331_v8 = vpop.f32.mrb[98].mxu1  ;;  %8813 = vmatprep.mubr.bf16.mxu0 %v8609_v22 }
 0xe80   :  { %v8488_v48 = vadd.f32 %v14352_v59, %v8331_v8  ;;  %v8333_v42 = vpop.f32.mrb[99].mxu1  ;;  %8814 = vmatmul.mubr.bf16.gmra.mrb[144].mxu0 %v8608_v49  ;;  %v8550_v26 = vmax.f32 %v8486_v38, 0.0 }
 0xe81   :  { %v8489_v57 = vadd.f32 %v14355_v23, %v8333_v42  ;;  %v8551_v30 = vmax.f32 %v8487_v9, 0.0 }
 0xe82   :  { %v8552_v28 = vmax.f32 %v8488_v48, 0.0 }
 0xe83   :  { %v8553_v13 = vmax.f32 %v8489_v57, 0.0 }
 0xe84   :  { %v8610_v54 = vpack.c.bf16 %v8552_v28, %v8550_v26 }
 0xe85   :  { %v8611_v53 = vpack.c.bf16 %v8553_v13, %v8551_v30  ;;  %v8337_v47 = vpop.f32.mrb[100].mxu1 }
 0xe86   :  { %v8490_v41 = vadd.f32 %v14352_v59, %v8337_v47  ;;  %v8339_v62 = vpop.f32.mrb[101].mxu1 }
 0xe87   :  { %v8491_v1 = vadd.f32 %v14355_v23, %v8339_v62  ;;  %v8341_v16 = vpop.f32.mrb[102].mxu1  ;;  %8821 = vmatprep.mubr.bf16.mxu0 %v8611_v53 }
 0xe88   :  { %v8492_v61 = vadd.f32 %v14352_v59, %v8341_v16  ;;  %v8343_v55 = vpop.f32.mrb[103].mxu1  ;;  %8822 = vmatmul.mubr.bf16.gmra.mrb[148].mxu0 %v8610_v54  ;;  %v8554_v4 = vmax.f32 %v8490_v41, 0.0 }
 0xe89   :  { %v8493_v2 = vadd.f32 %v14355_v23, %v8343_v55  ;;  %v8555_v44 = vmax.f32 %v8491_v1, 0.0 }
 0xe8a   :  { %v8556_v18 = vmax.f32 %v8492_v61, 0.0 }
 0xe8b   :  { %v8557_v52 = vmax.f32 %v8493_v2, 0.0 }
 0xe8c   :  { %v8612_v12 = vpack.c.bf16 %v8556_v18, %v8554_v4 }
 0xe8d   :  { %v8613_v0 = vpack.c.bf16 %v8557_v52, %v8555_v44  ;;  %v8347_v15 = vpop.f32.mrb[104].mxu1 }
 0xe8e   :  { %v8494_v6 = vadd.f32 %v14352_v59, %v8347_v15  ;;  %v8349_v50 = vpop.f32.mrb[105].mxu1 }
 0xe8f   :  { %v8495_v14 = vadd.f32 %v14355_v23, %v8349_v50  ;;  %v8351_v39 = vpop.f32.mrb[106].mxu1  ;;  %8829 = vmatprep.mubr.bf16.mxu0 %v8613_v0 }
 0xe90   :  { %v8496_v32 = vadd.f32 %v14352_v59, %v8351_v39  ;;  %v8353_v43 = vpop.f32.mrb[107].mxu1  ;;  %8830 = vmatmul.mubr.bf16.gmra.mrb[152].mxu0 %v8612_v12  ;;  %v8558_v24 = vmax.f32 %v8494_v6, 0.0 }
 0xe91   :  { %v8497_v19 = vadd.f32 %v14355_v23, %v8353_v43  ;;  %v8559_v21 = vmax.f32 %v8495_v14, 0.0 }
 0xe92   :  { %v8560_v46 = vmax.f32 %v8496_v32, 0.0 }
 0xe93   :  { %v8561_v51 = vmax.f32 %v8497_v19, 0.0 }
 0xe94   :  { %v8614_v33 = vpack.c.bf16 %v8560_v46, %v8558_v24 }
 0xe95   :  { %v8615_v7 = vpack.c.bf16 %v8561_v51, %v8559_v21  ;;  %v8357_v5 = vpop.f32.mrb[108].mxu1 }
 0xe96   :  { %v8498_v11 = vadd.f32 %v14352_v59, %v8357_v5  ;;  %v8359_v45 = vpop.f32.mrb[109].mxu1 }
 0xe97   :  { %v8499_v56 = vadd.f32 %v14355_v23, %v8359_v45  ;;  %v8361_v40 = vpop.f32.mrb[110].mxu1  ;;  %8837 = vmatprep.mubr.bf16.mxu0 %v8615_v7 }
 0xe98   :  { %v8500_v36 = vadd.f32 %v14352_v59, %v8361_v40  ;;  %v8363_v10 = vpop.f32.mrb[111].mxu1  ;;  %8838 = vmatmul.mubr.bf16.gmra.mrb[156].mxu0 %v8614_v33  ;;  %v8562_v25 = vmax.f32 %v8498_v11, 0.0 }
 0xe99   :  { %v8501_v63 = vadd.f32 %v14355_v23, %v8363_v10  ;;  %v8563_v58 = vmax.f32 %v8499_v56, 0.0 }
 0xe9a   :  { %v8564_v17 = vmax.f32 %v8500_v36, 0.0 }
 0xe9b   :  { %v8565_v20 = vmax.f32 %v8501_v63, 0.0 }
 0xe9c   :  { %v8616_v49 = vpack.c.bf16 %v8564_v17, %v8562_v25 }
 0xe9d   :  { %v8617_v22 = vpack.c.bf16 %v8565_v20, %v8563_v58  ;;  %v8367_v34 = vpop.f32.mrb[112].mxu1 }
 0xe9e   :  { %v8502_v38 = vadd.f32 %v14352_v59, %v8367_v34  ;;  %v8369_v37 = vpop.f32.mrb[113].mxu1 }
 0xe9f   :  { %v8503_v9 = vadd.f32 %v14355_v23, %v8369_v37  ;;  %v8371_v8 = vpop.f32.mrb[114].mxu1  ;;  %8845 = vmatprep.mubr.bf16.mxu0 %v8617_v22 }
 0xea0   :  { %v8504_v48 = vadd.f32 %v14352_v59, %v8371_v8  ;;  %v8373_v42 = vpop.f32.mrb[115].mxu1  ;;  %8846 = vmatmul.mubr.bf16.gmra.mrb[160].mxu0 %v8616_v49  ;;  %v8566_v26 = vmax.f32 %v8502_v38, 0.0 }
 0xea1   :  { %v8505_v57 = vadd.f32 %v14355_v23, %v8373_v42  ;;  %v8567_v30 = vmax.f32 %v8503_v9, 0.0 }
 0xea2   :  { %v8568_v28 = vmax.f32 %v8504_v48, 0.0 }
 0xea3   :  { %v8569_v13 = vmax.f32 %v8505_v57, 0.0 }
 0xea4   :  { %v8618_v54 = vpack.c.bf16 %v8568_v28, %v8566_v26 }
 0xea5   :  { %v8619_v53 = vpack.c.bf16 %v8569_v13, %v8567_v30  ;;  %v8377_v47 = vpop.f32.mrb[116].mxu1 }
 0xea6   :  { %v8506_v41 = vadd.f32 %v14352_v59, %v8377_v47  ;;  %v8379_v62 = vpop.f32.mrb[117].mxu1 }
 0xea7   :  { %v8507_v1 = vadd.f32 %v14355_v23, %v8379_v62  ;;  %v8381_v16 = vpop.f32.mrb[118].mxu1  ;;  %8853 = vmatprep.mubr.bf16.mxu0 %v8619_v53 }
 0xea8   :  { %v8508_v61 = vadd.f32 %v14352_v59, %v8381_v16  ;;  %v8383_v55 = vpop.f32.mrb[119].mxu1  ;;  %8854 = vmatmul.mubr.bf16.gmra.mrb[164].mxu0 %v8618_v54  ;;  %v8570_v4 = vmax.f32 %v8506_v41, 0.0 }
 0xea9   :  { %v8509_v2 = vadd.f32 %v14355_v23, %v8383_v55  ;;  %v8571_v44 = vmax.f32 %v8507_v1, 0.0 }
 0xeaa   :  { %v8572_v18 = vmax.f32 %v8508_v61, 0.0 }
 0xeab   :  { %v8573_v52 = vmax.f32 %v8509_v2, 0.0 }
 0xeac   :  { %v8620_v12 = vpack.c.bf16 %v8572_v18, %v8570_v4 }
 0xead   :  { %v8621_v0 = vpack.c.bf16 %v8573_v52, %v8571_v44  ;;  %v8387_v15 = vpop.f32.mrb[120].mxu1 }
 0xeae   :  { %v8510_v6 = vadd.f32 %v14352_v59, %v8387_v15  ;;  %v8389_v50 = vpop.f32.mrb[121].mxu1 }
 0xeaf   :  { %v8511_v14 = vadd.f32 %v14355_v23, %v8389_v50  ;;  %v8391_v39 = vpop.f32.mrb[122].mxu1  ;;  %8861 = vmatprep.mubr.bf16.mxu0 %v8621_v0 }
 0xeb0   :  { %v8512_v32 = vadd.f32 %v14352_v59, %v8391_v39  ;;  %v8393_v43 = vpop.f32.mrb[123].mxu1  ;;  %8862 = vmatmul.mubr.bf16.gmra.mrb[168].mxu0 %v8620_v12  ;;  %v8574_v24 = vmax.f32 %v8510_v6, 0.0 }
 0xeb1   :  { %v8513_v19 = vadd.f32 %v14355_v23, %v8393_v43  ;;  %v8575_v21 = vmax.f32 %v8511_v14, 0.0 }
 0xeb2   :  { %v8576_v46 = vmax.f32 %v8512_v32, 0.0 }
 0xeb3   :  { %v8577_v51 = vmax.f32 %v8513_v19, 0.0 }
 0xeb4   :  { %v8622_v33 = vpack.c.bf16 %v8576_v46, %v8574_v24 }
 0xeb5   :  { %v8623_v7 = vpack.c.bf16 %v8577_v51, %v8575_v21  ;;  %v8397_v5 = vpop.f32.mrb[124].mxu1 }
 0xeb6   :  { %v8514_v11 = vadd.f32 %v14352_v59, %v8397_v5  ;;  %v8399_v45 = vpop.f32.mrb[125].mxu1 }
 0xeb7   :  { %v8515_v56 = vadd.f32 %v14355_v23, %v8399_v45  ;;  %v8401_v40 = vpop.f32.mrb[126].mxu1  ;;  %8869 = vmatprep.mubr.bf16.mxu0 %v8623_v7 }
 0xeb8   :  { %v8516_v36 = vadd.f32 %v14352_v59, %v8401_v40  ;;  %v8403_v10 = vpop.f32.mrb[127].mxu1  ;;  %8870 = vmatmul.mubr.bf16.gmra.mrb[172].mxu0 %v8622_v33  ;;  %v8578_v25 = vmax.f32 %v8514_v11, 0.0 }
 0xeb9   :  { %v8517_v63 = vadd.f32 %v14355_v23, %v8403_v10  ;;  %v8579_v58 = vmax.f32 %v8515_v56, 0.0 }
 0xeba   :  { %v8580_v17 = vmax.f32 %v8516_v36, 0.0 }
 0xebb   :  { %v8581_v20 = vmax.f32 %v8517_v63, 0.0 }
 0xebc   :  { %v8624_v49 = vpack.c.bf16 %v8580_v17, %v8578_v25 }
 0xebd   :  { %v8625_v22 = vpack.c.bf16 %v8581_v20, %v8579_v58  ;;  %v8407_v34 = vpop.f32.mrb[128].mxu1 }
 0xebe   :  { %v8518_v38 = vadd.f32 %v14352_v59, %v8407_v34  ;;  %v8409_v37 = vpop.f32.mrb[129].mxu1 }
 0xebf   :  { %v8519_v9 = vadd.f32 %v14355_v23, %v8409_v37  ;;  %v8411_v8 = vpop.f32.mrb[130].mxu1  ;;  %8877 = vmatprep.mubr.bf16.mxu0 %v8625_v22 }
 0xec0   :  { %v8520_v48 = vadd.f32 %v14352_v59, %v8411_v8  ;;  %v8413_v42 = vpop.f32.mrb[131].mxu1  ;;  %8878 = vmatmul.mubr.bf16.gmra.mrb[176].mxu0 %v8624_v49  ;;  %v8582_v26 = vmax.f32 %v8518_v38, 0.0 }
 0xec1   :  { %v8521_v57 = vadd.f32 %v14355_v23, %v8413_v42  ;;  %v8583_v30 = vmax.f32 %v8519_v9, 0.0 }
 0xec2   :  { %v8584_v28 = vmax.f32 %v8520_v48, 0.0 }
 0xec3   :  { %v8585_v13 = vmax.f32 %v8521_v57, 0.0 }
 0xec4   :  { %v8626_v54 = vpack.c.bf16 %v8584_v28, %v8582_v26 }
 0xec5   :  { %v8627_v53 = vpack.c.bf16 %v8585_v13, %v8583_v30  ;;  %v8417_v47 = vpop.f32.mrb[132].mxu1 }
 0xec6   :  { %v8522_v41 = vadd.f32 %v14352_v59, %v8417_v47  ;;  %v8419_v62 = vpop.f32.mrb[133].mxu1 }
 0xec7   :  { %v8523_v1 = vadd.f32 %v14355_v23, %v8419_v62  ;;  %v8421_v16 = vpop.f32.mrb[134].mxu1  ;;  %8885 = vmatprep.mubr.bf16.mxu0 %v8627_v53 }
 0xec8   :  { %v8524_v61 = vadd.f32 %v14352_v59, %v8421_v16  ;;  %v8423_v55 = vpop.f32.mrb[135].mxu1  ;;  %8886 = vmatmul.mubr.bf16.gmra.mrb[180].mxu0 %v8626_v54  ;;  %v8586_v4 = vmax.f32 %v8522_v41, 0.0 }
 0xec9   :  { %v8525_v2 = vadd.f32 %v14355_v23, %v8423_v55  ;;  %v8587_v44 = vmax.f32 %v8523_v1, 0.0 }
 0xeca   :  { %v8588_v18 = vmax.f32 %v8524_v61, 0.0 }
 0xecb   :  { %v8589_v52 = vmax.f32 %v8525_v2, 0.0 }
 0xecc   :  { %v8628_v12 = vpack.c.bf16 %v8588_v18, %v8586_v4 }
 0xecd   :  { %v8629_v0 = vpack.c.bf16 %v8589_v52, %v8587_v44  ;;  %v8427_v15 = vpop.f32.mrb[136].mxu1 }
 0xece   :  { %v8526_v6 = vadd.f32 %v14352_v59, %v8427_v15  ;;  %v8429_v50 = vpop.f32.mrb[137].mxu1 }
 0xecf   :  { %v8527_v14 = vadd.f32 %v14355_v23, %v8429_v50  ;;  %v8431_v39 = vpop.f32.mrb[138].mxu1  ;;  %8893 = vmatprep.mubr.bf16.mxu0 %v8629_v0 }
 0xed0   :  { %v8528_v32 = vadd.f32 %v14352_v59, %v8431_v39  ;;  %v8433_v43 = vpop.f32.mrb[139].mxu1  ;;  %8894 = vmatmul.mubr.bf16.gmra.mrb[184].mxu0 %v8628_v12  ;;  %v8590_v24 = vmax.f32 %v8526_v6, 0.0  ;;  %v14421_v6 = vld [vmem:[#allocation45] ss:$0 sm:$0xff] }
 0xed1   :  { %v8529_v19 = vadd.f32 %v14355_v23, %v8433_v43  ;;  %v8591_v21 = vmax.f32 %v8527_v14, 0.0 }
 0xed2   :  { %v8592_v46 = vmax.f32 %v8528_v32, 0.0 }
 0xed3   :  { %v8593_v51 = vmax.f32 %v8529_v19, 0.0  ;;  %v14424_v19 = vld [vmem:[#allocation46] sm:$0x1] }
 0xed4   :  { %v8630_v33 = vpack.c.bf16 %v8592_v46, %v8590_v24 }
 0xed5   :  { %v8631_v7 = vpack.c.bf16 %v8593_v51, %v8591_v21  ;;  %v8437_v5 = vpop.f32.mrb[140].mxu1 }
 0xed6   :  { %v8530_v11 = vadd.f32 %v14352_v59, %v8437_v5  ;;  %v8439_v45 = vpop.f32.mrb[141].mxu1 }
 0xed7   :  { %v8531_v56 = vadd.f32 %v14355_v23, %v8439_v45  ;;  %v8441_v40 = vpop.f32.mrb[142].mxu1  ;;  %8901 = vmatprep.mubr.bf16.mxu0 %v8631_v7 }
 0xed8   :  { %v8532_v36 = vadd.f32 %v14352_v59, %v8441_v40  ;;  %v8443_v10 = vpop.f32.mrb[143].mxu1  ;;  %8902 = vmatmul.mubr.bf16.gmra.mrb[188].mxu0 %v8630_v33  ;;  %v8594_v25 = vmax.f32 %v8530_v11, 0.0 }
 0xed9   :  { %v8533_v63 = vadd.f32 %v14355_v23, %v8443_v10  ;;  %v8595_v58 = vmax.f32 %v8531_v56, 0.0 }
 0xeda   :  { %v8596_v17 = vmax.f32 %v8532_v36, 0.0 }
 0xedb   :  { %v8597_v20 = vmax.f32 %v8533_v63, 0.0 }
 0xedc   :  { %v8632_v49 = vpack.c.bf16 %v8596_v17, %v8594_v25 }
 0xedd   :  { %v8633_v22 = vpack.c.bf16 %v8597_v20, %v8595_v58  ;;  %v8447_v34 = vpop.f32.mrb[144].mxu1 }
 0xede   :  { %v8534_v38 = vadd.f32 %v14352_v59, %v8447_v34  ;;  %v8449_v37 = vpop.f32.mrb[145].mxu1 }
 0xedf   :  { %v8535_v9 = vadd.f32 %v14355_v23, %v8449_v37  ;;  %v8451_v8 = vpop.f32.mrb[146].mxu1  ;;  %8909 = vmatprep.mubr.bf16.mxu0 %v8633_v22 }
 0xee0   :  { %v8536_v48 = vadd.f32 %v14352_v59, %v8451_v8  ;;  %v8453_v42 = vpop.f32.mrb[147].mxu1  ;;  %8910 = vmatmul.mubr.bf16.gmra.mrb[192].mxu0 %v8632_v49  ;;  %v8598_v26 = vmax.f32 %v8534_v38, 0.0 }
 0xee1   :  { %v8537_v57 = vadd.f32 %v14355_v23, %v8453_v42  ;;  %v8599_v30 = vmax.f32 %v8535_v9, 0.0 }
 0xee2   :  { %v8600_v28 = vmax.f32 %v8536_v48, 0.0 }
 0xee3   :  { %v8601_v13 = vmax.f32 %v8537_v57, 0.0 }
 0xee4   :  { %v8634_v54 = vpack.c.bf16 %v8600_v28, %v8598_v26 }
 0xee5   :  { %v8635_v53 = vpack.c.bf16 %v8601_v13, %v8599_v30  ;;  %v8457_v47 = vpop.f32.mrb[148].mxu1 }
 0xee6   :  { %v8538_v41 = vadd.f32 %v14352_v59, %v8457_v47  ;;  %v8459_v62 = vpop.f32.mrb[149].mxu1 }
 0xee7   :  { %v8539_v1 = vadd.f32 %v14355_v23, %v8459_v62  ;;  %v8461_v16 = vpop.f32.mrb[150].mxu1  ;;  %8917 = vmatprep.mubr.bf16.mxu0 %v8635_v53 }
 0xee8   :  { %v8540_v61 = vadd.f32 %v14352_v59, %v8461_v16  ;;  %v8463_v55 = vpop.f32.mrb[151].mxu1  ;;  %8918 = vmatmul.mubr.bf16.gmra.mrb[196].mxu0 %v8634_v54  ;;  %v8602_v4 = vmax.f32 %v8538_v41, 0.0 }
 0xee9   :  { %v8541_v2 = vadd.f32 %v14355_v23, %v8463_v55  ;;  %v8603_v44 = vmax.f32 %v8539_v1, 0.0 }
 0xeea   :  { %v8604_v18 = vmax.f32 %v8540_v61, 0.0 }
 0xeeb   :  { %v8605_v52 = vmax.f32 %v8541_v2, 0.0 }
 0xeec   :  { %v8636_v12 = vpack.c.bf16 %v8604_v18, %v8602_v4 }
 0xeed   :  { %v8637_v0 = vpack.c.bf16 %v8605_v52, %v8603_v44 }
 0xeef   :  { %8925 = vmatprep.mubr.bf16.mxu0 %v8637_v0 }
 0xef0   :  { %8926 = vmatmul.mubr.bf16.gmra.mrb[200].mxu0 %v8636_v12 }
 0xef1   :  { %11640 = vmatprep.mubr.bf16.mxu0 %v14424_v19 }
 0xf4b   :  { %v11528_v15 = vpop.f32.mrb[140].mxu0 }
 0xf4c   :  { %v11529_v50 = vpop.f32.mrb[141].mxu0 }
 0xf4d   :  { %v11530_v14 = vadd.f32 %v11529_v50, %v11528_v15  ;;  %v11531_v39 = vpop.f32.mrb[142].mxu0 }
 0xf4e   :  { %v11532_v32 = vpop.f32.mrb[143].mxu0 }
 0xf4f   :  { %v8808_v59 = vadd.f32 %v11530_v14, %v14421_v6  ;;  %v11533_v43 = vadd.f32 %v11532_v32, %v11531_v39 }
 0xf51   :  { %v8811_v23 = vadd.f32 %v11533_v43, %v14421_v6  ;;  %v8934_v24 = vmax.f32 %v8808_v59, 0.0 }
 0xf53   :  { %v8935_v46 = vmax.f32 %v8811_v23, 0.0  ;;  %v11534_v21 = vpop.f32.mrb[144].mxu0 }
 0xf54   :  { %v11535_v51 = vpop.f32.mrb[145].mxu0 }
 0xf55   :  { %v14428_v33 = vpack.c.bf16 %v8935_v46, %v8934_v24  ;;  %v11536_v7 = vadd.f32 %v11535_v51, %v11534_v21  ;;  %v11537_v5 = vpop.f32.mrb[146].mxu0 }
 0xf56   :  { %v11538_v11 = vpop.f32.mrb[147].mxu0 }
 0xf57   :  { %v8816_v45 = vadd.f32 %v11536_v7, %v14421_v6  ;;  %v11539_v56 = vadd.f32 %v11538_v11, %v11537_v5 }
 0xf59   :  { %v8819_v40 = vadd.f32 %v11539_v56, %v14421_v6  ;;  %v8936_v36 = vmax.f32 %v8816_v45, 0.0 }
 0xf5b   :  { %v8937_v10 = vmax.f32 %v8819_v40, 0.0  ;;  %v11540_v63 = vpop.f32.mrb[148].mxu0 }
 0xf5c   :  { %v11541_v25 = vpop.f32.mrb[149].mxu0 }
 0xf5d   :  { %v14432_v17 = vpack.c.bf16 %v8937_v10, %v8936_v36  ;;  %v11542_v58 = vadd.f32 %v11541_v25, %v11540_v63  ;;  %v11543_v20 = vpop.f32.mrb[150].mxu0 }
 0xf5e   :  { %v11544_v49 = vpop.f32.mrb[151].mxu0 }
 0xf5f   :  { %v8824_v22 = vadd.f32 %v11542_v58, %v14421_v6  ;;  %v11545_v34 = vadd.f32 %v11544_v49, %v11543_v20 }
 0xf61   :  { %v8827_v38 = vadd.f32 %v11545_v34, %v14421_v6  ;;  %v8938_v37 = vmax.f32 %v8824_v22, 0.0 }
 0xf63   :  { %v8939_v9 = vmax.f32 %v8827_v38, 0.0  ;;  %v11546_v8 = vpop.f32.mrb[152].mxu0 }
 0xf64   :  { %v11547_v48 = vpop.f32.mrb[153].mxu0 }
 0xf65   :  { %v14436_v42 = vpack.c.bf16 %v8939_v9, %v8938_v37  ;;  %v11548_v57 = vadd.f32 %v11547_v48, %v11546_v8  ;;  %v11549_v26 = vpop.f32.mrb[154].mxu0 }
 0xf66   :  { %v11550_v28 = vpop.f32.mrb[155].mxu0 }
 0xf67   :  { %v8832_v30 = vadd.f32 %v11548_v57, %v14421_v6  ;;  %v11551_v13 = vadd.f32 %v11550_v28, %v11549_v26 }
 0xf69   :  { %v8835_v54 = vadd.f32 %v11551_v13, %v14421_v6  ;;  %v8940_v53 = vmax.f32 %v8832_v30, 0.0 }
 0xf6b   :  { %v8941_v47 = vmax.f32 %v8835_v54, 0.0  ;;  %v11552_v41 = vpop.f32.mrb[156].mxu0 }
 0xf6c   :  { %v11553_v62 = vpop.f32.mrb[157].mxu0 }
 0xf6d   :  { %v14440_v1 = vpack.c.bf16 %v8941_v47, %v8940_v53  ;;  %v11554_v16 = vadd.f32 %v11553_v62, %v11552_v41  ;;  %v11555_v61 = vpop.f32.mrb[158].mxu0 }
 0xf6e   :  { %v11556_v55 = vpop.f32.mrb[159].mxu0 }
 0xf6f   :  { %v8840_v2 = vadd.f32 %v11554_v16, %v14421_v6  ;;  %v11557_v4 = vadd.f32 %v11556_v55, %v11555_v61 }
 0xf71   :  { %v8843_v18 = vadd.f32 %v11557_v4, %v14421_v6  ;;  %v8942_v44 = vmax.f32 %v8840_v2, 0.0 }
 0xf73   :  { %v8943_v52 = vmax.f32 %v8843_v18, 0.0  ;;  %v11558_v12 = vpop.f32.mrb[160].mxu0 }
 0xf74   :  { %v11559_v0 = vpop.f32.mrb[161].mxu0 }
 0xf75   :  { %v14444_v15 = vpack.c.bf16 %v8943_v52, %v8942_v44  ;;  %v11560_v50 = vadd.f32 %v11559_v0, %v11558_v12  ;;  %v11561_v14 = vpop.f32.mrb[162].mxu0 }
 0xf76   :  { %v11562_v39 = vpop.f32.mrb[163].mxu0 }
 0xf77   :  { %v8848_v32 = vadd.f32 %v11560_v50, %v14421_v6  ;;  %v11563_v59 = vadd.f32 %v11562_v39, %v11561_v14 }
 0xf79   :  { %v8851_v43 = vadd.f32 %v11563_v59, %v14421_v6  ;;  %v8944_v23 = vmax.f32 %v8848_v32, 0.0 }
 0xf7b   :  { %v8945_v24 = vmax.f32 %v8851_v43, 0.0  ;;  %v11564_v46 = vpop.f32.mrb[164].mxu0 }
 0xf7c   :  { %v11565_v21 = vpop.f32.mrb[165].mxu0 }
 0xf7d   :  { %v14448_v51 = vpack.c.bf16 %v8945_v24, %v8944_v23  ;;  %v11566_v7 = vadd.f32 %v11565_v21, %v11564_v46  ;;  %v11567_v5 = vpop.f32.mrb[166].mxu0 }
 0xf7e   :  { %v11568_v11 = vpop.f32.mrb[167].mxu0 }
 0xf7f   :  { %v8856_v45 = vadd.f32 %v11566_v7, %v14421_v6  ;;  %v11569_v56 = vadd.f32 %v11568_v11, %v11567_v5 }
 0xf81   :  { %v8859_v40 = vadd.f32 %v11569_v56, %v14421_v6  ;;  %v8946_v36 = vmax.f32 %v8856_v45, 0.0 }
 0xf83   :  { %v8947_v10 = vmax.f32 %v8859_v40, 0.0  ;;  %v11570_v63 = vpop.f32.mrb[168].mxu0 }
 0xf84   :  { %v11571_v25 = vpop.f32.mrb[169].mxu0 }
 0xf85   :  { %v14452_v58 = vpack.c.bf16 %v8947_v10, %v8946_v36  ;;  %v11572_v20 = vadd.f32 %v11571_v25, %v11570_v63  ;;  %v11573_v49 = vpop.f32.mrb[170].mxu0 }
 0xf86   :  { %v11574_v22 = vpop.f32.mrb[171].mxu0 }
 0xf87   :  { %v8864_v34 = vadd.f32 %v11572_v20, %v14421_v6  ;;  %v11575_v38 = vadd.f32 %v11574_v22, %v11573_v49 }
 0xf89   :  { %v8867_v37 = vadd.f32 %v11575_v38, %v14421_v6  ;;  %v8948_v9 = vmax.f32 %v8864_v34, 0.0 }
 0xf8b   :  { %v8949_v8 = vmax.f32 %v8867_v37, 0.0  ;;  %v11576_v48 = vpop.f32.mrb[172].mxu0 }
 0xf8c   :  { %v11577_v57 = vpop.f32.mrb[173].mxu0 }
 0xf8d   :  { %v14456_v26 = vpack.c.bf16 %v8949_v8, %v8948_v9  ;;  %v11578_v28 = vadd.f32 %v11577_v57, %v11576_v48  ;;  %v11579_v30 = vpop.f32.mrb[174].mxu0 }
 0xf8e   :  { %v11580_v13 = vpop.f32.mrb[175].mxu0 }
 0xf8f   :  { %v8872_v54 = vadd.f32 %v11578_v28, %v14421_v6  ;;  %v11581_v53 = vadd.f32 %v11580_v13, %v11579_v30 }
 0xf91   :  { %v8875_v47 = vadd.f32 %v11581_v53, %v14421_v6  ;;  %v8950_v41 = vmax.f32 %v8872_v54, 0.0 }
 0xf93   :  { %v8951_v62 = vmax.f32 %v8875_v47, 0.0  ;;  %v11582_v16 = vpop.f32.mrb[176].mxu0 }
 0xf94   :  { %v11583_v61 = vpop.f32.mrb[177].mxu0 }
 0xf95   :  { %v11584_v55 = vadd.f32 %v11583_v61, %v11582_v16  ;;  %v11585_v2 = vpop.f32.mrb[178].mxu0  ;;  %v8975_v4 = vpack.c.bf16 %v8951_v62, %v8950_v41 }
 0xf96   :  { %v11586_v18 = vpop.f32.mrb[179].mxu0 }
 0xf97   :  { %v8880_v44 = vadd.f32 %v11584_v55, %v14421_v6  ;;  %v11587_v52 = vadd.f32 %v11586_v18, %v11585_v2  ;;  %11624 = vmatprep.subr.bf16.mxu0 %v8975_v4  ;;  %v1224_v18 = vadd.f32 %v13567_v27, %v13793_v3 }
 0xf98   :  { %11625 = vmatpush3.bf16.xpose.msra.mxu0 %v14428_v33 }
 0xf99   :  { %v8883_v12 = vadd.f32 %v11587_v52, %v14421_v6  ;;  %v8952_v0 = vmax.f32 %v8880_v44, 0.0 }
 0xf9b   :  { %v8953_v50 = vmax.f32 %v8883_v12, 0.0  ;;  %v11588_v14 = vpop.f32.mrb[180].mxu0 }
 0xf9c   :  { %v11589_v39 = vpop.f32.mrb[181].mxu0 }
 0xf9d   :  { %v11590_v32 = vadd.f32 %v11589_v39, %v11588_v14  ;;  %v11591_v59 = vpop.f32.mrb[182].mxu0  ;;  %v8976_v43 = vpack.c.bf16 %v8953_v50, %v8952_v0 }
 0xf9e   :  { %v11592_v23 = vpop.f32.mrb[183].mxu0 }
 0xf9f   :  { %v8888_v24 = vadd.f32 %v11590_v32, %v14421_v6  ;;  %v11593_v46 = vadd.f32 %v11592_v23, %v11591_v59  ;;  %11626 = vmatprep.subr.bf16.mxu0 %v8976_v43 }
 0xfa0   :  { %11627 = vmatpush3.bf16.xpose.msra.mxu0 %v14432_v17 }
 0xfa1   :  { %v8891_v21 = vadd.f32 %v11593_v46, %v14421_v6  ;;  %v8954_v7 = vmax.f32 %v8888_v24, 0.0 }
 0xfa3   :  { %v8955_v33 = vmax.f32 %v8891_v21, 0.0  ;;  %v11594_v5 = vpop.f32.mrb[184].mxu0  ;;  %v9069_v21 = vld [vmem:[%s15151_s25] sm:$0x3f] }
 0xfa4   :  { %v11595_v11 = vpop.f32.mrb[185].mxu0 }
 0xfa5   :  { %v11596_v45 = vadd.f32 %v11595_v11, %v11594_v5  ;;  %v11597_v56 = vpop.f32.mrb[186].mxu0  ;;  %v8977_v40 = vpack.c.bf16 %v8955_v33, %v8954_v7  ;;  %v9078_v11 = vrot.slane %v9069_v21, %v13503_v60 }
 0xfa6   :  { %v11598_v36 = vpop.f32.mrb[187].mxu0 }
 0xfa7   :  { %v8896_v10 = vadd.f32 %v11596_v45, %v14421_v6  ;;  %v11599_v63 = vadd.f32 %v11598_v36, %v11597_v56  ;;  %11628 = vmatprep.subr.bf16.mxu0 %v8977_v40  ;;  %v9093_v56 = vld [vmem:[%s15152_s6] sm:$0xff] }
 0xfa8   :  { %11629 = vmatpush3.bf16.xpose.msra.mxu0 %v14436_v42 }
 0xfa9   :  { %v8899_v25 = vadd.f32 %v11599_v63, %v14421_v6  ;;  %v8956_v20 = vmax.f32 %v8896_v10, 0.0 }
 0xfab   :  { %v8957_v17 = vmax.f32 %v8899_v25, 0.0  ;;  %v11600_v49 = vpop.f32.mrb[188].mxu0  ;;  %v9086_v25 = vcombine.high %v9078_v11, %v9078_v11 }
 0xfac   :  { %v11601_v22 = vpop.f32.mrb[189].mxu0 }
 0xfad   :  { %v11602_v34 = vadd.f32 %v11601_v22, %v11600_v49  ;;  %v11603_v38 = vpop.f32.mrb[190].mxu0  ;;  %v8978_v37 = vpack.c.bf16 %v8957_v17, %v8956_v20  ;;  %v9114_v17 = vcombine.high %v9093_v56, %v9093_v56  ;;  %v9071_v22 = vcombine.high %v9069_v21, %v9069_v21 }
 0xfae   :  { %v11604_v9 = vpop.f32.mrb[191].mxu0 }
 0xfaf   :  { %v8904_v8 = vadd.f32 %v11602_v34, %v14421_v6  ;;  %v11605_v48 = vadd.f32 %v11604_v9, %v11603_v38  ;;  %11630 = vmatprep.subr.bf16.mxu0 %v8978_v37 }
 0xfb0   :  { %11631 = vmatpush3.bf16.xpose.msra.mxu0 %v14440_v1 }
 0xfb1   :  { %v8907_v57 = vadd.f32 %v11605_v48, %v14421_v6  ;;  %v8958_v28 = vmax.f32 %v8904_v8, 0.0  ;;  %v15153_v8 = vmov 0.0  }
 0xfb3   :  { %v8959_v42 = vmax.f32 %v8907_v57, 0.0  ;;  %v11606_v30 = vpop.f32.mrb[192].mxu0 }
 0xfb4   :  { %v11607_v13 = vpop.f32.mrb[193].mxu0 }
 0xfb5   :  { %v11608_v54 = vadd.f32 %v11607_v13, %v11606_v30  ;;  %v11609_v53 = vpop.f32.mrb[194].mxu0  ;;  %v8979_v47 = vpack.c.bf16 %v8959_v42, %v8958_v28  ;;  %v15154_v42 = vld [vmem:[#allocation88_spill] sm:$0xff] }
 0xfb6   :  { %v11610_v41 = vpop.f32.mrb[195].mxu0 }
 0xfb7   :  { %v8912_v62 = vadd.f32 %v11608_v54, %v14421_v6  ;;  %v11611_v16 = vadd.f32 %v11610_v41, %v11609_v53  ;;  %11632 = vmatprep.subr.bf16.mxu0 %v8979_v47 }
 0xfb8   :  { %11633 = vmatpush3.bf16.xpose.msra.mxu0 %v14444_v15  ;;  %v9037_v15 = vrot.slane %v1224_v18, %v13975_v35 }
 0xfb9   :  { %v8915_v61 = vadd.f32 %v11611_v16, %v14421_v6  ;;  %v8960_v55 = vmax.f32 %v8912_v62, 0.0 }
 0xfba   :  { %v9038_v3 = vcombine.high %v9037_v15, %v9037_v15  ;;  %v9045_v40 = vrot.slane %v9037_v15, %v13975_v35 }
 0xfbb   :  { %v8961_v1 = vmax.f32 %v8915_v61, 0.0  ;;  %v11612_v2 = vpop.f32.mrb[196].mxu0 }
 0xfbc   :  { %v11613_v4 = vpop.f32.mrb[197].mxu0  ;;  %v9053_v49 = vcombine.high %v9045_v40, %v9045_v40 }
 0xfbd   :  { %v11614_v44 = vadd.f32 %v11613_v4, %v11612_v2  ;;  %v11615_v52 = vpop.f32.mrb[198].mxu0  ;;  %v8980_v12 = vpack.c.bf16 %v8961_v1, %v8960_v55 }
 0xfbe   :  { %v11616_v0 = vpop.f32.mrb[199].mxu0 }
 0xfbf   :  { %v8920_v50 = vadd.f32 %v11614_v44, %v14421_v6  ;;  %v11617_v14 = vadd.f32 %v11616_v0, %v11615_v52  ;;  %11634 = vmatprep.subr.bf16.mxu0 %v8980_v12 }
 0xfc0   :  { %11635 = vmatpush3.bf16.xpose.msra.mxu0 %v14448_v51  ;;  %v9052_v51 = vrot.slane %v9038_v3, %v13975_v35  ;;  %v9085_v35 = vrot.slane %v9071_v22, %v13503_v60 }
 0xfc1   :  { %v8923_v39 = vadd.f32 %v11617_v14, %v14421_v6  ;;  %v8962_v32 = vmax.f32 %v8920_v50, 0.0 }
 0xfc2   :  { %v9061_v63 = vrot.slane %v9052_v51, %v13570_v29 }
 0xfc3   :  { %v8963_v59 = vmax.f32 %v8923_v39, 0.0  ;;  %v11618_v43 = vpop.f32.mrb[200].mxu0 }
 0xfc4   :  { %v11619_v27 = vpop.f32.mrb[201].mxu0  ;;  %v9091_v34 = vmul.f32 %v9086_v25, %v9061_v63 }
 0xfc5   :  { %v11620_v23 = vadd.f32 %v11619_v27, %v11618_v43  ;;  %v11621_v24 = vpop.f32.mrb[202].mxu0  ;;  %v8981_v46 = vpack.c.bf16 %v8963_v59, %v8962_v32 }
 0xfc6   :  { %v11622_v7 = vpop.f32.mrb[203].mxu0 }
 0xfc7   :  { %v8928_v33 = vadd.f32 %v11620_v23, %v14421_v6  ;;  %v11623_v5 = vadd.f32 %v11622_v7, %v11621_v24  ;;  %11636 = vmatprep.subr.bf16.mxu0 %v8981_v46  ;;  %v15155_v46 = vmov 683565275   ;;  %v15156_v7 = vmov 2475754826  }
 0xfc8   :  { %11637 = vmatpush3.bf16.xpose.msra.mxu0 %v14452_v58  ;;  %v9057_v58 = vrot.slane %v9045_v40, %v13570_v29 }
 0xfc9   :  { %v8931_v45 = vadd.f32 %v11623_v5, %v14421_v6  ;;  %v8964_v36 = vmax.f32 %v8928_v33, 0.0  ;;  %v9065_v6 = vrot.slane %v9053_v49, %v13570_v29  ;;  %v15157_v5 = vmov 2131351028  }
 0xfca   :  { %v9090_v38 = vmul.f32 %v9078_v11, %v9057_v58  ;;  %v15158_v11 = vmov 2102212464  }
 0xfcb   :  { %v8965_v10 = vmax.f32 %v8931_v45, 0.0  ;;  %v9092_v9 = vmul.f32 %v9085_v35, %v9065_v6 }
 0xfcc   :  { %v9097_v37 = vcombine.low %v9090_v38, %v9091_v34 }
 0xfcd   :  { %v8982_v20 = vpack.c.bf16 %v8965_v10, %v8964_v36  ;;  %v9111_v57 = vrot.slane %v9092_v9, %v13503_v60  ;;  %v15159_v10 = vmov 920167782  }
 0xfce   :  { %v9104_v48 = vrot.slane %v9097_v37, %v13503_v60 }
 0xfcf   :  { %11638 = vmatprep.subr.bf16.mxu0 %v8982_v20  ;;  %v15160_v20 = vmov 1326507024  }
 0xfd0   :  { %11639 = vmatpush3.bf16.xpose.msra.mxu0 %v14456_v26  ;;  %v9112_v26 = vcombine.low %v9104_v48, %v9111_v57 }
 0xfd1   :  { %11193 = vmatprep.subr.msk.mxu0 %vm9118_vm1, %v9114_v17 }
 0xfd7   :  { %11641 = vmatmul.mubr.bf16.vlgmr.msra.gmra.mrb[204].mxu0 %v14424_v19 }
 0xfd8   :  { %11194 = vmatpush1.msk.msra.mxu0 %vm9118_vm1, %v9093_v56  ;;  %9187 = vmatprep.mubr.f32.mxu0 %v15153_v8 }
 0xfdf   :  { %11195 = vmatmul.mubr.msk.f32.vlgmr.msra.gmra.mrb[208].mxu0 %vm9115_vm6, %v9112_v26 }
0x10aa   :  { %v9023_v28 = vpop.f32.mrb[204].mxu0 }
0x10ab   :  { %v14499_v30 = vadd.f32 %v9023_v28, %v15154_v42  ;;  %v9025_v13 = vpop.f32.mrb[205].mxu0 }
0x10ac   :  { %v14502_v54 = vadd.f32 %v9025_v13, %v15154_v42  ;;  %v9027_v53 = vpop.f32.mrb[206].mxu0 }
0x10ad   :  { %v9194_v19 = vand.u32 2147483647, %v14499_v30  ;;  %v9197_v47 = vand.u32 2139095040, %v14499_v30  ;;  %v9028_v41 = vpop.f32.mrb[207].mxu0  ;;  %v9611_v1 = vrot.slane %v14499_v30, %v13573_v31  ;;  %vm9196_vm0 = vcmp.lt.s32.totalorder %v14499_v30, 0 }
0x10ae   :  { %v9301_v62 = vand.u32 2139095040, %v14502_v54  ;;  %v9298_v0 = vand.u32 2147483647, %v14502_v54 }
0x10af   :  { %v9198_v60 = vshrl.u32 %v9197_v47, 23  ;;  %v9201_v16 = vand.u32 8388607, %v9194_v19  ;;  %vm14611_vm5 = vcmp.le.f32.partialorder %v9194_v19, 0.7853982 }
0x10b0   :  { %v9302_v61 = vshrl.u32 %v9301_v62, 23  ;;  %v14523_v43 = vand.u32 8388607, %v9298_v0 }
0x10b1   :  { %v11196_v55 = vadd.s32 4294967169, %v9198_v60  ;;  %v9202_v12 = vor.u32 8388608, %v9201_v16 }
0x10b2   :  { %v11200_v2 = vadd.s32 4294967169, %v9302_v61  ;;  %v14511_v4 = vpop.f32.mrb[208].mxu0 }
0x10b3   :  { %v9204_v18 = vadd.s32 1, %v11196_v55  ;;  %v14514_v44 = vsub.f32 %v9611_v1, %v14511_v4  ;;  %v14516_v52 = vpop.f32.mrb[209].mxu0  ;;  %v14519_v59 = vshll.u32 %v9202_v12, 8 }
0x10b4   :  { %v9308_v50 = vadd.s32 1, %v11200_v2 }
0x10b5   :  { %vm9205_vm7 = vcmp.gt.s32.totalorder %v9204_v18, 0  ;;  %v9621_v24 = vand.u32 2139095040, %v14514_v44 }
0x10b6   :  { %v9206_v14 = vsel %vm9205_vm7, %v9204_v18, 0  ;;  %vm9309_vm8 = vcmp.gt.s32.totalorder %v9308_v50, 0 }
0x10b7   :  { %v9208_v15 = vand.u32 31, %v9206_v14  ;;  %v9310_v39 = vsel %vm9309_vm8, %v9308_v50, 0  ;;  %v9207_v32 = vshrl.u32 %v9206_v14, 5 }
0x10b8   :  { %v14525_v3 = vshrl.u32 %v9310_v39, 5  ;;  %v9312_v23 = vand.u32 31, %v9310_v39 }
0x10b9   :  { %v9209_v27 = vsub.s32 32, %v9208_v15  ;;  %v9211_v21 = vshll.u32 %v15155_v46, %v9208_v15  ;;  %v9214_v33 = vshll.u32 %v15156_v7, %v9208_v15  ;;  %v9217_v51 = vshll.u32 %v15157_v5, %v9208_v15 }
0x10ba   :  { %v9220_v45 = vshll.u32 %v15158_v11, %v9208_v15  ;;  %v9223_v63 = vshll.u32 %v15159_v10, %v9208_v15  ;;  %vm9226_vm9 = vcmp.lt.s32.totalorder %v9207_v32, 1  ;;  %vm9227_vm10 = vcmp.lt.s32.totalorder %v9207_v32, 2 }
0x10bb   :  { %v9212_v56 = vshrl.u32 %v15156_v7, %v9209_v27  ;;  %v9215_v40 = vshrl.u32 %v15157_v5, %v9209_v27  ;;  %v9218_v36 = vshrl.u32 %v15158_v11, %v9209_v27  ;;  %v9221_v25 = vshrl.u32 %v15159_v10, %v9209_v27 }
0x10bc   :  { %v9224_v17 = vshrl.u32 %v15160_v20, %v9209_v27  ;;  %v14538_v34 = vsub.s32 32, %v9312_v23  ;;  %v9210_v6 = vshrl.u32 %v15155_v46, %v9209_v27  ;;  %vm9229_vm11 = vcmp.lt.s32.totalorder %v9207_v32, 4 }
0x10bd   :  { %v9213_v49 = vor.u32 %v9212_v56, %v9211_v21  ;;  %v9216_v58 = vor.u32 %v9215_v40, %v9214_v33  ;;  %v9219_v22 = vor.u32 %v9218_v36, %v9217_v51  ;;  %v9222_v35 = vor.u32 %v9221_v25, %v9220_v45 }
0x10be   :  { %v9225_v38 = vor.u32 %v9224_v17, %v9223_v63  ;;  %vm9228_vm12 = vcmp.lt.s32.totalorder %v9207_v32, 3  ;;  %v9315_v26 = vshll.u32 %v15155_v46, %v9312_v23  ;;  %v9318_v28 = vshll.u32 %v15156_v7, %v9312_v23 }
0x10bf   :  { %v9231_v37 = vsel %vm9229_vm11, %v9219_v22, 2102212464  ;;  %v9234_v9 = vsel %vm9226_vm9, %v9213_v49, %v9216_v58  ;;  %v9238_v8 = vsel %vm9226_vm9, %v9216_v58, %v9219_v22  ;;  %v9235_v48 = vsel %vm9229_vm11, %v9222_v35, 920167782 }
0x10c0   :  { %v9239_v57 = vsel %vm9229_vm11, %v9225_v38, 1326507024  ;;  %v9230_v42 = vsel %vm9226_vm9, %v9210_v6, %v9213_v49  ;;  %v9236_v13 = vsel %vm9228_vm12, %v9219_v22, %v9235_v48  ;;  %v9316_v47 = vshrl.u32 %v15156_v7, %v14538_v34 }
0x10c1   :  { %v9240_v53 = vsel %vm9228_vm12, %v9222_v35, %v9239_v57  ;;  %v9232_v41 = vsel %vm9228_vm12, %v9216_v58, %v9231_v37  ;;  %v9237_v62 = vsel %vm9227_vm10, %v9234_v9, %v9236_v13  ;;  %v9319_v16 = vshrl.u32 %v15157_v5, %v14538_v34 }
0x10c2   :  { %v9241_v60 = vsel %vm9227_vm10, %v9238_v8, %v9240_v53  ;;  %v14557_v1 = vmul.u32.u64.low %v14519_v59, %v9237_v62  ;;  %v14558_v2 = vmul.u32.u64.high %v14519_v59, %v9237_v62, %v14557_v1  ;;  %v9317_v18 = vor.u32 %v9316_v47, %v9315_v26 }
0x10c3   :  { %v14553_v61 = vmul.u32.u64.low %v14519_v59, %v9241_v60  ;;  %v14554_v55 = vmul.u32.u64.high %v14519_v59, %v9241_v60, %v14553_v61  ;;  %v9320_v12 = vor.u32 %v9319_v16, %v9318_v28  ;;  %v9321_v50 = vshll.u32 %v15157_v5, %v9312_v23 }
0x10c4   :  { %v9322_v14 = vshrl.u32 %v15158_v11, %v14538_v34  ;;  %v9233_v15 = vsel %vm9227_vm10, %v9230_v42, %v9232_v41  ;;  %v9324_v39 = vshll.u32 %v15158_v11, %v9312_v23  ;;  %v9325_v27 = vshrl.u32 %v15159_v10, %v14538_v34 }
0x10c5   :  { %v9328_v21 = vshrl.u32 %v15160_v20, %v14538_v34  ;;  %v9306_v33 = vor.u32 8388608, %v14523_v43  ;;  %v9327_v45 = vshll.u32 %v15159_v10, %v9312_v23  ;;  %v9622_v56 = vshrl.u32 %v9621_v24, 23 }
0x10c6   :  { %v9323_v51 = vor.u32 %v9322_v14, %v9321_v50  ;;  %vm9251_vm13 = vc.u32 %v14554_v55, %v14557_v1  ;;  %v9252_v32 = vadd.s32 1, %v14558_v2  ;;  %v9326_v40 = vor.u32 %v9325_v27, %v9324_v39 }
0x10c7   :  { %vm9330_vm14 = vcmp.lt.s32.totalorder %v14525_v3, 1  ;;  %v9249_v36 = vmul.u32 %v14519_v59, %v9233_v15  ;;  %v9329_v63 = vor.u32 %v9328_v21, %v9327_v45  ;;  %vm9333_vm15 = vcmp.lt.s32.totalorder %v14525_v3, 4 }
0x10c8   :  { %v9338_v43 = vsel %vm9330_vm14, %v9317_v18, %v9320_v12  ;;  %v9253_v25 = vsel %vm9251_vm13, %v9252_v32, %v14558_v2  ;;  %vm9332_vm2 = vcmp.lt.s32.totalorder %v14525_v3, 3  ;;  %v9339_v23 = vsel %vm9333_vm15, %v9326_v40, 920167782 }
0x10c9   :  { %v9342_v24 = vsel %vm9330_vm14, %v9320_v12, %v9323_v51  ;;  %v9254_v17 = vadd.s32 %v9253_v25, %v9249_v36  ;;  %vm9331_vm3 = vcmp.lt.s32.totalorder %v14525_v3, 2  ;;  %v9340_v59 = vsel %vm9332_vm2, %v9323_v51, %v9339_v23 }
0x10ca   :  { %v9343_v49 = vsel %vm9333_vm15, %v9329_v63, 1326507024  ;;  %v9341_v58 = vsel %vm9331_vm3, %v9338_v43, %v9340_v59  ;;  %v11212_v6 = vadd.s32 4294967169, %v9622_v56  ;;  %v9346_v37 = vshll.u32 %v9306_v33, 8 }
0x10cb   :  { %v9344_v22 = vsel %vm9332_vm2, %v9326_v40, %v9343_v49  ;;  %v9255_v35 = vadd.s32 536870912, %v9254_v17  ;;  %v9335_v53 = vsel %vm9333_vm15, %v9323_v51, 2102212464  ;;  %v9314_v47 = vshrl.u32 %v15155_v46, %v14538_v34 }
0x10cc   :  { %v9345_v38 = vsel %vm9331_vm3, %v9342_v24, %v9344_v22  ;;  %v14597_v8 = vmul.u32.u64.low %v9346_v37, %v9341_v58  ;;  %v14598_v48 = vmul.u32.u64.high %v9346_v37, %v9341_v58, %v14597_v8  ;;  %v9628_v57 = vadd.s32 1, %v11212_v6 }
0x10cd   :  { %v9256_v9 = vshrl.u32 %v9255_v35, 30  ;;  %v14601_v26 = vmul.u32.u64.low %v9346_v37, %v9345_v38  ;;  %v14602_v28 = vmul.u32.u64.high %v9346_v37, %v9345_v38, %v14601_v26  ;;  %v9618_v61 = vand.u32 2147483647, %v14514_v44 }
0x10ce   :  { %vm9629_vm4 = vcmp.gt.s32.totalorder %v9628_v57, 0  ;;  %v9334_v34 = vsel %vm9330_vm14, %v9314_v47, %v9317_v18  ;;  %v9336_v50 = vsel %vm9332_vm2, %v9320_v12, %v9335_v53  ;;  %v9356_v27 = vadd.s32 1, %v14598_v48 }
0x10cf   :  { %v9257_v42 = vshll.u32 %v9256_v9, 30  ;;  %v9280_v13 = vsub.s32 4, %v9256_v9  ;;  %v9630_v41 = vsel %vm9629_vm4, %v9628_v57, 0  ;;  %v9337_v39 = vsel %vm9331_vm3, %v9334_v34, %v9336_v50 }
0x10d0   :  { %v9632_v19 = vand.u32 31, %v9630_v41  ;;  %vm9355_vm1 = vc.u32 %v14602_v28, %v14597_v8  ;;  %v9625_v33 = vand.u32 8388607, %v9618_v61  ;;  %v9837_v18 = vand.u32 2139095040, %v14511_v4 }
0x10d1   :  { %v9258_v60 = vsub.s32 %v9254_v17, %v9257_v42  ;;  %v9281_v16 = vsel %vm9196_vm0, %v9280_v13, %v9256_v9  ;;  %v9250_v12 = vadd.s32 %v14557_v1, %v14554_v55  ;;  %v9353_v45 = vmul.u32 %v9346_v37, %v9337_v39 }
0x10d2   :  { %v14620_v2 = vsel %vm14611_vm5, 0, %v9281_v16  ;;  %v9633_v21 = vsub.s32 32, %v9632_v19  ;;  %v9357_v3 = vsel %vm9355_vm1, %v9356_v27, %v14598_v48  ;;  %v9626_v36 = vor.u32 8388608, %v9625_v33 }
0x10d3   :  { %v9260_v14 = vsub.s32 0, %v9258_v60  ;;  %v9838_v25 = vshrl.u32 %v9837_v18, 23  ;;  %v9631_v23 = vshrl.u32 %v9630_v41, 5  ;;  %v9635_v24 = vshll.u32 %v15155_v46, %v9632_v19 }
0x10d4   :  { %v9636_v32 = vshrl.u32 %v15156_v7, %v9633_v21  ;;  %v9639_v40 = vshrl.u32 %v15157_v5, %v9633_v21  ;;  %v9642_v63 = vshrl.u32 %v15158_v11, %v9633_v21  ;;  %v9645_v43 = vshrl.u32 %v15159_v10, %v9633_v21 }
0x10d5   :  { %v11197_v15 = vmin.u32 %v9260_v14, %v9258_v60  ;;  %v9638_v55 = vshll.u32 %v15156_v7, %v9632_v19  ;;  %v14643_v17 = vadd.s32 %v9357_v3, %v9353_v45  ;;  %v9641_v59 = vshll.u32 %v15157_v5, %v9632_v19 }
0x10d6   :  { %v9644_v49 = vshll.u32 %v15158_v11, %v9632_v19  ;;  %v9637_v6 = vor.u32 %v9636_v32, %v9635_v24  ;;  %v9647_v9 = vshll.u32 %v15159_v10, %v9632_v19  ;;  %v9648_v48 = vshrl.u32 %v15160_v20, %v9633_v21 }
0x10d7   :  { %v9262_v51 = vclz %v11197_v15  ;;  %v9640_v35 = vor.u32 %v9639_v40, %v9638_v55  ;;  %v9643_v38 = vor.u32 %v9642_v63, %v9641_v59  ;;  %vm9650_vm7 = vcmp.lt.s32.totalorder %v9631_v23, 1 }
0x10d8   :  { %v9646_v37 = vor.u32 %v9645_v43, %v9644_v49  ;;  %v9649_v13 = vor.u32 %v9648_v48, %v9647_v9  ;;  %v9666_v53 = vshll.u32 %v9626_v36, 8  ;;  %v11220_v47 = vadd.s32 4294967169, %v9838_v25 }
0x10d9   :  { %v11198_v56 = vadd.s32 4294967294, %v9262_v51  ;;  %v9359_v34 = vadd.s32 536870912, %v14643_v17  ;;  %vm9653_vm8 = vcmp.lt.s32.totalorder %v9631_v23, 4  ;;  %vm9652_vm9 = vcmp.lt.s32.totalorder %v9631_v23, 3 }
0x10da   :  { %v9658_v50 = vsel %vm9650_vm7, %v9637_v6, %v9640_v35  ;;  %v9659_v14 = vsel %vm9653_vm8, %v9646_v37, 920167782  ;;  %v9662_v19 = vsel %vm9650_vm7, %v9640_v35, %v9643_v38  ;;  %v9655_v39 = vsel %vm9653_vm8, %v9643_v38, 2102212464 }
0x10db   :  { %vm11199_vm6 = vcmp.lt.s32.totalorder %v11198_v56, 0  ;;  %v9663_v27 = vsel %vm9653_vm8, %v9649_v13, 1326507024  ;;  %v9634_v18 = vshrl.u32 %v15155_v46, %v9633_v21  ;;  %vm9651_vm10 = vcmp.lt.s32.totalorder %v9631_v23, 2 }
0x10dc   :  { %v9265_v1 = vsel %vm11199_vm6, 0, %v11198_v56  ;;  %v9664_v51 = vsel %vm9652_vm9, %v9646_v37, %v9663_v27  ;;  %v9844_v3 = vadd.s32 1, %v11220_v47  ;;  %v14657_v32 = vshrl.u32 %v9359_v34, 30 }
0x10dd   :  { %v9266_v58 = vsub.s32 32, %v9265_v1  ;;  %v9270_v22 = vsub.s32 4294967266, %v9265_v1  ;;  %v9267_v57 = vshll.u32 %v9258_v60, %v9265_v1  ;;  %v9660_v60 = vsel %vm9652_vm9, %v9643_v38, %v9659_v14 }
0x10de   :  { %v9661_v45 = vsel %vm9651_vm10, %v9658_v50, %v9660_v60  ;;  %v9665_v56 = vsel %vm9651_vm10, %v9662_v19, %v9664_v51  ;;  %v9654_v40 = vsel %vm9650_vm7, %v9634_v18, %v9637_v6  ;;  %v9656_v36 = vsel %vm9652_vm9, %v9640_v35, %v9655_v39 }
0x10df   :  { %v9268_v26 = vshrl.u32 %v9250_v12, %v9266_v58  ;;  %v9271_v42 = vadd.s32 127, %v9270_v22  ;;  %v14661_v43 = vmul.u32.u64.low %v9666_v53, %v9665_v56  ;;  %v14662_v25 = vmul.u32.u64.high %v9666_v53, %v9665_v56, %v14661_v43 }
0x10e0   :  { %vm9845_vm11 = vcmp.gt.s32.totalorder %v9844_v3, 0  ;;  %v14664_v21 = vmul.u32.u64.low %v9666_v53, %v9661_v45  ;;  %v14665_v24 = vmul.u32.u64.high %v9666_v53, %v9661_v45, %v14664_v21  ;;  %v9834_v55 = vand.u32 2147483647, %v14511_v4 }
0x10e1   :  { %v9269_v41 = vor.u32 %v9268_v26, %v9267_v57  ;;  %v9272_v16 = vshll.u32 %v9271_v42, 23  ;;  %v9846_v59 = vsel %vm9845_vm11, %v9844_v3, 0  ;;  %v9657_v49 = vsel %vm9651_vm10, %v9654_v40, %v9656_v36 }
0x10e2   :  { %v9848_v58 = vand.u32 31, %v9846_v59  ;;  %v9361_v6 = vshll.u32 %v14657_v32, 30  ;;  %vm9675_vm12 = vc.u32 %v14662_v25, %v14664_v21  ;;  %v9676_v38 = vadd.s32 1, %v14665_v24 }
0x10e3   :  { %v9273_v15 = vor.u32 4788187, %v9272_v16  ;;  %v9276_v33 = vcvt.s32.f32 %v9269_v41  ;;  %v9841_v37 = vand.u32 8388607, %v9834_v55  ;;  %v9673_v23 = vmul.u32 %v9666_v53, %v9657_v49 }
0x10e4   :  { %v9849_v9 = vsub.s32 32, %v9848_v58  ;;  %v9287_v48 = vadd.s32 3, %v14620_v2  ;;  %v9677_v57 = vsel %vm9675_vm12, %v9676_v38, %v14665_v24  ;;  %v9495_v26 = vand.u32 3, %v14620_v2 }
0x10e5   :  { %v9274_v12 = vand.u32 2147483647, %v9273_v15  ;;  %v14685_v42 = vsub.s32 %v14643_v17, %v9361_v6  ;;  %v9678_v62 = vadd.s32 %v9677_v57, %v9673_v23  ;;  %v9842_v13 = vor.u32 8388608, %v9841_v37 }
0x10e6   :  { %v9852_v47 = vshrl.u32 %v15156_v7, %v9849_v9  ;;  %v9860_v41 = vshll.u32 %v15158_v11, %v9848_v58  ;;  %v9861_v16 = vshrl.u32 %v15159_v10, %v9849_v9  ;;  %v14690_v34 = vshrl.u32 %v9846_v59, 5 }
0x10e7   :  { %v9277_v63 = vmul.f32 %v9276_v33, %v9274_v12  ;;  %v9679_v53 = vadd.s32 536870912, %v9678_v62  ;;  %v9855_v50 = vshrl.u32 %v15157_v5, %v9849_v9  ;;  %v9858_v14 = vshrl.u32 %v15158_v11, %v9849_v9 }
0x10e8   :  { %v9288_v19 = vand.u32 3, %v9287_v48  ;;  %v9851_v2 = vshll.u32 %v15155_v46, %v9848_v58  ;;  %v9862_v17 = vor.u32 %v9861_v16, %v9860_v41  ;;  %v9864_v15 = vshrl.u32 %v15160_v20, %v9849_v9 }
0x10e9   :  { %v9278_v1 = vxor.u32 2147483648, %v9277_v63  ;;  %vm9496_vm13 = vcmp.lt.s32.totalorder %v9495_v26, 2  ;;  %v9364_v39 = vsub.s32 0, %v14685_v42  ;;  %v14697_v60 = vshrl.u32 %v9679_v53, 30 }
0x10ea   :  { %v9854_v27 = vshll.u32 %v15156_v7, %v9848_v58  ;;  %v9857_v33 = vshll.u32 %v15157_v5, %v9848_v58  ;;  %vm9286_vm14 = vweird.f32 %v14499_v30  ;;  %vm9497_vm15 = vcmp.eq.s32.totalorder %v9495_v26, 0 }
0x10eb   :  { %v9279_v22 = vsel %vm9196_vm0, %v9278_v1, %v9277_v63  ;;  %vm9500_vm2 = vcmp.eq.s32.totalorder %v9495_v26, 2  ;;  %v9853_v18 = vor.u32 %v9852_v47, %v9851_v2  ;;  %v9863_v51 = vshll.u32 %v15159_v10, %v9848_v58 }
0x10ec   :  { %v9282_v35 = vsel %vm14611_vm5, %v14499_v30, %v9279_v22  ;;  %v9681_v12 = vshll.u32 %v14697_v60, 30  ;;  %v9856_v45 = vor.u32 %v9855_v50, %v9854_v27  ;;  %v9859_v56 = vor.u32 %v9858_v14, %v9857_v33 }
0x10ed   :  { %12185 = vcosq.f32 %v9282_v35  ;;  %vm9869_vm3 = vcmp.lt.s32.totalorder %v14690_v34, 4  ;;  %vm9289_vm4 = vcmp.lt.s32.totalorder %v9288_v19, 2  ;;  %vm9290_vm0 = vcmp.eq.s32.totalorder %v9288_v19, 0 }
0x10ee   :  { %12187 = vsinq.f32 %v9282_v35  ;;  %v9865_v3 = vor.u32 %v9864_v15, %v9863_v51  ;;  %v9875_v40 = vsel %vm9869_vm3, %v9862_v17, 920167782  ;;  %vm9293_vm5 = vcmp.eq.s32.totalorder %v9288_v19, 2 }
0x10ef   :  { %v11201_v63 = vmin.u32 %v9364_v39, %v14685_v42  ;;  %v9682_v43 = vsub.s32 %v9678_v62, %v9681_v12  ;;  %v9882_v24 = vshll.u32 %v9842_v13, 8  ;;  %v9850_v49 = vshrl.u32 %v15155_v46, %v9849_v9 }
0x10f0   :  { %vm9866_vm1 = vcmp.lt.s32.totalorder %v14690_v34, 1  ;;  %vm9868_vm6 = vcmp.lt.s32.totalorder %v14690_v34, 3  ;;  %vm9867_vm7 = vcmp.lt.s32.totalorder %v14690_v34, 2  ;;  %v9879_v23 = vsel %vm9869_vm3, %v9865_v3, 1326507024 }
0x10f1   :  { %v9684_v22 = vsub.s32 0, %v9682_v43  ;;  %v9874_v6 = vsel %vm9866_vm1, %v9853_v18, %v9856_v45  ;;  %v9876_v35 = vsel %vm9868_vm6, %v9859_v56, %v9875_v40  ;;  %v9878_v62 = vsel %vm9866_vm1, %v9856_v45, %v9859_v56 }
0x10f2   :  { %v9871_v41 = vsel %vm9869_vm3, %v9859_v56, 2102212464  ;;  %v9877_v16 = vsel %vm9867_vm7, %v9874_v6, %v9876_v35  ;;  %v9880_v19 = vsel %vm9868_vm6, %v9862_v17, %v9879_v23  ;;  %v9870_v26 = vsel %vm9866_vm1, %v9850_v49, %v9853_v18 }
0x10f3   :  { %v11213_v57 = vmin.u32 %v9684_v22, %v9682_v43  ;;  %v9881_v2 = vsel %vm9867_vm7, %v9878_v62, %v9880_v19  ;;  %v9615_v15 = vrot.slane %v14502_v54, %v13573_v31  ;;  %v9872_v27 = vsel %vm9868_vm6, %v9856_v45, %v9871_v41 }
0x10f4   :  { %v14747_v30 = vmul.u32.u64.low %v9882_v24, %v9881_v2  ;;  %v14748_v33 = vmul.u32.u64.high %v9882_v24, %v9881_v2, %v14747_v30  ;;  %v9366_v51 = vclz %v11201_v63  ;;  %v9873_v3 = vsel %vm9867_vm7, %v9870_v26, %v9872_v27 }
0x10f5   :  { %v9686_v14 = vclz %v11213_v57  ;;  %v14750_v12 = vmul.u32.u64.low %v9882_v24, %v9877_v16  ;;  %v14751_v56 = vmul.u32.u64.high %v9882_v24, %v9877_v16, %v14750_v12  ;;  %v14754_v17 = vsub.f32 %v9615_v15, %v14516_v52 }
0x10f6   :  { %v9674_v40 = vadd.s32 %v14664_v21, %v14662_v25  ;;  %v9889_v6 = vmul.u32 %v9882_v24, %v9873_v3  ;;  %vm9620_vm11 = vcmp.lt.s32.totalorder %v14514_v44, 0  ;;  %v9941_v30 = vand.u32 2139095040, %v14516_v52 }
0x10f7   :  { %v12186_v36 = vpop.eup %12185  ;;  %v11214_v39 = vadd.s32 4294967294, %v9686_v14  ;;  %vm9891_vm9 = vc.u32 %v14748_v33, %v14750_v12  ;;  %v9892_v63 = vadd.s32 1, %v14751_v56  ;;  %v9721_v24 = vand.u32 2147483647, %v14754_v17 }
0x10f8   :  { %v12188_v1 = vpop.eup %12187  ;;  %v9294_v59 = vxor.u32 2147483648, %v12186_v36  ;;  %v9938_v3 = vand.u32 2147483647, %v14516_v52 }
0x10f9   :  { %v9291_v58 = vxor.u32 2147483648, %v12188_v1  ;;  %vm11215_vm8 = vcmp.lt.s32.totalorder %v11214_v39, 0  ;;  %v9893_v35 = vsel %vm9891_vm9, %v9892_v63, %v14751_v56  ;;  %v9890_v63 = vadd.s32 %v14750_v12, %v14748_v33 }
0x10fa   :  { %v9295_v38 = vsel %vm9293_vm5, %v9294_v59, %v12188_v1  ;;  %v9502_v37 = vsel %vm9500_vm2, %v9294_v59, %v12188_v1  ;;  %v9689_v18 = vsel %vm11215_vm8, 0, %v11214_v39  ;;  %v11202_v1 = vadd.s32 4294967294, %v9366_v51 }
0x10fb   :  { %v9292_v9 = vsel %vm9290_vm0, %v12186_v36, %v9291_v58  ;;  %v9499_v48 = vsel %vm9497_vm15, %v12186_v36, %v9291_v58  ;;  %v9690_v36 = vsub.s32 32, %v9689_v18  ;;  %v9694_v45 = vsub.s32 4294967266, %v9689_v18 }
0x10fc   :  { %v9296_v13 = vsel %vm9289_vm4, %v9292_v9, %v9295_v38  ;;  %v9503_v47 = vsel %vm9496_vm13, %v9499_v48, %v9502_v37  ;;  %v9724_v59 = vand.u32 2139095040, %v14754_v17  ;;  %v9691_v49 = vshll.u32 %v9682_v43, %v9689_v18 }
0x10fd   :  { %v14731_v53 = vsel %vm9286_vm14, nan, %v9296_v13  ;;  %v14735_v50 = vsel %vm9286_vm14, nan, %v9503_v47  ;;  %v9692_v58 = vshrl.u32 %v9674_v40, %v9690_v36  ;;  %v9695_v22 = vadd.s32 127, %v9694_v45 }
0x10fe   :  { %v9894_v37 = vadd.s32 %v9893_v35, %v9889_v6  ;;  %v9725_v23 = vshrl.u32 %v9724_v59, 23  ;;  %vm11203_vm10 = vcmp.lt.s32.totalorder %v11202_v1, 0  ;;  %v9704_v43 = vsub.s32 4, %v14697_v60 }
0x10ff   :  { %v9693_v34 = vor.u32 %v9692_v58, %v9691_v49  ;;  %v9696_v38 = vshll.u32 %v9695_v22, 23  ;;  %v14766_v13 = vsel %vm11203_vm10, 0, %v11202_v1  ;;  %v9728_v39 = vand.u32 8388607, %v9721_v24 }
0x1100   :  { %v9895_v21 = vadd.s32 536870912, %v9894_v37  ;;  %v11216_v9 = vadd.s32 4294967169, %v9725_v23  ;;  %v9374_v14 = vsub.s32 4294967266, %v14766_v13  ;;  %v14776_v15 = vsel %vm9620_vm11, %v9704_v43, %v14697_v60 }
0x1101   :  { %v9697_v25 = vor.u32 4788187, %v9696_v38  ;;  %v9700_v57 = vcvt.s32.f32 %v9693_v34  ;;  %vm14783_vm13 = vcmp.le.f32.partialorder %v9618_v61, 0.7853982  ;;  %v14791_v60 = vadd.s32 %v14597_v8, %v14602_v28 }
0x1102   :  { %v14764_v62 = vshrl.u32 %v9895_v21, 30  ;;  %v9731_v47 = vadd.s32 1, %v11216_v9  ;;  %v9370_v40 = vsub.s32 32, %v14766_v13  ;;  %v14797_v61 = vadd.s32 127, %v9374_v14 }
0x1103   :  { %v9698_v48 = vand.u32 2147483647, %v9697_v25  ;;  %v9707_v1 = vsel %vm14783_vm13, 0, %v14776_v15  ;;  %v9729_v28 = vor.u32 8388608, %v9728_v39  ;;  %v9942_v58 = vshrl.u32 %v9941_v30, 23 }
0x1104   :  { %v9897_v16 = vshll.u32 %v14764_v62, 30  ;;  %vm9732_vm12 = vcmp.gt.s32.totalorder %v9731_v47, 0  ;;  %v9920_v8 = vsub.s32 4, %v14764_v62  ;;  %vm9836_vm14 = vcmp.lt.s32.totalorder %v14511_v4, 0 }
0x1105   :  { %v9701_v41 = vmul.f32 %v9700_v57, %v9698_v48  ;;  %v9733_v2 = vsel %vm9732_vm12, %v9731_v47, 0  ;;  %vm14823_vm4 = vcmp.le.f32.partialorder %v9834_v55, 0.7853982  ;;  %vm9710_vm10 = vweird.f32 %v14514_v44 }
0x1106   :  { %v14773_v26 = vsub.s32 %v9894_v37, %v9897_v16  ;;  %v9735_v27 = vand.u32 31, %v9733_v2  ;;  %v14805_v49 = vshrl.u32 %v9733_v2, 5 }
0x1107   :  { %v9702_v19 = vxor.u32 2147483648, %v9701_v41 }
0x1108   :  { %v9900_v18 = vsub.s32 0, %v14773_v26  ;;  %v9736_v45 = vsub.s32 32, %v9735_v27  ;;  %v9738_v6 = vshll.u32 %v15155_v46, %v9735_v27  ;;  %v9741_v35 = vshll.u32 %v15156_v7, %v9735_v27 }
0x1109   :  { %v9703_v56 = vsel %vm9620_vm11, %v9702_v19, %v9701_v41  ;;  %v9744_v33 = vshll.u32 %v15157_v5, %v9735_v27  ;;  %v9747_v23 = vshll.u32 %v15158_v11, %v9735_v27  ;;  %v9750_v21 = vshll.u32 %v15159_v10, %v9735_v27 }
0x110a   :  { %v9706_v36 = vsel %vm14783_vm13, %v14514_v44, %v9703_v56  ;;  %v11221_v59 = vmin.u32 %v9900_v18, %v14773_v26  ;;  %v9739_v34 = vshrl.u32 %v15156_v7, %v9736_v45  ;;  %v9742_v38 = vshrl.u32 %v15157_v5, %v9736_v45 }
0x110b   :  { %12189 = vcosq.f32 %v9706_v36  ;;  %v9745_v12 = vshrl.u32 %v15158_v11, %v9736_v45  ;;  %v9748_v25 = vshrl.u32 %v15159_v10, %v9736_v45  ;;  %v9751_v43 = vshrl.u32 %v15160_v20, %v9736_v45 }
0x110c   :  { %v9902_v22 = vclz %v11221_v59  ;;  %v9740_v9 = vor.u32 %v9739_v34, %v9738_v6  ;;  %v9743_v48 = vor.u32 %v9742_v38, %v9741_v35  ;;  %12191 = vsinq.f32 %v9706_v36 }
0x110d   :  { %v9746_v57 = vor.u32 %v9745_v12, %v9744_v33  ;;  %v9737_v47 = vshrl.u32 %v15155_v46, %v9736_v45  ;;  %v9749_v41 = vor.u32 %v9748_v25, %v9747_v23  ;;  %v9752_v14 = vor.u32 %v9751_v43, %v9750_v21 }
0x110e   :  { %v11222_v37 = vadd.s32 4294967294, %v9902_v22  ;;  %vm9753_vm2 = vcmp.lt.s32.totalorder %v14805_v49, 1  ;;  %vm9754_vm3 = vcmp.lt.s32.totalorder %v14805_v49, 2  ;;  %vm9755_vm0 = vcmp.lt.s32.totalorder %v14805_v49, 3 }
0x110f   :  { %vm9756_vm5 = vcmp.lt.s32.totalorder %v14805_v49, 4  ;;  %v9761_v30 = vsel %vm9753_vm2, %v9740_v9, %v9743_v48  ;;  %v9765_v36 = vsel %vm9753_vm2, %v9743_v48, %v9746_v57  ;;  %v9769_v22 = vshll.u32 %v9729_v28, 8 }
0x1110   :  { %vm11223_vm15 = vcmp.lt.s32.totalorder %v11222_v37, 0  ;;  %v9758_v27 = vsel %vm9756_vm5, %v9746_v57, 2102212464  ;;  %v9762_v51 = vsel %vm9756_vm5, %v9749_v41, 920167782  ;;  %v11224_v6 = vadd.s32 4294967169, %v9942_v58 }
0x1111   :  { %v9905_v16 = vsel %vm11223_vm15, 0, %v11222_v37  ;;  %v9763_v55 = vsel %vm9755_vm0, %v9746_v57, %v9762_v51  ;;  %v9766_v59 = vsel %vm9756_vm5, %v9752_v14, 1326507024  ;;  %v9759_v33 = vsel %vm9755_vm0, %v9743_v48, %v9758_v27 }
0x1112   :  { %v9906_v2 = vsub.s32 32, %v9905_v16  ;;  %v9910_v15 = vsub.s32 4294967266, %v9905_v16  ;;  %v9907_v39 = vshll.u32 %v14773_v26, %v9905_v16  ;;  %v9764_v45 = vsel %vm9754_vm3, %v9761_v30, %v9763_v55 }
0x1113   :  { %v9767_v38 = vsel %vm9755_vm0, %v9749_v41, %v9766_v59  ;;  %v14848_v37 = vmul.u32.u64.low %v9769_v22, %v9764_v45  ;;  %v14849_v23 = vmul.u32.u64.high %v9769_v22, %v9764_v45, %v14848_v37  ;;  %v9371_v28 = vshll.u32 %v14685_v42, %v14766_v13 }
0x1114   :  { %v9908_v56 = vshrl.u32 %v9890_v63, %v9906_v2  ;;  %v9911_v18 = vadd.s32 127, %v9910_v15  ;;  %v9757_v63 = vsel %vm9753_vm2, %v9737_v47, %v9740_v9  ;;  %v9768_v12 = vsel %vm9754_vm3, %v9765_v36, %v9767_v38 }
0x1115   :  { %v14838_v26 = vpop.eup %12189  ;;  %v14854_v58 = vand.u32 3, %v9707_v1  ;;  %v9921_v21 = vsel %vm9836_vm14, %v9920_v8, %v14764_v62  ;;  %v14859_v9 = vmul.u32.u64.low %v9769_v22, %v9768_v12  ;;  %v14860_v57 = vmul.u32.u64.high %v9769_v22, %v9768_v12, %v14859_v9 }
0x1116   :  { %v9909_v35 = vor.u32 %v9908_v56, %v9907_v39  ;;  %v9912_v34 = vshll.u32 %v9911_v18, 23  ;;  %v14864_v48 = vand.u32 8388607, %v9938_v3  ;;  %v9948_v43 = vadd.s32 1, %v11224_v6  ;;  %v12192_v47 = vpop.eup %12191 }
0x1117   :  { %v14869_v41 = vshrl.u32 %v14791_v60, %v9370_v40  ;;  %v9760_v14 = vsel %vm9754_vm3, %v9757_v63, %v9759_v33  ;;  %v9376_v62 = vshll.u32 %v14797_v61, 23  ;;  %v9923_v8 = vsel %vm14823_vm4, 0, %v9921_v21 }
0x1118   :  { %v9913_v25 = vor.u32 4788187, %v9912_v34  ;;  %v9916_v16 = vcvt.s32.f32 %v9909_v35  ;;  %v9779_v2 = vadd.s32 1, %v14849_v23  ;;  %vm9949_vm1 = vcmp.gt.s32.totalorder %v9948_v43, 0 }
0x1119   :  { %vm9713_vm6 = vcmp.eq.s32.totalorder %v14854_v58, 0  ;;  %vm9716_vm7 = vcmp.eq.s32.totalorder %v14854_v58, 2  ;;  %v14881_v60 = vrot.slane %v14731_v53, %v13570_v29  ;;  %v14885_v49 = vrot.slane %v14735_v50, %v13570_v29 }
0x111a   :  { %v9914_v1 = vand.u32 2147483647, %v9913_v25  ;;  %v9950_v15 = vsel %vm9949_vm1, %v9948_v43, 0  ;;  %v9776_v39 = vmul.u32 %v9769_v22, %v9760_v14  ;;  %vm9778_vm8 = vc.u32 %v14860_v57, %v14848_v37 }
0x111b   :  { %v9946_v27 = vor.u32 8388608, %v14864_v48  ;;  %v9952_v30 = vand.u32 31, %v9950_v15  ;;  %v9717_v51 = vxor.u32 2147483648, %v14838_v26  ;;  %v9927_v18 = vadd.s32 3, %v9923_v8 }
0x111c   :  { %v9917_v40 = vmul.f32 %v9916_v16, %v9914_v1  ;;  %v9780_v55 = vsel %vm9778_vm8, %v9779_v2, %v14849_v23  ;;  %vm9712_vm9 = vcmp.lt.s32.totalorder %v14854_v58, 2  ;;  %v9714_v36 = vxor.u32 2147483648, %v12192_v47 }
0x111d   :  { %v9781_v45 = vadd.s32 %v9780_v55, %v9776_v39  ;;  %v14893_v59 = vshrl.u32 %v9950_v15, 5  ;;  %v9953_v6 = vsub.s32 32, %v9952_v30  ;;  %v9955_v35 = vshll.u32 %v15155_v46, %v9952_v30 }
0x111e   :  { %v9918_v56 = vxor.u32 2147483648, %v9917_v40  ;;  %v9958_v34 = vshll.u32 %v15156_v7, %v9952_v30  ;;  %v9961_v63 = vshll.u32 %v15157_v5, %v9952_v30  ;;  %v9964_v23 = vshll.u32 %v15158_v11, %v9952_v30 }
0x111f   :  { %v9782_v33 = vadd.s32 536870912, %v9781_v45  ;;  %v9956_v12 = vshrl.u32 %v15156_v7, %v9953_v6  ;;  %v9959_v25 = vshrl.u32 %v15157_v5, %v9953_v6  ;;  %v9962_v21 = vshrl.u32 %v15158_v11, %v9953_v6 }
0x1120   :  { %v9919_v22 = vsel %vm9836_vm14, %v9918_v56, %v9917_v40  ;;  %v9965_v9 = vshrl.u32 %v15159_v10, %v9953_v6  ;;  %v9968_v19 = vshrl.u32 %v15160_v20, %v9953_v6  ;;  %v9967_v14 = vshll.u32 %v15159_v10, %v9952_v30 }
0x1121   :  { %v9922_v38 = vsel %vm14823_vm4, %v14511_v4, %v9919_v22  ;;  %v14909_v48 = vshrl.u32 %v9782_v33, 30  ;;  %v9957_v43 = vor.u32 %v9956_v12, %v9955_v35  ;;  %v9960_v1 = vor.u32 %v9959_v25, %v9958_v34 }
0x1122   :  { %12193 = vcosq.f32 %v9922_v38  ;;  %v9963_v16 = vor.u32 %v9962_v21, %v9961_v63  ;;  %v9966_v7 = vor.u32 %v9965_v9, %v9964_v23  ;;  %v9715_v5 = vsel %vm9713_vm6, %v14838_v26, %v9714_v36 }
0x1123   :  { %12195 = vsinq.f32 %v9922_v38  ;;  %v9718_v11 = vsel %vm9716_vm7, %v9717_v51, %v12192_v47  ;;  %v9784_v2 = vshll.u32 %v14909_v48, 30  ;;  %vm9970_vm11 = vcmp.lt.s32.totalorder %v14893_v59, 1 }
0x1124   :  { %v10143_v40 = vand.u32 3, %v9923_v8  ;;  %v9969_v15 = vor.u32 %v9968_v19, %v9967_v14  ;;  %vm9973_vm12 = vcmp.lt.s32.totalorder %v14893_v59, 4  ;;  %v9978_v20 = vsel %vm9970_vm11, %v9957_v43, %v9960_v1 }
0x1125   :  { %v9928_v39 = vand.u32 3, %v9927_v18  ;;  %v14923_v10 = vsub.s32 %v9781_v45, %v9784_v2  ;;  %vm9972_vm13 = vcmp.lt.s32.totalorder %v14893_v59, 3  ;;  %v9979_v26 = vsel %vm9973_vm12, %v9966_v7, 920167782 }
0x1126   :  { %v9719_v47 = vsel %vm9712_vm9, %v9715_v5, %v9718_v11  ;;  %vm9971_vm14 = vcmp.lt.s32.totalorder %v14893_v59, 2  ;;  %v9980_v8 = vsel %vm9972_vm13, %v9963_v16, %v9979_v26  ;;  %v9986_v30 = vshll.u32 %v9946_v27, 8 }
0x1127   :  { %vm9926_vm15 = vweird.f32 %v14511_v4  ;;  %v9787_v51 = vsub.s32 0, %v14923_v10  ;;  %v9954_v56 = vshrl.u32 %v15155_v46, %v9953_v6  ;;  %v9975_v18 = vsel %vm9973_vm12, %v9963_v16, 2102212464 }
0x1128   :  { %v9981_v55 = vsel %vm9971_vm14, %v9978_v20, %v9980_v8  ;;  %v9982_v58 = vsel %vm9970_vm11, %v9960_v1, %v9963_v16  ;;  %v9983_v36 = vsel %vm9973_vm12, %v9969_v15, 1326507024  ;;  %vm10144_vm2 = vcmp.lt.s32.totalorder %v10143_v40, 2 }
0x1129   :  { %v14944_v45 = vmul.u32.u64.low %v9986_v30, %v9981_v55  ;;  %v14945_v27 = vmul.u32.u64.high %v9986_v30, %v9981_v55, %v14944_v45  ;;  %vm10145_vm3 = vcmp.eq.s32.totalorder %v10143_v40, 0  ;;  %vm10148_vm4 = vcmp.eq.s32.totalorder %v10143_v40, 2 }
0x112a   :  { %v11217_v46 = vmin.u32 %v9787_v51, %v14923_v10  ;;  %v9720_v22 = vsel %vm9710_vm10, nan, %v9719_v47  ;;  %vm9929_vm0 = vcmp.lt.s32.totalorder %v9928_v39, 2  ;;  %v9974_v35 = vsel %vm9970_vm11, %v9954_v56, %v9957_v43 }
0x112b   :  { %v9984_v34 = vsel %vm9972_vm13, %v9966_v7, %v9983_v36  ;;  %v9976_v12 = vsel %vm9972_vm13, %v9960_v1, %v9975_v18  ;;  %vm9933_vm5 = vcmp.eq.s32.totalorder %v9928_v39, 2  ;;  %vm9930_vm1 = vcmp.eq.s32.totalorder %v9928_v39, 0 }
0x112c   :  { %v12194_v6 = vpop.eup %12193  ;;  %v9789_v33 = vclz %v11217_v46  ;;  %v9985_v23 = vsel %vm9971_vm14, %v9982_v58, %v9984_v34  ;;  %v9832_v16 = vmul.f32 %v14881_v60, %v9720_v22  ;;  %v9977_v1 = vsel %vm9971_vm14, %v9974_v35, %v9976_v12 }
0x112d   :  { %v12196_v63 = vpop.eup %12195  ;;  %v9934_v38 = vxor.u32 2147483648, %v12194_v6  ;;  %v14959_v44 = vmul.u32.u64.low %v9986_v30, %v9985_v23  ;;  %v14960_v21 = vmul.u32.u64.high %v9986_v30, %v9985_v23, %v14959_v44  ;;  %v9996_v2 = vadd.s32 1, %v14945_v27 }
0x112e   :  { %v9931_v25 = vxor.u32 2147483648, %v12196_v63  ;;  %v11218_v19 = vadd.s32 4294967294, %v9789_v33  ;;  %v9377_v15 = vor.u32 4788187, %v9376_v62  ;;  %v9373_v40 = vor.u32 %v14869_v41, %v9371_v28 }
0x112f   :  { %v9935_v9 = vsel %vm9933_vm5, %v9934_v38, %v12196_v63  ;;  %v10150_v43 = vsel %vm10148_vm4, %v9934_v38, %v12196_v63  ;;  %v9993_v56 = vmul.u32 %v9986_v30, %v9977_v1  ;;  %vm9995_vm7 = vc.u32 %v14960_v21, %v14944_v45 }
0x1130   :  { %v9932_v7 = vsel %vm9930_vm1, %v12194_v6, %v9931_v25  ;;  %v10147_v14 = vsel %vm10145_vm3, %v12194_v6, %v9931_v25  ;;  %vm11219_vm6 = vcmp.lt.s32.totalorder %v11218_v19, 0  ;;  %v9777_v18 = vadd.s32 %v14848_v37, %v14860_v57 }
0x1131   :  { %v9936_v5 = vsel %vm9929_vm0, %v9932_v7, %v9935_v9  ;;  %v10151_v11 = vsel %vm10144_vm2, %v10147_v14, %v10150_v43  ;;  %v9792_v47 = vsel %vm11219_vm6, 0, %v11218_v19  ;;  %v9997_v55 = vsel %vm9995_vm7, %v9996_v2, %v14945_v27 }
0x1132   :  { %v9937_v20 = vsel %vm9926_vm15, nan, %v9936_v5  ;;  %v10152_v26 = vsel %vm9926_vm15, nan, %v10151_v11  ;;  %v9793_v39 = vsub.s32 32, %v9792_v47  ;;  %v9797_v51 = vsub.s32 4294967266, %v9792_v47 }
0x1133   :  { %v10044_v8 = vrot.slane %v9937_v20, 6  ;;  %v10264_v59 = vmul.f32 %v14885_v49, %v10152_v26  ;;  %v9378_v58 = vand.u32 2147483647, %v9377_v15  ;;  %v9998_v46 = vadd.s32 %v9997_v55, %v9993_v56 }
0x1134   :  { %v9798_v36 = vadd.s32 127, %v9797_v51  ;;  %v9795_v22 = vshrl.u32 %v9777_v18, %v9793_v39  ;;  %v9380_v42 = vcvt.s32.f32 %v9373_v40  ;;  %v9794_v30 = vshll.u32 %v14923_v10, %v9792_v47 }
0x1135   :  { %v10048_v61 = vmul.f32 %v10044_v8, %v9832_v16  ;;  %v10268_v62 = vrot.slane %v10264_v59, 6  ;;  %v9999_v28 = vadd.s32 536870912, %v9998_v46  ;;  %vm9300_vm8 = vcmp.lt.s32.totalorder %v14502_v54, 0 }
0x1136   :  { %v9799_v13 = vshll.u32 %v9798_v36, 23  ;;  %v9381_v35 = vmul.f32 %v9380_v42, %v9378_v58  ;;  %v9796_v33 = vor.u32 %v9795_v22, %v9794_v30  ;;  %vm14995_vm9 = vcmp.le.f32.partialorder %v9298_v0, 0.7853982 }
0x1137   :  { %v10272_v6 = vadd.f32 %v10268_v62, %v10048_v61  ;;  %v14987_v63 = vshrl.u32 %v9999_v28, 30  ;;  %v9384_v5 = vsub.s32 4, %v14657_v32  ;;  %vm9723_vm10 = vcmp.lt.s32.totalorder %v14754_v17, 0 }
0x1138   :  { %v9800_v34 = vor.u32 4788187, %v9799_v13  ;;  %v9382_v27 = vxor.u32 2147483648, %v9381_v35  ;;  %v9803_v23 = vcvt.s32.f32 %v9796_v33  ;;  %v10291_v0 = vrot.slane %v14735_v50, %v13573_v31 }
0x1139   :  { %v10274_v41 = vmax.f32 %v10272_v6, 1e-06  ;;  %v10001_v37 = vshll.u32 %v14987_v63, 30  ;;  %v10317_v2 = vrot.slane %v14731_v53, %v13573_v31  ;;  %vm15019_vm12 = vcmp.le.f32.partialorder %v9721_v24, 0.7853982 }
0x113a   :  { %v9801_v57 = vand.u32 2147483647, %v9800_v34  ;;  %v9383_v10 = vsel %vm9300_vm8, %v9382_v27, %v9381_v35  ;;  %v9807_v18 = vsub.s32 4, %v14909_v48  ;;  %vm9940_vm13 = vcmp.lt.s32.totalorder %v14516_v52, 0 }
0x113b   :  { %v10278_v38 = vrot.slane %v10274_v41, 6  ;;  %v10002_v12 = vsub.s32 %v9998_v46, %v10001_v37  ;;  %v9386_v16 = vsel %vm14995_vm9, %v14502_v54, %v9383_v10  ;;  %vm9939_vm14 = vcmp.le.f32.partialorder %v9938_v3, 0.7853982 }
0x113c   :  { %v9804_v44 = vmul.f32 %v9803_v23, %v9801_v57  ;;  %v9808_v22 = vsel %vm9723_vm10, %v9807_v18, %v14909_v48  ;;  %vm9390_vm7 = vweird.f32 %v14502_v54 }
0x113d   :  { %12197 = vrcp.f32 %v10278_v38  ;;  %v10004_v25 = vsub.s32 0, %v10002_v12  ;;  %v9810_v35 = vsel %vm15019_vm12, 0, %v9808_v22 }
0x113e   :  { %v9805_v7 = vxor.u32 2147483648, %v9804_v44  ;;  %12199 = vcosq.f32 %v9386_v16  ;;  %v9814_v57 = vand.u32 3, %v9810_v35 }
0x113f   :  { %v11225_v9 = vmin.u32 %v10004_v25, %v10002_v12  ;;  %12201 = vsinq.f32 %v9386_v16 }
0x1140   :  { %v9806_v15 = vsel %vm9723_vm10, %v9805_v7, %v9804_v44  ;;  %vm9816_vm5 = vcmp.eq.s32.totalorder %v9814_v57, 0  ;;  %vm9819_vm1 = vcmp.eq.s32.totalorder %v9814_v57, 2  ;;  %vm10030_vm10 = vweird.f32 %v14516_v52 }
0x1141   :  { %v10006_v19 = vclz %v11225_v9 }
0x1143   :  { %v11226_v14 = vadd.s32 4294967294, %v10006_v19 }
0x1145   :  { %vm11227_vm11 = vcmp.lt.s32.totalorder %v11226_v14, 0 }
0x1146   :  { %v10009_v20 = vsel %vm11227_vm11, 0, %v11226_v14 }
0x1147   :  { %v12198_v1 = vpop.eup %12197  ;;  %v10010_v8 = vsub.s32 32, %v10009_v20  ;;  %v10014_v53 = vsub.s32 4294967266, %v10009_v20 }
0x1148   :  { %v10283_v11 = vmul.f32 %v12198_v1, %v14511_v4  ;;  %v9994_v4 = vadd.s32 %v14944_v45, %v14960_v21  ;;  %v9385_v45 = vsel %vm9300_vm8, %v9384_v5, %v14657_v32  ;;  %v10011_v21 = vshll.u32 %v10002_v12, %v10009_v20  ;;  %v12200_v62 = vpop.eup %12199 }
0x1149   :  { %v10015_v40 = vadd.s32 127, %v10014_v53  ;;  %v9387_v56 = vsel %vm14995_vm9, 0, %v9385_v45  ;;  %v12202_v46 = vpop.eup %12201  ;;  %v10024_v32 = vsub.s32 4, %v14987_v63  ;;  %v9398_v41 = vxor.u32 2147483648, %v12200_v62 }
0x114a   :  { %v10286_v26 = vmul.f32 %v10283_v11, %v14881_v60  ;;  %v15013_v47 = vmul.f32 %v10283_v11, %v14885_v49  ;;  %v9809_v60 = vsel %vm15019_vm12, %v14754_v17, %v9806_v15  ;;  %v10012_v49 = vshrl.u32 %v9994_v4, %v10010_v8 }
0x114b   :  { %12203 = vcosq.f32 %v9809_v60  ;;  %v10016_v51 = vshll.u32 %v10015_v40, 23  ;;  %v9391_v55 = vadd.s32 3, %v9387_v56  ;;  %v9395_v28 = vxor.u32 2147483648, %v12202_v46 }
0x114c   :  { %v15023_v59 = vmul.f32 %v10291_v0, %v10286_v26  ;;  %v15025_v39 = vmul.f32 %v10317_v2, %v10286_v26  ;;  %v10013_v24 = vor.u32 %v10012_v49, %v10011_v21  ;;  %12205 = vsinq.f32 %v9809_v60 }
0x114d   :  { %v10017_v61 = vor.u32 4788187, %v10016_v51  ;;  %v9392_v42 = vand.u32 3, %v9391_v55  ;;  %v10025_v38 = vsel %vm9940_vm13, %v10024_v32, %v14987_v63  ;;  %v9598_v37 = vand.u32 3, %v9387_v56 }
0x114e   :  { %v10020_v36 = vcvt.s32.f32 %v10013_v24  ;;  %v10027_v27 = vsel %vm9939_vm14, 0, %v10025_v38  ;;  %vm9815_vm8 = vcmp.lt.s32.totalorder %v9814_v57, 2  ;;  %vm9813_vm9 = vweird.f32 %v14754_v17 }
0x114f   :  { %v10018_v58 = vand.u32 2147483647, %v10017_v61  ;;  %vm9394_vm15 = vcmp.eq.s32.totalorder %v9392_v42, 0  ;;  %vm9397_vm2 = vcmp.eq.s32.totalorder %v9392_v42, 2  ;;  %vm9600_vm3 = vcmp.eq.s32.totalorder %v9598_v37, 0 }
0x1150   :  { %v9396_v12 = vsel %vm9394_vm15, %v12200_v62, %v9395_v28  ;;  %v9399_v23 = vsel %vm9397_vm2, %v9398_v41, %v12202_v46  ;;  %vm9603_vm4 = vcmp.eq.s32.totalorder %v9598_v37, 2  ;;  %vm9393_vm0 = vcmp.lt.s32.totalorder %v9392_v42, 2 }
0x1151   :  { %v10021_v6 = vmul.f32 %v10020_v36, %v10018_v58  ;;  %v9602_v3 = vsel %vm9600_vm3, %v12200_v62, %v9395_v28  ;;  %v9605_v10 = vsel %vm9603_vm4, %v9398_v41, %v12202_v46  ;;  %v10031_v63 = vadd.s32 3, %v10027_v27 }
0x1152   :  { %v9400_v9 = vsel %vm9393_vm0, %v9396_v12, %v9399_v23  ;;  %vm9599_vm6 = vcmp.lt.s32.totalorder %v9598_v37, 2  ;;  %v10246_v1 = vand.u32 3, %v10027_v27  ;;  %v11242_v46 = vclamps-f32 %v15013_v47, 1.0 }
0x1153   :  { %v10022_v13 = vxor.u32 2147483648, %v10021_v6  ;;  %v9606_v16 = vsel %vm9599_vm6, %v9602_v3, %v9605_v10  ;;  %v9401_v7 = vsel %vm9390_vm7, nan, %v9400_v9  ;;  %v10032_v14 = vand.u32 3, %v10031_v63 }
0x1154   :  { %v9607_v0 = vsel %vm9390_vm7, nan, %v9606_v16  ;;  %v9831_v15 = vrot.slane %v9401_v7, %v13570_v29  ;;  %vm10251_vm12 = vcmp.eq.s32.totalorder %v10246_v1, 2  ;;  %vm10247_vm2 = vcmp.lt.s32.totalorder %v10246_v1, 2 }
0x1155   :  { %v12204_v30 = vpop.eup %12203  ;;  %v10023_v34 = vsel %vm9940_vm13, %v10022_v13, %v10021_v6  ;;  %vm10037_vm11 = vcmp.eq.s32.totalorder %v10032_v14, 2  ;;  %vm10034_vm13 = vcmp.eq.s32.totalorder %v10032_v14, 0  ;;  %vm10033_vm15 = vcmp.lt.s32.totalorder %v10032_v14, 2 }
0x1156   :  { %v12206_v33 = vpop.eup %12205  ;;  %v10026_v48 = vsel %vm9939_vm14, %v14516_v52, %v10023_v34  ;;  %v9820_v44 = vxor.u32 2147483648, %v12204_v30  ;;  %vm10248_vm14 = vcmp.eq.s32.totalorder %v10246_v1, 0  ;;  %v10263_v45 = vrot.slane %v9607_v0, %v13570_v29 }
0x1157   :  { %12207 = vcosq.f32 %v10026_v48  ;;  %v9817_v25 = vxor.u32 2147483648, %v12206_v33  ;;  %v10295_v29 = vrot.slane %v9607_v0, %v13573_v31  ;;  %v10321_v32 = vrot.slane %v9401_v7, %v13573_v31 }
0x1158   :  { %12209 = vsinq.f32 %v10026_v48  ;;  %v9821_v19 = vsel %vm9819_vm1, %v9820_v44, %v12206_v33  ;;  %v11236_v42 = vclamps-f32 %v15023_v59, 1.0  ;;  %v11239_v13 = vclamps-f32 %v15025_v39, 1.0 }
0x1159   :  { %v9818_v43 = vsel %vm9816_vm5, %v12204_v30, %v9817_v25 }
0x115a   :  { %v9822_v5 = vsel %vm9815_vm8, %v9818_v43, %v9821_v19 }
0x115b   :  { %v9823_v26 = vsel %vm9813_vm9, nan, %v9822_v5 }
0x115c   :  { %v9833_v60 = vmul.f32 %v9831_v15, %v9823_v26 }
0x1161   :  { %v12208_v11 = vpop.eup %12207 }
0x1162   :  { %v12210_v2 = vpop.eup %12209  ;;  %v10038_v20 = vxor.u32 2147483648, %v12208_v11 }
0x1163   :  { %v10035_v4 = vxor.u32 2147483648, %v12210_v2 }
0x1164   :  { %v10039_v54 = vsel %vm10037_vm11, %v10038_v20, %v12210_v2  ;;  %v10253_v8 = vsel %vm10251_vm12, %v10038_v20, %v12210_v2 }
0x1165   :  { %v10036_v50 = vsel %vm10034_vm13, %v12208_v11, %v10035_v4  ;;  %v10250_v53 = vsel %vm10248_vm14, %v12208_v11, %v10035_v4 }
0x1166   :  { %v10040_v49 = vsel %vm10033_vm15, %v10036_v50, %v10039_v54  ;;  %v10254_v17 = vsel %vm10247_vm2, %v10250_v53, %v10253_v8 }
0x1167   :  { %v10041_v21 = vsel %vm10030_vm10, nan, %v10040_v49  ;;  %v10255_v40 = vsel %vm10030_vm10, nan, %v10254_v17 }
0x1168   :  { %v10045_v24 = vrot.slane %v10041_v21, 6  ;;  %v10265_v51 = vmul.f32 %v10263_v45, %v10255_v40 }
0x116a   :  { %v10049_v56 = vmul.f32 %v10045_v24, %v9833_v60  ;;  %v10269_v61 = vrot.slane %v10265_v51, 6 }
0x116c   :  { %v10273_v62 = vadd.f32 %v10269_v61, %v10049_v56 }
0x116e   :  { %v10275_v18 = vmax.f32 %v10273_v62, 1e-06 }
0x1170   :  { %v10279_v55 = vrot.slane %v10275_v18, 6 }
0x1172   :  { %12211 = vrcp.f32 %v10279_v55 }
0x117c   :  { %v12212_v58 = vpop.eup %12211 }
0x117d   :  { %v10285_v36 = vmul.f32 %v12212_v58, %v14516_v52 }
0x117f   :  { %v10287_v6 = vmul.f32 %v10285_v36, %v9831_v15  ;;  %v10342_v22 = vmul.f32 %v10285_v36, %v10263_v45 }
0x1181   :  { %v10297_v28 = vmul.f32 %v10295_v29, %v10287_v6  ;;  %v10323_v41 = vmul.f32 %v10321_v32, %v10287_v6  ;;  %v11243_v30 = vclamps-f32 %v10342_v22, 1.0 }
0x1183   :  { %v11237_v35 = vclamps-f32 %v10297_v28, 1.0  ;;  %v11240_v52 = vclamps-f32 %v10323_v41, 1.0  ;;  %v10349_v34 = vcombine.high %v11242_v46, %v11243_v30 }
0x1185   :  { %v10304_v38 = vcombine.high %v11236_v42, %v11237_v35  ;;  %v10330_v33 = vcombine.high %v11239_v13, %v11240_v52  ;;  %11246 = vst.sshfl [vmem:[%s13214_s4 + $0x8] sm:$0x33 pattern:$0x76325410] %v10349_v34 }
0x1187   :  { %11238 = vst.sshfl [vmem:[%s13214_s4] sm:$0x33 pattern:$0x76325410] %v10304_v38 }
0x1188   :  { %11245 = vst.sshfl [vmem:[%s13214_s4 + $0x4] sm:$0x33 pattern:$0x76325410] %v10330_v33 }
0x1189   :  { %10368 = vsyncpa [#allocation3], 1 }
0x118a   :  { %10369 = vsyncpa [#allocation5], 1 }
0x118b   :  { %10370 = vsyncpa [#allocation8], 1 }
0x118c   :  { %10371 = vsyncpa [#allocation11], 1 }
0x118d   :  { %10372 = vsyncpa [#allocation14], 1 }
0x118e   :  { %10373 = vsyncpa [#allocation17], 1 }
0x118f   :  { %10374 = vsyncpa [#allocation20], 1 }
0x1190   :  { %10375 = vsyncpa [#allocation23], 1 }
0x1191   :  { %10376 = vsyncpa [#allocation26], 1 }
0x1192   :  { %10377 = vsyncpa [#allocation29], 1 }
0x1193   :  { %10378 = vsyncpa [#allocation32], 1 }
0x1194   :  { %10379 = vsyncpa [#allocation35], 1 }
0x1195   :  { %10380 = vsyncpa [#allocation38], 1 }
0x1196   :  { %10381 = vsyncpa [#allocation41], 1 }
0x1197   :  { %10382 = vsyncpa [#allocation44], 1 }
0x1198   :  { %10383 = vsyncpa [#allocation47], 1 }

</bundles_post_ra>
